<compile_context>
chip_gen: v7x
topology: tpu7x:2x2x1
jax: 0.10.0
libtpu: 0.0.40
codegen_flags: <defaults>
</compile_context>

<pallas_src>
import numpy as np
import jax
import jax.numpy as jnp
from jax.experimental import pallas as pl
from jax.experimental.pallas import tpu as pltpu

BN_EPS = 1e-5
# eval-mode BatchNorm with gamma=1, beta=0, running_mean=0, running_var=1
S0 = float(1.0 / np.sqrt(1.0 + BN_EPS))
POOL_SCALES = (1, 2, 3, 6)


def _round_up(x, m):
    return (x + m - 1) // m * m


def _make_divisible(v, divisor, min_value=None):
    if min_value is None:
        min_value = divisor
    new_v = max(min_value, int(v + divisor / 2) // divisor * divisor)
    if new_v < 0.9 * v:
        new_v += divisor
    return new_v


def _pick_base_tile():
    """128-wide tiles on v5-class chips (4x128^2 MXU); 256 on v6e/v7x (2x256^2 MXU)."""
    try:
        kind = jax.devices()[0].device_kind.lower()
    except Exception:
        return 256
    if "v5" in kind:
        return 128
    return 256


_BASE_TILE = _pick_base_tile()
_MIN_PALLAS_M = 128   # below this, pad/launch overhead dominates -> plain jnp.dot


# --------------------------------------------------------------------------
# Pallas matmul kernels (bf16 operands, f32 accumulation, fused bias/residual)
# --------------------------------------------------------------------------

def _mm_kernel_1k(x_ref, w_ref, b_ref, o_ref):
    """Single-K-step fast path: out = x @ w + bias."""
    o_ref[...] = jnp.dot(x_ref[...], w_ref[...],
                         preferred_element_type=jnp.float32) + b_ref[...]


def _mm_res_kernel_1k(x_ref, w_ref, b_ref, r_ref, o_ref):
    """Single-K-step fast path with fused residual add."""
    o_ref[...] = (jnp.dot(x_ref[...], w_ref[...],
                          preferred_element_type=jnp.float32)
                  + b_ref[...] + r_ref[...])


def _mm_kernel(x_ref, w_ref, b_ref, o_ref, acc_ref):
    """K-accumulated matmul: out = x @ w + bias."""
    @pl.when(pl.program_id(2) == 0)
    def _():
        acc_ref[...] = jnp.zeros_like(acc_ref)

    acc_ref[...] += jnp.dot(x_ref[...], w_ref[...],
                            preferred_element_type=jnp.float32)

    @pl.when(pl.program_id(2) == pl.num_programs(2) - 1)
    def _():
        o_ref[...] = acc_ref[...] + b_ref[...]


def _mm_res_kernel(x_ref, w_ref, b_ref, r_ref, o_ref, acc_ref):
    """K-accumulated matmul with fused residual add in the epilogue."""
    @pl.when(pl.program_id(2) == 0)
    def _():
        acc_ref[...] = jnp.zeros_like(acc_ref)

    acc_ref[...] += jnp.dot(x_ref[...], w_ref[...],
                            preferred_element_type=jnp.float32)

    @pl.when(pl.program_id(2) == pl.num_programs(2) - 1)
    def _():
        o_ref[...] = acc_ref[...] + b_ref[...] + r_ref[...]


def pallas_matmul_bias(x, w, bias, residual=None):
    """x: (M, K), w: (K, N) [bf16], bias: (N,) f32, residual: (M, N) f32 or None.

    Returns (M, N) float32. Operands are fed to the MXU in bf16; accumulation is f32.
    """
    M, K = x.shape
    K2, N = w.shape
    assert K == K2

    if M < _MIN_PALLAS_M:
        # Tiny GEMMs (PPM pooled branches, 4x4-resolution layers): padding to a
        # full 128-tile would be >90% wasted work -> let XLA handle them.
        out = jnp.dot(x.astype(jnp.bfloat16), w.astype(jnp.bfloat16),
                      preferred_element_type=jnp.float32) + bias[None, :]
        if residual is not None:
            out = out + residual
        return out

    base = _BASE_TILE
    tm = min(base, _round_up(M, 128))
    tn = min(base, _round_up(N, 128))
    tk = min(base, _round_up(K, 128))
    Mp, Kp, Np = _round_up(M, tm), _round_up(K, tk), _round_up(N, tn)

    xp = jnp.pad(x, ((0, Mp - M), (0, Kp - K))).astype(jnp.bfloat16)
    wp = jnp.pad(w, ((0, Kp - K), (0, Np - N))).astype(jnp.bfloat16)
    bp = jnp.pad(bias, (0, Np - N)).reshape(1, Np).astype(jnp.float32)
    has_res = residual is not None
    if has_res:
        rp = jnp.pad(residual, ((0, Mp - M), (0, Np - N))).astype(jnp.float32)

    if Kp == tk:
        # Single K step: no accumulator scratch, no pl.when branches.
        grid = (Mp // tm, Np // tn)
        in_specs = [pl.BlockSpec((tm, tk), lambda i, j: (i, 0)),
                    pl.BlockSpec((tk, tn), lambda i, j: (0, j)),
                    pl.BlockSpec((1, tn), lambda i, j: (0, j))]
        args = [xp, wp, bp]
        kernel = _mm_kernel_1k
        if has_res:
            in_specs.append(pl.BlockSpec((tm, tn), lambda i, j: (i, j)))
            args.append(rp)
            kernel = _mm_res_kernel_1k
        out = pl.pallas_call(
            kernel,
            out_shape=jax.ShapeDtypeStruct((Mp, Np), jnp.float32),
            grid_spec=pltpu.PrefetchScalarGridSpec(
                num_scalar_prefetch=0,
                grid=grid,
                in_specs=in_specs,
                out_specs=pl.BlockSpec((tm, tn), lambda i, j: (i, j))),
            compiler_params=pltpu.CompilerParams(
                dimension_semantics=("parallel", "parallel")),
        )(*args)
    else:
        grid = (Mp // tm, Np // tn, Kp // tk)
        in_specs = [pl.BlockSpec((tm, tk), lambda i, j, k: (i, k)),
                    pl.BlockSpec((tk, tn), lambda i, j, k: (k, j)),
                    pl.BlockSpec((1, tn), lambda i, j, k: (0, j))]
        args = [xp, wp, bp]
        kernel = _mm_kernel
        if has_res:
            in_specs.append(pl.BlockSpec((tm, tn), lambda i, j, k: (i, j)))
            args.append(rp)
            kernel = _mm_res_kernel
        out = pl.pallas_call(
            kernel,
            out_shape=jax.ShapeDtypeStruct((Mp, Np), jnp.float32),
            grid_spec=pltpu.PrefetchScalarGridSpec(
                num_scalar_prefetch=0,
                grid=grid,
                in_specs=in_specs,
                out_specs=pl.BlockSpec((tm, tn), lambda i, j, k: (i, j)),
                scratch_shapes=[pltpu.VMEM((tm, tn), jnp.float32)]),
            compiler_params=pltpu.CompilerParams(
                dimension_semantics=("parallel", "parallel", "arbitrary")),
        )(*args)
    return out[:M, :N]


# --------------------------------------------------------------------------
# Pallas depthwise kernel (lane-dense Wo*C rows, no major-axis transpose)
# --------------------------------------------------------------------------

def _dw_kernel(p_ref, w_ref, b_ref, o_ref):
    """out[m, l] = sum_k p[k, m, l] * w[k, l] + b[l]   (l = flattened Wo*C)."""
    kk = p_ref.shape[0]
    acc = p_ref[0] * w_ref[0]
    for k in range(1, kk):
        acc = acc + p_ref[k] * w_ref[k]
    o_ref[...] = acc + b_ref[...]


def pallas_depthwise(patches, w_row, b_row):
    """patches: (KK, M, L), w_row: (KK, L), b_row: (L,) -> (M, L) float32."""
    KK, M, L = patches.shape
    Lp = _round_up(L, 128)
    # bound the (KK, tm, Lp) input block to ~4 MiB of VMEM (double-buffered ~8 MiB)
    cap = max(8, (4 * 1024 * 1024) // max(1, KK * Lp * 4) // 8 * 8)
    tm = max(8, min(256, min(cap, _round_up(M, 8))))
    Mp = _round_up(M, tm)

    pp = jnp.pad(patches, ((0, 0), (0, Mp - M), (0, Lp - L)))
    wb = jnp.pad(w_row, ((0, 0), (0, Lp - L))).reshape(KK, 1, Lp)
    bb = jnp.pad(b_row, (0, Lp - L)).reshape(1, Lp)

    out = pl.pallas_call(
        _dw_kernel,
        out_shape=jax.ShapeDtypeStruct((Mp, Lp), jnp.float32),
        grid_spec=pltpu.PrefetchScalarGridSpec(
            num_scalar_prefetch=0,
            grid=(Mp // tm,),
            in_specs=[pl.BlockSpec((KK, tm, Lp), lambda i: (0, i, 0)),
                      pl.BlockSpec((KK, 1, Lp), lambda i: (0, 0, 0)),
                      pl.BlockSpec((1, Lp), lambda i: (0, 0))],
            out_specs=pl.BlockSpec((tm, Lp), lambda i: (i, 0))),
        compiler_params=pltpu.CompilerParams(
            dimension_semantics=("parallel",)),
    )(pp, wb, bb)
    return out[:M, :L]


# --------------------------------------------------------------------------
# Conv / resize glue (plain JAX: im2col, gathers, reshapes)
# --------------------------------------------------------------------------

def extract_patches(x, k, stride, pad):
    """x: (N,H,W,C) -> (N,Ho,Wo,k*k,C), tap order = kh*k + kw."""
    if pad > 0:
        x = jnp.pad(x, ((0, 0), (pad, pad), (pad, pad), (0, 0)))
    N, H, W, C = x.shape
    Ho = (H - k) // stride + 1
    Wo = (W - k) // stride + 1
    taps = []
    for di in range(k):
        for dj in range(k):
            taps.append(x[:, di:di + stride * (Ho - 1) + 1:stride,
                          dj:dj + stride * (Wo - 1) + 1:stride, :])
    return jnp.stack(taps, axis=3)


def depthwise_conv(p, x):
    """Depthwise conv via per-tap shifted slices flattened to lane-dense rows."""
    k, stride, pad = p['k'], p['stride'], p['pad']
    if pad > 0:
        x = jnp.pad(x, ((0, 0), (pad, pad), (pad, pad), (0, 0)))
    N, H, W, C = x.shape
    Ho = (H - k) // stride + 1
    Wo = (W - k) // stride + 1
    taps = []
    for di in range(k):
        for dj in range(k):
            t = x[:, di:di + stride * (Ho - 1) + 1:stride,
                  dj:dj + stride * (Wo - 1) + 1:stride, :]
            taps.append(t.reshape(N * Ho, Wo * C))
    patches = jnp.stack(taps, axis=0)                               # (KK, N*Ho, Wo*C)
    w_row = jnp.tile(p['w'][:, None, :], (1, Wo, 1)).reshape(k * k, Wo * C)
    b_row = jnp.tile(p['b'][None, :], (Wo, 1)).reshape(Wo * C)
    out = pallas_depthwise(patches, w_row, b_row)                   # (N*Ho, Wo*C)
    return out.reshape(N, Ho, Wo, C)


def apply_conv(p, x, residual=None):
    """Apply a folded Conv(+BN) layer. p['kind'] in {'dense', 'dw'}.

    `residual` (NHWC, same shape as output) is fused into the matmul epilogue.
    """
    k, stride, pad = p['k'], p['stride'], p['pad']
    if p['kind'] == 'dense':
        if k == 1 and stride == 1 and pad == 0:
            N, H, W, C = x.shape
            res = residual.reshape(N * H * W, -1) if residual is not None else None
            out = pallas_matmul_bias(x.reshape(N * H * W, C), p['w'], p['b'], res)
            return out.reshape(N, H, W, -1)
        xb = x.astype(jnp.bfloat16)      # halve im2col HBM traffic
        patches = extract_patches(xb, k, stride, pad)
        N, Ho, Wo, KK, C = patches.shape
        res = residual.reshape(N * Ho * Wo, -1) if residual is not None else None
        out = pallas_matmul_bias(patches.reshape(N * Ho * Wo, KK * C),
                                 p['w'], p['b'], res)
        return out.reshape(N, Ho, Wo, -1)
    # depthwise
    assert residual is None
    return depthwise_conv(p, x)


def gelu(x):
    # exact erf-based GELU (PyTorch nn.GELU default)
    return jax.nn.gelu(x, approximate=False)


def bilinear_resize(x, out_h, out_w):
    """F.interpolate(mode='bilinear', align_corners=True) on NHWC."""
    N, H, W, C = x.shape

    def coords(out_s, in_s):
        if out_s == 1 or in_s == 1:
            return jnp.zeros((out_s,), jnp.float32)
        return jnp.arange(out_s, dtype=jnp.float32) * ((in_s - 1) / (out_s - 1))

    hy = coords(out_h, H)
    wx = coords(out_w, W)
    y0 = jnp.floor(hy).astype(jnp.int32)
    y1 = jnp.minimum(y0 + 1, H - 1)
    fy = hy - y0.astype(jnp.float32)
    x0 = jnp.floor(wx).astype(jnp.int32)
    x1 = jnp.minimum(x0 + 1, W - 1)
    fx = wx - x0.astype(jnp.float32)

    top = x[:, y0]
    bot = x[:, y1]
    v = top * (1.0 - fy)[None, :, None, None] + bot * fy[None, :, None, None]
    left = v[:, :, x0]
    right = v[:, :, x1]
    return left * (1.0 - fx)[None, None, :, None] + right * fx[None, None, :, None]


def adaptive_avg_pool(x, out_size):
    """nn.AdaptiveAvgPool2d(out_size) semantics on NHWC."""
    N, H, W, C = x.shape

    def bounds(in_s, out_s):
        starts = [(i * in_s) // out_s for i in range(out_s)]
        ends = [-(-((i + 1) * in_s) // out_s) for i in range(out_s)]
        return starts, ends

    hs, he = bounds(H, out_size)
    ws, we = bounds(W, out_size)
    rows = []
    for i in range(out_size):
        cols = []
        for j in range(out_size):
            cols.append(jnp.mean(x[:, hs[i]:he[i], ws[j]:we[j], :], axis=(1, 2)))
        rows.append(jnp.stack(cols, axis=1))
    return jnp.stack(rows, axis=1)


# --------------------------------------------------------------------------
# Deterministic parameter construction (BN folded, eval mode)
# --------------------------------------------------------------------------

class ParamGen:
    def __init__(self, seed=0):
        self._key = jax.random.PRNGKey(seed)
        self._i = 0

    def _next(self):
        self._i += 1
        return jax.random.fold_in(self._key, self._i)

    def conv_w(self, cout, cin_per_group, k, groups=1):
        fan_out = max(1, cout * k * k // groups)
        std = float(np.sqrt(2.0 / fan_out))
        return jax.random.normal(self._next(), (cout, cin_per_group, k, k),
                                 jnp.float32) * std


def make_conv_bn(pg, cin, cout, k, stride, pad, groups=1):
    """Conv2d(bias=False) + eval BatchNorm2d, folded. Dense weights stored in bf16."""
    if groups == 1:
        w = pg.conv_w(cout, cin, k)
        w_mat = (jnp.transpose(w, (2, 3, 1, 0)).reshape(k * k * cin, cout) * S0
                 ).astype(jnp.bfloat16)
        return dict(kind='dense', k=k, stride=stride, pad=pad,
                    w=w_mat, b=jnp.zeros((cout,), jnp.float32))
    assert groups == cin == cout, "only groups in {1, C} appear in this model"
    w = pg.conv_w(cout, 1, k, groups=groups)
    w_kkc = jnp.transpose(w.reshape(cout, k * k), (1, 0)) * S0
    return dict(kind='dw', k=k, stride=stride, pad=pad,
                w=w_kkc, b=jnp.zeros((cout,), jnp.float32))


def make_repvggdw(pg, ed):
    """RepVGGDW: bn(dw3x3_bn(x) + dw1x1(x) + x), folded into a single dw3x3."""
    w3 = jnp.transpose(pg.conv_w(ed, 1, 3, groups=ed).reshape(ed, 9), (1, 0))  # (9, ed)
    w1 = pg.conv_w(ed, 1, 1, groups=ed).reshape(ed)                            # conv1 weight
    # conv1 bias = 0, all BN: gamma=1, beta=0, mean=0, var=1  -> scale = S0, shift = 0
    w_eff = w3 * (S0 * S0)
    w_eff = w_eff.at[4].add((w1 + 1.0) * S0)   # identity + conv1 fold into center tap
    b_eff = jnp.zeros((ed,), jnp.float32)
    return dict(kind='dw', k=3, stride=1, pad=1, w=w_eff, b=b_eff)


def make_block(pg, inp, hidden_dim, oup, k, s, use_se, use_hs):
    assert s in (1, 2)
    assert hidden_dim == 2 * inp
    assert use_se == 0  # TODO(synk): SqueezeExcite not implemented (cfgs use use_se=0)
    identity = (s == 1 and inp == oup)
    if s == 2:
        tok = [make_conv_bn(pg, inp, inp, k, s, (k - 1) // 2, groups=inp),
               make_conv_bn(pg, inp, oup, 1, 1, 0)]
        ch = [make_conv_bn(pg, oup, 2 * oup, 1, 1, 0),
              make_conv_bn(pg, 2 * oup, oup, 1, 1, 0)]
    else:
        assert identity
        tok = make_repvggdw(pg, inp)
        ch = [make_conv_bn(pg, inp, hidden_dim, 1, 1, 0),
              make_conv_bn(pg, hidden_dim, oup, 1, 1, 0)]
    return dict(identity=identity, stride=s, tm=tok, cm=ch)


def make_uperhead(pg, in_channels, fpn_ch=256, out_ch=512):
    return dict(
        ppm=[make_conv_bn(pg, in_channels[-1], fpn_ch, 1, 1, 0) for _ in POOL_SCALES],
        fpn_in=[make_conv_bn(pg, c, fpn_ch, 1, 1, 0) for c in in_channels],
        fpn_out=[make_conv_bn(pg, fpn_ch, fpn_ch, 3, 1, 1) for _ in in_channels],
        bottleneck=make_conv_bn(pg, 4 * fpn_ch, out_ch, 3, 1, 1),
    )


def make_model(pg, cfgs, num_classes=19):
    input_channel = cfgs[0][2]
    params = {}
    params['pe0'] = make_conv_bn(pg, 3, input_channel // 2, 3, 2, 1)
    params['pe1'] = make_conv_bn(pg, input_channel // 2, input_channel, 3, 2, 1)
    stages, downsample_indices, stage_channels = [], [], []
    for stage_idx, (k, t, c, use_se, use_hs, s) in enumerate(cfgs):
        output_channel = _make_divisible(c, 8)
        exp_size = _make_divisible(input_channel * t, 8)
        stages.append(make_block(pg, input_channel, exp_size, output_channel,
                                 k, s, use_se, use_hs))
        if s == 2 and stage_idx > 0:
            downsample_indices.append(stage_idx)
            stage_channels.append(output_channel)
        input_channel = output_channel
    stage_channels.append(input_channel)
    if len(stage_channels) < 4:
        stage_channels += [stage_channels[-1]] * (4 - len(stage_channels))
    else:
        stage_channels = stage_channels[-4:]
    params['stages'] = stages
    params['decoder_indices'] = downsample_indices[-len(stage_channels):]
    params['head'] = make_uperhead(pg, stage_channels, 256, 512)
    params['seg0'] = make_conv_bn(pg, 512, 512, 3, 1, 1)
    w_seg = pg.conv_w(num_classes, 512, 1)
    params['seg_w'] = jnp.transpose(w_seg, (2, 3, 1, 0)).reshape(
        512, num_classes).astype(jnp.bfloat16)
    params['seg_b'] = jnp.zeros((num_classes,), jnp.float32)  # bias init to 0
    return params


# --------------------------------------------------------------------------
# Forward pass
# --------------------------------------------------------------------------

def apply_block(bp, x):
    if bp['identity']:
        t = apply_conv(bp['tm'], x)                 # RepVGGDW (folded dw3x3)
        y = apply_conv(bp['cm'][0], t)
        y = gelu(y)
        return apply_conv(bp['cm'][1], y, residual=x)   # fused residual add
    t = apply_conv(bp['tm'][0], x)                  # dw stride-2 token mixer
    t = apply_conv(bp['tm'][1], t)                  # 1x1 pointwise
    y = apply_conv(bp['cm'][0], t)
    y = gelu(y)
    y = apply_conv(bp['cm'][1], y)
    return y


def uperhead_forward(hp, feats):
    deepest = feats[-1]
    H, W = deepest.shape[1:3]
    ppm_outs = [apply_conv(hp['fpn_in'][-1], deepest)]
    for scale, pconv in zip(POOL_SCALES, hp['ppm']):
        p = adaptive_avg_pool(deepest, scale)
        p = apply_conv(pconv, p)
        ppm_outs.append(bilinear_resize(p, H, W))
    s = ppm_outs[0]
    for t in ppm_outs[1:]:
        s = s + t
    f = apply_conv(hp['fpn_out'][-1], s)
    fpn_features = [f]
    for i in reversed(range(len(feats) - 1)):
        lateral = apply_conv(hp['fpn_in'][i], feats[i])
        f = lateral + bilinear_resize(f, lateral.shape[1], lateral.shape[2])
        fpn_features.append(apply_conv(hp['fpn_out'][i], f))
    fpn_features = fpn_features[::-1]
    oh, ow = fpn_features[0].shape[1:3]
    outs = [fpn_features[0]] + [bilinear_resize(t, oh, ow) for t in fpn_features[1:]]
    out = jnp.concatenate(outs, axis=-1)
    out = apply_conv(hp['bottleneck'], out)
    return out                                       # Dropout2d -> identity (eval)


def forward(params, x_nchw):
    input_hw = x_nchw.shape[2:]
    x = jnp.transpose(x_nchw, (0, 2, 3, 1)).astype(jnp.float32)   # -> NHWC
    # patch embed
    x = apply_conv(params['pe0'], x)
    x = gelu(x)
    x = apply_conv(params['pe1'], x)
    # stages
    features = []
    for bp in params['stages']:
        x = apply_block(bp, x)
        features.append(x)
    decoder_features = [features[i] for i in params['decoder_indices']]
    while len(decoder_features) < 4:
        decoder_features.append(features[-1])
    # decode head
    x = uperhead_forward(params['head'], decoder_features)
    # seg head
    x = apply_conv(params['seg0'], x)                # Conv2d_BN 3x3 ; Dropout2d=identity
    N, H, W, C = x.shape
    x = pallas_matmul_bias(x.reshape(N * H * W, C), params['seg_w'], params['seg_b'])
    x = x.reshape(N, H, W, -1)
    # upsample to input resolution
    x = bilinear_resize(x, input_hw[0], input_hw[1])
    return jnp.transpose(x, (0, 3, 1, 2))            # -> NCHW


# --------------------------------------------------------------------------
# Main
# --------------------------------------------------------------------------

if __name__ == "__main__":
    # cfgs: (kernel, expand_t, channels, use_se, use_hs, stride)
    cfgs = [
        (3, 2, 16, 0, 0, 1),
        (3, 2, 32, 0, 0, 2),
        (3, 2, 32, 0, 1, 1),
        (3, 2, 64, 0, 1, 2),
    ]
    num_classes = 19

    pg = ParamGen(seed=0)
    params = make_model(pg, cfgs, num_classes=num_classes)

    key = jax.random.PRNGKey(0)
    x = jax.random.normal(key, (2, 3, 64, 64), jnp.float32)   # NCHW like PyTorch

    fwd = jax.jit(lambda inp: forward(params, inp))
    y = fwd(x)
    y = jax.block_until_ready(y)
    assert y.shape == (2, num_classes, 64, 64), y.shape
    assert bool(jnp.all(jnp.isfinite(y)))
    print("KERNEL_OK")
</pallas_src>

<mosaic_0001>
module attributes {stable_mosaic.version = 11 : i64} {
  func.func @_mm_kernel_1k(%arg0: i32, %arg1: i32, %arg2: memref<256x128xbf16, #tpu.memory_space<vmem>>, %arg3: memref<128x128xbf16, #tpu.memory_space<vmem>>, %arg4: memref<1x128xf32, #tpu.memory_space<vmem>>, %arg5: memref<256x128xf32, #tpu.memory_space<vmem>>) attributes {dimension_semantics = [#tpu.dimension_semantics<parallel>, #tpu.dimension_semantics<parallel>], iteration_bounds = array<i64: 8, 1>, scalar_prefetch = 0 : i64, scratch_operands = 0 : i64, tpu.core_type = #tpu.core_type<tc>, window_params = [{transform_indices = @transform_0, window_bounds = array<i64: 256, 128>}, {transform_indices = @transform_1, window_bounds = array<i64: 128, 128>}, {transform_indices = @transform_2, window_bounds = array<i64: 1, 128>}, {transform_indices = @transform_3, window_bounds = array<i64: 256, 128>}]} {
    %c0 = arith.constant 0 : index
    %c0_0 = arith.constant 0 : index
    %0 = vector.load %arg2[%c0, %c0_0] : memref<256x128xbf16, #tpu.memory_space<vmem>>, vector<256x128xbf16>
    %c0_1 = arith.constant 0 : index
    %c0_2 = arith.constant 0 : index
    %1 = vector.load %arg3[%c0_1, %c0_2] : memref<128x128xbf16, #tpu.memory_space<vmem>>, vector<128x128xbf16>
    %cst = arith.constant dense<0.000000e+00> : vector<256x128xf32>
    %2 = tpu.matmul %0, %1, %cst {dimension_numbers = #tpu.dot_dimension_numbers<[1], [0], [0], [1], [0, 0, 1, 1], [], []>} : vector<256x128xbf16>, vector<128x128xbf16>, vector<256x128xf32> -> vector<256x128xf32>
    %c0_3 = arith.constant 0 : index
    %c0_4 = arith.constant 0 : index
    %3 = vector.load %arg4[%c0_3, %c0_4] : memref<1x128xf32, #tpu.memory_space<vmem>>, vector<1x128xf32>
    %4 = vector.broadcast %3 : vector<1x128xf32> to vector<256x128xf32>
    %5 = arith.addf %2, %4 : vector<256x128xf32>
    %c0_5 = arith.constant 0 : index
    %c0_6 = arith.constant 0 : index
    %6 = vector.load %arg5[%c0_5, %c0_6] : memref<256x128xf32, #tpu.memory_space<vmem>>, vector<256x128xf32>
    tpu.vector_store %arg5[%c0_5, %c0_6], %5 {strides = array<i32>} : memref<256x128xf32, #tpu.memory_space<vmem>>, vector<256x128xf32>,
    return
  }
  func.func @transform_0(%arg0: i32, %arg1: i32) -> (i32, i32) {
    %c0_i32 = arith.constant 0 : i32
    %c0_i32_0 = arith.constant 0 : i32
    return %arg0, %c0_i32 : i32, i32
  }
  func.func @transform_1(%arg0: i32, %arg1: i32) -> (i32, i32) {
    %c0_i32 = arith.constant 0 : i32
    %c0_i32_0 = arith.constant 0 : i32
    return %c0_i32, %arg1 : i32, i32
  }
  func.func @transform_2(%arg0: i32, %arg1: i32) -> (i32, i32) {
    %c0_i32 = arith.constant 0 : i32
    %c0_i32_0 = arith.constant 0 : i32
    return %c0_i32, %arg1 : i32, i32
  }
  func.func @transform_3(%arg0: i32, %arg1: i32) -> (i32, i32) {
    %c0_i32 = arith.constant 0 : i32
    return %arg0, %arg1 : i32, i32
  }
}

module attributes {stable_mosaic.version = 11 : i64} {
  func.func @_mm_kernel_1k(%arg0: i32, %arg1: i32, %arg2: memref<256x128xbf16, #tpu.memory_space<vmem>>, %arg3: memref<128x128xbf16, #tpu.memory_space<vmem>>, %arg4: memref<1x128xf32, #tpu.memory_space<vmem>>, %arg5: memref<256x128xf32, #tpu.memory_space<vmem>>) attributes {dimension_semantics = [#tpu.dimension_semantics<parallel>, #tpu.dimension_semantics<parallel>], iteration_bounds = array<i64: 2, 1>, scalar_prefetch = 0 : i64, scratch_operands = 0 : i64, tpu.core_type = #tpu.core_type<tc>, window_params = [{transform_indices = @transform_0, window_bounds = array<i64: 256, 128>}, {transform_indices = @transform_1, window_bounds = array<i64: 128, 128>}, {transform_indices = @transform_2, window_bounds = array<i64: 1, 128>}, {transform_indices = @transform_3, window_bounds = array<i64: 256, 128>}]} {
    %c0 = arith.constant 0 : index
    %c0_0 = arith.constant 0 : index
    %0 = vector.load %arg2[%c0, %c0_0] : memref<256x128xbf16, #tpu.memory_space<vmem>>, vector<256x128xbf16>
    %c0_1 = arith.constant 0 : index
    %c0_2 = arith.constant 0 : index
    %1 = vector.load %arg3[%c0_1, %c0_2] : memref<128x128xbf16, #tpu.memory_space<vmem>>, vector<128x128xbf16>
    %cst = arith.constant dense<0.000000e+00> : vector<256x128xf32>
    %2 = tpu.matmul %0, %1, %cst {dimension_numbers = #tpu.dot_dimension_numbers<[1], [0], [0], [1], [0, 0, 1, 1], [], []>} : vector<256x128xbf16>, vector<128x128xbf16>, vector<256x128xf32> -> vector<256x128xf32>
    %c0_3 = arith.constant 0 : index
    %c0_4 = arith.constant 0 : index
    %3 = vector.load %arg4[%c0_3, %c0_4] : memref<1x128xf32, #tpu.memory_space<vmem>>, vector<1x128xf32>
    %4 = vector.broadcast %3 : vector<1x128xf32> to vector<256x128xf32>
    %5 = arith.addf %2, %4 : vector<256x128xf32>
    %c0_5 = arith.constant 0 : index
    %c0_6 = arith.constant 0 : index
    %6 = vector.load %arg5[%c0_5, %c0_6] : memref<256x128xf32, #tpu.memory_space<vmem>>, vector<256x128xf32>
    tpu.vector_store %arg5[%c0_5, %c0_6], %5 {strides = array<i32>} : memref<256x128xf32, #tpu.memory_space<vmem>>, vector<256x128xf32>,
    return
  }
  func.func @transform_0(%arg0: i32, %arg1: i32) -> (i32, i32) {
    %c0_i32 = arith.constant 0 : i32
    %c0_i32_0 = arith.constant 0 : i32
    return %arg0, %c0_i32 : i32, i32
  }
  func.func @transform_1(%arg0: i32, %arg1: i32) -> (i32, i32) {
    %c0_i32 = arith.constant 0 : i32
    %c0_i32_0 = arith.constant 0 : i32
    return %c0_i32, %arg1 : i32, i32
  }
  func.func @transform_2(%arg0: i32, %arg1: i32) -> (i32, i32) {
    %c0_i32 = arith.constant 0 : i32
    %c0_i32_0 = arith.constant 0 : i32
    return %c0_i32, %arg1 : i32, i32
  }
  func.func @transform_3(%arg0: i32, %arg1: i32) -> (i32, i32) {
    %c0_i32 = arith.constant 0 : i32
    return %arg0, %arg1 : i32, i32
  }
}

module attributes {stable_mosaic.version = 11 : i64} {
  func.func @_dw_kernel(%arg0: i32, %arg1: memref<9x32x256xf32, #tpu.memory_space<vmem>>, %arg2: memref<9x1x256xf32, #tpu.memory_space<vmem>>, %arg3: memref<1x256xf32, #tpu.memory_space<vmem>>, %arg4: memref<32x256xf32, #tpu.memory_space<vmem>>) attributes {dimension_semantics = [#tpu.dimension_semantics<parallel>], iteration_bounds = array<i64: 1>, scalar_prefetch = 0 : i64, scratch_operands = 0 : i64, tpu.core_type = #tpu.core_type<tc>, window_params = [{transform_indices = @transform_0, window_bounds = array<i64: 9, 32, 256>}, {pipeline_mode = #tpu.pipeline_mode<synchronous>, transform_indices = @transform_1, window_bounds = array<i64: 9, 1, 256>}, {pipeline_mode = #tpu.pipeline_mode<synchronous>, transform_indices = @transform_2, window_bounds = array<i64: 1, 256>}, {transform_indices = @transform_3, window_bounds = array<i64: 32, 256>}]} {
    %c0 = arith.constant 0 : index
    %c0_0 = arith.constant 0 : index
    %c0_1 = arith.constant 0 : index
    %0 = vector.load %arg1[%c0, %c0_0, %c0_1] : memref<9x32x256xf32, #tpu.memory_space<vmem>>, vector<1x32x256xf32>
    %1 = vector.shape_cast %0 : vector<1x32x256xf32> to vector<32x256xf32>
    %c0_2 = arith.constant 0 : index
    %c0_3 = arith.constant 0 : index
    %c0_4 = arith.constant 0 : index
    %2 = vector.load %arg2[%c0_2, %c0_3, %c0_4] : memref<9x1x256xf32, #tpu.memory_space<vmem>>, vector<1x1x256xf32>
    %3 = vector.shape_cast %2 : vector<1x1x256xf32> to vector<1x256xf32>
    %4 = vector.broadcast %3 : vector<1x256xf32> to vector<32x256xf32>
    %5 = arith.mulf %1, %4 : vector<32x256xf32>
    %c1 = arith.constant 1 : index
    %c0_5 = arith.constant 0 : index
    %c0_6 = arith.constant 0 : index
    %6 = vector.load %arg1[%c1, %c0_5, %c0_6] : memref<9x32x256xf32, #tpu.memory_space<vmem>>, vector<1x32x256xf32>
    %7 = vector.shape_cast %6 : vector<1x32x256xf32> to vector<32x256xf32>
    %c1_7 = arith.constant 1 : index
    %c0_8 = arith.constant 0 : index
    %c0_9 = arith.constant 0 : index
    %8 = vector.load %arg2[%c1_7, %c0_8, %c0_9] : memref<9x1x256xf32, #tpu.memory_space<vmem>>, vector<1x1x256xf32>
    %9 = vector.shape_cast %8 : vector<1x1x256xf32> to vector<1x256xf32>
    %10 = vector.broadcast %9 : vector<1x256xf32> to vector<32x256xf32>
    %11 = arith.mulf %7, %10 : vector<32x256xf32>
    %12 = arith.addf %5, %11 : vector<32x256xf32>
    %c2 = arith.constant 2 : index
    %c0_10 = arith.constant 0 : index
    %c0_11 = arith.constant 0 : index
    %13 = vector.load %arg1[%c2, %c0_10, %c0_11] : memref<9x32x256xf32, #tpu.memory_space<vmem>>, vector<1x32x256xf32>
    %14 = vector.shape_cast %13 : vector<1x32x256xf32> to vector<32x256xf32>
    %c2_12 = arith.constant 2 : index
    %c0_13 = arith.constant 0 : index
    %c0_14 = arith.constant 0 : index
    %15 = vector.load %arg2[%c2_12, %c0_13, %c0_14] : memref<9x1x256xf32, #tpu.memory_space<vmem>>, vector<1x1x256xf32>
    %16 = vector.shape_cast %15 : vector<1x1x256xf32> to vector<1x256xf32>
    %17 = vector.broadcast %16 : vector<1x256xf32> to vector<32x256xf32>
    %18 = arith.mulf %14, %17 : vector<32x256xf32>
    %19 = arith.addf %12, %18 : vector<32x256xf32>
    %c3 = arith.constant 3 : index
    %c0_15 = arith.constant 0 : index
    %c0_16 = arith.constant 0 : index
    %20 = vector.load %arg1[%c3, %c0_15, %c0_16] : memref<9x32x256xf32, #tpu.memory_space<vmem>>, vector<1x32x256xf32>
    %21 = vector.shape_cast %20 : vector<1x32x256xf32> to vector<32x256xf32>
    %c3_17 = arith.constant 3 : index
    %c0_18 = arith.constant 0 : index
    %c0_19 = arith.constant 0 : index
    %22 = vector.load %arg2[%c3_17, %c0_18, %c0_19] : memref<9x1x256xf32, #tpu.memory_space<vmem>>, vector<1x1x256xf32>
    %23 = vector.shape_cast %22 : vector<1x1x256xf32> to vector<1x256xf32>
    %24 = vector.broadcast %23 : vector<1x256xf32> to vector<32x256xf32>
    %25 = arith.mulf %21, %24 : vector<32x256xf32>
    %26 = arith.addf %19, %25 : vector<32x256xf32>
    %c4 = arith.constant 4 : index
    %c0_20 = arith.constant 0 : index
    %c0_21 = arith.constant 0 : index
    %27 = vector.load %arg1[%c4, %c0_20, %c0_21] : memref<9x32x256xf32, #tpu.memory_space<vmem>>, vector<1x32x256xf32>
    %28 = vector.shape_cast %27 : vector<1x32x256xf32> to vector<32x256xf32>
    %c4_22 = arith.constant 4 : index
    %c0_23 = arith.constant 0 : index
    %c0_24 = arith.constant 0 : index
    %29 = vector.load %arg2[%c4_22, %c0_23, %c0_24] : memref<9x1x256xf32, #tpu.memory_space<vmem>>, vector<1x1x256xf32>
    %30 = vector.shape_cast %29 : vector<1x1x256xf32> to vector<1x256xf32>
    %31 = vector.broadcast %30 : vector<1x256xf32> to vector<32x256xf32>
    %32 = arith.mulf %28, %31 : vector<32x256xf32>
    %33 = arith.addf %26, %32 : vector<32x256xf32>
    %c5 = arith.constant 5 : index
    %c0_25 = arith.constant 0 : index
    %c0_26 = arith.constant 0 : index
    %34 = vector.load %arg1[%c5, %c0_25, %c0_26] : memref<9x32x256xf32, #tpu.memory_space<vmem>>, vector<1x32x256xf32>
    %35 = vector.shape_cast %34 : vector<1x32x256xf32> to vector<32x256xf32>
    %c5_27 = arith.constant 5 : index
    %c0_28 = arith.constant 0 : index
    %c0_29 = arith.constant 0 : index
    %36 = vector.load %arg2[%c5_27, %c0_28, %c0_29] : memref<9x1x256xf32, #tpu.memory_space<vmem>>, vector<1x1x256xf32>
    %37 = vector.shape_cast %36 : vector<1x1x256xf32> to vector<1x256xf32>
    %38 = vector.broadcast %37 : vector<1x256xf32> to vector<32x256xf32>
    %39 = arith.mulf %35, %38 : vector<32x256xf32>
    %40 = arith.addf %33, %39 : vector<32x256xf32>
    %c6 = arith.constant 6 : index
    %c0_30 = arith.constant 0 : index
    %c0_31 = arith.constant 0 : index
    %41 = vector.load %arg1[%c6, %c0_30, %c0_31] : memref<9x32x256xf32, #tpu.memory_space<vmem>>, vector<1x32x256xf32>
    %42 = vector.shape_cast %41 : vector<1x32x256xf32> to vector<32x256xf32>
    %c6_32 = arith.constant 6 : index
    %c0_33 = arith.constant 0 : index
    %c0_34 = arith.constant 0 : index
    %43 = vector.load %arg2[%c6_32, %c0_33, %c0_34] : memref<9x1x256xf32, #tpu.memory_space<vmem>>, vector<1x1x256xf32>
    %44 = vector.shape_cast %43 : vector<1x1x256xf32> to vector<1x256xf32>
    %45 = vector.broadcast %44 : vector<1x256xf32> to vector<32x256xf32>
    %46 = arith.mulf %42, %45 : vector<32x256xf32>
    %47 = arith.addf %40, %46 : vector<32x256xf32>
    %c7 = arith.constant 7 : index
    %c0_35 = arith.constant 0 : index
    %c0_36 = arith.constant 0 : index
    %48 = vector.load %arg1[%c7, %c0_35, %c0_36] : memref<9x32x256xf32, #tpu.memory_space<vmem>>, vector<1x32x256xf32>
    %49 = vector.shape_cast %48 : vector<1x32x256xf32> to vector<32x256xf32>
    %c7_37 = arith.constant 7 : index
    %c0_38 = arith.constant 0 : index
    %c0_39 = arith.constant 0 : index
    %50 = vector.load %arg2[%c7_37, %c0_38, %c0_39] : memref<9x1x256xf32, #tpu.memory_space<vmem>>, vector<1x1x256xf32>
    %51 = vector.shape_cast %50 : vector<1x1x256xf32> to vector<1x256xf32>
    %52 = vector.broadcast %51 : vector<1x256xf32> to vector<32x256xf32>
    %53 = arith.mulf %49, %52 : vector<32x256xf32>
    %54 = arith.addf %47, %53 : vector<32x256xf32>
    %c8 = arith.constant 8 : index
    %c0_40 = arith.constant 0 : index
    %c0_41 = arith.constant 0 : index
    %55 = vector.load %arg1[%c8, %c0_40, %c0_41] : memref<9x32x256xf32, #tpu.memory_space<vmem>>, vector<1x32x256xf32>
    %56 = vector.shape_cast %55 : vector<1x32x256xf32> to vector<32x256xf32>
    %c8_42 = arith.constant 8 : index
    %c0_43 = arith.constant 0 : index
    %c0_44 = arith.constant 0 : index
    %57 = vector.load %arg2[%c8_42, %c0_43, %c0_44] : memref<9x1x256xf32, #tpu.memory_space<vmem>>, vector<1x1x256xf32>
    %58 = vector.shape_cast %57 : vector<1x1x256xf32> to vector<1x256xf32>
    %59 = vector.broadcast %58 : vector<1x256xf32> to vector<32x256xf32>
    %60 = arith.mulf %56, %59 : vector<32x256xf32>
    %61 = arith.addf %54, %60 : vector<32x256xf32>
    %c0_45 = arith.constant 0 : index
    %c0_46 = arith.constant 0 : index
    %62 = vector.load %arg3[%c0_45, %c0_46] : memref<1x256xf32, #tpu.memory_space<vmem>>, vector<1x256xf32>
    %63 = vector.broadcast %62 : vector<1x256xf32> to vector<32x256xf32>
    %64 = arith.addf %61, %63 : vector<32x256xf32>
    %c0_47 = arith.constant 0 : index
    %c0_48 = arith.constant 0 : index
    %65 = vector.load %arg4[%c0_47, %c0_48] : memref<32x256xf32, #tpu.memory_space<vmem>>, vector<32x256xf32>
    tpu.vector_store %arg4[%c0_47, %c0_48], %64 {strides = array<i32>} : memref<32x256xf32, #tpu.memory_space<vmem>>, vector<32x256xf32>,
    return
  }
  func.func @transform_0(%arg0: i32) -> (i32, i32, i32) {
    %c0_i32 = arith.constant 0 : i32
    %c0_i32_0 = arith.constant 0 : i32
    %c0_i32_1 = arith.constant 0 : i32
    return %c0_i32, %arg0, %c0_i32_0 : i32, i32, i32
  }
  func.func @transform_1(%arg0: i32) -> (i32, i32, i32) {
    %c0_i32 = arith.constant 0 : i32
    %c0_i32_0 = arith.constant 0 : i32
    %c0_i32_1 = arith.constant 0 : i32
    %c0_i32_2 = arith.constant 0 : i32
    return %c0_i32, %c0_i32_0, %c0_i32_1 : i32, i32, i32
  }
  func.func @transform_2(%arg0: i32) -> (i32, i32) {
    %c0_i32 = arith.constant 0 : i32
    %c0_i32_0 = arith.constant 0 : i32
    %c0_i32_1 = arith.constant 0 : i32
    return %c0_i32, %c0_i32_0 : i32, i32
  }
  func.func @transform_3(%arg0: i32) -> (i32, i32) {
    %c0_i32 = arith.constant 0 : i32
    %c0_i32_0 = arith.constant 0 : i32
    return %arg0, %c0_i32 : i32, i32
  }
}

module attributes {stable_mosaic.version = 11 : i64} {
  func.func @_mm_res_kernel_1k(%arg0: i32, %arg1: i32, %arg2: memref<256x128xbf16, #tpu.memory_space<vmem>>, %arg3: memref<128x128xbf16, #tpu.memory_space<vmem>>, %arg4: memref<1x128xf32, #tpu.memory_space<vmem>>, %arg5: memref<256x128xf32, #tpu.memory_space<vmem>>, %arg6: memref<256x128xf32, #tpu.memory_space<vmem>>) attributes {dimension_semantics = [#tpu.dimension_semantics<parallel>, #tpu.dimension_semantics<parallel>], iteration_bounds = array<i64: 2, 1>, scalar_prefetch = 0 : i64, scratch_operands = 0 : i64, tpu.core_type = #tpu.core_type<tc>, window_params = [{transform_indices = @transform_0, window_bounds = array<i64: 256, 128>}, {transform_indices = @transform_1, window_bounds = array<i64: 128, 128>}, {transform_indices = @transform_2, window_bounds = array<i64: 1, 128>}, {transform_indices = @transform_3, window_bounds = array<i64: 256, 128>}, {transform_indices = @transform_4, window_bounds = array<i64: 256, 128>}]} {
    %c0 = arith.constant 0 : index
    %c0_0 = arith.constant 0 : index
    %0 = vector.load %arg2[%c0, %c0_0] : memref<256x128xbf16, #tpu.memory_space<vmem>>, vector<256x128xbf16>
    %c0_1 = arith.constant 0 : index
    %c0_2 = arith.constant 0 : index
    %1 = vector.load %arg3[%c0_1, %c0_2] : memref<128x128xbf16, #tpu.memory_space<vmem>>, vector<128x128xbf16>
    %cst = arith.constant dense<0.000000e+00> : vector<256x128xf32>
    %2 = tpu.matmul %0, %1, %cst {dimension_numbers = #tpu.dot_dimension_numbers<[1], [0], [0], [1], [0, 0, 1, 1], [], []>} : vector<256x128xbf16>, vector<128x128xbf16>, vector<256x128xf32> -> vector<256x128xf32>
    %c0_3 = arith.constant 0 : index
    %c0_4 = arith.constant 0 : index
    %3 = vector.load %arg4[%c0_3, %c0_4] : memref<1x128xf32, #tpu.memory_space<vmem>>, vector<1x128xf32>
    %4 = vector.broadcast %3 : vector<1x128xf32> to vector<256x128xf32>
    %5 = arith.addf %2, %4 : vector<256x128xf32>
    %c0_5 = arith.constant 0 : index
    %c0_6 = arith.constant 0 : index
    %6 = vector.load %arg5[%c0_5, %c0_6] : memref<256x128xf32, #tpu.memory_space<vmem>>, vector<256x128xf32>
    %7 = arith.addf %5, %6 : vector<256x128xf32>
    %c0_7 = arith.constant 0 : index
    %c0_8 = arith.constant 0 : index
    %8 = vector.load %arg6[%c0_7, %c0_8] : memref<256x128xf32, #tpu.memory_space<vmem>>, vector<256x128xf32>
    tpu.vector_store %arg6[%c0_7, %c0_8], %7 {strides = array<i32>} : memref<256x128xf32, #tpu.memory_space<vmem>>, vector<256x128xf32>,
    return
  }
  func.func @transform_0(%arg0: i32, %arg1: i32) -> (i32, i32) {
    %c0_i32 = arith.constant 0 : i32
    %c0_i32_0 = arith.constant 0 : i32
    return %arg0, %c0_i32 : i32, i32
  }
  func.func @transform_1(%arg0: i32, %arg1: i32) -> (i32, i32) {
    %c0_i32 = arith.constant 0 : i32
    %c0_i32_0 = arith.constant 0 : i32
    return %c0_i32, %arg1 : i32, i32
  }
  func.func @transform_2(%arg0: i32, %arg1: i32) -> (i32, i32) {
    %c0_i32 = arith.constant 0 : i32
    %c0_i32_0 = arith.constant 0 : i32
    return %c0_i32, %arg1 : i32, i32
  }
  func.func @transform_3(%arg0: i32, %arg1: i32) -> (i32, i32) {
    %c0_i32 = arith.constant 0 : i32
    return %arg0, %arg1 : i32, i32
  }
  func.func @transform_4(%arg0: i32, %arg1: i32) -> (i32, i32) {
    %c0_i32 = arith.constant 0 : i32
    return %arg0, %arg1 : i32, i32
  }
}

module attributes {stable_mosaic.version = 11 : i64} {
  func.func @_dw_kernel(%arg0: i32, %arg1: memref<9x16x128xf32, #tpu.memory_space<vmem>>, %arg2: memref<9x1x128xf32, #tpu.memory_space<vmem>>, %arg3: memref<1x128xf32, #tpu.memory_space<vmem>>, %arg4: memref<16x128xf32, #tpu.memory_space<vmem>>) attributes {dimension_semantics = [#tpu.dimension_semantics<parallel>], iteration_bounds = array<i64: 1>, scalar_prefetch = 0 : i64, scratch_operands = 0 : i64, tpu.core_type = #tpu.core_type<tc>, window_params = [{transform_indices = @transform_0, window_bounds = array<i64: 9, 16, 128>}, {pipeline_mode = #tpu.pipeline_mode<synchronous>, transform_indices = @transform_1, window_bounds = array<i64: 9, 1, 128>}, {pipeline_mode = #tpu.pipeline_mode<synchronous>, transform_indices = @transform_2, window_bounds = array<i64: 1, 128>}, {transform_indices = @transform_3, window_bounds = array<i64: 16, 128>}]} {
    %c0 = arith.constant 0 : index
    %c0_0 = arith.constant 0 : index
    %c0_1 = arith.constant 0 : index
    %0 = vector.load %arg1[%c0, %c0_0, %c0_1] : memref<9x16x128xf32, #tpu.memory_space<vmem>>, vector<1x16x128xf32>
    %1 = vector.shape_cast %0 : vector<1x16x128xf32> to vector<16x128xf32>
    %c0_2 = arith.constant 0 : index
    %c0_3 = arith.constant 0 : index
    %c0_4 = arith.constant 0 : index
    %2 = vector.load %arg2[%c0_2, %c0_3, %c0_4] : memref<9x1x128xf32, #tpu.memory_space<vmem>>, vector<1x1x128xf32>
    %3 = vector.shape_cast %2 : vector<1x1x128xf32> to vector<1x128xf32>
    %4 = vector.broadcast %3 : vector<1x128xf32> to vector<16x128xf32>
    %5 = arith.mulf %1, %4 : vector<16x128xf32>
    %c1 = arith.constant 1 : index
    %c0_5 = arith.constant 0 : index
    %c0_6 = arith.constant 0 : index
    %6 = vector.load %arg1[%c1, %c0_5, %c0_6] : memref<9x16x128xf32, #tpu.memory_space<vmem>>, vector<1x16x128xf32>
    %7 = vector.shape_cast %6 : vector<1x16x128xf32> to vector<16x128xf32>
    %c1_7 = arith.constant 1 : index
    %c0_8 = arith.constant 0 : index
    %c0_9 = arith.constant 0 : index
    %8 = vector.load %arg2[%c1_7, %c0_8, %c0_9] : memref<9x1x128xf32, #tpu.memory_space<vmem>>, vector<1x1x128xf32>
    %9 = vector.shape_cast %8 : vector<1x1x128xf32> to vector<1x128xf32>
    %10 = vector.broadcast %9 : vector<1x128xf32> to vector<16x128xf32>
    %11 = arith.mulf %7, %10 : vector<16x128xf32>
    %12 = arith.addf %5, %11 : vector<16x128xf32>
    %c2 = arith.constant 2 : index
    %c0_10 = arith.constant 0 : index
    %c0_11 = arith.constant 0 : index
    %13 = vector.load %arg1[%c2, %c0_10, %c0_11] : memref<9x16x128xf32, #tpu.memory_space<vmem>>, vector<1x16x128xf32>
    %14 = vector.shape_cast %13 : vector<1x16x128xf32> to vector<16x128xf32>
    %c2_12 = arith.constant 2 : index
    %c0_13 = arith.constant 0 : index
    %c0_14 = arith.constant 0 : index
    %15 = vector.load %arg2[%c2_12, %c0_13, %c0_14] : memref<9x1x128xf32, #tpu.memory_space<vmem>>, vector<1x1x128xf32>
    %16 = vector.shape_cast %15 : vector<1x1x128xf32> to vector<1x128xf32>
    %17 = vector.broadcast %16 : vector<1x128xf32> to vector<16x128xf32>
    %18 = arith.mulf %14, %17 : vector<16x128xf32>
    %19 = arith.addf %12, %18 : vector<16x128xf32>
    %c3 = arith.constant 3 : index
    %c0_15 = arith.constant 0 : index
    %c0_16 = arith.constant 0 : index
    %20 = vector.load %arg1[%c3, %c0_15, %c0_16] : memref<9x16x128xf32, #tpu.memory_space<vmem>>, vector<1x16x128xf32>
    %21 = vector.shape_cast %20 : vector<1x16x128xf32> to vector<16x128xf32>
    %c3_17 = arith.constant 3 : index
    %c0_18 = arith.constant 0 : index
    %c0_19 = arith.constant 0 : index
    %22 = vector.load %arg2[%c3_17, %c0_18, %c0_19] : memref<9x1x128xf32, #tpu.memory_space<vmem>>, vector<1x1x128xf32>
    %23 = vector.shape_cast %22 : vector<1x1x128xf32> to vector<1x128xf32>
    %24 = vector.broadcast %23 : vector<1x128xf32> to vector<16x128xf32>
    %25 = arith.mulf %21, %24 : vector<16x128xf32>
    %26 = arith.addf %19, %25 : vector<16x128xf32>
    %c4 = arith.constant 4 : index
    %c0_20 = arith.constant 0 : index
    %c0_21 = arith.constant 0 : index
    %27 = vector.load %arg1[%c4, %c0_20, %c0_21] : memref<9x16x128xf32, #tpu.memory_space<vmem>>, vector<1x16x128xf32>
    %28 = vector.shape_cast %27 : vector<1x16x128xf32> to vector<16x128xf32>
    %c4_22 = arith.constant 4 : index
    %c0_23 = arith.constant 0 : index
    %c0_24 = arith.constant 0 : index
    %29 = vector.load %arg2[%c4_22, %c0_23, %c0_24] : memref<9x1x128xf32, #tpu.memory_space<vmem>>, vector<1x1x128xf32>
    %30 = vector.shape_cast %29 : vector<1x1x128xf32> to vector<1x128xf32>
    %31 = vector.broadcast %30 : vector<1x128xf32> to vector<16x128xf32>
    %32 = arith.mulf %28, %31 : vector<16x128xf32>
    %33 = arith.addf %26, %32 : vector<16x128xf32>
    %c5 = arith.constant 5 : index
    %c0_25 = arith.constant 0 : index
    %c0_26 = arith.constant 0 : index
    %34 = vector.load %arg1[%c5, %c0_25, %c0_26] : memref<9x16x128xf32, #tpu.memory_space<vmem>>, vector<1x16x128xf32>
    %35 = vector.shape_cast %34 : vector<1x16x128xf32> to vector<16x128xf32>
    %c5_27 = arith.constant 5 : index
    %c0_28 = arith.constant 0 : index
    %c0_29 = arith.constant 0 : index
    %36 = vector.load %arg2[%c5_27, %c0_28, %c0_29] : memref<9x1x128xf32, #tpu.memory_space<vmem>>, vector<1x1x128xf32>
    %37 = vector.shape_cast %36 : vector<1x1x128xf32> to vector<1x128xf32>
    %38 = vector.broadcast %37 : vector<1x128xf32> to vector<16x128xf32>
    %39 = arith.mulf %35, %38 : vector<16x128xf32>
    %40 = arith.addf %33, %39 : vector<16x128xf32>
    %c6 = arith.constant 6 : index
    %c0_30 = arith.constant 0 : index
    %c0_31 = arith.constant 0 : index
    %41 = vector.load %arg1[%c6, %c0_30, %c0_31] : memref<9x16x128xf32, #tpu.memory_space<vmem>>, vector<1x16x128xf32>
    %42 = vector.shape_cast %41 : vector<1x16x128xf32> to vector<16x128xf32>
    %c6_32 = arith.constant 6 : index
    %c0_33 = arith.constant 0 : index
    %c0_34 = arith.constant 0 : index
    %43 = vector.load %arg2[%c6_32, %c0_33, %c0_34] : memref<9x1x128xf32, #tpu.memory_space<vmem>>, vector<1x1x128xf32>
    %44 = vector.shape_cast %43 : vector<1x1x128xf32> to vector<1x128xf32>
    %45 = vector.broadcast %44 : vector<1x128xf32> to vector<16x128xf32>
    %46 = arith.mulf %42, %45 : vector<16x128xf32>
    %47 = arith.addf %40, %46 : vector<16x128xf32>
    %c7 = arith.constant 7 : index
    %c0_35 = arith.constant 0 : index
    %c0_36 = arith.constant 0 : index
    %48 = vector.load %arg1[%c7, %c0_35, %c0_36] : memref<9x16x128xf32, #tpu.memory_space<vmem>>, vector<1x16x128xf32>
    %49 = vector.shape_cast %48 : vector<1x16x128xf32> to vector<16x128xf32>
    %c7_37 = arith.constant 7 : index
    %c0_38 = arith.constant 0 : index
    %c0_39 = arith.constant 0 : index
    %50 = vector.load %arg2[%c7_37, %c0_38, %c0_39] : memref<9x1x128xf32, #tpu.memory_space<vmem>>, vector<1x1x128xf32>
    %51 = vector.shape_cast %50 : vector<1x1x128xf32> to vector<1x128xf32>
    %52 = vector.broadcast %51 : vector<1x128xf32> to vector<16x128xf32>
    %53 = arith.mulf %49, %52 : vector<16x128xf32>
    %54 = arith.addf %47, %53 : vector<16x128xf32>
    %c8 = arith.constant 8 : index
    %c0_40 = arith.constant 0 : index
    %c0_41 = arith.constant 0 : index
    %55 = vector.load %arg1[%c8, %c0_40, %c0_41] : memref<9x16x128xf32, #tpu.memory_space<vmem>>, vector<1x16x128xf32>
    %56 = vector.shape_cast %55 : vector<1x16x128xf32> to vector<16x128xf32>
    %c8_42 = arith.constant 8 : index
    %c0_43 = arith.constant 0 : index
    %c0_44 = arith.constant 0 : index
    %57 = vector.load %arg2[%c8_42, %c0_43, %c0_44] : memref<9x1x128xf32, #tpu.memory_space<vmem>>, vector<1x1x128xf32>
    %58 = vector.shape_cast %57 : vector<1x1x128xf32> to vector<1x128xf32>
    %59 = vector.broadcast %58 : vector<1x128xf32> to vector<16x128xf32>
    %60 = arith.mulf %56, %59 : vector<16x128xf32>
    %61 = arith.addf %54, %60 : vector<16x128xf32>
    %c0_45 = arith.constant 0 : index
    %c0_46 = arith.constant 0 : index
    %62 = vector.load %arg3[%c0_45, %c0_46] : memref<1x128xf32, #tpu.memory_space<vmem>>, vector<1x128xf32>
    %63 = vector.broadcast %62 : vector<1x128xf32> to vector<16x128xf32>
    %64 = arith.addf %61, %63 : vector<16x128xf32>
    %c0_47 = arith.constant 0 : index
    %c0_48 = arith.constant 0 : index
    %65 = vector.load %arg4[%c0_47, %c0_48] : memref<16x128xf32, #tpu.memory_space<vmem>>, vector<16x128xf32>
    tpu.vector_store %arg4[%c0_47, %c0_48], %64 {strides = array<i32>} : memref<16x128xf32, #tpu.memory_space<vmem>>, vector<16x128xf32>,
    return
  }
  func.func @transform_0(%arg0: i32) -> (i32, i32, i32) {
    %c0_i32 = arith.constant 0 : i32
    %c0_i32_0 = arith.constant 0 : i32
    %c0_i32_1 = arith.constant 0 : i32
    return %c0_i32, %arg0, %c0_i32_0 : i32, i32, i32
  }
  func.func @transform_1(%arg0: i32) -> (i32, i32, i32) {
    %c0_i32 = arith.constant 0 : i32
    %c0_i32_0 = arith.constant 0 : i32
    %c0_i32_1 = arith.constant 0 : i32
    %c0_i32_2 = arith.constant 0 : i32
    return %c0_i32, %c0_i32_0, %c0_i32_1 : i32, i32, i32
  }
  func.func @transform_2(%arg0: i32) -> (i32, i32) {
    %c0_i32 = arith.constant 0 : i32
    %c0_i32_0 = arith.constant 0 : i32
    %c0_i32_1 = arith.constant 0 : i32
    return %c0_i32, %c0_i32_0 : i32, i32
  }
  func.func @transform_3(%arg0: i32) -> (i32, i32) {
    %c0_i32 = arith.constant 0 : i32
    %c0_i32_0 = arith.constant 0 : i32
    return %arg0, %c0_i32 : i32, i32
  }
}

module attributes {stable_mosaic.version = 11 : i64} {
  func.func @_mm_kernel_1k(%arg0: i32, %arg1: i32, %arg2: memref<128x128xbf16, #tpu.memory_space<vmem>>, %arg3: memref<128x128xbf16, #tpu.memory_space<vmem>>, %arg4: memref<1x128xf32, #tpu.memory_space<vmem>>, %arg5: memref<128x128xf32, #tpu.memory_space<vmem>>) attributes {dimension_semantics = [#tpu.dimension_semantics<parallel>, #tpu.dimension_semantics<parallel>], iteration_bounds = array<i64: 1, 1>, scalar_prefetch = 0 : i64, scratch_operands = 0 : i64, tpu.core_type = #tpu.core_type<tc>, window_params = [{transform_indices = @transform_0, window_bounds = array<i64: 128, 128>}, {transform_indices = @transform_1, window_bounds = array<i64: 128, 128>}, {transform_indices = @transform_2, window_bounds = array<i64: 1, 128>}, {transform_indices = @transform_3, window_bounds = array<i64: 128, 128>}]} {
    %c0 = arith.constant 0 : index
    %c0_0 = arith.constant 0 : index
    %0 = vector.load %arg2[%c0, %c0_0] : memref<128x128xbf16, #tpu.memory_space<vmem>>, vector<128x128xbf16>
    %c0_1 = arith.constant 0 : index
    %c0_2 = arith.constant 0 : index
    %1 = vector.load %arg3[%c0_1, %c0_2] : memref<128x128xbf16, #tpu.memory_space<vmem>>, vector<128x128xbf16>
    %cst = arith.constant dense<0.000000e+00> : vector<128x128xf32>
    %2 = tpu.matmul %0, %1, %cst {dimension_numbers = #tpu.dot_dimension_numbers<[1], [0], [0], [1], [0, 0, 1, 1], [], []>} : vector<128x128xbf16>, vector<128x128xbf16>, vector<128x128xf32> -> vector<128x128xf32>
    %c0_3 = arith.constant 0 : index
    %c0_4 = arith.constant 0 : index
    %3 = vector.load %arg4[%c0_3, %c0_4] : memref<1x128xf32, #tpu.memory_space<vmem>>, vector<1x128xf32>
    %4 = vector.broadcast %3 : vector<1x128xf32> to vector<128x128xf32>
    %5 = arith.addf %2, %4 : vector<128x128xf32>
    %c0_5 = arith.constant 0 : index
    %c0_6 = arith.constant 0 : index
    %6 = vector.load %arg5[%c0_5, %c0_6] : memref<128x128xf32, #tpu.memory_space<vmem>>, vector<128x128xf32>
    tpu.vector_store %arg5[%c0_5, %c0_6], %5 {strides = array<i32>} : memref<128x128xf32, #tpu.memory_space<vmem>>, vector<128x128xf32>,
    return
  }
  func.func @transform_0(%arg0: i32, %arg1: i32) -> (i32, i32) {
    %c0_i32 = arith.constant 0 : i32
    %c0_i32_0 = arith.constant 0 : i32
    return %arg0, %c0_i32 : i32, i32
  }
  func.func @transform_1(%arg0: i32, %arg1: i32) -> (i32, i32) {
    %c0_i32 = arith.constant 0 : i32
    %c0_i32_0 = arith.constant 0 : i32
    return %c0_i32, %arg1 : i32, i32
  }
  func.func @transform_2(%arg0: i32, %arg1: i32) -> (i32, i32) {
    %c0_i32 = arith.constant 0 : i32
    %c0_i32_0 = arith.constant 0 : i32
    return %c0_i32, %arg1 : i32, i32
  }
  func.func @transform_3(%arg0: i32, %arg1: i32) -> (i32, i32) {
    %c0_i32 = arith.constant 0 : i32
    return %arg0, %arg1 : i32, i32
  }
}

module attributes {stable_mosaic.version = 11 : i64} {
  func.func @_dw_kernel(%arg0: i32, %arg1: memref<9x16x256xf32, #tpu.memory_space<vmem>>, %arg2: memref<9x1x256xf32, #tpu.memory_space<vmem>>, %arg3: memref<1x256xf32, #tpu.memory_space<vmem>>, %arg4: memref<16x256xf32, #tpu.memory_space<vmem>>) attributes {dimension_semantics = [#tpu.dimension_semantics<parallel>], iteration_bounds = array<i64: 1>, scalar_prefetch = 0 : i64, scratch_operands = 0 : i64, tpu.core_type = #tpu.core_type<tc>, window_params = [{transform_indices = @transform_0, window_bounds = array<i64: 9, 16, 256>}, {pipeline_mode = #tpu.pipeline_mode<synchronous>, transform_indices = @transform_1, window_bounds = array<i64: 9, 1, 256>}, {pipeline_mode = #tpu.pipeline_mode<synchronous>, transform_indices = @transform_2, window_bounds = array<i64: 1, 256>}, {transform_indices = @transform_3, window_bounds = array<i64: 16, 256>}]} {
    %c0 = arith.constant 0 : index
    %c0_0 = arith.constant 0 : index
    %c0_1 = arith.constant 0 : index
    %0 = vector.load %arg1[%c0, %c0_0, %c0_1] : memref<9x16x256xf32, #tpu.memory_space<vmem>>, vector<1x16x256xf32>
    %1 = vector.shape_cast %0 : vector<1x16x256xf32> to vector<16x256xf32>
    %c0_2 = arith.constant 0 : index
    %c0_3 = arith.constant 0 : index
    %c0_4 = arith.constant 0 : index
    %2 = vector.load %arg2[%c0_2, %c0_3, %c0_4] : memref<9x1x256xf32, #tpu.memory_space<vmem>>, vector<1x1x256xf32>
    %3 = vector.shape_cast %2 : vector<1x1x256xf32> to vector<1x256xf32>
    %4 = vector.broadcast %3 : vector<1x256xf32> to vector<16x256xf32>
    %5 = arith.mulf %1, %4 : vector<16x256xf32>
    %c1 = arith.constant 1 : index
    %c0_5 = arith.constant 0 : index
    %c0_6 = arith.constant 0 : index
    %6 = vector.load %arg1[%c1, %c0_5, %c0_6] : memref<9x16x256xf32, #tpu.memory_space<vmem>>, vector<1x16x256xf32>
    %7 = vector.shape_cast %6 : vector<1x16x256xf32> to vector<16x256xf32>
    %c1_7 = arith.constant 1 : index
    %c0_8 = arith.constant 0 : index
    %c0_9 = arith.constant 0 : index
    %8 = vector.load %arg2[%c1_7, %c0_8, %c0_9] : memref<9x1x256xf32, #tpu.memory_space<vmem>>, vector<1x1x256xf32>
    %9 = vector.shape_cast %8 : vector<1x1x256xf32> to vector<1x256xf32>
    %10 = vector.broadcast %9 : vector<1x256xf32> to vector<16x256xf32>
    %11 = arith.mulf %7, %10 : vector<16x256xf32>
    %12 = arith.addf %5, %11 : vector<16x256xf32>
    %c2 = arith.constant 2 : index
    %c0_10 = arith.constant 0 : index
    %c0_11 = arith.constant 0 : index
    %13 = vector.load %arg1[%c2, %c0_10, %c0_11] : memref<9x16x256xf32, #tpu.memory_space<vmem>>, vector<1x16x256xf32>
    %14 = vector.shape_cast %13 : vector<1x16x256xf32> to vector<16x256xf32>
    %c2_12 = arith.constant 2 : index
    %c0_13 = arith.constant 0 : index
    %c0_14 = arith.constant 0 : index
    %15 = vector.load %arg2[%c2_12, %c0_13, %c0_14] : memref<9x1x256xf32, #tpu.memory_space<vmem>>, vector<1x1x256xf32>
    %16 = vector.shape_cast %15 : vector<1x1x256xf32> to vector<1x256xf32>
    %17 = vector.broadcast %16 : vector<1x256xf32> to vector<16x256xf32>
    %18 = arith.mulf %14, %17 : vector<16x256xf32>
    %19 = arith.addf %12, %18 : vector<16x256xf32>
    %c3 = arith.constant 3 : index
    %c0_15 = arith.constant 0 : index
    %c0_16 = arith.constant 0 : index
    %20 = vector.load %arg1[%c3, %c0_15, %c0_16] : memref<9x16x256xf32, #tpu.memory_space<vmem>>, vector<1x16x256xf32>
    %21 = vector.shape_cast %20 : vector<1x16x256xf32> to vector<16x256xf32>
    %c3_17 = arith.constant 3 : index
    %c0_18 = arith.constant 0 : index
    %c0_19 = arith.constant 0 : index
    %22 = vector.load %arg2[%c3_17, %c0_18, %c0_19] : memref<9x1x256xf32, #tpu.memory_space<vmem>>, vector<1x1x256xf32>
    %23 = vector.shape_cast %22 : vector<1x1x256xf32> to vector<1x256xf32>
    %24 = vector.broadcast %23 : vector<1x256xf32> to vector<16x256xf32>
    %25 = arith.mulf %21, %24 : vector<16x256xf32>
    %26 = arith.addf %19, %25 : vector<16x256xf32>
    %c4 = arith.constant 4 : index
    %c0_20 = arith.constant 0 : index
    %c0_21 = arith.constant 0 : index
    %27 = vector.load %arg1[%c4, %c0_20, %c0_21] : memref<9x16x256xf32, #tpu.memory_space<vmem>>, vector<1x16x256xf32>
    %28 = vector.shape_cast %27 : vector<1x16x256xf32> to vector<16x256xf32>
    %c4_22 = arith.constant 4 : index
    %c0_23 = arith.constant 0 : index
    %c0_24 = arith.constant 0 : index
    %29 = vector.load %arg2[%c4_22, %c0_23, %c0_24] : memref<9x1x256xf32, #tpu.memory_space<vmem>>, vector<1x1x256xf32>
    %30 = vector.shape_cast %29 : vector<1x1x256xf32> to vector<1x256xf32>
    %31 = vector.broadcast %30 : vector<1x256xf32> to vector<16x256xf32>
    %32 = arith.mulf %28, %31 : vector<16x256xf32>
    %33 = arith.addf %26, %32 : vector<16x256xf32>
    %c5 = arith.constant 5 : index
    %c0_25 = arith.constant 0 : index
    %c0_26 = arith.constant 0 : index
    %34 = vector.load %arg1[%c5, %c0_25, %c0_26] : memref<9x16x256xf32, #tpu.memory_space<vmem>>, vector<1x16x256xf32>
    %35 = vector.shape_cast %34 : vector<1x16x256xf32> to vector<16x256xf32>
    %c5_27 = arith.constant 5 : index
    %c0_28 = arith.constant 0 : index
    %c0_29 = arith.constant 0 : index
    %36 = vector.load %arg2[%c5_27, %c0_28, %c0_29] : memref<9x1x256xf32, #tpu.memory_space<vmem>>, vector<1x1x256xf32>
    %37 = vector.shape_cast %36 : vector<1x1x256xf32> to vector<1x256xf32>
    %38 = vector.broadcast %37 : vector<1x256xf32> to vector<16x256xf32>
    %39 = arith.mulf %35, %38 : vector<16x256xf32>
    %40 = arith.addf %33, %39 : vector<16x256xf32>
    %c6 = arith.constant 6 : index
    %c0_30 = arith.constant 0 : index
    %c0_31 = arith.constant 0 : index
    %41 = vector.load %arg1[%c6, %c0_30, %c0_31] : memref<9x16x256xf32, #tpu.memory_space<vmem>>, vector<1x16x256xf32>
    %42 = vector.shape_cast %41 : vector<1x16x256xf32> to vector<16x256xf32>
    %c6_32 = arith.constant 6 : index
    %c0_33 = arith.constant 0 : index
    %c0_34 = arith.constant 0 : index
    %43 = vector.load %arg2[%c6_32, %c0_33, %c0_34] : memref<9x1x256xf32, #tpu.memory_space<vmem>>, vector<1x1x256xf32>
    %44 = vector.shape_cast %43 : vector<1x1x256xf32> to vector<1x256xf32>
    %45 = vector.broadcast %44 : vector<1x256xf32> to vector<16x256xf32>
    %46 = arith.mulf %42, %45 : vector<16x256xf32>
    %47 = arith.addf %40, %46 : vector<16x256xf32>
    %c7 = arith.constant 7 : index
    %c0_35 = arith.constant 0 : index
    %c0_36 = arith.constant 0 : index
    %48 = vector.load %arg1[%c7, %c0_35, %c0_36] : memref<9x16x256xf32, #tpu.memory_space<vmem>>, vector<1x16x256xf32>
    %49 = vector.shape_cast %48 : vector<1x16x256xf32> to vector<16x256xf32>
    %c7_37 = arith.constant 7 : index
    %c0_38 = arith.constant 0 : index
    %c0_39 = arith.constant 0 : index
    %50 = vector.load %arg2[%c7_37, %c0_38, %c0_39] : memref<9x1x256xf32, #tpu.memory_space<vmem>>, vector<1x1x256xf32>
    %51 = vector.shape_cast %50 : vector<1x1x256xf32> to vector<1x256xf32>
    %52 = vector.broadcast %51 : vector<1x256xf32> to vector<16x256xf32>
    %53 = arith.mulf %49, %52 : vector<16x256xf32>
    %54 = arith.addf %47, %53 : vector<16x256xf32>
    %c8 = arith.constant 8 : index
    %c0_40 = arith.constant 0 : index
    %c0_41 = arith.constant 0 : index
    %55 = vector.load %arg1[%c8, %c0_40, %c0_41] : memref<9x16x256xf32, #tpu.memory_space<vmem>>, vector<1x16x256xf32>
    %56 = vector.shape_cast %55 : vector<1x16x256xf32> to vector<16x256xf32>
    %c8_42 = arith.constant 8 : index
    %c0_43 = arith.constant 0 : index
    %c0_44 = arith.constant 0 : index
    %57 = vector.load %arg2[%c8_42, %c0_43, %c0_44] : memref<9x1x256xf32, #tpu.memory_space<vmem>>, vector<1x1x256xf32>
    %58 = vector.shape_cast %57 : vector<1x1x256xf32> to vector<1x256xf32>
    %59 = vector.broadcast %58 : vector<1x256xf32> to vector<16x256xf32>
    %60 = arith.mulf %56, %59 : vector<16x256xf32>
    %61 = arith.addf %54, %60 : vector<16x256xf32>
    %c0_45 = arith.constant 0 : index
    %c0_46 = arith.constant 0 : index
    %62 = vector.load %arg3[%c0_45, %c0_46] : memref<1x256xf32, #tpu.memory_space<vmem>>, vector<1x256xf32>
    %63 = vector.broadcast %62 : vector<1x256xf32> to vector<16x256xf32>
    %64 = arith.addf %61, %63 : vector<16x256xf32>
    %c0_47 = arith.constant 0 : index
    %c0_48 = arith.constant 0 : index
    %65 = vector.load %arg4[%c0_47, %c0_48] : memref<16x256xf32, #tpu.memory_space<vmem>>, vector<16x256xf32>
    tpu.vector_store %arg4[%c0_47, %c0_48], %64 {strides = array<i32>} : memref<16x256xf32, #tpu.memory_space<vmem>>, vector<16x256xf32>,
    return
  }
  func.func @transform_0(%arg0: i32) -> (i32, i32, i32) {
    %c0_i32 = arith.constant 0 : i32
    %c0_i32_0 = arith.constant 0 : i32
    %c0_i32_1 = arith.constant 0 : i32
    return %c0_i32, %arg0, %c0_i32_0 : i32, i32, i32
  }
  func.func @transform_1(%arg0: i32) -> (i32, i32, i32) {
    %c0_i32 = arith.constant 0 : i32
    %c0_i32_0 = arith.constant 0 : i32
    %c0_i32_1 = arith.constant 0 : i32
    %c0_i32_2 = arith.constant 0 : i32
    return %c0_i32, %c0_i32_0, %c0_i32_1 : i32, i32, i32
  }
  func.func @transform_2(%arg0: i32) -> (i32, i32) {
    %c0_i32 = arith.constant 0 : i32
    %c0_i32_0 = arith.constant 0 : i32
    %c0_i32_1 = arith.constant 0 : i32
    return %c0_i32, %c0_i32_0 : i32, i32
  }
  func.func @transform_3(%arg0: i32) -> (i32, i32) {
    %c0_i32 = arith.constant 0 : i32
    %c0_i32_0 = arith.constant 0 : i32
    return %arg0, %c0_i32 : i32, i32
  }
}

module attributes {stable_mosaic.version = 11 : i64} {
  func.func @_mm_res_kernel_1k(%arg0: i32, %arg1: i32, %arg2: memref<128x128xbf16, #tpu.memory_space<vmem>>, %arg3: memref<128x128xbf16, #tpu.memory_space<vmem>>, %arg4: memref<1x128xf32, #tpu.memory_space<vmem>>, %arg5: memref<128x128xf32, #tpu.memory_space<vmem>>, %arg6: memref<128x128xf32, #tpu.memory_space<vmem>>) attributes {dimension_semantics = [#tpu.dimension_semantics<parallel>, #tpu.dimension_semantics<parallel>], iteration_bounds = array<i64: 1, 1>, scalar_prefetch = 0 : i64, scratch_operands = 0 : i64, tpu.core_type = #tpu.core_type<tc>, window_params = [{transform_indices = @transform_0, window_bounds = array<i64: 128, 128>}, {transform_indices = @transform_1, window_bounds = array<i64: 128, 128>}, {transform_indices = @transform_2, window_bounds = array<i64: 1, 128>}, {transform_indices = @transform_3, window_bounds = array<i64: 128, 128>}, {transform_indices = @transform_4, window_bounds = array<i64: 128, 128>}]} {
    %c0 = arith.constant 0 : index
    %c0_0 = arith.constant 0 : index
    %0 = vector.load %arg2[%c0, %c0_0] : memref<128x128xbf16, #tpu.memory_space<vmem>>, vector<128x128xbf16>
    %c0_1 = arith.constant 0 : index
    %c0_2 = arith.constant 0 : index
    %1 = vector.load %arg3[%c0_1, %c0_2] : memref<128x128xbf16, #tpu.memory_space<vmem>>, vector<128x128xbf16>
    %cst = arith.constant dense<0.000000e+00> : vector<128x128xf32>
    %2 = tpu.matmul %0, %1, %cst {dimension_numbers = #tpu.dot_dimension_numbers<[1], [0], [0], [1], [0, 0, 1, 1], [], []>} : vector<128x128xbf16>, vector<128x128xbf16>, vector<128x128xf32> -> vector<128x128xf32>
    %c0_3 = arith.constant 0 : index
    %c0_4 = arith.constant 0 : index
    %3 = vector.load %arg4[%c0_3, %c0_4] : memref<1x128xf32, #tpu.memory_space<vmem>>, vector<1x128xf32>
    %4 = vector.broadcast %3 : vector<1x128xf32> to vector<128x128xf32>
    %5 = arith.addf %2, %4 : vector<128x128xf32>
    %c0_5 = arith.constant 0 : index
    %c0_6 = arith.constant 0 : index
    %6 = vector.load %arg5[%c0_5, %c0_6] : memref<128x128xf32, #tpu.memory_space<vmem>>, vector<128x128xf32>
    %7 = arith.addf %5, %6 : vector<128x128xf32>
    %c0_7 = arith.constant 0 : index
    %c0_8 = arith.constant 0 : index
    %8 = vector.load %arg6[%c0_7, %c0_8] : memref<128x128xf32, #tpu.memory_space<vmem>>, vector<128x128xf32>
    tpu.vector_store %arg6[%c0_7, %c0_8], %7 {strides = array<i32>} : memref<128x128xf32, #tpu.memory_space<vmem>>, vector<128x128xf32>,
    return
  }
  func.func @transform_0(%arg0: i32, %arg1: i32) -> (i32, i32) {
    %c0_i32 = arith.constant 0 : i32
    %c0_i32_0 = arith.constant 0 : i32
    return %arg0, %c0_i32 : i32, i32
  }
  func.func @transform_1(%arg0: i32, %arg1: i32) -> (i32, i32) {
    %c0_i32 = arith.constant 0 : i32
    %c0_i32_0 = arith.constant 0 : i32
    return %c0_i32, %arg1 : i32, i32
  }
  func.func @transform_2(%arg0: i32, %arg1: i32) -> (i32, i32) {
    %c0_i32 = arith.constant 0 : i32
    %c0_i32_0 = arith.constant 0 : i32
    return %c0_i32, %arg1 : i32, i32
  }
  func.func @transform_3(%arg0: i32, %arg1: i32) -> (i32, i32) {
    %c0_i32 = arith.constant 0 : i32
    return %arg0, %arg1 : i32, i32
  }
  func.func @transform_4(%arg0: i32, %arg1: i32) -> (i32, i32) {
    %c0_i32 = arith.constant 0 : i32
    return %arg0, %arg1 : i32, i32
  }
}

module attributes {stable_mosaic.version = 11 : i64} {
  func.func @_dw_kernel(%arg0: i32, %arg1: memref<9x8x128xf32, #tpu.memory_space<vmem>>, %arg2: memref<9x1x128xf32, #tpu.memory_space<vmem>>, %arg3: memref<1x128xf32, #tpu.memory_space<vmem>>, %arg4: memref<8x128xf32, #tpu.memory_space<vmem>>) attributes {dimension_semantics = [#tpu.dimension_semantics<parallel>], iteration_bounds = array<i64: 1>, scalar_prefetch = 0 : i64, scratch_operands = 0 : i64, tpu.core_type = #tpu.core_type<tc>, window_params = [{transform_indices = @transform_0, window_bounds = array<i64: 9, 8, 128>}, {pipeline_mode = #tpu.pipeline_mode<synchronous>, transform_indices = @transform_1, window_bounds = array<i64: 9, 1, 128>}, {pipeline_mode = #tpu.pipeline_mode<synchronous>, transform_indices = @transform_2, window_bounds = array<i64: 1, 128>}, {transform_indices = @transform_3, window_bounds = array<i64: 8, 128>}]} {
    %c0 = arith.constant 0 : index
    %c0_0 = arith.constant 0 : index
    %c0_1 = arith.constant 0 : index
    %0 = vector.load %arg1[%c0, %c0_0, %c0_1] : memref<9x8x128xf32, #tpu.memory_space<vmem>>, vector<1x8x128xf32>
    %1 = vector.shape_cast %0 : vector<1x8x128xf32> to vector<8x128xf32>
    %c0_2 = arith.constant 0 : index
    %c0_3 = arith.constant 0 : index
    %c0_4 = arith.constant 0 : index
    %2 = vector.load %arg2[%c0_2, %c0_3, %c0_4] : memref<9x1x128xf32, #tpu.memory_space<vmem>>, vector<1x1x128xf32>
    %3 = vector.shape_cast %2 : vector<1x1x128xf32> to vector<1x128xf32>
    %4 = vector.broadcast %3 : vector<1x128xf32> to vector<8x128xf32>
    %5 = arith.mulf %1, %4 : vector<8x128xf32>
    %c1 = arith.constant 1 : index
    %c0_5 = arith.constant 0 : index
    %c0_6 = arith.constant 0 : index
    %6 = vector.load %arg1[%c1, %c0_5, %c0_6] : memref<9x8x128xf32, #tpu.memory_space<vmem>>, vector<1x8x128xf32>
    %7 = vector.shape_cast %6 : vector<1x8x128xf32> to vector<8x128xf32>
    %c1_7 = arith.constant 1 : index
    %c0_8 = arith.constant 0 : index
    %c0_9 = arith.constant 0 : index
    %8 = vector.load %arg2[%c1_7, %c0_8, %c0_9] : memref<9x1x128xf32, #tpu.memory_space<vmem>>, vector<1x1x128xf32>
    %9 = vector.shape_cast %8 : vector<1x1x128xf32> to vector<1x128xf32>
    %10 = vector.broadcast %9 : vector<1x128xf32> to vector<8x128xf32>
    %11 = arith.mulf %7, %10 : vector<8x128xf32>
    %12 = arith.addf %5, %11 : vector<8x128xf32>
    %c2 = arith.constant 2 : index
    %c0_10 = arith.constant 0 : index
    %c0_11 = arith.constant 0 : index
    %13 = vector.load %arg1[%c2, %c0_10, %c0_11] : memref<9x8x128xf32, #tpu.memory_space<vmem>>, vector<1x8x128xf32>
    %14 = vector.shape_cast %13 : vector<1x8x128xf32> to vector<8x128xf32>
    %c2_12 = arith.constant 2 : index
    %c0_13 = arith.constant 0 : index
    %c0_14 = arith.constant 0 : index
    %15 = vector.load %arg2[%c2_12, %c0_13, %c0_14] : memref<9x1x128xf32, #tpu.memory_space<vmem>>, vector<1x1x128xf32>
    %16 = vector.shape_cast %15 : vector<1x1x128xf32> to vector<1x128xf32>
    %17 = vector.broadcast %16 : vector<1x128xf32> to vector<8x128xf32>
    %18 = arith.mulf %14, %17 : vector<8x128xf32>
    %19 = arith.addf %12, %18 : vector<8x128xf32>
    %c3 = arith.constant 3 : index
    %c0_15 = arith.constant 0 : index
    %c0_16 = arith.constant 0 : index
    %20 = vector.load %arg1[%c3, %c0_15, %c0_16] : memref<9x8x128xf32, #tpu.memory_space<vmem>>, vector<1x8x128xf32>
    %21 = vector.shape_cast %20 : vector<1x8x128xf32> to vector<8x128xf32>
    %c3_17 = arith.constant 3 : index
    %c0_18 = arith.constant 0 : index
    %c0_19 = arith.constant 0 : index
    %22 = vector.load %arg2[%c3_17, %c0_18, %c0_19] : memref<9x1x128xf32, #tpu.memory_space<vmem>>, vector<1x1x128xf32>
    %23 = vector.shape_cast %22 : vector<1x1x128xf32> to vector<1x128xf32>
    %24 = vector.broadcast %23 : vector<1x128xf32> to vector<8x128xf32>
    %25 = arith.mulf %21, %24 : vector<8x128xf32>
    %26 = arith.addf %19, %25 : vector<8x128xf32>
    %c4 = arith.constant 4 : index
    %c0_20 = arith.constant 0 : index
    %c0_21 = arith.constant 0 : index
    %27 = vector.load %arg1[%c4, %c0_20, %c0_21] : memref<9x8x128xf32, #tpu.memory_space<vmem>>, vector<1x8x128xf32>
    %28 = vector.shape_cast %27 : vector<1x8x128xf32> to vector<8x128xf32>
    %c4_22 = arith.constant 4 : index
    %c0_23 = arith.constant 0 : index
    %c0_24 = arith.constant 0 : index
    %29 = vector.load %arg2[%c4_22, %c0_23, %c0_24] : memref<9x1x128xf32, #tpu.memory_space<vmem>>, vector<1x1x128xf32>
    %30 = vector.shape_cast %29 : vector<1x1x128xf32> to vector<1x128xf32>
    %31 = vector.broadcast %30 : vector<1x128xf32> to vector<8x128xf32>
    %32 = arith.mulf %28, %31 : vector<8x128xf32>
    %33 = arith.addf %26, %32 : vector<8x128xf32>
    %c5 = arith.constant 5 : index
    %c0_25 = arith.constant 0 : index
    %c0_26 = arith.constant 0 : index
    %34 = vector.load %arg1[%c5, %c0_25, %c0_26] : memref<9x8x128xf32, #tpu.memory_space<vmem>>, vector<1x8x128xf32>
    %35 = vector.shape_cast %34 : vector<1x8x128xf32> to vector<8x128xf32>
    %c5_27 = arith.constant 5 : index
    %c0_28 = arith.constant 0 : index
    %c0_29 = arith.constant 0 : index
    %36 = vector.load %arg2[%c5_27, %c0_28, %c0_29] : memref<9x1x128xf32, #tpu.memory_space<vmem>>, vector<1x1x128xf32>
    %37 = vector.shape_cast %36 : vector<1x1x128xf32> to vector<1x128xf32>
    %38 = vector.broadcast %37 : vector<1x128xf32> to vector<8x128xf32>
    %39 = arith.mulf %35, %38 : vector<8x128xf32>
    %40 = arith.addf %33, %39 : vector<8x128xf32>
    %c6 = arith.constant 6 : index
    %c0_30 = arith.constant 0 : index
    %c0_31 = arith.constant 0 : index
    %41 = vector.load %arg1[%c6, %c0_30, %c0_31] : memref<9x8x128xf32, #tpu.memory_space<vmem>>, vector<1x8x128xf32>
    %42 = vector.shape_cast %41 : vector<1x8x128xf32> to vector<8x128xf32>
    %c6_32 = arith.constant 6 : index
    %c0_33 = arith.constant 0 : index
    %c0_34 = arith.constant 0 : index
    %43 = vector.load %arg2[%c6_32, %c0_33, %c0_34] : memref<9x1x128xf32, #tpu.memory_space<vmem>>, vector<1x1x128xf32>
    %44 = vector.shape_cast %43 : vector<1x1x128xf32> to vector<1x128xf32>
    %45 = vector.broadcast %44 : vector<1x128xf32> to vector<8x128xf32>
    %46 = arith.mulf %42, %45 : vector<8x128xf32>
    %47 = arith.addf %40, %46 : vector<8x128xf32>
    %c7 = arith.constant 7 : index
    %c0_35 = arith.constant 0 : index
    %c0_36 = arith.constant 0 : index
    %48 = vector.load %arg1[%c7, %c0_35, %c0_36] : memref<9x8x128xf32, #tpu.memory_space<vmem>>, vector<1x8x128xf32>
    %49 = vector.shape_cast %48 : vector<1x8x128xf32> to vector<8x128xf32>
    %c7_37 = arith.constant 7 : index
    %c0_38 = arith.constant 0 : index
    %c0_39 = arith.constant 0 : index
    %50 = vector.load %arg2[%c7_37, %c0_38, %c0_39] : memref<9x1x128xf32, #tpu.memory_space<vmem>>, vector<1x1x128xf32>
    %51 = vector.shape_cast %50 : vector<1x1x128xf32> to vector<1x128xf32>
    %52 = vector.broadcast %51 : vector<1x128xf32> to vector<8x128xf32>
    %53 = arith.mulf %49, %52 : vector<8x128xf32>
    %54 = arith.addf %47, %53 : vector<8x128xf32>
    %c8 = arith.constant 8 : index
    %c0_40 = arith.constant 0 : index
    %c0_41 = arith.constant 0 : index
    %55 = vector.load %arg1[%c8, %c0_40, %c0_41] : memref<9x8x128xf32, #tpu.memory_space<vmem>>, vector<1x8x128xf32>
    %56 = vector.shape_cast %55 : vector<1x8x128xf32> to vector<8x128xf32>
    %c8_42 = arith.constant 8 : index
    %c0_43 = arith.constant 0 : index
    %c0_44 = arith.constant 0 : index
    %57 = vector.load %arg2[%c8_42, %c0_43, %c0_44] : memref<9x1x128xf32, #tpu.memory_space<vmem>>, vector<1x1x128xf32>
    %58 = vector.shape_cast %57 : vector<1x1x128xf32> to vector<1x128xf32>
    %59 = vector.broadcast %58 : vector<1x128xf32> to vector<8x128xf32>
    %60 = arith.mulf %56, %59 : vector<8x128xf32>
    %61 = arith.addf %54, %60 : vector<8x128xf32>
    %c0_45 = arith.constant 0 : index
    %c0_46 = arith.constant 0 : index
    %62 = vector.load %arg3[%c0_45, %c0_46] : memref<1x128xf32, #tpu.memory_space<vmem>>, vector<1x128xf32>
    %63 = vector.broadcast %62 : vector<1x128xf32> to vector<8x128xf32>
    %64 = arith.addf %61, %63 : vector<8x128xf32>
    %c0_47 = arith.constant 0 : index
    %c0_48 = arith.constant 0 : index
    %65 = vector.load %arg4[%c0_47, %c0_48] : memref<8x128xf32, #tpu.memory_space<vmem>>, vector<8x128xf32>
    tpu.vector_store %arg4[%c0_47, %c0_48], %64 {strides = array<i32>} : memref<8x128xf32, #tpu.memory_space<vmem>>, vector<8x128xf32>,
    return
  }
  func.func @transform_0(%arg0: i32) -> (i32, i32, i32) {
    %c0_i32 = arith.constant 0 : i32
    %c0_i32_0 = arith.constant 0 : i32
    %c0_i32_1 = arith.constant 0 : i32
    return %c0_i32, %arg0, %c0_i32_0 : i32, i32, i32
  }
  func.func @transform_1(%arg0: i32) -> (i32, i32, i32) {
    %c0_i32 = arith.constant 0 : i32
    %c0_i32_0 = arith.constant 0 : i32
    %c0_i32_1 = arith.constant 0 : i32
    %c0_i32_2 = arith.constant 0 : i32
    return %c0_i32, %c0_i32_0, %c0_i32_1 : i32, i32, i32
  }
  func.func @transform_2(%arg0: i32) -> (i32, i32) {
    %c0_i32 = arith.constant 0 : i32
    %c0_i32_0 = arith.constant 0 : i32
    %c0_i32_1 = arith.constant 0 : i32
    return %c0_i32, %c0_i32_0 : i32, i32
  }
  func.func @transform_3(%arg0: i32) -> (i32, i32) {
    %c0_i32 = arith.constant 0 : i32
    %c0_i32_0 = arith.constant 0 : i32
    return %arg0, %c0_i32 : i32, i32
  }
}

module attributes {stable_mosaic.version = 11 : i64} {
  func.func @_mm_kernel_1k(%arg0: i32, %arg1: i32, %arg2: memref<128x128xbf16, #tpu.memory_space<vmem>>, %arg3: memref<128x256xbf16, #tpu.memory_space<vmem>>, %arg4: memref<1x256xf32, #tpu.memory_space<vmem>>, %arg5: memref<128x256xf32, #tpu.memory_space<vmem>>) attributes {dimension_semantics = [#tpu.dimension_semantics<parallel>, #tpu.dimension_semantics<parallel>], iteration_bounds = array<i64: 1, 1>, scalar_prefetch = 0 : i64, scratch_operands = 0 : i64, tpu.core_type = #tpu.core_type<tc>, window_params = [{transform_indices = @transform_0, window_bounds = array<i64: 128, 128>}, {transform_indices = @transform_1, window_bounds = array<i64: 128, 256>}, {transform_indices = @transform_2, window_bounds = array<i64: 1, 256>}, {transform_indices = @transform_3, window_bounds = array<i64: 128, 256>}]} {
    %c0 = arith.constant 0 : index
    %c0_0 = arith.constant 0 : index
    %0 = vector.load %arg2[%c0, %c0_0] : memref<128x128xbf16, #tpu.memory_space<vmem>>, vector<128x128xbf16>
    %c0_1 = arith.constant 0 : index
    %c0_2 = arith.constant 0 : index
    %1 = vector.load %arg3[%c0_1, %c0_2] : memref<128x256xbf16, #tpu.memory_space<vmem>>, vector<128x256xbf16>
    %cst = arith.constant dense<0.000000e+00> : vector<128x256xf32>
    %2 = tpu.matmul %0, %1, %cst {dimension_numbers = #tpu.dot_dimension_numbers<[1], [0], [0], [1], [0, 0, 1, 1], [], []>} : vector<128x128xbf16>, vector<128x256xbf16>, vector<128x256xf32> -> vector<128x256xf32>
    %c0_3 = arith.constant 0 : index
    %c0_4 = arith.constant 0 : index
    %3 = vector.load %arg4[%c0_3, %c0_4] : memref<1x256xf32, #tpu.memory_space<vmem>>, vector<1x256xf32>
    %4 = vector.broadcast %3 : vector<1x256xf32> to vector<128x256xf32>
    %5 = arith.addf %2, %4 : vector<128x256xf32>
    %c0_5 = arith.constant 0 : index
    %c0_6 = arith.constant 0 : index
    %6 = vector.load %arg5[%c0_5, %c0_6] : memref<128x256xf32, #tpu.memory_space<vmem>>, vector<128x256xf32>
    tpu.vector_store %arg5[%c0_5, %c0_6], %5 {strides = array<i32>} : memref<128x256xf32, #tpu.memory_space<vmem>>, vector<128x256xf32>,
    return
  }
  func.func @transform_0(%arg0: i32, %arg1: i32) -> (i32, i32) {
    %c0_i32 = arith.constant 0 : i32
    %c0_i32_0 = arith.constant 0 : i32
    return %arg0, %c0_i32 : i32, i32
  }
  func.func @transform_1(%arg0: i32, %arg1: i32) -> (i32, i32) {
    %c0_i32 = arith.constant 0 : i32
    %c0_i32_0 = arith.constant 0 : i32
    return %c0_i32, %arg1 : i32, i32
  }
  func.func @transform_2(%arg0: i32, %arg1: i32) -> (i32, i32) {
    %c0_i32 = arith.constant 0 : i32
    %c0_i32_0 = arith.constant 0 : i32
    return %c0_i32, %arg1 : i32, i32
  }
  func.func @transform_3(%arg0: i32, %arg1: i32) -> (i32, i32) {
    %c0_i32 = arith.constant 0 : i32
    return %arg0, %arg1 : i32, i32
  }
}

module attributes {stable_mosaic.version = 11 : i64} {
  func.func @_mm_kernel(%arg0: i32, %arg1: i32, %arg2: i32, %arg3: memref<128x256xbf16, #tpu.memory_space<vmem>>, %arg4: memref<256x256xbf16, #tpu.memory_space<vmem>>, %arg5: memref<1x256xf32, #tpu.memory_space<vmem>>, %arg6: memref<128x256xf32, #tpu.memory_space<vmem>>, %arg7: memref<128x256xf32, #tpu.memory_space<vmem>>) attributes {dimension_semantics = [#tpu.dimension_semantics<parallel>, #tpu.dimension_semantics<parallel>, #tpu.dimension_semantics<arbitrary>], iteration_bounds = array<i64: 1, 1, 9>, scalar_prefetch = 0 : i64, scratch_operands = 1 : i64, tpu.core_type = #tpu.core_type<tc>, window_params = [{transform_indices = @transform_0, window_bounds = array<i64: 128, 256>}, {transform_indices = @transform_1, window_bounds = array<i64: 256, 256>}, {transform_indices = @transform_2, window_bounds = array<i64: 1, 256>}, {transform_indices = @transform_3, window_bounds = array<i64: 128, 256>}]} {
    %c0_i32 = arith.constant 0 : i32
    %0 = arith.cmpi eq, %arg2, %c0_i32 : i32
    %1 = arith.extui %0 : i1 to i32
    %c0_i32_0 = arith.constant 0 : i32
    %2 = arith.cmpi ne, %1, %c0_i32_0 : i32
    scf.if %2 {
      %cst_9 = arith.constant 0.000000e+00 : f32
      %12 = vector.broadcast %cst_9 : f32 to vector<128x256xf32>
      %c0_10 = arith.constant 0 : index
      %c0_11 = arith.constant 0 : index
      %13 = vector.load %arg7[%c0_10, %c0_11] : memref<128x256xf32, #tpu.memory_space<vmem>>, vector<128x256xf32>
      tpu.vector_store %arg7[%c0_10, %c0_11], %12 {strides = array<i32>} : memref<128x256xf32, #tpu.memory_space<vmem>>, vector<128x256xf32>,
    } else {
    }
    %c0 = arith.constant 0 : index
    %c0_1 = arith.constant 0 : index
    %3 = vector.load %arg7[%c0, %c0_1] : memref<128x256xf32, #tpu.memory_space<vmem>>, vector<128x256xf32>
    %c0_2 = arith.constant 0 : index
    %c0_3 = arith.constant 0 : index
    %4 = vector.load %arg3[%c0_2, %c0_3] : memref<128x256xbf16, #tpu.memory_space<vmem>>, vector<128x256xbf16>
    %c0_4 = arith.constant 0 : index
    %c0_5 = arith.constant 0 : index
    %5 = vector.load %arg4[%c0_4, %c0_5] : memref<256x256xbf16, #tpu.memory_space<vmem>>, vector<256x256xbf16>
    %cst = arith.constant dense<0.000000e+00> : vector<128x256xf32>
    %6 = tpu.matmul %4, %5, %cst {dimension_numbers = #tpu.dot_dimension_numbers<[1], [0], [0], [1], [0, 0, 1, 1], [], []>} : vector<128x256xbf16>, vector<256x256xbf16>, vector<128x256xf32> -> vector<128x256xf32>
    %7 = arith.addf %3, %6 : vector<128x256xf32>
    %c0_6 = arith.constant 0 : index
    %c0_7 = arith.constant 0 : index
    %8 = vector.load %arg7[%c0_6, %c0_7] : memref<128x256xf32, #tpu.memory_space<vmem>>, vector<128x256xf32>
    tpu.vector_store %arg7[%c0_6, %c0_7], %7 {strides = array<i32>} : memref<128x256xf32, #tpu.memory_space<vmem>>, vector<128x256xf32>,
    %c8_i32 = arith.constant 8 : i32
    %9 = arith.cmpi eq, %arg2, %c8_i32 : i32
    %10 = arith.extui %9 : i1 to i32
    %c0_i32_8 = arith.constant 0 : i32
    %11 = arith.cmpi ne, %10, %c0_i32_8 : i32
    scf.if %11 {
      %c0_9 = arith.constant 0 : index
      %c0_10 = arith.constant 0 : index
      %12 = vector.load %arg7[%c0_9, %c0_10] : memref<128x256xf32, #tpu.memory_space<vmem>>, vector<128x256xf32>
      %c0_11 = arith.constant 0 : index
      %c0_12 = arith.constant 0 : index
      %13 = vector.load %arg5[%c0_11, %c0_12] : memref<1x256xf32, #tpu.memory_space<vmem>>, vector<1x256xf32>
      %14 = vector.broadcast %13 : vector<1x256xf32> to vector<128x256xf32>
      %15 = arith.addf %12, %14 : vector<128x256xf32>
      %c0_13 = arith.constant 0 : index
      %c0_14 = arith.constant 0 : index
      %16 = vector.load %arg6[%c0_13, %c0_14] : memref<128x256xf32, #tpu.memory_space<vmem>>, vector<128x256xf32>
      tpu.vector_store %arg6[%c0_13, %c0_14], %15 {strides = array<i32>} : memref<128x256xf32, #tpu.memory_space<vmem>>, vector<128x256xf32>,
    } else {
    }
    return
  }
  func.func @transform_0(%arg0: i32, %arg1: i32, %arg2: i32) -> (i32, i32) {
    %c0_i32 = arith.constant 0 : i32
    return %arg0, %arg2 : i32, i32
  }
  func.func @transform_1(%arg0: i32, %arg1: i32, %arg2: i32) -> (i32, i32) {
    %c0_i32 = arith.constant 0 : i32
    return %arg2, %arg1 : i32, i32
  }
  func.func @transform_2(%arg0: i32, %arg1: i32, %arg2: i32) -> (i32, i32) {
    %c0_i32 = arith.constant 0 : i32
    %c0_i32_0 = arith.constant 0 : i32
    return %c0_i32, %arg1 : i32, i32
  }
  func.func @transform_3(%arg0: i32, %arg1: i32, %arg2: i32) -> (i32, i32) {
    %c0_i32 = arith.constant 0 : i32
    return %arg0, %arg1 : i32, i32
  }
}

module attributes {stable_mosaic.version = 11 : i64} {
  func.func @_mm_kernel(%arg0: i32, %arg1: i32, %arg2: i32, %arg3: memref<128x256xbf16, #tpu.memory_space<vmem>>, %arg4: memref<256x256xbf16, #tpu.memory_space<vmem>>, %arg5: memref<1x256xf32, #tpu.memory_space<vmem>>, %arg6: memref<128x256xf32, #tpu.memory_space<vmem>>, %arg7: memref<128x256xf32, #tpu.memory_space<vmem>>) attributes {dimension_semantics = [#tpu.dimension_semantics<parallel>, #tpu.dimension_semantics<parallel>, #tpu.dimension_semantics<arbitrary>], iteration_bounds = array<i64: 1, 2, 36>, scalar_prefetch = 0 : i64, scratch_operands = 1 : i64, tpu.core_type = #tpu.core_type<tc>, window_params = [{transform_indices = @transform_0, window_bounds = array<i64: 128, 256>}, {transform_indices = @transform_1, window_bounds = array<i64: 256, 256>}, {transform_indices = @transform_2, window_bounds = array<i64: 1, 256>}, {transform_indices = @transform_3, window_bounds = array<i64: 128, 256>}]} {
    %c0_i32 = arith.constant 0 : i32
    %0 = arith.cmpi eq, %arg2, %c0_i32 : i32
    %1 = arith.extui %0 : i1 to i32
    %c0_i32_0 = arith.constant 0 : i32
    %2 = arith.cmpi ne, %1, %c0_i32_0 : i32
    scf.if %2 {
      %cst_9 = arith.constant 0.000000e+00 : f32
      %12 = vector.broadcast %cst_9 : f32 to vector<128x256xf32>
      %c0_10 = arith.constant 0 : index
      %c0_11 = arith.constant 0 : index
      %13 = vector.load %arg7[%c0_10, %c0_11] : memref<128x256xf32, #tpu.memory_space<vmem>>, vector<128x256xf32>
      tpu.vector_store %arg7[%c0_10, %c0_11], %12 {strides = array<i32>} : memref<128x256xf32, #tpu.memory_space<vmem>>, vector<128x256xf32>,
    } else {
    }
    %c0 = arith.constant 0 : index
    %c0_1 = arith.constant 0 : index
    %3 = vector.load %arg7[%c0, %c0_1] : memref<128x256xf32, #tpu.memory_space<vmem>>, vector<128x256xf32>
    %c0_2 = arith.constant 0 : index
    %c0_3 = arith.constant 0 : index
    %4 = vector.load %arg3[%c0_2, %c0_3] : memref<128x256xbf16, #tpu.memory_space<vmem>>, vector<128x256xbf16>
    %c0_4 = arith.constant 0 : index
    %c0_5 = arith.constant 0 : index
    %5 = vector.load %arg4[%c0_4, %c0_5] : memref<256x256xbf16, #tpu.memory_space<vmem>>, vector<256x256xbf16>
    %cst = arith.constant dense<0.000000e+00> : vector<128x256xf32>
    %6 = tpu.matmul %4, %5, %cst {dimension_numbers = #tpu.dot_dimension_numbers<[1], [0], [0], [1], [0, 0, 1, 1], [], []>} : vector<128x256xbf16>, vector<256x256xbf16>, vector<128x256xf32> -> vector<128x256xf32>
    %7 = arith.addf %3, %6 : vector<128x256xf32>
    %c0_6 = arith.constant 0 : index
    %c0_7 = arith.constant 0 : index
    %8 = vector.load %arg7[%c0_6, %c0_7] : memref<128x256xf32, #tpu.memory_space<vmem>>, vector<128x256xf32>
    tpu.vector_store %arg7[%c0_6, %c0_7], %7 {strides = array<i32>} : memref<128x256xf32, #tpu.memory_space<vmem>>, vector<128x256xf32>,
    %c35_i32 = arith.constant 35 : i32
    %9 = arith.cmpi eq, %arg2, %c35_i32 : i32
    %10 = arith.extui %9 : i1 to i32
    %c0_i32_8 = arith.constant 0 : i32
    %11 = arith.cmpi ne, %10, %c0_i32_8 : i32
    scf.if %11 {
      %c0_9 = arith.constant 0 : index
      %c0_10 = arith.constant 0 : index
      %12 = vector.load %arg7[%c0_9, %c0_10] : memref<128x256xf32, #tpu.memory_space<vmem>>, vector<128x256xf32>
      %c0_11 = arith.constant 0 : index
      %c0_12 = arith.constant 0 : index
      %13 = vector.load %arg5[%c0_11, %c0_12] : memref<1x256xf32, #tpu.memory_space<vmem>>, vector<1x256xf32>
      %14 = vector.broadcast %13 : vector<1x256xf32> to vector<128x256xf32>
      %15 = arith.addf %12, %14 : vector<128x256xf32>
      %c0_13 = arith.constant 0 : index
      %c0_14 = arith.constant 0 : index
      %16 = vector.load %arg6[%c0_13, %c0_14] : memref<128x256xf32, #tpu.memory_space<vmem>>, vector<128x256xf32>
      tpu.vector_store %arg6[%c0_13, %c0_14], %15 {strides = array<i32>} : memref<128x256xf32, #tpu.memory_space<vmem>>, vector<128x256xf32>,
    } else {
    }
    return
  }
  func.func @transform_0(%arg0: i32, %arg1: i32, %arg2: i32) -> (i32, i32) {
    %c0_i32 = arith.constant 0 : i32
    return %arg0, %arg2 : i32, i32
  }
  func.func @transform_1(%arg0: i32, %arg1: i32, %arg2: i32) -> (i32, i32) {
    %c0_i32 = arith.constant 0 : i32
    return %arg2, %arg1 : i32, i32
  }
  func.func @transform_2(%arg0: i32, %arg1: i32, %arg2: i32) -> (i32, i32) {
    %c0_i32 = arith.constant 0 : i32
    %c0_i32_0 = arith.constant 0 : i32
    return %c0_i32, %arg1 : i32, i32
  }
  func.func @transform_3(%arg0: i32, %arg1: i32, %arg2: i32) -> (i32, i32) {
    %c0_i32 = arith.constant 0 : i32
    return %arg0, %arg1 : i32, i32
  }
}

module attributes {stable_mosaic.version = 11 : i64} {
  func.func @_mm_kernel(%arg0: i32, %arg1: i32, %arg2: i32, %arg3: memref<128x256xbf16, #tpu.memory_space<vmem>>, %arg4: memref<256x128xbf16, #tpu.memory_space<vmem>>, %arg5: memref<1x128xf32, #tpu.memory_space<vmem>>, %arg6: memref<128x128xf32, #tpu.memory_space<vmem>>, %arg7: memref<128x128xf32, #tpu.memory_space<vmem>>) attributes {dimension_semantics = [#tpu.dimension_semantics<parallel>, #tpu.dimension_semantics<parallel>, #tpu.dimension_semantics<arbitrary>], iteration_bounds = array<i64: 1, 1, 2>, scalar_prefetch = 0 : i64, scratch_operands = 1 : i64, tpu.core_type = #tpu.core_type<tc>, window_params = [{transform_indices = @transform_0, window_bounds = array<i64: 128, 256>}, {transform_indices = @transform_1, window_bounds = array<i64: 256, 128>}, {transform_indices = @transform_2, window_bounds = array<i64: 1, 128>}, {transform_indices = @transform_3, window_bounds = array<i64: 128, 128>}]} {
    %c0_i32 = arith.constant 0 : i32
    %0 = arith.cmpi eq, %arg2, %c0_i32 : i32
    %1 = arith.extui %0 : i1 to i32
    %c0_i32_0 = arith.constant 0 : i32
    %2 = arith.cmpi ne, %1, %c0_i32_0 : i32
    scf.if %2 {
      %cst_9 = arith.constant 0.000000e+00 : f32
      %12 = vector.broadcast %cst_9 : f32 to vector<128x128xf32>
      %c0_10 = arith.constant 0 : index
      %c0_11 = arith.constant 0 : index
      %13 = vector.load %arg7[%c0_10, %c0_11] : memref<128x128xf32, #tpu.memory_space<vmem>>, vector<128x128xf32>
      tpu.vector_store %arg7[%c0_10, %c0_11], %12 {strides = array<i32>} : memref<128x128xf32, #tpu.memory_space<vmem>>, vector<128x128xf32>,
    } else {
    }
    %c0 = arith.constant 0 : index
    %c0_1 = arith.constant 0 : index
    %3 = vector.load %arg7[%c0, %c0_1] : memref<128x128xf32, #tpu.memory_space<vmem>>, vector<128x128xf32>
    %c0_2 = arith.constant 0 : index
    %c0_3 = arith.constant 0 : index
    %4 = vector.load %arg3[%c0_2, %c0_3] : memref<128x256xbf16, #tpu.memory_space<vmem>>, vector<128x256xbf16>
    %c0_4 = arith.constant 0 : index
    %c0_5 = arith.constant 0 : index
    %5 = vector.load %arg4[%c0_4, %c0_5] : memref<256x128xbf16, #tpu.memory_space<vmem>>, vector<256x128xbf16>
    %cst = arith.constant dense<0.000000e+00> : vector<128x128xf32>
    %6 = tpu.matmul %4, %5, %cst {dimension_numbers = #tpu.dot_dimension_numbers<[1], [0], [0], [1], [0, 0, 1, 1], [], []>} : vector<128x256xbf16>, vector<256x128xbf16>, vector<128x128xf32> -> vector<128x128xf32>
    %7 = arith.addf %3, %6 : vector<128x128xf32>
    %c0_6 = arith.constant 0 : index
    %c0_7 = arith.constant 0 : index
    %8 = vector.load %arg7[%c0_6, %c0_7] : memref<128x128xf32, #tpu.memory_space<vmem>>, vector<128x128xf32>
    tpu.vector_store %arg7[%c0_6, %c0_7], %7 {strides = array<i32>} : memref<128x128xf32, #tpu.memory_space<vmem>>, vector<128x128xf32>,
    %c1_i32 = arith.constant 1 : i32
    %9 = arith.cmpi eq, %arg2, %c1_i32 : i32
    %10 = arith.extui %9 : i1 to i32
    %c0_i32_8 = arith.constant 0 : i32
    %11 = arith.cmpi ne, %10, %c0_i32_8 : i32
    scf.if %11 {
      %c0_9 = arith.constant 0 : index
      %c0_10 = arith.constant 0 : index
      %12 = vector.load %arg7[%c0_9, %c0_10] : memref<128x128xf32, #tpu.memory_space<vmem>>, vector<128x128xf32>
      %c0_11 = arith.constant 0 : index
      %c0_12 = arith.constant 0 : index
      %13 = vector.load %arg5[%c0_11, %c0_12] : memref<1x128xf32, #tpu.memory_space<vmem>>, vector<1x128xf32>
      %14 = vector.broadcast %13 : vector<1x128xf32> to vector<128x128xf32>
      %15 = arith.addf %12, %14 : vector<128x128xf32>
      %c0_13 = arith.constant 0 : index
      %c0_14 = arith.constant 0 : index
      %16 = vector.load %arg6[%c0_13, %c0_14] : memref<128x128xf32, #tpu.memory_space<vmem>>, vector<128x128xf32>
      tpu.vector_store %arg6[%c0_13, %c0_14], %15 {strides = array<i32>} : memref<128x128xf32, #tpu.memory_space<vmem>>, vector<128x128xf32>,
    } else {
    }
    return
  }
  func.func @transform_0(%arg0: i32, %arg1: i32, %arg2: i32) -> (i32, i32) {
    %c0_i32 = arith.constant 0 : i32
    return %arg0, %arg2 : i32, i32
  }
  func.func @transform_1(%arg0: i32, %arg1: i32, %arg2: i32) -> (i32, i32) {
    %c0_i32 = arith.constant 0 : i32
    return %arg2, %arg1 : i32, i32
  }
  func.func @transform_2(%arg0: i32, %arg1: i32, %arg2: i32) -> (i32, i32) {
    %c0_i32 = arith.constant 0 : i32
    %c0_i32_0 = arith.constant 0 : i32
    return %c0_i32, %arg1 : i32, i32
  }
  func.func @transform_3(%arg0: i32, %arg1: i32, %arg2: i32) -> (i32, i32) {
    %c0_i32 = arith.constant 0 : i32
    return %arg0, %arg1 : i32, i32
  }
}

module attributes {stable_mosaic.version = 11 : i64} {
  func.func @_mm_kernel(%arg0: i32, %arg1: i32, %arg2: i32, %arg3: memref<128x256xbf16, #tpu.memory_space<vmem>>, %arg4: memref<256x256xbf16, #tpu.memory_space<vmem>>, %arg5: memref<1x256xf32, #tpu.memory_space<vmem>>, %arg6: memref<128x256xf32, #tpu.memory_space<vmem>>, %arg7: memref<128x256xf32, #tpu.memory_space<vmem>>) attributes {dimension_semantics = [#tpu.dimension_semantics<parallel>, #tpu.dimension_semantics<parallel>, #tpu.dimension_semantics<arbitrary>], iteration_bounds = array<i64: 1, 2, 18>, scalar_prefetch = 0 : i64, scratch_operands = 1 : i64, tpu.core_type = #tpu.core_type<tc>, window_params = [{transform_indices = @transform_0, window_bounds = array<i64: 128, 256>}, {transform_indices = @transform_1, window_bounds = array<i64: 256, 256>}, {transform_indices = @transform_2, window_bounds = array<i64: 1, 256>}, {transform_indices = @transform_3, window_bounds = array<i64: 128, 256>}]} {
    %c0_i32 = arith.constant 0 : i32
    %0 = arith.cmpi eq, %arg2, %c0_i32 : i32
    %1 = arith.extui %0 : i1 to i32
    %c0_i32_0 = arith.constant 0 : i32
    %2 = arith.cmpi ne, %1, %c0_i32_0 : i32
    scf.if %2 {
      %cst_9 = arith.constant 0.000000e+00 : f32
      %12 = vector.broadcast %cst_9 : f32 to vector<128x256xf32>
      %c0_10 = arith.constant 0 : index
      %c0_11 = arith.constant 0 : index
      %13 = vector.load %arg7[%c0_10, %c0_11] : memref<128x256xf32, #tpu.memory_space<vmem>>, vector<128x256xf32>
      tpu.vector_store %arg7[%c0_10, %c0_11], %12 {strides = array<i32>} : memref<128x256xf32, #tpu.memory_space<vmem>>, vector<128x256xf32>,
    } else {
    }
    %c0 = arith.constant 0 : index
    %c0_1 = arith.constant 0 : index
    %3 = vector.load %arg7[%c0, %c0_1] : memref<128x256xf32, #tpu.memory_space<vmem>>, vector<128x256xf32>
    %c0_2 = arith.constant 0 : index
    %c0_3 = arith.constant 0 : index
    %4 = vector.load %arg3[%c0_2, %c0_3] : memref<128x256xbf16, #tpu.memory_space<vmem>>, vector<128x256xbf16>
    %c0_4 = arith.constant 0 : index
    %c0_5 = arith.constant 0 : index
    %5 = vector.load %arg4[%c0_4, %c0_5] : memref<256x256xbf16, #tpu.memory_space<vmem>>, vector<256x256xbf16>
    %cst = arith.constant dense<0.000000e+00> : vector<128x256xf32>
    %6 = tpu.matmul %4, %5, %cst {dimension_numbers = #tpu.dot_dimension_numbers<[1], [0], [0], [1], [0, 0, 1, 1], [], []>} : vector<128x256xbf16>, vector<256x256xbf16>, vector<128x256xf32> -> vector<128x256xf32>
    %7 = arith.addf %3, %6 : vector<128x256xf32>
    %c0_6 = arith.constant 0 : index
    %c0_7 = arith.constant 0 : index
    %8 = vector.load %arg7[%c0_6, %c0_7] : memref<128x256xf32, #tpu.memory_space<vmem>>, vector<128x256xf32>
    tpu.vector_store %arg7[%c0_6, %c0_7], %7 {strides = array<i32>} : memref<128x256xf32, #tpu.memory_space<vmem>>, vector<128x256xf32>,
    %c17_i32 = arith.constant 17 : i32
    %9 = arith.cmpi eq, %arg2, %c17_i32 : i32
    %10 = arith.extui %9 : i1 to i32
    %c0_i32_8 = arith.constant 0 : i32
    %11 = arith.cmpi ne, %10, %c0_i32_8 : i32
    scf.if %11 {
      %c0_9 = arith.constant 0 : index
      %c0_10 = arith.constant 0 : index
      %12 = vector.load %arg7[%c0_9, %c0_10] : memref<128x256xf32, #tpu.memory_space<vmem>>, vector<128x256xf32>
      %c0_11 = arith.constant 0 : index
      %c0_12 = arith.constant 0 : index
      %13 = vector.load %arg5[%c0_11, %c0_12] : memref<1x256xf32, #tpu.memory_space<vmem>>, vector<1x256xf32>
      %14 = vector.broadcast %13 : vector<1x256xf32> to vector<128x256xf32>
      %15 = arith.addf %12, %14 : vector<128x256xf32>
      %c0_13 = arith.constant 0 : index
      %c0_14 = arith.constant 0 : index
      %16 = vector.load %arg6[%c0_13, %c0_14] : memref<128x256xf32, #tpu.memory_space<vmem>>, vector<128x256xf32>
      tpu.vector_store %arg6[%c0_13, %c0_14], %15 {strides = array<i32>} : memref<128x256xf32, #tpu.memory_space<vmem>>, vector<128x256xf32>,
    } else {
    }
    return
  }
  func.func @transform_0(%arg0: i32, %arg1: i32, %arg2: i32) -> (i32, i32) {
    %c0_i32 = arith.constant 0 : i32
    return %arg0, %arg2 : i32, i32
  }
  func.func @transform_1(%arg0: i32, %arg1: i32, %arg2: i32) -> (i32, i32) {
    %c0_i32 = arith.constant 0 : i32
    return %arg2, %arg1 : i32, i32
  }
  func.func @transform_2(%arg0: i32, %arg1: i32, %arg2: i32) -> (i32, i32) {
    %c0_i32 = arith.constant 0 : i32
    %c0_i32_0 = arith.constant 0 : i32
    return %c0_i32, %arg1 : i32, i32
  }
  func.func @transform_3(%arg0: i32, %arg1: i32, %arg2: i32) -> (i32, i32) {
    %c0_i32 = arith.constant 0 : i32
    return %arg0, %arg1 : i32, i32
  }
}

</mosaic_0001>

<bundles_post_ra>
// kernel: _lambda_.18
= control target key start
LH: loop header
LB: loop body
LE: loop exit
PB: predicated region body
PF: predicated region fallthrough
CT: control target
= control target key end

     0   :  { %s938_s12 = smov 0   ;;  %s940_s13 = smov 0   ;;  %s1088_s0 = inlined_call_operand.vmem [shape: bf16[2048,128], index: 0, kind: input, shape index: {}]   ;;  %s1089_s1 = inlined_call_operand.vmem [shape: bf16[128,128], index: 1, kind: input, shape index: {}]   ;;  %s1090_s2 = inlined_call_operand.vmem [shape: f32[1,128], index: 2, kind: input, shape index: {}]   ;;  %s1091_s3 = inlined_call_operand.vmem [shape: f32[2048,128], index: 3, kind: output, shape index: {}]  }
   0x1   :  { %s942_s14 = smov 0  }
   0x2 LB: > { %s25_s15 = sadd.s32 1, %s912_s13  ;;  %p726_p0 = scmp.ge.s32.totalorder %s916_s14, 1  ;;  %s916_s14 = sphi %s942_s14, %s13_s14   ;;  %s912_s13 = sphi %s940_s13, %s1093_s13   ;;  %s908_s12 = sphi %s938_s12, %s1092_s12  }
   0x3   : > { %p27_p1 = scmp.ge.s32.totalorder %s25_s15, 8  ;;  %p169_p2 = scmp.lt.s32.totalorder %s916_s14, 9 }
   0x5   : > { %s1095_s15 = smov (%p27_p1, %s25_s15), 0  ;;  %p170_p3 = pnand %p726_p0, %p169_p2 }
   0x6   : > { %v870_v0 = vld [vmem:[%s1089_s1] sm:$0xff] (!%p170_p3)   ;;  %s727_s18 = sshll.u32 (!%p170_p3), %s908_s12, 5  ;;  %v871_v1 = vld [vmem:[%s1089_s1 + $0x8] sm:$0xff] (!%p170_p3)   ;;  %v872_v2 = vld [vmem:[%s1089_s1 + $0x10] sm:$0xff] (!%p170_p3)  }
   0x7   : > { %173 = sbr.rel (%p170_p3) target bundleno = 281 (0x119), region = 32  ;;  %p204_p4 = scmp.lt.s32.totalorder (!%p170_p3), %s727_s18, 255  ;;  %782 = vmatprep.subr.bf16.mxu0 (!%p170_p3), %v870_v0  ;;  %830 = vmatprep.subr.bf16.mxu1 (!%p170_p3), %v870_v0  ;;  %v873_v3 = vld [vmem:[%s1089_s1 + $0x18] sm:$0xff] (!%p170_p3)   ;;  %v874_v6 = vld [vmem:[%s1089_s1 + $0x20] sm:$0xff] (!%p170_p3)   ;;  %v875_v7 = vld [vmem:[%s1089_s1 + $0x28] sm:$0xff] (!%p170_p3)  }
   0x8   : > { %783 = vmatpush3.bf16.msra.mxu0 (!%p170_p3), %v870_v0  ;;  %838 = vmatpush3.bf16.msra.mxu1 (!%p170_p3), %v870_v0  ;;  %v876_v8 = vld [vmem:[%s1089_s1 + $0x30] sm:$0xff] (!%p170_p3)   ;;  %v877_v9 = vld [vmem:[%s1089_s1 + $0x38] sm:$0xff] (!%p170_p3)   ;;  %v1008_v24 = vld [vmem:[%s1090_s2] ss:$0 sm:$0xff] (!%p170_p3) }
   0x9   : > { %784 = vmatprep.subr.bf16.mxu0 (!%p170_p3), %v871_v1  ;;  %831 = vmatprep.subr.bf16.mxu1 (!%p170_p3), %v871_v1 }
   0xc   : > { %785 = vmatpush3.bf16.msra.mxu0 (!%p170_p3), %v871_v1  ;;  %839 = vmatpush3.bf16.msra.mxu1 (!%p170_p3), %v871_v1 }
   0xd   : > { %786 = vmatprep.subr.bf16.mxu0 (!%p170_p3), %v872_v2  ;;  %832 = vmatprep.subr.bf16.mxu1 (!%p170_p3), %v872_v2 }
   0xe   : > { %s1097_s18 = smov (!%p204_p4, %s727_s18), 255 }
   0xf   : > { %s728_s23 = sshll.u32 %s1097_s18, 2  ;;  %s730_s10 = sshll.u32 %s1097_s18, 3 }
  0x10   : > { %s971_s26 = scalar_lea.vmem %s1088_s0, %s728_s23  ;;  %787 = vmatpush3.bf16.msra.mxu0 %v872_v2  ;;  %840 = vmatpush3.bf16.msra.mxu1 %v872_v2  ;;  %s1013_s19 = scalar_lea.vmem %s1091_s3, %s730_s10 }
  0x11   : > { %v878_v4 = vld [vmem:[%s971_s26] sm:$0xff]   ;;  %788 = vmatprep.subr.bf16.mxu0 %v873_v3  ;;  %833 = vmatprep.subr.bf16.mxu1 %v873_v3  ;;  %v880_v10 = vld [vmem:[%s971_s26 + $0x8] sm:$0xff]   ;;  %v882_v12 = vld [vmem:[%s971_s26 + $0x10] sm:$0xff]  }
  0x12   : > { %v879_v5 = vld [vmem:[%s971_s26 + $0x40] sm:$0xff]   ;;  %798 = vmatprep.mubr.bf16.mxu0 %v878_v4  ;;  %v881_v11 = vld [vmem:[%s971_s26 + $0x48] sm:$0xff]   ;;  %v883_v13 = vld [vmem:[%s971_s26 + $0x50] sm:$0xff]  }
  0x13   : > { %814 = vmatprep.mubr.bf16.mxu1 %v879_v5  ;;  %v884_v14 = vld [vmem:[%s971_s26 + $0x18] sm:$0xff]   ;;  %v886_v16 = vld [vmem:[%s971_s26 + $0x20] sm:$0xff]   ;;  %v888_v18 = vld [vmem:[%s971_s26 + $0x28] sm:$0xff]  }
  0x14   : > { %789 = vmatpush3.bf16.msra.mxu0 %v873_v3  ;;  %841 = vmatpush3.bf16.msra.mxu1 %v873_v3  ;;  %v885_v15 = vld [vmem:[%s971_s26 + $0x58] sm:$0xff]   ;;  %v887_v17 = vld [vmem:[%s971_s26 + $0x60] sm:$0xff]   ;;  %v889_v19 = vld [vmem:[%s971_s26 + $0x68] sm:$0xff]  }
  0x15   : > { %790 = vmatprep.subr.bf16.mxu0 %v874_v6  ;;  %834 = vmatprep.subr.bf16.mxu1 %v874_v6  ;;  %v890_v20 = vld [vmem:[%s971_s26 + $0x30] sm:$0xff]   ;;  %v892_v22 = vld [vmem:[%s971_s26 + $0x38] sm:$0xff]  }
  0x16   : > { %v891_v21 = vld [vmem:[%s971_s26 + $0x70] sm:$0xff]   ;;  %v893_v23 = vld [vmem:[%s971_s26 + $0x78] sm:$0xff]  }
  0x18   : > { %791 = vmatpush3.bf16.msra.mxu0 %v874_v6  ;;  %842 = vmatpush3.bf16.msra.mxu1 %v874_v6 }
  0x19   : > { %792 = vmatprep.subr.bf16.mxu0 %v875_v7  ;;  %835 = vmatprep.subr.bf16.mxu1 %v875_v7 }
  0x1c   : > { %793 = vmatpush3.bf16.msra.mxu0 %v875_v7  ;;  %843 = vmatpush3.bf16.msra.mxu1 %v875_v7 }
  0x1d   : > { %794 = vmatprep.subr.bf16.mxu0 %v876_v8  ;;  %836 = vmatprep.subr.bf16.mxu1 %v876_v8 }
  0x20   : > { %795 = vmatpush3.bf16.msra.mxu0 %v876_v8  ;;  %844 = vmatpush3.bf16.msra.mxu1 %v876_v8 }
  0x21   : > { %796 = vmatprep.subr.bf16.mxu0 %v877_v9  ;;  %837 = vmatprep.subr.bf16.mxu1 %v877_v9 }
  0x24   : > { %797 = vmatpush3.bf16.msra.mxu0 %v877_v9  ;;  %845 = vmatpush3.bf16.msra.mxu1 %v877_v9 }
  0x27   : > { %799 = vmatmul.mubr.bf16.vlgmr.msra.gmra.mrb[0].mxu0 %v880_v10  ;;  %815 = vmatmul.mubr.bf16.vlgmr.msra.gmra.mrb[0].mxu1 %v881_v11 }
  0x28   : > { %802 = vmatprep.mubr.bf16.mxu0 %v882_v12  ;;  %818 = vmatprep.mubr.bf16.mxu1 %v883_v13 }
  0x2f   : > { %803 = vmatmul.mubr.bf16.gmra.mrb[4].mxu0 %v884_v14  ;;  %819 = vmatmul.mubr.bf16.gmra.mrb[4].mxu1 %v885_v15 }
  0x30   : > { %806 = vmatprep.mubr.bf16.mxu0 %v886_v16  ;;  %822 = vmatprep.mubr.bf16.mxu1 %v887_v17 }
  0x37   : > { %807 = vmatmul.mubr.bf16.gmra.mrb[8].mxu0 %v888_v18  ;;  %823 = vmatmul.mubr.bf16.gmra.mrb[8].mxu1 %v889_v19 }
  0x38   : > { %810 = vmatprep.mubr.bf16.mxu0 %v890_v20  ;;  %826 = vmatprep.mubr.bf16.mxu1 %v891_v21 }
  0x3f   : > { %811 = vmatmul.mubr.bf16.gmra.mrb[12].mxu0 %v892_v22  ;;  %827 = vmatmul.mubr.bf16.gmra.mrb[12].mxu1 %v893_v23 }
  0xfa   : > { %v800_v25 = vpop.f32.mrb[0].mxu0  ;;  %v816_v26 = vpop.f32.mrb[0].mxu1 }
  0xfb   : > { %v468_v27 = vadd.f32 %v800_v25, %v1008_v24  ;;  %v532_v28 = vadd.f32 %v816_v26, %v1008_v24  ;;  %v459_v29 = vpop.f32.mrb[1].mxu0  ;;  %v523_v30 = vpop.f32.mrb[1].mxu1 }
  0xfc   : > { %v460_v31 = vadd.f32 %v1008_v24, %v459_v29  ;;  %v524_v32 = vadd.f32 %v1008_v24, %v523_v30  ;;  %v801_v33 = vpop.f32.mrb[2].mxu0  ;;  %v817_v34 = vpop.f32.mrb[2].mxu1 }
  0xfd   : > { %588 = vst [vmem:[%s1013_s19 + $0x10] sm:$0xff] %v468_v27  ;;  %604 = vst [vmem:[%s1013_s19 + $0x90] sm:$0xff] %v532_v28  ;;  %v471_v35 = vadd.f32 %v801_v33, %v1008_v24  ;;  %v535_v36 = vadd.f32 %v817_v34, %v1008_v24  ;;  %v462_v37 = vpop.f32.mrb[3].mxu0  ;;  %v526_v38 = vpop.f32.mrb[3].mxu1 }
  0xfe   : > { %586 = vst [vmem:[%s1013_s19] sm:$0xff] %v460_v31  ;;  %602 = vst [vmem:[%s1013_s19 + $0x80] sm:$0xff] %v524_v32  ;;  %v463_v39 = vadd.f32 %v1008_v24, %v462_v37  ;;  %v527_v40 = vadd.f32 %v1008_v24, %v526_v38 }
  0xff   : > { %589 = vst [vmem:[%s1013_s19 + $0x18] sm:$0xff] %v471_v35  ;;  %605 = vst [vmem:[%s1013_s19 + $0x98] sm:$0xff] %v535_v36 }
 0x100   : > { %587 = vst [vmem:[%s1013_s19 + $0x8] sm:$0xff] %v463_v39  ;;  %603 = vst [vmem:[%s1013_s19 + $0x88] sm:$0xff] %v527_v40 }
 0x102   : > { %v804_v41 = vpop.f32.mrb[4].mxu0  ;;  %v820_v42 = vpop.f32.mrb[4].mxu1 }
 0x103   : > { %v484_v43 = vadd.f32 %v804_v41, %v1008_v24  ;;  %v548_v44 = vadd.f32 %v820_v42, %v1008_v24  ;;  %v475_v45 = vpop.f32.mrb[5].mxu0  ;;  %v539_v46 = vpop.f32.mrb[5].mxu1 }
 0x104   : > { %v476_v47 = vadd.f32 %v1008_v24, %v475_v45  ;;  %v540_v48 = vadd.f32 %v1008_v24, %v539_v46  ;;  %v805_v49 = vpop.f32.mrb[6].mxu0  ;;  %v821_v50 = vpop.f32.mrb[6].mxu1 }
 0x105   : > { %592 = vst [vmem:[%s1013_s19 + $0x30] sm:$0xff] %v484_v43  ;;  %608 = vst [vmem:[%s1013_s19 + $0xb0] sm:$0xff] %v548_v44  ;;  %v487_v51 = vadd.f32 %v805_v49, %v1008_v24  ;;  %v551_v52 = vadd.f32 %v821_v50, %v1008_v24  ;;  %v478_v53 = vpop.f32.mrb[7].mxu0  ;;  %v542_v54 = vpop.f32.mrb[7].mxu1 }
 0x106   : > { %590 = vst [vmem:[%s1013_s19 + $0x20] sm:$0xff] %v476_v47  ;;  %606 = vst [vmem:[%s1013_s19 + $0xa0] sm:$0xff] %v540_v48  ;;  %v479_v55 = vadd.f32 %v1008_v24, %v478_v53  ;;  %v543_v56 = vadd.f32 %v1008_v24, %v542_v54 }
 0x107   : > { %593 = vst [vmem:[%s1013_s19 + $0x38] sm:$0xff] %v487_v51  ;;  %609 = vst [vmem:[%s1013_s19 + $0xb8] sm:$0xff] %v551_v52 }
 0x108   : > { %591 = vst [vmem:[%s1013_s19 + $0x28] sm:$0xff] %v479_v55  ;;  %607 = vst [vmem:[%s1013_s19 + $0xa8] sm:$0xff] %v543_v56 }
 0x10a   : > { %v808_v57 = vpop.f32.mrb[8].mxu0  ;;  %v824_v58 = vpop.f32.mrb[8].mxu1 }
 0x10b   : > { %v500_v59 = vadd.f32 %v808_v57, %v1008_v24  ;;  %v564_v60 = vadd.f32 %v824_v58, %v1008_v24  ;;  %v491_v61 = vpop.f32.mrb[9].mxu0  ;;  %v555_v62 = vpop.f32.mrb[9].mxu1 }
 0x10c   : > { %v492_v63 = vadd.f32 %v1008_v24, %v491_v61  ;;  %v556_v0 = vadd.f32 %v1008_v24, %v555_v62  ;;  %v809_v1 = vpop.f32.mrb[10].mxu0  ;;  %v825_v2 = vpop.f32.mrb[10].mxu1 }
 0x10d   : > { %596 = vst [vmem:[%s1013_s19 + $0x50] sm:$0xff] %v500_v59  ;;  %612 = vst [vmem:[%s1013_s19 + $0xd0] sm:$0xff] %v564_v60  ;;  %v503_v3 = vadd.f32 %v809_v1, %v1008_v24  ;;  %v567_v4 = vadd.f32 %v825_v2, %v1008_v24  ;;  %v494_v5 = vpop.f32.mrb[11].mxu0  ;;  %v558_v6 = vpop.f32.mrb[11].mxu1 }
 0x10e   : > { %594 = vst [vmem:[%s1013_s19 + $0x40] sm:$0xff] %v492_v63  ;;  %610 = vst [vmem:[%s1013_s19 + $0xc0] sm:$0xff] %v556_v0  ;;  %v495_v7 = vadd.f32 %v1008_v24, %v494_v5  ;;  %v559_v8 = vadd.f32 %v1008_v24, %v558_v6 }
 0x10f   : > { %597 = vst [vmem:[%s1013_s19 + $0x58] sm:$0xff] %v503_v3  ;;  %613 = vst [vmem:[%s1013_s19 + $0xd8] sm:$0xff] %v567_v4 }
 0x110   : > { %595 = vst [vmem:[%s1013_s19 + $0x48] sm:$0xff] %v495_v7  ;;  %611 = vst [vmem:[%s1013_s19 + $0xc8] sm:$0xff] %v559_v8 }
 0x112   : > { %v812_v9 = vpop.f32.mrb[12].mxu0  ;;  %v828_v10 = vpop.f32.mrb[12].mxu1 }
 0x113   : > { %v516_v11 = vadd.f32 %v812_v9, %v1008_v24  ;;  %v580_v12 = vadd.f32 %v828_v10, %v1008_v24  ;;  %v507_v13 = vpop.f32.mrb[13].mxu0  ;;  %v571_v14 = vpop.f32.mrb[13].mxu1 }
 0x114   : > { %v508_v15 = vadd.f32 %v1008_v24, %v507_v13  ;;  %v572_v16 = vadd.f32 %v1008_v24, %v571_v14  ;;  %v813_v17 = vpop.f32.mrb[14].mxu0  ;;  %v829_v18 = vpop.f32.mrb[14].mxu1 }
 0x115   : > { %600 = vst [vmem:[%s1013_s19 + $0x70] sm:$0xff] %v516_v11  ;;  %616 = vst [vmem:[%s1013_s19 + $0xf0] sm:$0xff] %v580_v12  ;;  %v519_v19 = vadd.f32 %v813_v17, %v1008_v24  ;;  %v583_v20 = vadd.f32 %v829_v18, %v1008_v24  ;;  %v510_v21 = vpop.f32.mrb[15].mxu0  ;;  %v574_v22 = vpop.f32.mrb[15].mxu1 }
 0x116   : > { %598 = vst [vmem:[%s1013_s19 + $0x60] sm:$0xff] %v508_v15  ;;  %614 = vst [vmem:[%s1013_s19 + $0xe0] sm:$0xff] %v572_v16  ;;  %v511_v23 = vadd.f32 %v1008_v24, %v510_v21  ;;  %v575_v25 = vadd.f32 %v1008_v24, %v574_v22 }
 0x117   : > { %601 = vst [vmem:[%s1013_s19 + $0x78] sm:$0xff] %v519_v19  ;;  %617 = vst [vmem:[%s1013_s19 + $0xf8] sm:$0xff] %v583_v20 }
 0x118   : > { %599 = vst [vmem:[%s1013_s19 + $0x68] sm:$0xff] %v511_v23  ;;  %615 = vst [vmem:[%s1013_s19 + $0xe8] sm:$0xff] %v575_v25 }
 0x119 PF: > { %s13_s14 = sadd.s32 1, %s916_s14   ;;  %s1092_s12 = smov %s912_s13 }
 0x11a   : > { %p10_p5 = scmp.ge.s32.totalorder %s13_s14, 10   ;;  %s1093_s13 = smov %s1095_s15 }
 0x11c   :  { %12 = sbr.rel (!%p10_p5) target bundleno = 2 (0x2), region = 68 }

// kernel: _lambda_.19
= control target key start
LH: loop header
LB: loop body
LE: loop exit
PB: predicated region body
PF: predicated region fallthrough
CT: control target
= control target key end

     0   :  { %s938_s12 = smov 0   ;;  %s940_s13 = smov 0   ;;  %s1088_s0 = inlined_call_operand.vmem [shape: bf16[512,128], index: 0, kind: input, shape index: {}]   ;;  %s1089_s1 = inlined_call_operand.vmem [shape: bf16[128,128], index: 1, kind: input, shape index: {}]   ;;  %s1090_s2 = inlined_call_operand.vmem [shape: f32[1,128], index: 2, kind: input, shape index: {}]   ;;  %s1091_s3 = inlined_call_operand.vmem [shape: f32[512,128], index: 3, kind: output, shape index: {}]  }
   0x1   :  { %s942_s14 = smov 0  }
   0x2 LB: > { %s25_s15 = sadd.s32 1, %s912_s13  ;;  %p726_p0 = scmp.ge.s32.totalorder %s916_s14, 1  ;;  %s916_s14 = sphi %s942_s14, %s13_s14   ;;  %s912_s13 = sphi %s940_s13, %s1093_s13   ;;  %s908_s12 = sphi %s938_s12, %s1092_s12  }
   0x3   : > { %p27_p1 = scmp.ge.s32.totalorder %s25_s15, 2  ;;  %p169_p2 = scmp.lt.s32.totalorder %s916_s14, 3 }
   0x5   : > { %s1095_s15 = smov (%p27_p1, %s25_s15), 0  ;;  %p170_p3 = pnand %p726_p0, %p169_p2 }
   0x6   : > { %v870_v0 = vld [vmem:[%s1089_s1] sm:$0xff] (!%p170_p3)   ;;  %s727_s18 = sshll.u32 (!%p170_p3), %s908_s12, 5  ;;  %v871_v1 = vld [vmem:[%s1089_s1 + $0x8] sm:$0xff] (!%p170_p3)   ;;  %v872_v2 = vld [vmem:[%s1089_s1 + $0x10] sm:$0xff] (!%p170_p3)  }
   0x7   : > { %173 = sbr.rel (%p170_p3) target bundleno = 281 (0x119), region = 32  ;;  %p204_p4 = scmp.lt.s32.totalorder (!%p170_p3), %s727_s18, 63  ;;  %782 = vmatprep.subr.bf16.mxu0 (!%p170_p3), %v870_v0  ;;  %830 = vmatprep.subr.bf16.mxu1 (!%p170_p3), %v870_v0  ;;  %v873_v3 = vld [vmem:[%s1089_s1 + $0x18] sm:$0xff] (!%p170_p3)   ;;  %v874_v6 = vld [vmem:[%s1089_s1 + $0x20] sm:$0xff] (!%p170_p3)   ;;  %v875_v7 = vld [vmem:[%s1089_s1 + $0x28] sm:$0xff] (!%p170_p3)  }
   0x8   : > { %783 = vmatpush3.bf16.msra.mxu0 (!%p170_p3), %v870_v0  ;;  %838 = vmatpush3.bf16.msra.mxu1 (!%p170_p3), %v870_v0  ;;  %v876_v8 = vld [vmem:[%s1089_s1 + $0x30] sm:$0xff] (!%p170_p3)   ;;  %v877_v9 = vld [vmem:[%s1089_s1 + $0x38] sm:$0xff] (!%p170_p3)   ;;  %v1008_v24 = vld [vmem:[%s1090_s2] ss:$0 sm:$0xff] (!%p170_p3) }
   0x9   : > { %784 = vmatprep.subr.bf16.mxu0 (!%p170_p3), %v871_v1  ;;  %831 = vmatprep.subr.bf16.mxu1 (!%p170_p3), %v871_v1 }
   0xc   : > { %785 = vmatpush3.bf16.msra.mxu0 (!%p170_p3), %v871_v1  ;;  %839 = vmatpush3.bf16.msra.mxu1 (!%p170_p3), %v871_v1 }
   0xd   : > { %786 = vmatprep.subr.bf16.mxu0 (!%p170_p3), %v872_v2  ;;  %832 = vmatprep.subr.bf16.mxu1 (!%p170_p3), %v872_v2 }
   0xe   : > { %s1097_s18 = smov (!%p204_p4, %s727_s18), 63 }
   0xf   : > { %s728_s23 = sshll.u32 %s1097_s18, 2  ;;  %s730_s10 = sshll.u32 %s1097_s18, 3 }
  0x10   : > { %s971_s26 = scalar_lea.vmem %s1088_s0, %s728_s23  ;;  %787 = vmatpush3.bf16.msra.mxu0 %v872_v2  ;;  %840 = vmatpush3.bf16.msra.mxu1 %v872_v2  ;;  %s1013_s19 = scalar_lea.vmem %s1091_s3, %s730_s10 }
  0x11   : > { %v878_v4 = vld [vmem:[%s971_s26] sm:$0xff]   ;;  %788 = vmatprep.subr.bf16.mxu0 %v873_v3  ;;  %833 = vmatprep.subr.bf16.mxu1 %v873_v3  ;;  %v880_v10 = vld [vmem:[%s971_s26 + $0x8] sm:$0xff]   ;;  %v882_v12 = vld [vmem:[%s971_s26 + $0x10] sm:$0xff]  }
  0x12   : > { %v879_v5 = vld [vmem:[%s971_s26 + $0x40] sm:$0xff]   ;;  %798 = vmatprep.mubr.bf16.mxu0 %v878_v4  ;;  %v881_v11 = vld [vmem:[%s971_s26 + $0x48] sm:$0xff]   ;;  %v883_v13 = vld [vmem:[%s971_s26 + $0x50] sm:$0xff]  }
  0x13   : > { %814 = vmatprep.mubr.bf16.mxu1 %v879_v5  ;;  %v884_v14 = vld [vmem:[%s971_s26 + $0x18] sm:$0xff]   ;;  %v886_v16 = vld [vmem:[%s971_s26 + $0x20] sm:$0xff]   ;;  %v888_v18 = vld [vmem:[%s971_s26 + $0x28] sm:$0xff]  }
  0x14   : > { %789 = vmatpush3.bf16.msra.mxu0 %v873_v3  ;;  %841 = vmatpush3.bf16.msra.mxu1 %v873_v3  ;;  %v885_v15 = vld [vmem:[%s971_s26 + $0x58] sm:$0xff]   ;;  %v887_v17 = vld [vmem:[%s971_s26 + $0x60] sm:$0xff]   ;;  %v889_v19 = vld [vmem:[%s971_s26 + $0x68] sm:$0xff]  }
  0x15   : > { %790 = vmatprep.subr.bf16.mxu0 %v874_v6  ;;  %834 = vmatprep.subr.bf16.mxu1 %v874_v6  ;;  %v890_v20 = vld [vmem:[%s971_s26 + $0x30] sm:$0xff]   ;;  %v892_v22 = vld [vmem:[%s971_s26 + $0x38] sm:$0xff]  }
  0x16   : > { %v891_v21 = vld [vmem:[%s971_s26 + $0x70] sm:$0xff]   ;;  %v893_v23 = vld [vmem:[%s971_s26 + $0x78] sm:$0xff]  }
  0x18   : > { %791 = vmatpush3.bf16.msra.mxu0 %v874_v6  ;;  %842 = vmatpush3.bf16.msra.mxu1 %v874_v6 }
  0x19   : > { %792 = vmatprep.subr.bf16.mxu0 %v875_v7  ;;  %835 = vmatprep.subr.bf16.mxu1 %v875_v7 }
  0x1c   : > { %793 = vmatpush3.bf16.msra.mxu0 %v875_v7  ;;  %843 = vmatpush3.bf16.msra.mxu1 %v875_v7 }
  0x1d   : > { %794 = vmatprep.subr.bf16.mxu0 %v876_v8  ;;  %836 = vmatprep.subr.bf16.mxu1 %v876_v8 }
  0x20   : > { %795 = vmatpush3.bf16.msra.mxu0 %v876_v8  ;;  %844 = vmatpush3.bf16.msra.mxu1 %v876_v8 }
  0x21   : > { %796 = vmatprep.subr.bf16.mxu0 %v877_v9  ;;  %837 = vmatprep.subr.bf16.mxu1 %v877_v9 }
  0x24   : > { %797 = vmatpush3.bf16.msra.mxu0 %v877_v9  ;;  %845 = vmatpush3.bf16.msra.mxu1 %v877_v9 }
  0x27   : > { %799 = vmatmul.mubr.bf16.vlgmr.msra.gmra.mrb[0].mxu0 %v880_v10  ;;  %815 = vmatmul.mubr.bf16.vlgmr.msra.gmra.mrb[0].mxu1 %v881_v11 }
  0x28   : > { %802 = vmatprep.mubr.bf16.mxu0 %v882_v12  ;;  %818 = vmatprep.mubr.bf16.mxu1 %v883_v13 }
  0x2f   : > { %803 = vmatmul.mubr.bf16.gmra.mrb[4].mxu0 %v884_v14  ;;  %819 = vmatmul.mubr.bf16.gmra.mrb[4].mxu1 %v885_v15 }
  0x30   : > { %806 = vmatprep.mubr.bf16.mxu0 %v886_v16  ;;  %822 = vmatprep.mubr.bf16.mxu1 %v887_v17 }
  0x37   : > { %807 = vmatmul.mubr.bf16.gmra.mrb[8].mxu0 %v888_v18  ;;  %823 = vmatmul.mubr.bf16.gmra.mrb[8].mxu1 %v889_v19 }
  0x38   : > { %810 = vmatprep.mubr.bf16.mxu0 %v890_v20  ;;  %826 = vmatprep.mubr.bf16.mxu1 %v891_v21 }
  0x3f   : > { %811 = vmatmul.mubr.bf16.gmra.mrb[12].mxu0 %v892_v22  ;;  %827 = vmatmul.mubr.bf16.gmra.mrb[12].mxu1 %v893_v23 }
  0xfa   : > { %v800_v25 = vpop.f32.mrb[0].mxu0  ;;  %v816_v26 = vpop.f32.mrb[0].mxu1 }
  0xfb   : > { %v468_v27 = vadd.f32 %v800_v25, %v1008_v24  ;;  %v532_v28 = vadd.f32 %v816_v26, %v1008_v24  ;;  %v459_v29 = vpop.f32.mrb[1].mxu0  ;;  %v523_v30 = vpop.f32.mrb[1].mxu1 }
  0xfc   : > { %v460_v31 = vadd.f32 %v1008_v24, %v459_v29  ;;  %v524_v32 = vadd.f32 %v1008_v24, %v523_v30  ;;  %v801_v33 = vpop.f32.mrb[2].mxu0  ;;  %v817_v34 = vpop.f32.mrb[2].mxu1 }
  0xfd   : > { %588 = vst [vmem:[%s1013_s19 + $0x10] sm:$0xff] %v468_v27  ;;  %604 = vst [vmem:[%s1013_s19 + $0x90] sm:$0xff] %v532_v28  ;;  %v471_v35 = vadd.f32 %v801_v33, %v1008_v24  ;;  %v535_v36 = vadd.f32 %v817_v34, %v1008_v24  ;;  %v462_v37 = vpop.f32.mrb[3].mxu0  ;;  %v526_v38 = vpop.f32.mrb[3].mxu1 }
  0xfe   : > { %586 = vst [vmem:[%s1013_s19] sm:$0xff] %v460_v31  ;;  %602 = vst [vmem:[%s1013_s19 + $0x80] sm:$0xff] %v524_v32  ;;  %v463_v39 = vadd.f32 %v1008_v24, %v462_v37  ;;  %v527_v40 = vadd.f32 %v1008_v24, %v526_v38 }
  0xff   : > { %589 = vst [vmem:[%s1013_s19 + $0x18] sm:$0xff] %v471_v35  ;;  %605 = vst [vmem:[%s1013_s19 + $0x98] sm:$0xff] %v535_v36 }
 0x100   : > { %587 = vst [vmem:[%s1013_s19 + $0x8] sm:$0xff] %v463_v39  ;;  %603 = vst [vmem:[%s1013_s19 + $0x88] sm:$0xff] %v527_v40 }
 0x102   : > { %v804_v41 = vpop.f32.mrb[4].mxu0  ;;  %v820_v42 = vpop.f32.mrb[4].mxu1 }
 0x103   : > { %v484_v43 = vadd.f32 %v804_v41, %v1008_v24  ;;  %v548_v44 = vadd.f32 %v820_v42, %v1008_v24  ;;  %v475_v45 = vpop.f32.mrb[5].mxu0  ;;  %v539_v46 = vpop.f32.mrb[5].mxu1 }
 0x104   : > { %v476_v47 = vadd.f32 %v1008_v24, %v475_v45  ;;  %v540_v48 = vadd.f32 %v1008_v24, %v539_v46  ;;  %v805_v49 = vpop.f32.mrb[6].mxu0  ;;  %v821_v50 = vpop.f32.mrb[6].mxu1 }
 0x105   : > { %592 = vst [vmem:[%s1013_s19 + $0x30] sm:$0xff] %v484_v43  ;;  %608 = vst [vmem:[%s1013_s19 + $0xb0] sm:$0xff] %v548_v44  ;;  %v487_v51 = vadd.f32 %v805_v49, %v1008_v24  ;;  %v551_v52 = vadd.f32 %v821_v50, %v1008_v24  ;;  %v478_v53 = vpop.f32.mrb[7].mxu0  ;;  %v542_v54 = vpop.f32.mrb[7].mxu1 }
 0x106   : > { %590 = vst [vmem:[%s1013_s19 + $0x20] sm:$0xff] %v476_v47  ;;  %606 = vst [vmem:[%s1013_s19 + $0xa0] sm:$0xff] %v540_v48  ;;  %v479_v55 = vadd.f32 %v1008_v24, %v478_v53  ;;  %v543_v56 = vadd.f32 %v1008_v24, %v542_v54 }
 0x107   : > { %593 = vst [vmem:[%s1013_s19 + $0x38] sm:$0xff] %v487_v51  ;;  %609 = vst [vmem:[%s1013_s19 + $0xb8] sm:$0xff] %v551_v52 }
 0x108   : > { %591 = vst [vmem:[%s1013_s19 + $0x28] sm:$0xff] %v479_v55  ;;  %607 = vst [vmem:[%s1013_s19 + $0xa8] sm:$0xff] %v543_v56 }
 0x10a   : > { %v808_v57 = vpop.f32.mrb[8].mxu0  ;;  %v824_v58 = vpop.f32.mrb[8].mxu1 }
 0x10b   : > { %v500_v59 = vadd.f32 %v808_v57, %v1008_v24  ;;  %v564_v60 = vadd.f32 %v824_v58, %v1008_v24  ;;  %v491_v61 = vpop.f32.mrb[9].mxu0  ;;  %v555_v62 = vpop.f32.mrb[9].mxu1 }
 0x10c   : > { %v492_v63 = vadd.f32 %v1008_v24, %v491_v61  ;;  %v556_v0 = vadd.f32 %v1008_v24, %v555_v62  ;;  %v809_v1 = vpop.f32.mrb[10].mxu0  ;;  %v825_v2 = vpop.f32.mrb[10].mxu1 }
 0x10d   : > { %596 = vst [vmem:[%s1013_s19 + $0x50] sm:$0xff] %v500_v59  ;;  %612 = vst [vmem:[%s1013_s19 + $0xd0] sm:$0xff] %v564_v60  ;;  %v503_v3 = vadd.f32 %v809_v1, %v1008_v24  ;;  %v567_v4 = vadd.f32 %v825_v2, %v1008_v24  ;;  %v494_v5 = vpop.f32.mrb[11].mxu0  ;;  %v558_v6 = vpop.f32.mrb[11].mxu1 }
 0x10e   : > { %594 = vst [vmem:[%s1013_s19 + $0x40] sm:$0xff] %v492_v63  ;;  %610 = vst [vmem:[%s1013_s19 + $0xc0] sm:$0xff] %v556_v0  ;;  %v495_v7 = vadd.f32 %v1008_v24, %v494_v5  ;;  %v559_v8 = vadd.f32 %v1008_v24, %v558_v6 }
 0x10f   : > { %597 = vst [vmem:[%s1013_s19 + $0x58] sm:$0xff] %v503_v3  ;;  %613 = vst [vmem:[%s1013_s19 + $0xd8] sm:$0xff] %v567_v4 }
 0x110   : > { %595 = vst [vmem:[%s1013_s19 + $0x48] sm:$0xff] %v495_v7  ;;  %611 = vst [vmem:[%s1013_s19 + $0xc8] sm:$0xff] %v559_v8 }
 0x112   : > { %v812_v9 = vpop.f32.mrb[12].mxu0  ;;  %v828_v10 = vpop.f32.mrb[12].mxu1 }
 0x113   : > { %v516_v11 = vadd.f32 %v812_v9, %v1008_v24  ;;  %v580_v12 = vadd.f32 %v828_v10, %v1008_v24  ;;  %v507_v13 = vpop.f32.mrb[13].mxu0  ;;  %v571_v14 = vpop.f32.mrb[13].mxu1 }
 0x114   : > { %v508_v15 = vadd.f32 %v1008_v24, %v507_v13  ;;  %v572_v16 = vadd.f32 %v1008_v24, %v571_v14  ;;  %v813_v17 = vpop.f32.mrb[14].mxu0  ;;  %v829_v18 = vpop.f32.mrb[14].mxu1 }
 0x115   : > { %600 = vst [vmem:[%s1013_s19 + $0x70] sm:$0xff] %v516_v11  ;;  %616 = vst [vmem:[%s1013_s19 + $0xf0] sm:$0xff] %v580_v12  ;;  %v519_v19 = vadd.f32 %v813_v17, %v1008_v24  ;;  %v583_v20 = vadd.f32 %v829_v18, %v1008_v24  ;;  %v510_v21 = vpop.f32.mrb[15].mxu0  ;;  %v574_v22 = vpop.f32.mrb[15].mxu1 }
 0x116   : > { %598 = vst [vmem:[%s1013_s19 + $0x60] sm:$0xff] %v508_v15  ;;  %614 = vst [vmem:[%s1013_s19 + $0xe0] sm:$0xff] %v572_v16  ;;  %v511_v23 = vadd.f32 %v1008_v24, %v510_v21  ;;  %v575_v25 = vadd.f32 %v1008_v24, %v574_v22 }
 0x117   : > { %601 = vst [vmem:[%s1013_s19 + $0x78] sm:$0xff] %v519_v19  ;;  %617 = vst [vmem:[%s1013_s19 + $0xf8] sm:$0xff] %v583_v20 }
 0x118   : > { %599 = vst [vmem:[%s1013_s19 + $0x68] sm:$0xff] %v511_v23  ;;  %615 = vst [vmem:[%s1013_s19 + $0xe8] sm:$0xff] %v575_v25 }
 0x119 PF: > { %s13_s14 = sadd.s32 1, %s916_s14   ;;  %s1092_s12 = smov %s912_s13 }
 0x11a   : > { %p10_p5 = scmp.ge.s32.totalorder %s13_s14, 4   ;;  %s1093_s13 = smov %s1095_s15 }
 0x11c   :  { %12 = sbr.rel (!%p10_p5) target bundleno = 2 (0x2), region = 68 }

// kernel: _lambda_.20
= control target key start
LH: loop header
LB: loop body
LE: loop exit
PB: predicated region body
PF: predicated region fallthrough
CT: control target
= control target key end

     0   :  { %v24_v0 = vlaneseq  ;;  %s872_s1 = inlined_call_operand.vmem [shape: f32[9,1,256], index: 1, kind: input, shape index: {}]   ;;  %s873_s0 = inlined_call_operand.vmem [shape: f32[9,32,256], index: 0, kind: input, shape index: {}]   ;;  %s874_s2 = inlined_call_operand.vmem [shape: f32[1,256], index: 2, kind: input, shape index: {}]   ;;  %s875_s3 = inlined_call_operand.vmem [shape: f32[32,256], index: 3, kind: output, shape index: {}]  }
   0x1   :  { %v22_v1 = vld [vmem:[%s872_s1] sm:$0x3]  ;;  %v386_v3 = vld [vmem:[%s872_s1 + $0x2] sm:$0x3]  ;;  %v395_v4 = vld [vmem:[%s872_s1 + $0x4] sm:$0x3] }
   0x2   :  { %v25_v2 = vshrl.u32 %v24_v0, 7  ;;  %v404_v5 = vld [vmem:[%s872_s1 + $0x6] sm:$0x3]  ;;  %v413_v7 = vld [vmem:[%s872_s1 + $0x8] sm:$0x3]  ;;  %v16_v49 = vld [vmem:[%s873_s0 + $0x10] sm:$0xff] }
   0x3   :  { %v422_v8 = vld [vmem:[%s872_s1 + $0xa] sm:$0x3]  ;;  %v14_v9 = vld [vmem:[%s873_s0] sm:$0xff]  ;;  %v431_v17 = vld [vmem:[%s872_s1 + $0xc] sm:$0x3] }
   0x4   :  { %v26_v6 = vsub.s32 0, %v25_v2  ;;  %v378_v10 = vld [vmem:[%s873_s0 + $0x40] sm:$0xff]  ;;  %v497_v12 = vsub.s32 1, %v25_v2  ;;  %v440_v18 = vld [vmem:[%s872_s1 + $0xe] sm:$0x3]  ;;  %v380_v56 = vld [vmem:[%s873_s0 + $0x50] sm:$0xff] }
   0x5   :  { %v387_v11 = vld [vmem:[%s873_s0 + $0x80] sm:$0xff]  ;;  %v449_v29 = vld [vmem:[%s872_s1 + $0x10] sm:$0x3]  ;;  %v15_v30 = vld [vmem:[%s873_s0 + $0x8] sm:$0xff] }
   0x6   :  { %v499_v13 = vrot.slane %v22_v1, %v26_v6  ;;  %v501_v14 = vrot.slane %v386_v3, %v26_v6  ;;  %v503_v15 = vrot.slane %v395_v4, %v26_v6  ;;  %v505_v16 = vrot.slane %v404_v5, %v26_v6  ;;  %v396_v19 = vld [vmem:[%s873_s0 + $0xc0] sm:$0xff]  ;;  %v379_v36 = vld [vmem:[%s873_s0 + $0x48] sm:$0xff]  ;;  %v389_v62 = vld [vmem:[%s873_s0 + $0x90] sm:$0xff] }
   0x7   :  { %v405_v20 = vld [vmem:[%s873_s0 + $0x100] sm:$0xff]  ;;  %v519_v21 = vrot.slane %v413_v7, %v26_v6  ;;  %v521_v22 = vrot.slane %v422_v8, %v26_v6  ;;  %v529_v27 = vrot.slane %v431_v17, %v26_v6  ;;  %v531_v28 = vrot.slane %v440_v18, %v26_v6  ;;  %v388_v37 = vld [vmem:[%s873_s0 + $0x88] sm:$0xff] }
   0x8   :  { %v34_v23 = vmul.f32 %v499_v13, %v14_v9  ;;  %v64_v24 = vmul.f32 %v378_v10, %v501_v14  ;;  %v102_v25 = vmul.f32 %v387_v11, %v503_v15  ;;  %v414_v26 = vld [vmem:[%s873_s0 + $0x140] sm:$0xff]  ;;  %v140_v32 = vmul.f32 %v396_v19, %v505_v16  ;;  %v397_v43 = vld [vmem:[%s873_s0 + $0xc8] sm:$0xff]  ;;  %v407_v10 = vld [vmem:[%s873_s0 + $0x110] sm:$0xff] }
   0x9   :  { %v178_v33 = vmul.f32 %v405_v20, %v519_v21  ;;  %v423_v34 = vld [vmem:[%s873_s0 + $0x180] sm:$0xff]  ;;  %v545_v35 = vrot.slane %v22_v1, %v497_v12  ;;  %v216_v38 = vmul.f32 %v414_v26, %v521_v22  ;;  %v561_v41 = vrot.slane %v386_v3, %v497_v12  ;;  %v406_v54 = vld [vmem:[%s873_s0 + $0x108] sm:$0xff]  ;;  %v398_v3 = vld [vmem:[%s873_s0 + $0xd0] sm:$0xff] }
   0xa   :  { %v72_v31 = vadd.f32 %v64_v24, %v34_v23  ;;  %v432_v39 = vld [vmem:[%s873_s0 + $0x1c0] sm:$0xff]  ;;  %v564_v42 = vrot.slane %v395_v4, %v497_v12  ;;  %v570_v44 = vrot.slane %v404_v5, %v497_v12  ;;  %v572_v46 = vrot.slane %v449_v29, %v26_v6  ;;  %v415_v61 = vld [vmem:[%s873_s0 + $0x148] sm:$0xff]  ;;  %v17_v20 = vld [vmem:[%s873_s0 + $0x18] sm:$0xff] }
   0xb   :  { %v346_v40 = vld [vmem:[%s874_s2] sm:$0x3]  ;;  %v35_v47 = vmul.f32 %v545_v35, %v15_v30  ;;  %v576_v48 = vrot.slane %v413_v7, %v497_v12  ;;  %v254_v50 = vmul.f32 %v423_v34, %v529_v27  ;;  %v65_v52 = vmul.f32 %v379_v36, %v561_v41  ;;  %v424_v7 = vld [vmem:[%s873_s0 + $0x188] sm:$0xff]  ;;  %v381_v23 = vld [vmem:[%s873_s0 + $0x58] sm:$0xff] }
   0xc   :  { %v110_v45 = vadd.f32 %v102_v25, %v72_v31  ;;  %v441_v51 = vld [vmem:[%s873_s0 + $0x200] sm:$0xff]  ;;  %v103_v53 = vmul.f32 %v388_v37, %v564_v42  ;;  %v591_v55 = vrot.slane %v422_v8, %v497_v12  ;;  %v292_v58 = vmul.f32 %v432_v39, %v531_v28  ;;  %v433_v8 = vld [vmem:[%s873_s0 + $0x1c8] sm:$0xff]  ;;  %v416_v31 = vld [vmem:[%s873_s0 + $0x150] sm:$0xff] }
   0xd   :  { %v597_v59 = vrot.slane %v346_v40, %v26_v6  ;;  %v141_v60 = vmul.f32 %v397_v43, %v570_v44  ;;  %v73_v63 = vadd.f32 %v65_v52, %v35_v47  ;;  %v607_v0 = vrot.slane %v431_v17, %v497_v12  ;;  %v442_v25 = vld [vmem:[%s873_s0 + $0x208] sm:$0xff]  ;;  %v434_v43 = vld [vmem:[%s873_s0 + $0x1d0] sm:$0xff] }
   0xe   :  { %v148_v57 = vadd.f32 %v140_v32, %v110_v45  ;;  %v610_v1 = vrot.slane %v440_v18, %v497_v12  ;;  %v36_v2 = vmul.f32 %v499_v13, %v16_v49  ;;  %v330_v5 = vmul.f32 %v441_v51, %v572_v46  ;;  %v390_v32 = vld [vmem:[%s873_s0 + $0x98] sm:$0xff] }
   0xf   :  { %v179_v6 = vmul.f32 %v406_v54, %v576_v48  ;;  %v66_v9 = vmul.f32 %v380_v56, %v501_v14  ;;  %v111_v11 = vadd.f32 %v103_v53, %v73_v63  ;;  %v217_v17 = vmul.f32 %v415_v61, %v591_v55  ;;  %v408_v49 = vld [vmem:[%s873_s0 + $0x118] sm:$0xff]  ;;  %v18_v54 = vld [vmem:[%s873_s0 + $0x20] sm:$0xff] }
  0x10   :  { %v186_v4 = vadd.f32 %v178_v33, %v148_v57  ;;  %v630_v18 = vrot.slane %v449_v29, %v497_v12  ;;  %v104_v19 = vmul.f32 %v389_v62, %v503_v15  ;;  %v643_v26 = vrot.slane %v346_v40, %v497_v12  ;;  %v399_v12 = vld [vmem:[%s873_s0 + $0xd8] sm:$0xff]  ;;  %v425_v40 = vld [vmem:[%s873_s0 + $0x190] sm:$0xff]  ;;  %v382_v63 = vld [vmem:[%s873_s0 + $0x60] sm:$0xff] }
  0x11   :  { %v74_v29 = vadd.f32 %v66_v9, %v36_v2  ;;  %v142_v30 = vmul.f32 %v398_v3, %v505_v16  ;;  %v149_v33 = vadd.f32 %v141_v60, %v111_v11  ;;  %v255_v34 = vmul.f32 %v424_v7, %v607_v0  ;;  %v443_v60 = vld [vmem:[%s873_s0 + $0x210] sm:$0xff]  ;;  %v391_v2 = vld [vmem:[%s873_s0 + $0xa0] sm:$0xff]  ;;  %v417_v7 = vld [vmem:[%s873_s0 + $0x158] sm:$0xff] }
  0x12   :  { %v224_v24 = vadd.f32 %v216_v38, %v186_v4  ;;  %v293_v36 = vmul.f32 %v433_v8, %v610_v1  ;;  %v180_v37 = vmul.f32 %v407_v10, %v519_v21  ;;  %v37_v45 = vmul.f32 %v545_v35, %v17_v20  ;;  %v426_v11 = vld [vmem:[%s873_s0 + $0x198] sm:$0xff] }
  0x13   :  { %v112_v39 = vadd.f32 %v104_v19, %v74_v29  ;;  %v67_v47 = vmul.f32 %v381_v23, %v561_v41  ;;  %v187_v51 = vadd.f32 %v179_v6, %v149_v33  ;;  %v218_v52 = vmul.f32 %v416_v31, %v521_v22  ;;  %v409_v29 = vld [vmem:[%s873_s0 + $0x120] sm:$0xff] }
  0x14   :  { %v262_v38 = vadd.f32 %v254_v50, %v224_v24  ;;  %v331_v50 = vmul.f32 %v442_v25, %v630_v18  ;;  %v105_v53 = vmul.f32 %v390_v32, %v564_v42  ;;  %v143_v62 = vmul.f32 %v399_v12, %v570_v44  ;;  %v435_v24 = vld [vmem:[%s873_s0 + $0x1d8] sm:$0xff] }
  0x15   :  { %v150_v57 = vadd.f32 %v142_v30, %v112_v39  ;;  %v75_v61 = vadd.f32 %v67_v47, %v37_v45  ;;  %v225_v3 = vadd.f32 %v217_v17, %v187_v51  ;;  %v256_v4 = vmul.f32 %v425_v40, %v529_v27  ;;  %v400_v17 = vld [vmem:[%s873_s0 + $0xe0] sm:$0xff]  ;;  %v392_v45 = vld [vmem:[%s873_s0 + $0xa8] sm:$0xff] }
  0x16   :  { %v300_v56 = vadd.f32 %v292_v58, %v262_v38  ;;  %v294_v58 = vmul.f32 %v434_v43, %v531_v28  ;;  %v181_v6 = vmul.f32 %v408_v49, %v576_v48  ;;  %v38_v19 = vmul.f32 %v499_v13, %v18_v54  ;;  %v418_v43 = vld [vmem:[%s873_s0 + $0x160] sm:$0xff]  ;;  %v444_v54 = vld [vmem:[%s873_s0 + $0x218] sm:$0xff] }
  0x17   :  { %v188_v9 = vadd.f32 %v180_v37, %v150_v57  ;;  %v113_v10 = vadd.f32 %v105_v53, %v75_v61  ;;  %v263_v20 = vadd.f32 %v255_v34, %v225_v3  ;;  %v332_v23 = vmul.f32 %v443_v60, %v572_v46  ;;  %v19_v34 = vld [vmem:[%s873_s0 + $0x28] sm:$0xff]  ;;  %v427_v57 = vld [vmem:[%s873_s0 + $0x1a0] sm:$0xff] }
  0x18   :  { %v338_v8 = vadd.f32 %v330_v5, %v300_v56  ;;  %v68_v5 = vmul.f32 %v382_v63, %v501_v14  ;;  %v106_v25 = vmul.f32 %v391_v2, %v503_v15  ;;  %v219_v33 = vmul.f32 %v417_v7, %v591_v55  ;;  %v383_v37 = vld [vmem:[%s873_s0 + $0x68] sm:$0xff] }
  0x19   :  { %v226_v31 = vadd.f32 %v218_v52, %v188_v9  ;;  %v151_v32 = vadd.f32 %v143_v62, %v113_v10  ;;  %v301_v12 = vadd.f32 %v293_v36, %v263_v20  ;;  %v257_v38 = vmul.f32 %v426_v11, %v607_v0  ;;  %v401_v52 = vld [vmem:[%s873_s0 + $0xe8] sm:$0xff]  ;;  %v384_v10 = vld [vmem:[%s873_s0 + $0x70] sm:$0xff] }
  0x1a   :  { %v358_v30 = vadd.f32 %v597_v59, %v338_v8  ;;  %v76_v39 = vadd.f32 %v68_v5, %v38_v19  ;;  %v144_v40 = vmul.f32 %v400_v17, %v505_v16  ;;  %v295_v36 = vmul.f32 %v435_v24, %v610_v1  ;;  %v419_v24 = vld [vmem:[%s873_s0 + $0x168] sm:$0xff]  ;;  %v393_v5 = vld [vmem:[%s873_s0 + $0xb0] sm:$0xff] }
  0x1b   :  { %v264_v47 = vadd.f32 %v256_v4, %v226_v31  ;;  %v189_v49 = vadd.f32 %v181_v6, %v151_v32  ;;  %v182_v51 = vmul.f32 %v409_v29, %v519_v21  ;;  %v339_v53 = vadd.f32 %v331_v50, %v301_v12  ;;  %v436_v50 = vld [vmem:[%s873_s0 + $0x1e0] sm:$0xff]  ;;  %v410_v4 = vld [vmem:[%s873_s0 + $0x128] sm:$0xff]  ;;  %v402_v32 = vld [vmem:[%s873_s0 + $0xf0] sm:$0xff] }
  0x1c   :  { %366 = vst [vmem:[%s875_s3] sm:$0xff] %v358_v30  ;;  %v114_v56 = vadd.f32 %v106_v25, %v76_v39  ;;  %v39_v60 = vmul.f32 %v545_v35, %v19_v34  ;;  %v69_v61 = vmul.f32 %v383_v37, %v561_v41  ;;  %v220_v2 = vmul.f32 %v418_v43, %v521_v22  ;;  %v445_v29 = vld [vmem:[%s873_s0 + $0x220] sm:$0xff]  ;;  %v428_v37 = vld [vmem:[%s873_s0 + $0x1a8] sm:$0xff] }
  0x1d   :  { %v302_v62 = vadd.f32 %v294_v58, %v264_v47  ;;  %v227_v63 = vadd.f32 %v219_v33, %v189_v49  ;;  %v107_v3 = vmul.f32 %v392_v45, %v564_v42  ;;  %v359_v6 = vadd.f32 %v643_v26, %v339_v53  ;;  %v20_v58 = vld [vmem:[%s873_s0 + $0x30] sm:$0xff]  ;;  %v437_v12 = vld [vmem:[%s873_s0 + $0x1e8] sm:$0xff]  ;;  %v394_v53 = vld [vmem:[%s873_s0 + $0xb8] sm:$0xff] }
  0x1e   :  { %v152_v7 = vadd.f32 %v144_v40, %v114_v56  ;;  %v77_v8 = vadd.f32 %v69_v61, %v39_v60  ;;  %v145_v9 = vmul.f32 %v401_v52, %v570_v44  ;;  %v333_v17 = vmul.f32 %v444_v54, %v630_v18  ;;  %v411_v49 = vld [vmem:[%s873_s0 + $0x130] sm:$0xff]  ;;  %v446_v61 = vld [vmem:[%s873_s0 + $0x228] sm:$0xff] }
  0x1f   :  { %v340_v11 = vadd.f32 %v332_v23, %v302_v62  ;;  %v265_v19 = vadd.f32 %v257_v38, %v227_v63  ;;  %v258_v20 = vmul.f32 %v427_v57, %v529_v27  ;;  %367 = vst [vmem:[%s875_s3 + $0x8] sm:$0xff] %v359_v6  ;;  %v296_v23 = vmul.f32 %v436_v50, %v531_v28 }
  0x20   :  { %v190_v25 = vadd.f32 %v182_v51, %v152_v7  ;;  %v115_v30 = vadd.f32 %v107_v3, %v77_v8  ;;  %v183_v31 = vmul.f32 %v410_v4, %v576_v48  ;;  %v40_v38 = vmul.f32 %v499_v13, %v20_v58  ;;  %v403_v3 = vld [vmem:[%s873_s0 + $0xf8] sm:$0xff]  ;;  %v429_v7 = vld [vmem:[%s873_s0 + $0x1b0] sm:$0xff] }
  0x21   :  { %v360_v33 = vadd.f32 %v597_v59, %v340_v11  ;;  %v303_v34 = vadd.f32 %v295_v36, %v265_v19  ;;  %v70_v39 = vmul.f32 %v384_v10, %v501_v14  ;;  %v221_v45 = vmul.f32 %v419_v24, %v591_v55  ;;  %v21_v36 = vld [vmem:[%s873_s0 + $0x38] sm:$0xff] }
  0x22   :  { %v228_v40 = vadd.f32 %v220_v2, %v190_v25  ;;  %v153_v43 = vadd.f32 %v145_v9, %v115_v30  ;;  %v108_v47 = vmul.f32 %v393_v5, %v503_v15  ;;  %v334_v14 = vmul.f32 %v445_v29, %v572_v46  ;;  %v385_v15 = vld [vmem:[%s873_s0 + $0x78] sm:$0xff] }
  0x23   :  { %368 = vst [vmem:[%s875_s3 + $0x10] sm:$0xff] %v360_v33  ;;  %v341_v13 = vadd.f32 %v333_v17, %v303_v34  ;;  %v78_v51 = vadd.f32 %v70_v39, %v40_v38  ;;  %v146_v52 = vmul.f32 %v402_v32, %v505_v16  ;;  %v259_v57 = vmul.f32 %v428_v37, %v607_v0  ;;  %v420_v16 = vld [vmem:[%s873_s0 + $0x170] sm:$0xff]  ;;  %v412_v10 = vld [vmem:[%s873_s0 + $0x138] sm:$0xff] }
  0x24   :  { %v266_v54 = vadd.f32 %v258_v20, %v228_v40  ;;  %v191_v56 = vadd.f32 %v183_v31, %v153_v43  ;;  %v297_v60 = vmul.f32 %v437_v12, %v610_v1  ;;  %v184_v2 = vmul.f32 %v411_v49, %v519_v21  ;;  %v448_v43 = vld [vmem:[%s873_s0 + $0x238] sm:$0xff] }
  0x25   :  { %v361_v62 = vadd.f32 %v643_v26, %v341_v13  ;;  %v116_v63 = vadd.f32 %v108_v47, %v78_v51  ;;  %v41_v50 = vmul.f32 %v545_v35, %v21_v36  ;;  %v71_v8 = vmul.f32 %v385_v15, %v561_v41  ;;  %v438_v41 = vld [vmem:[%s873_s0 + $0x1f0] sm:$0xff] }
  0x26   :  { %v304_v4 = vadd.f32 %v296_v23, %v266_v54  ;;  %v229_v6 = vadd.f32 %v221_v45, %v191_v56  ;;  %v109_v9 = vmul.f32 %v394_v53, %v564_v42  ;;  %v335_v21 = vmul.f32 %v446_v61, %v630_v18  ;;  %v447_v23 = vld [vmem:[%s873_s0 + $0x230] sm:$0xff] }
  0x27   :  { %369 = vst [vmem:[%s875_s3 + $0x18] sm:$0xff] %v361_v62  ;;  %v154_v35 = vadd.f32 %v146_v52, %v116_v63  ;;  %v222_v58 = vmul.f32 %v420_v16, %v521_v22  ;;  %v79_v42 = vadd.f32 %v71_v8, %v41_v50  ;;  %v147_v17 = vmul.f32 %v403_v3, %v570_v44  ;;  %v421_v22 = vld [vmem:[%s873_s0 + $0x178] sm:$0xff] }
  0x28   :  { %v342_v11 = vadd.f32 %v334_v14, %v304_v4  ;;  %v267_v19 = vadd.f32 %v259_v57, %v229_v6  ;;  %v260_v24 = vmul.f32 %v429_v7, %v529_v27  ;;  %v185_v30 = vmul.f32 %v412_v10, %v576_v48  ;;  %v430_v27 = vld [vmem:[%s873_s0 + $0x1b8] sm:$0xff] }
  0x29   :  { %v192_v20 = vadd.f32 %v184_v2, %v154_v35  ;;  %v117_v29 = vadd.f32 %v109_v9, %v79_v42  ;;  %v298_v44 = vmul.f32 %v438_v41, %v531_v28  ;;  %v223_v34 = vmul.f32 %v421_v22, %v591_v55  ;;  %v439_v48 = vld [vmem:[%s873_s0 + $0x1f8] sm:$0xff] }
  0x2a   :  { %v362_v5 = vadd.f32 %v597_v59, %v342_v11  ;;  %v305_v25 = vadd.f32 %v297_v60, %v267_v19  ;;  %v336_v12 = vmul.f32 %v447_v23, %v572_v46  ;;  %v261_v39 = vmul.f32 %v430_v27, %v607_v0 }
  0x2b   :  { %v230_v31 = vadd.f32 %v222_v58, %v192_v20  ;;  %v155_v33 = vadd.f32 %v147_v17, %v117_v29  ;;  %v299_v46 = vmul.f32 %v439_v48, %v610_v1  ;;  %v337_v49 = vmul.f32 %v448_v43, %v630_v18 }
  0x2c   :  { %370 = vst [vmem:[%s875_s3 + $0x20] sm:$0xff] %v362_v5  ;;  %v343_v32 = vadd.f32 %v335_v21, %v305_v25 }
  0x2d   :  { %v268_v37 = vadd.f32 %v260_v24, %v230_v31  ;;  %v193_v38 = vadd.f32 %v185_v30, %v155_v33 }
  0x2e   :  { %v363_v28 = vadd.f32 %v643_v26, %v343_v32 }
  0x2f   :  { %v306_v40 = vadd.f32 %v298_v44, %v268_v37  ;;  %v231_v55 = vadd.f32 %v223_v34, %v193_v38 }
  0x30   :  { %371 = vst [vmem:[%s875_s3 + $0x28] sm:$0xff] %v363_v28 }
  0x31   :  { %v344_v45 = vadd.f32 %v336_v12, %v306_v40  ;;  %v269_v47 = vadd.f32 %v261_v39, %v231_v55 }
  0x33   :  { %v364_v36 = vadd.f32 %v597_v59, %v344_v45  ;;  %v307_v13 = vadd.f32 %v299_v46, %v269_v47 }
  0x35   :  { %372 = vst [vmem:[%s875_s3 + $0x30] sm:$0xff] %v364_v36  ;;  %v345_v0 = vadd.f32 %v337_v49, %v307_v13 }
  0x37   :  { %v365_v14 = vadd.f32 %v643_v26, %v345_v0 }
  0x39   :  { %373 = vst [vmem:[%s875_s3 + $0x38] sm:$0xff] %v365_v14 }

// kernel: _lambda_.22
= control target key start
LH: loop header
LB: loop body
LE: loop exit
PB: predicated region body
PF: predicated region fallthrough
CT: control target
= control target key end

     0   :  { %s1084_s15 = smov 0   ;;  %s1086_s16 = smov 0   ;;  %s1271_s0 = inlined_call_operand.vmem [shape: bf16[512,128], index: 0, kind: input, shape index: {}]   ;;  %s1272_s1 = inlined_call_operand.vmem [shape: bf16[128,128], index: 1, kind: input, shape index: {}]   ;;  %s1273_s2 = inlined_call_operand.vmem [shape: f32[1,128], index: 2, kind: input, shape index: {}]   ;;  %s1274_s3 = inlined_call_operand.vmem [shape: f32[512,128], index: 3, kind: input, shape index: {}]   ;;  %s1275_s4 = inlined_call_operand.vmem [shape: f32[512,128], index: 4, kind: output, shape index: {}]  }
   0x1   :  { %s1088_s17 = smov 0  }
   0x2 LB: > { %s26_s18 = sadd.s32 1, %s1053_s16  ;;  %p865_p0 = scmp.ge.s32.totalorder %s1057_s17, 1  ;;  %s1057_s17 = sphi %s1088_s17, %s14_s17   ;;  %s1053_s16 = sphi %s1086_s16, %s1277_s16   ;;  %s1049_s15 = sphi %s1084_s15, %s1276_s15  }
   0x3   : > { %p28_p1 = scmp.ge.s32.totalorder %s26_s18, 2  ;;  %p210_p2 = scmp.lt.s32.totalorder %s1057_s17, 3 }
   0x5   : > { %s1279_s18 = smov (%p28_p1, %s26_s18), 0  ;;  %p211_p3 = pnand %p865_p0, %p210_p2 }
   0x6   : > { %v1011_v0 = vld [vmem:[%s1272_s1] sm:$0xff] (!%p211_p3)   ;;  %s866_s21 = sshll.u32 (!%p211_p3), %s1049_s15, 5  ;;  %v1012_v1 = vld [vmem:[%s1272_s1 + $0x8] sm:$0xff] (!%p211_p3)   ;;  %v1013_v2 = vld [vmem:[%s1272_s1 + $0x10] sm:$0xff] (!%p211_p3)  }
   0x7   : > { %214 = sbr.rel (%p211_p3) target bundleno = 283 (0x11b), region = 36  ;;  %p255_p4 = scmp.lt.s32.totalorder (!%p211_p3), %s866_s21, 63  ;;  %923 = vmatprep.subr.bf16.mxu0 (!%p211_p3), %v1011_v0  ;;  %971 = vmatprep.subr.bf16.mxu1 (!%p211_p3), %v1011_v0  ;;  %v1014_v3 = vld [vmem:[%s1272_s1 + $0x18] sm:$0xff] (!%p211_p3)   ;;  %v1015_v6 = vld [vmem:[%s1272_s1 + $0x20] sm:$0xff] (!%p211_p3)   ;;  %v1016_v7 = vld [vmem:[%s1272_s1 + $0x28] sm:$0xff] (!%p211_p3)  }
   0x8   : > { %924 = vmatpush3.bf16.msra.mxu0 (!%p211_p3), %v1011_v0  ;;  %979 = vmatpush3.bf16.msra.mxu1 (!%p211_p3), %v1011_v0  ;;  %v1017_v8 = vld [vmem:[%s1272_s1 + $0x30] sm:$0xff] (!%p211_p3)   ;;  %v1018_v9 = vld [vmem:[%s1272_s1 + $0x38] sm:$0xff] (!%p211_p3)   ;;  %v1159_v24 = vld [vmem:[%s1273_s2] ss:$0 sm:$0xff] (!%p211_p3) }
   0x9   : > { %925 = vmatprep.subr.bf16.mxu0 (!%p211_p3), %v1012_v1  ;;  %972 = vmatprep.subr.bf16.mxu1 (!%p211_p3), %v1012_v1 }
   0xc   : > { %926 = vmatpush3.bf16.msra.mxu0 (!%p211_p3), %v1012_v1  ;;  %980 = vmatpush3.bf16.msra.mxu1 (!%p211_p3), %v1012_v1 }
   0xd   : > { %927 = vmatprep.subr.bf16.mxu0 (!%p211_p3), %v1013_v2  ;;  %973 = vmatprep.subr.bf16.mxu1 (!%p211_p3), %v1013_v2 }
   0xe   : > { %s1281_s21 = smov (!%p255_p4, %s866_s21), 63 }
   0xf   : > { %s867_s26 = sshll.u32 %s1281_s21, 2  ;;  %s869_s14 = sshll.u32 %s1281_s21, 3 }
  0x10   : > { %s1117_s29 = scalar_lea.vmem %s1271_s0, %s867_s26  ;;  %928 = vmatpush3.bf16.msra.mxu0 %v1013_v2  ;;  %981 = vmatpush3.bf16.msra.mxu1 %v1013_v2  ;;  %s1154_s20 = scalar_lea.vmem %s1274_s3, %s869_s14 }
  0x11   : > { %v1019_v4 = vld [vmem:[%s1117_s29] sm:$0xff]   ;;  %929 = vmatprep.subr.bf16.mxu0 %v1014_v3  ;;  %974 = vmatprep.subr.bf16.mxu1 %v1014_v3  ;;  %v1021_v10 = vld [vmem:[%s1117_s29 + $0x8] sm:$0xff]   ;;  %v1023_v12 = vld [vmem:[%s1117_s29 + $0x10] sm:$0xff]   ;;  %s1170_s25 = scalar_lea.vmem %s1275_s4, %s869_s14 }
  0x12   : > { %v1020_v5 = vld [vmem:[%s1117_s29 + $0x40] sm:$0xff]   ;;  %939 = vmatprep.mubr.bf16.mxu0 %v1019_v4  ;;  %v1022_v11 = vld [vmem:[%s1117_s29 + $0x48] sm:$0xff]   ;;  %v1024_v13 = vld [vmem:[%s1117_s29 + $0x50] sm:$0xff]  }
  0x13   : > { %955 = vmatprep.mubr.bf16.mxu1 %v1020_v5  ;;  %v1025_v14 = vld [vmem:[%s1117_s29 + $0x18] sm:$0xff]   ;;  %v1027_v16 = vld [vmem:[%s1117_s29 + $0x20] sm:$0xff]   ;;  %v1029_v18 = vld [vmem:[%s1117_s29 + $0x28] sm:$0xff]  }
  0x14   : > { %930 = vmatpush3.bf16.msra.mxu0 %v1014_v3  ;;  %982 = vmatpush3.bf16.msra.mxu1 %v1014_v3  ;;  %v1026_v15 = vld [vmem:[%s1117_s29 + $0x58] sm:$0xff]   ;;  %v1028_v17 = vld [vmem:[%s1117_s29 + $0x60] sm:$0xff]   ;;  %v1030_v19 = vld [vmem:[%s1117_s29 + $0x68] sm:$0xff]  }
  0x15   : > { %931 = vmatprep.subr.bf16.mxu0 %v1015_v6  ;;  %975 = vmatprep.subr.bf16.mxu1 %v1015_v6  ;;  %v1031_v20 = vld [vmem:[%s1117_s29 + $0x30] sm:$0xff]   ;;  %v1033_v22 = vld [vmem:[%s1117_s29 + $0x38] sm:$0xff]   ;;  %v646_v32 = vld [vmem:[%s1154_s20] sm:$0xff] }
  0x16   : > { %v1032_v21 = vld [vmem:[%s1117_s29 + $0x70] sm:$0xff]   ;;  %v1034_v23 = vld [vmem:[%s1117_s29 + $0x78] sm:$0xff]   ;;  %v662_v34 = vld [vmem:[%s1154_s20 + $0x80] sm:$0xff] }
  0x17   : > { %v648_v26 = vld [vmem:[%s1154_s20 + $0x10] sm:$0xff]  ;;  %v649_v38 = vld [vmem:[%s1154_s20 + $0x18] sm:$0xff]  ;;  %v647_v46 = vld [vmem:[%s1154_s20 + $0x8] sm:$0xff] }
  0x18   : > { %932 = vmatpush3.bf16.msra.mxu0 %v1015_v6  ;;  %983 = vmatpush3.bf16.msra.mxu1 %v1015_v6  ;;  %v664_v28 = vld [vmem:[%s1154_s20 + $0x90] sm:$0xff]  ;;  %v665_v40 = vld [vmem:[%s1154_s20 + $0x98] sm:$0xff]  ;;  %v663_v48 = vld [vmem:[%s1154_s20 + $0x88] sm:$0xff] }
  0x19   : > { %933 = vmatprep.subr.bf16.mxu0 %v1016_v7  ;;  %976 = vmatprep.subr.bf16.mxu1 %v1016_v7  ;;  %v652_v58 = vld [vmem:[%s1154_s20 + $0x30] sm:$0xff]  ;;  %v650_v0 = vld [vmem:[%s1154_s20 + $0x20] sm:$0xff]  ;;  %v653_v6 = vld [vmem:[%s1154_s20 + $0x38] sm:$0xff] }
  0x1a   : > { %v668_v60 = vld [vmem:[%s1154_s20 + $0xb0] sm:$0xff]  ;;  %v666_v2 = vld [vmem:[%s1154_s20 + $0xa0] sm:$0xff] }
  0x1c   : > { %934 = vmatpush3.bf16.msra.mxu0 %v1016_v7  ;;  %984 = vmatpush3.bf16.msra.mxu1 %v1016_v7 }
  0x1d   : > { %935 = vmatprep.subr.bf16.mxu0 %v1017_v8  ;;  %977 = vmatprep.subr.bf16.mxu1 %v1017_v8 }
  0x20   : > { %936 = vmatpush3.bf16.msra.mxu0 %v1017_v8  ;;  %985 = vmatpush3.bf16.msra.mxu1 %v1017_v8  ;;  %v669_v8 = vld [vmem:[%s1154_s20 + $0xb8] sm:$0xff] }
  0x21   : > { %937 = vmatprep.subr.bf16.mxu0 %v1018_v9  ;;  %978 = vmatprep.subr.bf16.mxu1 %v1018_v9 }
  0x24   : > { %938 = vmatpush3.bf16.msra.mxu0 %v1018_v9  ;;  %986 = vmatpush3.bf16.msra.mxu1 %v1018_v9 }
  0x27   : > { %940 = vmatmul.mubr.bf16.vlgmr.msra.gmra.mrb[0].mxu0 %v1021_v10  ;;  %956 = vmatmul.mubr.bf16.vlgmr.msra.gmra.mrb[0].mxu1 %v1022_v11 }
  0x28   : > { %943 = vmatprep.mubr.bf16.mxu0 %v1023_v12  ;;  %959 = vmatprep.mubr.bf16.mxu1 %v1024_v13 }
  0x2f   : > { %944 = vmatmul.mubr.bf16.gmra.mrb[4].mxu0 %v1025_v14  ;;  %960 = vmatmul.mubr.bf16.gmra.mrb[4].mxu1 %v1026_v15  ;;  %v651_v14 = vld [vmem:[%s1154_s20 + $0x28] sm:$0xff] }
  0x30   : > { %947 = vmatprep.mubr.bf16.mxu0 %v1027_v16  ;;  %963 = vmatprep.mubr.bf16.mxu1 %v1028_v17  ;;  %v667_v16 = vld [vmem:[%s1154_s20 + $0xa8] sm:$0xff] }
  0x37   : > { %948 = vmatmul.mubr.bf16.gmra.mrb[8].mxu0 %v1029_v18  ;;  %964 = vmatmul.mubr.bf16.gmra.mrb[8].mxu1 %v1030_v19 }
  0x38   : > { %951 = vmatprep.mubr.bf16.mxu0 %v1031_v20  ;;  %967 = vmatprep.mubr.bf16.mxu1 %v1032_v21 }
  0x3f   : > { %952 = vmatmul.mubr.bf16.gmra.mrb[12].mxu0 %v1033_v22  ;;  %968 = vmatmul.mubr.bf16.gmra.mrb[12].mxu1 %v1034_v23 }
  0xfa   : > { %v941_v25 = vpop.f32.mrb[0].mxu0  ;;  %v957_v27 = vpop.f32.mrb[0].mxu1 }
  0xfb   : > { %v528_v29 = vadd.f32 %v941_v25, %v1159_v24  ;;  %v592_v30 = vadd.f32 %v957_v27, %v1159_v24  ;;  %v519_v31 = vpop.f32.mrb[1].mxu0  ;;  %v583_v33 = vpop.f32.mrb[1].mxu1  ;;  %v656_v27 = vld [vmem:[%s1154_s20 + $0x50] sm:$0xff] }
  0xfc   : > { %v520_v35 = vadd.f32 %v1159_v24, %v519_v31  ;;  %v584_v36 = vadd.f32 %v1159_v24, %v583_v33  ;;  %v942_v37 = vpop.f32.mrb[2].mxu0  ;;  %v958_v39 = vpop.f32.mrb[2].mxu1  ;;  %v654_v33 = vld [vmem:[%s1154_s20 + $0x40] sm:$0xff] }
  0xfd   : > { %v680_v41 = vadd.f32 %v648_v26, %v528_v29  ;;  %v696_v42 = vadd.f32 %v664_v28, %v592_v30  ;;  %v531_v43 = vadd.f32 %v942_v37, %v1159_v24  ;;  %v595_v44 = vadd.f32 %v958_v39, %v1159_v24  ;;  %v522_v45 = vpop.f32.mrb[3].mxu0  ;;  %v586_v47 = vpop.f32.mrb[3].mxu1  ;;  %v672_v29 = vld [vmem:[%s1154_s20 + $0xd0] sm:$0xff]  ;;  %v657_v39 = vld [vmem:[%s1154_s20 + $0x58] sm:$0xff] }
  0xfe   : > { %v678_v49 = vadd.f32 %v646_v32, %v520_v35  ;;  %v694_v50 = vadd.f32 %v662_v34, %v584_v36  ;;  %v523_v51 = vadd.f32 %v1159_v24, %v522_v45  ;;  %v587_v52 = vadd.f32 %v1159_v24, %v586_v47  ;;  %v670_v35 = vld [vmem:[%s1154_s20 + $0xc0] sm:$0xff]  ;;  %v655_v47 = vld [vmem:[%s1154_s20 + $0x48] sm:$0xff] }
  0xff   : > { %712 = vst [vmem:[%s1170_s25 + $0x10] sm:$0xff] %v680_v41  ;;  %728 = vst [vmem:[%s1170_s25 + $0x90] sm:$0xff] %v696_v42  ;;  %v681_v53 = vadd.f32 %v649_v38, %v531_v43  ;;  %v697_v54 = vadd.f32 %v665_v40, %v595_v44  ;;  %v673_v41 = vld [vmem:[%s1154_s20 + $0xd8] sm:$0xff] }
 0x100   : > { %710 = vst [vmem:[%s1170_s25] sm:$0xff] %v678_v49  ;;  %726 = vst [vmem:[%s1170_s25 + $0x80] sm:$0xff] %v694_v50  ;;  %v679_v55 = vadd.f32 %v647_v46, %v523_v51  ;;  %v695_v56 = vadd.f32 %v663_v48, %v587_v52  ;;  %v671_v49 = vld [vmem:[%s1154_s20 + $0xc8] sm:$0xff] }
 0x101   : > { %713 = vst [vmem:[%s1170_s25 + $0x18] sm:$0xff] %v681_v53  ;;  %729 = vst [vmem:[%s1170_s25 + $0x98] sm:$0xff] %v697_v54 }
 0x102   : > { %711 = vst [vmem:[%s1170_s25 + $0x8] sm:$0xff] %v679_v55  ;;  %727 = vst [vmem:[%s1170_s25 + $0x88] sm:$0xff] %v695_v56  ;;  %v945_v57 = vpop.f32.mrb[4].mxu0  ;;  %v961_v59 = vpop.f32.mrb[4].mxu1 }
 0x103   : > { %v544_v61 = vadd.f32 %v945_v57, %v1159_v24  ;;  %v608_v62 = vadd.f32 %v961_v59, %v1159_v24  ;;  %v535_v63 = vpop.f32.mrb[5].mxu0  ;;  %v599_v1 = vpop.f32.mrb[5].mxu1  ;;  %v660_v59 = vld [vmem:[%s1154_s20 + $0x70] sm:$0xff] }
 0x104   : > { %v536_v3 = vadd.f32 %v1159_v24, %v535_v63  ;;  %v600_v4 = vadd.f32 %v1159_v24, %v599_v1  ;;  %v946_v5 = vpop.f32.mrb[6].mxu0  ;;  %v962_v7 = vpop.f32.mrb[6].mxu1  ;;  %v658_v1 = vld [vmem:[%s1154_s20 + $0x60] sm:$0xff] }
 0x105   : > { %v684_v9 = vadd.f32 %v652_v58, %v544_v61  ;;  %v700_v10 = vadd.f32 %v668_v60, %v608_v62  ;;  %v547_v11 = vadd.f32 %v946_v5, %v1159_v24  ;;  %v611_v12 = vadd.f32 %v962_v7, %v1159_v24  ;;  %v538_v13 = vpop.f32.mrb[7].mxu0  ;;  %v602_v15 = vpop.f32.mrb[7].mxu1  ;;  %v676_v61 = vld [vmem:[%s1154_s20 + $0xf0] sm:$0xff]  ;;  %v661_v7 = vld [vmem:[%s1154_s20 + $0x78] sm:$0xff] }
 0x106   : > { %v682_v17 = vadd.f32 %v650_v0, %v536_v3  ;;  %v698_v18 = vadd.f32 %v666_v2, %v600_v4  ;;  %v539_v19 = vadd.f32 %v1159_v24, %v538_v13  ;;  %v603_v20 = vadd.f32 %v1159_v24, %v602_v15  ;;  %v674_v3 = vld [vmem:[%s1154_s20 + $0xe0] sm:$0xff]  ;;  %v659_v15 = vld [vmem:[%s1154_s20 + $0x68] sm:$0xff] }
 0x107   : > { %716 = vst [vmem:[%s1170_s25 + $0x30] sm:$0xff] %v684_v9  ;;  %732 = vst [vmem:[%s1170_s25 + $0xb0] sm:$0xff] %v700_v10  ;;  %v685_v21 = vadd.f32 %v653_v6, %v547_v11  ;;  %v701_v22 = vadd.f32 %v669_v8, %v611_v12  ;;  %v677_v9 = vld [vmem:[%s1154_s20 + $0xf8] sm:$0xff] }
 0x108   : > { %714 = vst [vmem:[%s1170_s25 + $0x20] sm:$0xff] %v682_v17  ;;  %730 = vst [vmem:[%s1170_s25 + $0xa0] sm:$0xff] %v698_v18  ;;  %v683_v23 = vadd.f32 %v651_v14, %v539_v19  ;;  %v699_v25 = vadd.f32 %v667_v16, %v603_v20  ;;  %v675_v17 = vld [vmem:[%s1154_s20 + $0xe8] sm:$0xff] }
 0x109   : > { %717 = vst [vmem:[%s1170_s25 + $0x38] sm:$0xff] %v685_v21  ;;  %733 = vst [vmem:[%s1170_s25 + $0xb8] sm:$0xff] %v701_v22 }
 0x10a   : > { %715 = vst [vmem:[%s1170_s25 + $0x28] sm:$0xff] %v683_v23  ;;  %731 = vst [vmem:[%s1170_s25 + $0xa8] sm:$0xff] %v699_v25  ;;  %v949_v26 = vpop.f32.mrb[8].mxu0  ;;  %v965_v28 = vpop.f32.mrb[8].mxu1 }
 0x10b   : > { %v560_v30 = vadd.f32 %v949_v26, %v1159_v24  ;;  %v624_v31 = vadd.f32 %v965_v28, %v1159_v24  ;;  %v551_v32 = vpop.f32.mrb[9].mxu0  ;;  %v615_v34 = vpop.f32.mrb[9].mxu1 }
 0x10c   : > { %v552_v36 = vadd.f32 %v1159_v24, %v551_v32  ;;  %v616_v37 = vadd.f32 %v1159_v24, %v615_v34  ;;  %v950_v38 = vpop.f32.mrb[10].mxu0  ;;  %v966_v40 = vpop.f32.mrb[10].mxu1 }
 0x10d   : > { %v688_v42 = vadd.f32 %v656_v27, %v560_v30  ;;  %v704_v43 = vadd.f32 %v672_v29, %v624_v31  ;;  %v563_v44 = vadd.f32 %v950_v38, %v1159_v24  ;;  %v627_v45 = vadd.f32 %v966_v40, %v1159_v24  ;;  %v554_v46 = vpop.f32.mrb[11].mxu0  ;;  %v618_v48 = vpop.f32.mrb[11].mxu1 }
 0x10e   : > { %v686_v50 = vadd.f32 %v654_v33, %v552_v36  ;;  %v702_v51 = vadd.f32 %v670_v35, %v616_v37  ;;  %v555_v52 = vadd.f32 %v1159_v24, %v554_v46  ;;  %v619_v53 = vadd.f32 %v1159_v24, %v618_v48 }
 0x10f   : > { %720 = vst [vmem:[%s1170_s25 + $0x50] sm:$0xff] %v688_v42  ;;  %736 = vst [vmem:[%s1170_s25 + $0xd0] sm:$0xff] %v704_v43  ;;  %v689_v54 = vadd.f32 %v657_v39, %v563_v44  ;;  %v705_v55 = vadd.f32 %v673_v41, %v627_v45 }
 0x110   : > { %718 = vst [vmem:[%s1170_s25 + $0x40] sm:$0xff] %v686_v50  ;;  %734 = vst [vmem:[%s1170_s25 + $0xc0] sm:$0xff] %v702_v51  ;;  %v687_v56 = vadd.f32 %v655_v47, %v555_v52  ;;  %v703_v57 = vadd.f32 %v671_v49, %v619_v53 }
 0x111   : > { %721 = vst [vmem:[%s1170_s25 + $0x58] sm:$0xff] %v689_v54  ;;  %737 = vst [vmem:[%s1170_s25 + $0xd8] sm:$0xff] %v705_v55 }
 0x112   : > { %719 = vst [vmem:[%s1170_s25 + $0x48] sm:$0xff] %v687_v56  ;;  %735 = vst [vmem:[%s1170_s25 + $0xc8] sm:$0xff] %v703_v57  ;;  %v953_v58 = vpop.f32.mrb[12].mxu0  ;;  %v969_v60 = vpop.f32.mrb[12].mxu1 }
 0x113   : > { %v576_v62 = vadd.f32 %v953_v58, %v1159_v24  ;;  %v640_v63 = vadd.f32 %v969_v60, %v1159_v24  ;;  %v567_v0 = vpop.f32.mrb[13].mxu0  ;;  %v631_v2 = vpop.f32.mrb[13].mxu1 }
 0x114   : > { %v568_v4 = vadd.f32 %v1159_v24, %v567_v0  ;;  %v632_v5 = vadd.f32 %v1159_v24, %v631_v2  ;;  %v954_v6 = vpop.f32.mrb[14].mxu0  ;;  %v970_v8 = vpop.f32.mrb[14].mxu1 }
 0x115   : > { %v692_v10 = vadd.f32 %v660_v59, %v576_v62  ;;  %v708_v11 = vadd.f32 %v676_v61, %v640_v63  ;;  %v579_v12 = vadd.f32 %v954_v6, %v1159_v24  ;;  %v643_v13 = vadd.f32 %v970_v8, %v1159_v24  ;;  %v570_v14 = vpop.f32.mrb[15].mxu0  ;;  %v634_v16 = vpop.f32.mrb[15].mxu1 }
 0x116   : > { %v690_v18 = vadd.f32 %v658_v1, %v568_v4  ;;  %v706_v19 = vadd.f32 %v674_v3, %v632_v5  ;;  %v571_v20 = vadd.f32 %v1159_v24, %v570_v14  ;;  %v635_v21 = vadd.f32 %v1159_v24, %v634_v16 }
 0x117   : > { %724 = vst [vmem:[%s1170_s25 + $0x70] sm:$0xff] %v692_v10  ;;  %740 = vst [vmem:[%s1170_s25 + $0xf0] sm:$0xff] %v708_v11  ;;  %v693_v22 = vadd.f32 %v661_v7, %v579_v12  ;;  %v709_v23 = vadd.f32 %v677_v9, %v643_v13 }
 0x118   : > { %722 = vst [vmem:[%s1170_s25 + $0x60] sm:$0xff] %v690_v18  ;;  %738 = vst [vmem:[%s1170_s25 + $0xe0] sm:$0xff] %v706_v19  ;;  %v691_v25 = vadd.f32 %v659_v15, %v571_v20  ;;  %v707_v26 = vadd.f32 %v675_v17, %v635_v21 }
 0x119   : > { %725 = vst [vmem:[%s1170_s25 + $0x78] sm:$0xff] %v693_v22  ;;  %741 = vst [vmem:[%s1170_s25 + $0xf8] sm:$0xff] %v709_v23 }
 0x11a   : > { %723 = vst [vmem:[%s1170_s25 + $0x68] sm:$0xff] %v691_v25  ;;  %739 = vst [vmem:[%s1170_s25 + $0xe8] sm:$0xff] %v707_v26 }
 0x11b PF: > { %s14_s17 = sadd.s32 1, %s1057_s17   ;;  %s1276_s15 = smov %s1053_s16 }
 0x11c   : > { %p11_p5 = scmp.ge.s32.totalorder %s14_s17, 4   ;;  %s1277_s16 = smov %s1279_s18 }
 0x11e   :  { %13 = sbr.rel (!%p11_p5) target bundleno = 2 (0x2), region = 75 }

// kernel: _lambda_.23
= control target key start
LH: loop header
LB: loop body
LE: loop exit
PB: predicated region body
PF: predicated region fallthrough
CT: control target
= control target key end

     0   :  { %s304_s0 = inlined_call_operand.vmem [shape: f32[9,16,128], index: 0, kind: input, shape index: {}]   ;;  %s305_s1 = inlined_call_operand.vmem [shape: f32[9,1,128], index: 1, kind: input, shape index: {}]   ;;  %s306_s2 = inlined_call_operand.vmem [shape: f32[1,128], index: 2, kind: input, shape index: {}]   ;;  %s307_s3 = inlined_call_operand.vmem [shape: f32[16,128], index: 3, kind: output, shape index: {}]  }
   0x1   :  { %v14_v0 = vld [vmem:[%s304_s0] sm:$0xff]  ;;  %v161_v2 = vld [vmem:[%s304_s0 + $0x10] sm:$0xff]  ;;  %v15_v20 = vld [vmem:[%s304_s0 + $0x8] sm:$0xff] }
   0x2   :  { %v160_v1 = vld [vmem:[%s305_s1] ss:$0 sm:$0xff]  ;;  %v164_v4 = vld [vmem:[%s305_s1 + $0x1] ss:$0 sm:$0xff]  ;;  %v168_v6 = vld [vmem:[%s305_s1 + $0x2] ss:$0 sm:$0xff] }
   0x3   :  { %v23_v3 = vmul.f32 %v160_v1, %v14_v0  ;;  %v165_v5 = vld [vmem:[%s304_s0 + $0x20] sm:$0xff]  ;;  %v36_v7 = vmul.f32 %v164_v4, %v161_v2  ;;  %v169_v9 = vld [vmem:[%s304_s0 + $0x30] sm:$0xff]  ;;  %v162_v21 = vld [vmem:[%s304_s0 + $0x18] sm:$0xff]  ;;  %v24_v23 = vmul.f32 %v160_v1, %v15_v20 }
   0x4   :  { %v51_v8 = vmul.f32 %v168_v6, %v165_v5  ;;  %v172_v10 = vld [vmem:[%s305_s1 + $0x3] ss:$0 sm:$0xff]  ;;  %v176_v12 = vld [vmem:[%s305_s1 + $0x4] ss:$0 sm:$0xff]  ;;  %v177_v15 = vld [vmem:[%s304_s0 + $0x50] sm:$0xff]  ;;  %v37_v24 = vmul.f32 %v164_v4, %v162_v21 }
   0x5   :  { %v173_v11 = vld [vmem:[%s304_s0 + $0x40] sm:$0xff]  ;;  %v38_v13 = vadd.f32 %v36_v7, %v23_v3  ;;  %v66_v14 = vmul.f32 %v172_v10, %v169_v9  ;;  %v166_v25 = vld [vmem:[%s304_s0 + $0x28] sm:$0xff]  ;;  %v170_v26 = vld [vmem:[%s304_s0 + $0x38] sm:$0xff] }
   0x6   :  { %v180_v16 = vld [vmem:[%s305_s1 + $0x5] ss:$0 sm:$0xff]  ;;  %v81_v18 = vmul.f32 %v176_v12, %v173_v11  ;;  %v184_v22 = vld [vmem:[%s305_s1 + $0x6] ss:$0 sm:$0xff]  ;;  %v52_v29 = vmul.f32 %v168_v6, %v166_v25  ;;  %v174_v30 = vld [vmem:[%s304_s0 + $0x48] sm:$0xff]  ;;  %v39_v33 = vadd.f32 %v37_v24, %v24_v23  ;;  %v67_v34 = vmul.f32 %v172_v10, %v170_v26 }
   0x7   :  { %v53_v17 = vadd.f32 %v51_v8, %v38_v13  ;;  %v181_v19 = vld [vmem:[%s304_s0 + $0x60] sm:$0xff]  ;;  %v96_v28 = vmul.f32 %v180_v16, %v177_v15  ;;  %v185_v31 = vld [vmem:[%s304_s0 + $0x70] sm:$0xff]  ;;  %v178_v37 = vld [vmem:[%s304_s0 + $0x58] sm:$0xff]  ;;  %v82_v41 = vmul.f32 %v176_v12, %v174_v30 }
   0x8   :  { %v188_v32 = vld [vmem:[%s305_s1 + $0x7] ss:$0 sm:$0xff]  ;;  %v111_v36 = vmul.f32 %v184_v22, %v181_v19  ;;  %v192_v39 = vld [vmem:[%s305_s1 + $0x8] ss:$0 sm:$0xff]  ;;  %v54_v40 = vadd.f32 %v52_v29, %v39_v33  ;;  %v97_v46 = vmul.f32 %v180_v16, %v178_v37  ;;  %v186_v49 = vld [vmem:[%s304_s0 + $0x78] sm:$0xff] }
   0x9   :  { %v68_v27 = vadd.f32 %v66_v14, %v53_v17  ;;  %v189_v38 = vld [vmem:[%s304_s0 + $0x80] sm:$0xff]  ;;  %v126_v43 = vmul.f32 %v188_v32, %v185_v31  ;;  %v182_v44 = vld [vmem:[%s304_s0 + $0x68] sm:$0xff]  ;;  %v127_v56 = vmul.f32 %v188_v32, %v186_v49 }
   0xa   :  { %v69_v45 = vadd.f32 %v67_v34, %v54_v40  ;;  %v141_v48 = vmul.f32 %v192_v39, %v189_v38  ;;  %v112_v51 = vmul.f32 %v184_v22, %v182_v44  ;;  %v190_v53 = vld [vmem:[%s304_s0 + $0x88] sm:$0xff]  ;;  %v193_v54 = vld [vmem:[%s306_s2] ss:$0 sm:$0xff] }
   0xb   :  { %v83_v35 = vadd.f32 %v81_v18, %v68_v27  ;;  %v142_v59 = vmul.f32 %v192_v39, %v190_v53 }
   0xc   :  { %v84_v50 = vadd.f32 %v82_v41, %v69_v45 }
   0xd   :  { %v98_v42 = vadd.f32 %v96_v28, %v83_v35 }
   0xe   :  { %v99_v55 = vadd.f32 %v97_v46, %v84_v50 }
   0xf   :  { %v113_v47 = vadd.f32 %v111_v36, %v98_v42 }
  0x10   :  { %v114_v58 = vadd.f32 %v112_v51, %v99_v55 }
  0x11   :  { %v128_v52 = vadd.f32 %v126_v43, %v113_v47 }
  0x12   :  { %v129_v61 = vadd.f32 %v127_v56, %v114_v58 }
  0x13   :  { %v143_v57 = vadd.f32 %v141_v48, %v128_v52 }
  0x14   :  { %v144_v62 = vadd.f32 %v142_v59, %v129_v61 }
  0x15   :  { %v152_v60 = vadd.f32 %v193_v54, %v143_v57 }
  0x16   :  { %v153_v63 = vadd.f32 %v193_v54, %v144_v62 }
  0x17   :  { %154 = vst [vmem:[%s307_s3] sm:$0xff] %v152_v60 }
  0x18   :  { %155 = vst [vmem:[%s307_s3 + $0x8] sm:$0xff] %v153_v63 }

// kernel: _lambda_.24
= control target key start
LH: loop header
LB: loop body
LE: loop exit
PB: predicated region body
PF: predicated region fallthrough
CT: control target
= control target key end

     0   :  { %s483_s1 = inlined_call_operand.vmem [shape: bf16[128,128], index: 1, kind: input, shape index: {}]   ;;  %s484_s0 = inlined_call_operand.vmem [shape: bf16[128,128], index: 0, kind: input, shape index: {}]   ;;  %s485_s2 = inlined_call_operand.vmem [shape: f32[1,128], index: 2, kind: input, shape index: {}]   ;;  %s486_s3 = inlined_call_operand.vmem [shape: f32[128,128], index: 3, kind: output, shape index: {}]  }
   0x1   :  { %v348_v0 = vld [vmem:[%s483_s1] sm:$0xff]   ;;  %v349_v1 = vld [vmem:[%s483_s1 + $0x8] sm:$0xff]   ;;  %v350_v2 = vld [vmem:[%s483_s1 + $0x10] sm:$0xff]  }
   0x2   :  { %300 = vmatprep.subr.bf16.mxu0 %v348_v0  ;;  %332 = vmatprep.subr.bf16.mxu1 %v348_v0  ;;  %v351_v3 = vld [vmem:[%s483_s1 + $0x18] sm:$0xff]   ;;  %v356_v4 = vld [vmem:[%s484_s0] sm:$0xff]   ;;  %v353_v7 = vld [vmem:[%s483_s1 + $0x28] sm:$0xff]  }
   0x3   :  { %301 = vmatpush3.bf16.msra.mxu0 %v348_v0  ;;  %340 = vmatpush3.bf16.msra.mxu1 %v348_v0  ;;  %v357_v5 = vld [vmem:[%s484_s0 + $0x20] sm:$0xff]   ;;  %v354_v8 = vld [vmem:[%s483_s1 + $0x30] sm:$0xff]   ;;  %v355_v9 = vld [vmem:[%s483_s1 + $0x38] sm:$0xff]  }
   0x4   :  { %302 = vmatprep.subr.bf16.mxu0 %v349_v1  ;;  %333 = vmatprep.subr.bf16.mxu1 %v349_v1  ;;  %v352_v6 = vld [vmem:[%s483_s1 + $0x20] sm:$0xff]   ;;  %v358_v10 = vld [vmem:[%s484_s0 + $0x8] sm:$0xff]   ;;  %v360_v12 = vld [vmem:[%s484_s0 + $0x10] sm:$0xff]  }
   0x5   :  { %316 = vmatprep.mubr.bf16.mxu0 %v356_v4  ;;  %324 = vmatprep.mubr.bf16.mxu1 %v357_v5  ;;  %v359_v11 = vld [vmem:[%s484_s0 + $0x28] sm:$0xff]   ;;  %v361_v13 = vld [vmem:[%s484_s0 + $0x30] sm:$0xff]   ;;  %v362_v14 = vld [vmem:[%s484_s0 + $0x18] sm:$0xff]  }
   0x6   :  { %v363_v15 = vld [vmem:[%s484_s0 + $0x38] sm:$0xff]   ;;  %v267_v16 = vld [vmem:[%s485_s2] ss:$0 sm:$0xff] }
   0x7   :  { %303 = vmatpush3.bf16.msra.mxu0 %v349_v1  ;;  %341 = vmatpush3.bf16.msra.mxu1 %v349_v1 }
   0x8   :  { %304 = vmatprep.subr.bf16.mxu0 %v350_v2  ;;  %334 = vmatprep.subr.bf16.mxu1 %v350_v2 }
   0xb   :  { %305 = vmatpush3.bf16.msra.mxu0 %v350_v2  ;;  %342 = vmatpush3.bf16.msra.mxu1 %v350_v2 }
   0xc   :  { %306 = vmatprep.subr.bf16.mxu0 %v351_v3  ;;  %335 = vmatprep.subr.bf16.mxu1 %v351_v3 }
   0xf   :  { %307 = vmatpush3.bf16.msra.mxu0 %v351_v3  ;;  %343 = vmatpush3.bf16.msra.mxu1 %v351_v3 }
  0x10   :  { %308 = vmatprep.subr.bf16.mxu0 %v352_v6  ;;  %336 = vmatprep.subr.bf16.mxu1 %v352_v6 }
  0x13   :  { %309 = vmatpush3.bf16.msra.mxu0 %v352_v6  ;;  %344 = vmatpush3.bf16.msra.mxu1 %v352_v6 }
  0x14   :  { %310 = vmatprep.subr.bf16.mxu0 %v353_v7  ;;  %337 = vmatprep.subr.bf16.mxu1 %v353_v7 }
  0x17   :  { %311 = vmatpush3.bf16.msra.mxu0 %v353_v7  ;;  %345 = vmatpush3.bf16.msra.mxu1 %v353_v7 }
  0x18   :  { %312 = vmatprep.subr.bf16.mxu0 %v354_v8  ;;  %338 = vmatprep.subr.bf16.mxu1 %v354_v8 }
  0x1b   :  { %313 = vmatpush3.bf16.msra.mxu0 %v354_v8  ;;  %346 = vmatpush3.bf16.msra.mxu1 %v354_v8 }
  0x1c   :  { %314 = vmatprep.subr.bf16.mxu0 %v355_v9  ;;  %339 = vmatprep.subr.bf16.mxu1 %v355_v9 }
  0x1f   :  { %315 = vmatpush3.bf16.msra.mxu0 %v355_v9  ;;  %347 = vmatpush3.bf16.msra.mxu1 %v355_v9 }
  0x22   :  { %317 = vmatmul.mubr.bf16.vlgmr.msra.gmra.mrb[0].mxu0 %v358_v10  ;;  %325 = vmatmul.mubr.bf16.vlgmr.msra.gmra.mrb[0].mxu1 %v359_v11 }
  0x23   :  { %320 = vmatprep.mubr.bf16.mxu0 %v360_v12  ;;  %328 = vmatprep.mubr.bf16.mxu1 %v361_v13 }
  0x2a   :  { %321 = vmatmul.mubr.bf16.gmra.mrb[4].mxu0 %v362_v14  ;;  %329 = vmatmul.mubr.bf16.gmra.mrb[4].mxu1 %v363_v15 }
  0xf5   :  { %v318_v17 = vpop.f32.mrb[0].mxu0  ;;  %v326_v18 = vpop.f32.mrb[0].mxu1 }
  0xf6   :  { %v193_v19 = vadd.f32 %v318_v17, %v267_v16  ;;  %v225_v20 = vadd.f32 %v326_v18, %v267_v16  ;;  %v184_v21 = vpop.f32.mrb[1].mxu0  ;;  %v216_v22 = vpop.f32.mrb[1].mxu1 }
  0xf7   :  { %v185_v23 = vadd.f32 %v267_v16, %v184_v21  ;;  %v217_v24 = vadd.f32 %v267_v16, %v216_v22  ;;  %v319_v25 = vpop.f32.mrb[2].mxu0  ;;  %v327_v26 = vpop.f32.mrb[2].mxu1 }
  0xf8   :  { %249 = vst [vmem:[%s486_s3 + $0x10] sm:$0xff] %v193_v19  ;;  %257 = vst [vmem:[%s486_s3 + $0x50] sm:$0xff] %v225_v20  ;;  %v196_v27 = vadd.f32 %v319_v25, %v267_v16  ;;  %v228_v28 = vadd.f32 %v327_v26, %v267_v16  ;;  %v187_v29 = vpop.f32.mrb[3].mxu0  ;;  %v219_v30 = vpop.f32.mrb[3].mxu1 }
  0xf9   :  { %247 = vst [vmem:[%s486_s3] sm:$0xff] %v185_v23  ;;  %255 = vst [vmem:[%s486_s3 + $0x40] sm:$0xff] %v217_v24  ;;  %v188_v31 = vadd.f32 %v267_v16, %v187_v29  ;;  %v220_v32 = vadd.f32 %v267_v16, %v219_v30 }
  0xfa   :  { %250 = vst [vmem:[%s486_s3 + $0x18] sm:$0xff] %v196_v27  ;;  %258 = vst [vmem:[%s486_s3 + $0x58] sm:$0xff] %v228_v28 }
  0xfb   :  { %248 = vst [vmem:[%s486_s3 + $0x8] sm:$0xff] %v188_v31  ;;  %256 = vst [vmem:[%s486_s3 + $0x48] sm:$0xff] %v220_v32 }
  0xfd   :  { %v322_v33 = vpop.f32.mrb[4].mxu0  ;;  %v330_v34 = vpop.f32.mrb[4].mxu1 }
  0xfe   :  { %v209_v35 = vadd.f32 %v322_v33, %v267_v16  ;;  %v241_v36 = vadd.f32 %v330_v34, %v267_v16  ;;  %v200_v37 = vpop.f32.mrb[5].mxu0  ;;  %v232_v38 = vpop.f32.mrb[5].mxu1 }
  0xff   :  { %v201_v39 = vadd.f32 %v267_v16, %v200_v37  ;;  %v233_v40 = vadd.f32 %v267_v16, %v232_v38  ;;  %v323_v41 = vpop.f32.mrb[6].mxu0  ;;  %v331_v42 = vpop.f32.mrb[6].mxu1 }
 0x100   :  { %253 = vst [vmem:[%s486_s3 + $0x30] sm:$0xff] %v209_v35  ;;  %261 = vst [vmem:[%s486_s3 + $0x70] sm:$0xff] %v241_v36  ;;  %v212_v43 = vadd.f32 %v323_v41, %v267_v16  ;;  %v244_v44 = vadd.f32 %v331_v42, %v267_v16  ;;  %v203_v45 = vpop.f32.mrb[7].mxu0  ;;  %v235_v46 = vpop.f32.mrb[7].mxu1 }
 0x101   :  { %251 = vst [vmem:[%s486_s3 + $0x20] sm:$0xff] %v201_v39  ;;  %259 = vst [vmem:[%s486_s3 + $0x60] sm:$0xff] %v233_v40  ;;  %v204_v47 = vadd.f32 %v267_v16, %v203_v45  ;;  %v236_v48 = vadd.f32 %v267_v16, %v235_v46 }
 0x102   :  { %254 = vst [vmem:[%s486_s3 + $0x38] sm:$0xff] %v212_v43  ;;  %262 = vst [vmem:[%s486_s3 + $0x78] sm:$0xff] %v244_v44 }
 0x103   :  { %252 = vst [vmem:[%s486_s3 + $0x28] sm:$0xff] %v204_v47  ;;  %260 = vst [vmem:[%s486_s3 + $0x68] sm:$0xff] %v236_v48 }

// kernel: _lambda_.27
= control target key start
LH: loop header
LB: loop body
LE: loop exit
PB: predicated region body
PF: predicated region fallthrough
CT: control target
= control target key end

     0   :  { %v20_v0 = vlaneseq  ;;  %s528_s1 = inlined_call_operand.vmem [shape: f32[9,1,256], index: 1, kind: input, shape index: {}]   ;;  %s529_s0 = inlined_call_operand.vmem [shape: f32[9,16,256], index: 0, kind: input, shape index: {}]   ;;  %s530_s2 = inlined_call_operand.vmem [shape: f32[1,256], index: 2, kind: input, shape index: {}]   ;;  %s531_s3 = inlined_call_operand.vmem [shape: f32[16,256], index: 3, kind: output, shape index: {}]  }
   0x1   :  { %v18_v1 = vld [vmem:[%s528_s1] sm:$0x3]  ;;  %v270_v3 = vld [vmem:[%s528_s1 + $0x2] sm:$0x3]  ;;  %v275_v4 = vld [vmem:[%s528_s1 + $0x4] sm:$0x3] }
   0x2   :  { %v21_v2 = vshrl.u32 %v20_v0, 7  ;;  %v280_v5 = vld [vmem:[%s528_s1 + $0x6] sm:$0x3]  ;;  %v285_v10 = vld [vmem:[%s528_s1 + $0x8] sm:$0x3]  ;;  %v16_v46 = vld [vmem:[%s529_s0 + $0x10] sm:$0xff] }
   0x3   :  { %v14_v6 = vld [vmem:[%s529_s0] sm:$0xff]  ;;  %v290_v16 = vld [vmem:[%s528_s1 + $0xa] sm:$0x3]  ;;  %v295_v18 = vld [vmem:[%s528_s1 + $0xc] sm:$0x3] }
   0x4   :  { %v22_v7 = vsub.s32 0, %v21_v2  ;;  %v266_v8 = vld [vmem:[%s529_s0 + $0x20] sm:$0xff]  ;;  %v350_v11 = vsub.s32 1, %v21_v2  ;;  %v300_v23 = vld [vmem:[%s528_s1 + $0xe] sm:$0x3]  ;;  %v268_v52 = vld [vmem:[%s529_s0 + $0x30] sm:$0xff] }
   0x5   :  { %v271_v9 = vld [vmem:[%s529_s0 + $0x40] sm:$0xff]  ;;  %v305_v26 = vld [vmem:[%s528_s1 + $0x10] sm:$0x3]  ;;  %v15_v27 = vld [vmem:[%s529_s0 + $0x8] sm:$0xff] }
   0x6   :  { %v23_v12 = vrot.slane %v18_v1, %v22_v7  ;;  %v45_v13 = vrot.slane %v270_v3, %v22_v7  ;;  %v71_v14 = vrot.slane %v275_v4, %v22_v7  ;;  %v352_v15 = vrot.slane %v280_v5, %v22_v7  ;;  %v276_v17 = vld [vmem:[%s529_s0 + $0x60] sm:$0xff]  ;;  %v267_v32 = vld [vmem:[%s529_s0 + $0x28] sm:$0xff]  ;;  %v273_v58 = vld [vmem:[%s529_s0 + $0x50] sm:$0xff] }
   0x7   :  { %v363_v22 = vrot.slane %v285_v10, %v22_v7  ;;  %v281_v24 = vld [vmem:[%s529_s0 + $0x80] sm:$0xff]  ;;  %v371_v25 = vrot.slane %v290_v16, %v22_v7  ;;  %v380_v30 = vrot.slane %v295_v18, %v22_v7  ;;  %v27_v31 = vrot.slane %v18_v1, %v350_v11  ;;  %v272_v33 = vld [vmem:[%s529_s0 + $0x48] sm:$0xff]  ;;  %v278_v0 = vld [vmem:[%s529_s0 + $0x70] sm:$0xff] }
   0x8   :  { %v30_v19 = vmul.f32 %v23_v12, %v14_v6  ;;  %v52_v20 = vmul.f32 %v266_v8, %v45_v13  ;;  %v78_v21 = vmul.f32 %v271_v9, %v71_v14  ;;  %v104_v29 = vmul.f32 %v276_v17, %v352_v15  ;;  %v286_v34 = vld [vmem:[%s529_s0 + $0xa0] sm:$0xff]  ;;  %v277_v45 = vld [vmem:[%s529_s0 + $0x68] sm:$0xff] }
   0x9   :  { %v291_v35 = vld [vmem:[%s529_s0 + $0xc0] sm:$0xff]  ;;  %v395_v36 = vrot.slane %v300_v23, %v22_v7  ;;  %v49_v37 = vrot.slane %v270_v3, %v350_v11  ;;  %v75_v38 = vrot.slane %v275_v4, %v350_v11  ;;  %v400_v39 = vrot.slane %v280_v5, %v350_v11  ;;  %v282_v56 = vld [vmem:[%s529_s0 + $0x88] sm:$0xff]  ;;  %v283_v5 = vld [vmem:[%s529_s0 + $0x90] sm:$0xff] }
   0xa   :  { %v56_v28 = vadd.f32 %v52_v20, %v30_v19  ;;  %v130_v41 = vmul.f32 %v281_v24, %v363_v22  ;;  %v296_v42 = vld [vmem:[%s529_s0 + $0xe0] sm:$0xff]  ;;  %v406_v43 = vrot.slane %v305_v26, %v22_v7  ;;  %v31_v44 = vmul.f32 %v27_v31, %v15_v27  ;;  %v287_v62 = vld [vmem:[%s529_s0 + $0xa8] sm:$0xff] }
   0xb   :  { %v301_v47 = vld [vmem:[%s529_s0 + $0x100] sm:$0xff]  ;;  %v53_v49 = vmul.f32 %v267_v32, %v49_v37  ;;  %v79_v50 = vmul.f32 %v272_v33, %v75_v38  ;;  %v127_v51 = vrot.slane %v285_v10, %v350_v11  ;;  %v156_v54 = vmul.f32 %v286_v34, %v371_v25  ;;  %v292_v17 = vld [vmem:[%s529_s0 + $0xc8] sm:$0xff]  ;;  %v293_v34 = vld [vmem:[%s529_s0 + $0xd0] sm:$0xff] }
   0xc   :  { %v82_v40 = vadd.f32 %v78_v21, %v56_v28  ;;  %v420_v48 = vld [vmem:[%s530_s2] sm:$0x3]  ;;  %v182_v55 = vmul.f32 %v291_v35, %v380_v30  ;;  %v432_v57 = vrot.slane %v290_v16, %v350_v11  ;;  %v208_v59 = vmul.f32 %v296_v42, %v395_v36  ;;  %v269_v16 = vld [vmem:[%s529_s0 + $0x38] sm:$0xff]  ;;  %v297_v32 = vld [vmem:[%s529_s0 + $0xe8] sm:$0xff] }
   0xd   :  { %v57_v60 = vadd.f32 %v53_v49, %v31_v44  ;;  %v105_v61 = vmul.f32 %v277_v45, %v400_v39  ;;  %v32_v63 = vmul.f32 %v23_v12, %v16_v46  ;;  %v234_v2 = vmul.f32 %v301_v47, %v406_v43  ;;  %v17_v12 = vld [vmem:[%s529_s0 + $0x18] sm:$0xff]  ;;  %v302_v45 = vld [vmem:[%s529_s0 + $0x108] sm:$0xff] }
   0xe   :  { %v108_v53 = vadd.f32 %v104_v29, %v82_v40  ;;  %v447_v3 = vrot.slane %v420_v48, %v22_v7  ;;  %v54_v4 = vmul.f32 %v268_v52, %v45_v13  ;;  %v131_v8 = vmul.f32 %v282_v56, %v127_v51  ;;  %v279_v29 = vld [vmem:[%s529_s0 + $0x78] sm:$0xff] }
   0xf   :  { %v83_v6 = vadd.f32 %v79_v50, %v57_v60  ;;  %v179_v9 = vrot.slane %v295_v18, %v350_v11  ;;  %v80_v10 = vmul.f32 %v273_v58, %v71_v14  ;;  %v157_v13 = vmul.f32 %v287_v62, %v432_v57  ;;  %v288_v14 = vld [vmem:[%s529_s0 + $0xb0] sm:$0xff]  ;;  %v274_v18 = vld [vmem:[%s529_s0 + $0x58] sm:$0xff] }
  0x10   :  { %v134_v1 = vadd.f32 %v130_v41, %v108_v53  ;;  %v58_v19 = vadd.f32 %v54_v4, %v32_v63  ;;  %v106_v20 = vmul.f32 %v278_v0, %v352_v15  ;;  %v205_v24 = vrot.slane %v300_v23, %v350_v11  ;;  %v284_v42 = vld [vmem:[%s529_s0 + $0x98] sm:$0xff] }
  0x11   :  { %v109_v21 = vadd.f32 %v105_v61, %v83_v6  ;;  %v231_v27 = vrot.slane %v305_v26, %v350_v11  ;;  %v132_v28 = vmul.f32 %v283_v5, %v363_v22  ;;  %v33_v35 = vmul.f32 %v27_v31, %v17_v12  ;;  %v298_v31 = vld [vmem:[%s529_s0 + $0xf0] sm:$0xff]  ;;  %v289_v50 = vld [vmem:[%s529_s0 + $0xb8] sm:$0xff] }
  0x12   :  { %v160_v7 = vadd.f32 %v156_v54, %v134_v1  ;;  %v84_v33 = vadd.f32 %v80_v10, %v58_v19  ;;  %v55_v23 = vmul.f32 %v269_v16, %v49_v37  ;;  %v183_v26 = vmul.f32 %v292_v17, %v179_v9 }
  0x13   :  { %v135_v40 = vadd.f32 %v131_v8, %v109_v21  ;;  %v158_v22 = vmul.f32 %v288_v14, %v371_v25  ;;  %v81_v41 = vmul.f32 %v274_v18, %v75_v38  ;;  %v107_v47 = vmul.f32 %v279_v29, %v400_v39  ;;  %v303_v39 = vld [vmem:[%s529_s0 + $0x110] sm:$0xff] }
  0x14   :  { %v186_v15 = vadd.f32 %v182_v55, %v160_v7  ;;  %v110_v46 = vadd.f32 %v106_v20, %v84_v33  ;;  %v59_v37 = vadd.f32 %v55_v23, %v33_v35  ;;  %v209_v25 = vmul.f32 %v297_v32, %v205_v24 }
  0x15   :  { %v161_v49 = vadd.f32 %v157_v13, %v135_v40  ;;  %v184_v38 = vmul.f32 %v293_v34, %v380_v30  ;;  %v133_v55 = vmul.f32 %v284_v42, %v127_v51  ;;  %v235_v58 = vmul.f32 %v302_v45, %v231_v27  ;;  %v294_v30 = vld [vmem:[%s529_s0 + $0xd8] sm:$0xff] }
  0x16   :  { %v212_v44 = vadd.f32 %v208_v59, %v186_v15  ;;  %v136_v53 = vadd.f32 %v132_v28, %v110_v46  ;;  %v85_v54 = vadd.f32 %v81_v41, %v59_v37  ;;  %v210_v59 = vmul.f32 %v298_v31, %v395_v36  ;;  %v299_v36 = vld [vmem:[%s529_s0 + $0xf8] sm:$0xff] }
  0x17   :  { %v187_v56 = vadd.f32 %v183_v26, %v161_v49  ;;  %v159_v63 = vmul.f32 %v289_v50, %v432_v57  ;;  %v251_v51 = vrot.slane %v420_v48, %v350_v11  ;;  %v185_v5 = vmul.f32 %v294_v30, %v179_v9  ;;  %v304_v57 = vld [vmem:[%s529_s0 + $0x118] sm:$0xff] }
  0x18   :  { %v238_v52 = vadd.f32 %v234_v2, %v212_v44  ;;  %v162_v61 = vadd.f32 %v158_v22, %v136_v53  ;;  %v111_v62 = vadd.f32 %v107_v47, %v85_v54  ;;  %v236_v2 = vmul.f32 %v303_v39, %v406_v43 }
  0x19   :  { %v213_v0 = vadd.f32 %v209_v25, %v187_v56  ;;  %v211_v48 = vmul.f32 %v299_v36, %v205_v24  ;;  %v237_v7 = vmul.f32 %v304_v57, %v231_v27 }
  0x1a   :  { %v254_v60 = vadd.f32 %v447_v3, %v238_v52  ;;  %v188_v1 = vadd.f32 %v184_v38, %v162_v61  ;;  %v137_v4 = vadd.f32 %v133_v55, %v111_v62 }
  0x1b   :  { %v239_v6 = vadd.f32 %v235_v58, %v213_v0 }
  0x1c   :  { %258 = vst [vmem:[%s531_s3] sm:$0xff] %v254_v60  ;;  %v214_v8 = vadd.f32 %v210_v59, %v188_v1  ;;  %v163_v11 = vadd.f32 %v159_v63, %v137_v4 }
  0x1d   :  { %v255_v10 = vadd.f32 %v251_v51, %v239_v6 }
  0x1e   :  { %v240_v12 = vadd.f32 %v236_v2, %v214_v8  ;;  %v189_v16 = vadd.f32 %v185_v5, %v163_v11 }
  0x1f   :  { %259 = vst [vmem:[%s531_s3 + $0x8] sm:$0xff] %v255_v10 }
  0x20   :  { %v256_v43 = vadd.f32 %v447_v3, %v240_v12  ;;  %v215_v13 = vadd.f32 %v211_v48, %v189_v16 }
  0x22   :  { %260 = vst [vmem:[%s531_s3 + $0x10] sm:$0xff] %v256_v43  ;;  %v241_v9 = vadd.f32 %v237_v7, %v215_v13 }
  0x24   :  { %v257_v17 = vadd.f32 %v251_v51, %v241_v9 }
  0x26   :  { %261 = vst [vmem:[%s531_s3 + $0x18] sm:$0xff] %v257_v17 }

// kernel: _lambda_.29
= control target key start
LH: loop header
LB: loop body
LE: loop exit
PB: predicated region body
PF: predicated region fallthrough
CT: control target
= control target key end

     0   :  { %s589_s1 = inlined_call_operand.vmem [shape: bf16[128,128], index: 1, kind: input, shape index: {}]   ;;  %s590_s0 = inlined_call_operand.vmem [shape: bf16[128,128], index: 0, kind: input, shape index: {}]   ;;  %s591_s2 = inlined_call_operand.vmem [shape: f32[1,128], index: 2, kind: input, shape index: {}]   ;;  %s592_s3 = inlined_call_operand.vmem [shape: f32[128,128], index: 3, kind: input, shape index: {}]   ;;  %s593_s4 = inlined_call_operand.vmem [shape: f32[128,128], index: 4, kind: output, shape index: {}]  }
   0x1   :  { %v383_v0 = vld [vmem:[%s589_s1] sm:$0xff]   ;;  %v384_v1 = vld [vmem:[%s589_s1 + $0x8] sm:$0xff]   ;;  %v385_v2 = vld [vmem:[%s589_s1 + $0x10] sm:$0xff]  }
   0x2   :  { %335 = vmatprep.subr.bf16.mxu0 %v383_v0  ;;  %367 = vmatprep.subr.bf16.mxu1 %v383_v0  ;;  %v386_v3 = vld [vmem:[%s589_s1 + $0x18] sm:$0xff]   ;;  %v391_v4 = vld [vmem:[%s590_s0] sm:$0xff]   ;;  %v388_v7 = vld [vmem:[%s589_s1 + $0x28] sm:$0xff]  }
   0x3   :  { %336 = vmatpush3.bf16.msra.mxu0 %v383_v0  ;;  %375 = vmatpush3.bf16.msra.mxu1 %v383_v0  ;;  %v392_v5 = vld [vmem:[%s590_s0 + $0x20] sm:$0xff]   ;;  %v389_v8 = vld [vmem:[%s589_s1 + $0x30] sm:$0xff]   ;;  %v390_v9 = vld [vmem:[%s589_s1 + $0x38] sm:$0xff]  }
   0x4   :  { %337 = vmatprep.subr.bf16.mxu0 %v384_v1  ;;  %368 = vmatprep.subr.bf16.mxu1 %v384_v1  ;;  %v387_v6 = vld [vmem:[%s589_s1 + $0x20] sm:$0xff]   ;;  %v393_v10 = vld [vmem:[%s590_s0 + $0x8] sm:$0xff]   ;;  %v395_v12 = vld [vmem:[%s590_s0 + $0x10] sm:$0xff]  }
   0x5   :  { %351 = vmatprep.mubr.bf16.mxu0 %v391_v4  ;;  %359 = vmatprep.mubr.bf16.mxu1 %v392_v5  ;;  %v394_v11 = vld [vmem:[%s590_s0 + $0x28] sm:$0xff]   ;;  %v396_v13 = vld [vmem:[%s590_s0 + $0x30] sm:$0xff]   ;;  %v397_v14 = vld [vmem:[%s590_s0 + $0x18] sm:$0xff]  }
   0x6   :  { %v398_v15 = vld [vmem:[%s590_s0 + $0x38] sm:$0xff]   ;;  %v475_v16 = vld [vmem:[%s591_s2] ss:$0 sm:$0xff]  ;;  %v252_v18 = vld [vmem:[%s592_s3 + $0x10] sm:$0xff] }
   0x7   :  { %338 = vmatpush3.bf16.msra.mxu0 %v384_v1  ;;  %376 = vmatpush3.bf16.msra.mxu1 %v384_v1  ;;  %v260_v20 = vld [vmem:[%s592_s3 + $0x50] sm:$0xff]  ;;  %v250_v24 = vld [vmem:[%s592_s3] sm:$0xff]  ;;  %v253_v30 = vld [vmem:[%s592_s3 + $0x18] sm:$0xff] }
   0x8   :  { %339 = vmatprep.subr.bf16.mxu0 %v385_v2  ;;  %369 = vmatprep.subr.bf16.mxu1 %v385_v2  ;;  %v258_v26 = vld [vmem:[%s592_s3 + $0x40] sm:$0xff]  ;;  %v261_v32 = vld [vmem:[%s592_s3 + $0x58] sm:$0xff]  ;;  %v251_v38 = vld [vmem:[%s592_s3 + $0x8] sm:$0xff] }
   0x9   :  { %v259_v40 = vld [vmem:[%s592_s3 + $0x48] sm:$0xff]  ;;  %v256_v50 = vld [vmem:[%s592_s3 + $0x30] sm:$0xff]  ;;  %v254_v56 = vld [vmem:[%s592_s3 + $0x20] sm:$0xff] }
   0xa   :  { %v264_v52 = vld [vmem:[%s592_s3 + $0x70] sm:$0xff]  ;;  %v262_v58 = vld [vmem:[%s592_s3 + $0x60] sm:$0xff]  ;;  %v257_v62 = vld [vmem:[%s592_s3 + $0x38] sm:$0xff] }
   0xb   :  { %340 = vmatpush3.bf16.msra.mxu0 %v385_v2  ;;  %377 = vmatpush3.bf16.msra.mxu1 %v385_v2  ;;  %v265_v0 = vld [vmem:[%s592_s3 + $0x78] sm:$0xff] }
   0xc   :  { %341 = vmatprep.subr.bf16.mxu0 %v386_v3  ;;  %370 = vmatprep.subr.bf16.mxu1 %v386_v3 }
   0xf   :  { %342 = vmatpush3.bf16.msra.mxu0 %v386_v3  ;;  %378 = vmatpush3.bf16.msra.mxu1 %v386_v3 }
  0x10   :  { %343 = vmatprep.subr.bf16.mxu0 %v387_v6  ;;  %371 = vmatprep.subr.bf16.mxu1 %v387_v6 }
  0x13   :  { %344 = vmatpush3.bf16.msra.mxu0 %v387_v6  ;;  %379 = vmatpush3.bf16.msra.mxu1 %v387_v6  ;;  %v255_v6 = vld [vmem:[%s592_s3 + $0x28] sm:$0xff] }
  0x14   :  { %345 = vmatprep.subr.bf16.mxu0 %v388_v7  ;;  %372 = vmatprep.subr.bf16.mxu1 %v388_v7 }
  0x17   :  { %346 = vmatpush3.bf16.msra.mxu0 %v388_v7  ;;  %380 = vmatpush3.bf16.msra.mxu1 %v388_v7 }
  0x18   :  { %347 = vmatprep.subr.bf16.mxu0 %v389_v8  ;;  %373 = vmatprep.subr.bf16.mxu1 %v389_v8 }
  0x1b   :  { %348 = vmatpush3.bf16.msra.mxu0 %v389_v8  ;;  %381 = vmatpush3.bf16.msra.mxu1 %v389_v8  ;;  %v263_v8 = vld [vmem:[%s592_s3 + $0x68] sm:$0xff] }
  0x1c   :  { %349 = vmatprep.subr.bf16.mxu0 %v390_v9  ;;  %374 = vmatprep.subr.bf16.mxu1 %v390_v9 }
  0x1f   :  { %350 = vmatpush3.bf16.msra.mxu0 %v390_v9  ;;  %382 = vmatpush3.bf16.msra.mxu1 %v390_v9 }
  0x22   :  { %352 = vmatmul.mubr.bf16.vlgmr.msra.gmra.mrb[0].mxu0 %v393_v10  ;;  %360 = vmatmul.mubr.bf16.vlgmr.msra.gmra.mrb[0].mxu1 %v394_v11 }
  0x23   :  { %355 = vmatprep.mubr.bf16.mxu0 %v395_v12  ;;  %363 = vmatprep.mubr.bf16.mxu1 %v396_v13 }
  0x2a   :  { %356 = vmatmul.mubr.bf16.gmra.mrb[4].mxu0 %v397_v14  ;;  %364 = vmatmul.mubr.bf16.gmra.mrb[4].mxu1 %v398_v15 }
  0xf5   :  { %v353_v17 = vpop.f32.mrb[0].mxu0  ;;  %v361_v19 = vpop.f32.mrb[0].mxu1 }
  0xf6   :  { %v196_v21 = vadd.f32 %v353_v17, %v475_v16  ;;  %v228_v22 = vadd.f32 %v361_v19, %v475_v16  ;;  %v187_v23 = vpop.f32.mrb[1].mxu0  ;;  %v219_v25 = vpop.f32.mrb[1].mxu1 }
  0xf7   :  { %v188_v27 = vadd.f32 %v475_v16, %v187_v23  ;;  %v220_v28 = vadd.f32 %v475_v16, %v219_v25  ;;  %v354_v29 = vpop.f32.mrb[2].mxu0  ;;  %v362_v31 = vpop.f32.mrb[2].mxu1 }
  0xf8   :  { %v268_v33 = vadd.f32 %v252_v18, %v196_v21  ;;  %v276_v34 = vadd.f32 %v260_v20, %v228_v22  ;;  %v199_v35 = vadd.f32 %v354_v29, %v475_v16  ;;  %v231_v36 = vadd.f32 %v362_v31, %v475_v16  ;;  %v190_v37 = vpop.f32.mrb[3].mxu0  ;;  %v222_v39 = vpop.f32.mrb[3].mxu1 }
  0xf9   :  { %v266_v41 = vadd.f32 %v250_v24, %v188_v27  ;;  %v274_v42 = vadd.f32 %v258_v26, %v220_v28  ;;  %v191_v43 = vadd.f32 %v475_v16, %v190_v37  ;;  %v223_v44 = vadd.f32 %v475_v16, %v222_v39 }
  0xfa   :  { %284 = vst [vmem:[%s593_s4 + $0x10] sm:$0xff] %v268_v33  ;;  %292 = vst [vmem:[%s593_s4 + $0x50] sm:$0xff] %v276_v34  ;;  %v269_v45 = vadd.f32 %v253_v30, %v199_v35  ;;  %v277_v46 = vadd.f32 %v261_v32, %v231_v36 }
  0xfb   :  { %282 = vst [vmem:[%s593_s4] sm:$0xff] %v266_v41  ;;  %290 = vst [vmem:[%s593_s4 + $0x40] sm:$0xff] %v274_v42  ;;  %v267_v47 = vadd.f32 %v251_v38, %v191_v43  ;;  %v275_v48 = vadd.f32 %v259_v40, %v223_v44 }
  0xfc   :  { %285 = vst [vmem:[%s593_s4 + $0x18] sm:$0xff] %v269_v45  ;;  %293 = vst [vmem:[%s593_s4 + $0x58] sm:$0xff] %v277_v46 }
  0xfd   :  { %283 = vst [vmem:[%s593_s4 + $0x8] sm:$0xff] %v267_v47  ;;  %291 = vst [vmem:[%s593_s4 + $0x48] sm:$0xff] %v275_v48  ;;  %v357_v49 = vpop.f32.mrb[4].mxu0  ;;  %v365_v51 = vpop.f32.mrb[4].mxu1 }
  0xfe   :  { %v212_v53 = vadd.f32 %v357_v49, %v475_v16  ;;  %v244_v54 = vadd.f32 %v365_v51, %v475_v16  ;;  %v203_v55 = vpop.f32.mrb[5].mxu0  ;;  %v235_v57 = vpop.f32.mrb[5].mxu1 }
  0xff   :  { %v204_v59 = vadd.f32 %v475_v16, %v203_v55  ;;  %v236_v60 = vadd.f32 %v475_v16, %v235_v57  ;;  %v358_v61 = vpop.f32.mrb[6].mxu0  ;;  %v366_v63 = vpop.f32.mrb[6].mxu1 }
 0x100   :  { %v272_v1 = vadd.f32 %v256_v50, %v212_v53  ;;  %v280_v2 = vadd.f32 %v264_v52, %v244_v54  ;;  %v215_v3 = vadd.f32 %v358_v61, %v475_v16  ;;  %v247_v4 = vadd.f32 %v366_v63, %v475_v16  ;;  %v206_v5 = vpop.f32.mrb[7].mxu0  ;;  %v238_v7 = vpop.f32.mrb[7].mxu1 }
 0x101   :  { %v270_v9 = vadd.f32 %v254_v56, %v204_v59  ;;  %v278_v10 = vadd.f32 %v262_v58, %v236_v60  ;;  %v207_v11 = vadd.f32 %v475_v16, %v206_v5  ;;  %v239_v12 = vadd.f32 %v475_v16, %v238_v7 }
 0x102   :  { %288 = vst [vmem:[%s593_s4 + $0x30] sm:$0xff] %v272_v1  ;;  %296 = vst [vmem:[%s593_s4 + $0x70] sm:$0xff] %v280_v2  ;;  %v273_v13 = vadd.f32 %v257_v62, %v215_v3  ;;  %v281_v14 = vadd.f32 %v265_v0, %v247_v4 }
 0x103   :  { %286 = vst [vmem:[%s593_s4 + $0x20] sm:$0xff] %v270_v9  ;;  %294 = vst [vmem:[%s593_s4 + $0x60] sm:$0xff] %v278_v10  ;;  %v271_v15 = vadd.f32 %v255_v6, %v207_v11  ;;  %v279_v16 = vadd.f32 %v263_v8, %v239_v12 }
 0x104   :  { %289 = vst [vmem:[%s593_s4 + $0x38] sm:$0xff] %v273_v13  ;;  %297 = vst [vmem:[%s593_s4 + $0x78] sm:$0xff] %v281_v14 }
 0x105   :  { %287 = vst [vmem:[%s593_s4 + $0x28] sm:$0xff] %v271_v15  ;;  %295 = vst [vmem:[%s593_s4 + $0x68] sm:$0xff] %v279_v16 }

// kernel: _lambda_.30
= control target key start
LH: loop header
LB: loop body
LE: loop exit
PB: predicated region body
PF: predicated region fallthrough
CT: control target
= control target key end

     0   :  { %s238_s0 = inlined_call_operand.vmem [shape: f32[9,8,128], index: 0, kind: input, shape index: {}]   ;;  %s239_s1 = inlined_call_operand.vmem [shape: f32[9,1,128], index: 1, kind: input, shape index: {}]   ;;  %s240_s2 = inlined_call_operand.vmem [shape: f32[1,128], index: 2, kind: input, shape index: {}]   ;;  %s241_s3 = inlined_call_operand.vmem [shape: f32[8,128], index: 3, kind: output, shape index: {}]  }
   0x1   :  { %v14_v0 = vld [vmem:[%s238_s0] sm:$0xff]  ;;  %v133_v2 = vld [vmem:[%s238_s0 + $0x8] sm:$0xff]  ;;  %v136_v5 = vld [vmem:[%s238_s0 + $0x10] sm:$0xff] }
   0x2   :  { %v132_v1 = vld [vmem:[%s239_s1] ss:$0 sm:$0xff]  ;;  %v135_v4 = vld [vmem:[%s239_s1 + $0x1] ss:$0 sm:$0xff]  ;;  %v138_v6 = vld [vmem:[%s239_s1 + $0x2] ss:$0 sm:$0xff] }
   0x3   :  { %v22_v3 = vmul.f32 %v132_v1, %v14_v0  ;;  %v33_v7 = vmul.f32 %v135_v4, %v133_v2  ;;  %v45_v8 = vmul.f32 %v138_v6, %v136_v5  ;;  %v139_v9 = vld [vmem:[%s238_s0 + $0x18] sm:$0xff]  ;;  %v141_v10 = vld [vmem:[%s239_s1 + $0x3] ss:$0 sm:$0xff]  ;;  %v144_v12 = vld [vmem:[%s239_s1 + $0x4] ss:$0 sm:$0xff] }
   0x4   :  { %v142_v11 = vld [vmem:[%s238_s0 + $0x20] sm:$0xff]  ;;  %v57_v14 = vmul.f32 %v141_v10, %v139_v9  ;;  %v145_v15 = vld [vmem:[%s238_s0 + $0x28] sm:$0xff]  ;;  %v148_v19 = vld [vmem:[%s238_s0 + $0x30] sm:$0xff] }
   0x5   :  { %v34_v13 = vadd.f32 %v33_v7, %v22_v3  ;;  %v147_v16 = vld [vmem:[%s239_s1 + $0x5] ss:$0 sm:$0xff]  ;;  %v69_v18 = vmul.f32 %v144_v12, %v142_v11  ;;  %v150_v20 = vld [vmem:[%s239_s1 + $0x6] ss:$0 sm:$0xff]  ;;  %v151_v23 = vld [vmem:[%s238_s0 + $0x38] sm:$0xff] }
   0x6   :  { %v81_v22 = vmul.f32 %v147_v16, %v145_v15  ;;  %v153_v24 = vld [vmem:[%s239_s1 + $0x7] ss:$0 sm:$0xff]  ;;  %v93_v26 = vmul.f32 %v150_v20, %v148_v19  ;;  %v156_v28 = vld [vmem:[%s239_s1 + $0x8] ss:$0 sm:$0xff]  ;;  %v157_v34 = vld [vmem:[%s240_s2] ss:$0 sm:$0xff] }
   0x7   :  { %v46_v17 = vadd.f32 %v45_v8, %v34_v13  ;;  %v154_v27 = vld [vmem:[%s238_s0 + $0x40] sm:$0xff]  ;;  %v105_v30 = vmul.f32 %v153_v24, %v151_v23 }
   0x8   :  { %v117_v32 = vmul.f32 %v156_v28, %v154_v27 }
   0x9   :  { %v58_v21 = vadd.f32 %v57_v14, %v46_v17 }
   0xb   :  { %v70_v25 = vadd.f32 %v69_v18, %v58_v21 }
   0xd   :  { %v82_v29 = vadd.f32 %v81_v22, %v70_v25 }
   0xf   :  { %v94_v31 = vadd.f32 %v93_v26, %v82_v29 }
  0x11   :  { %v106_v33 = vadd.f32 %v105_v30, %v94_v31 }
  0x13   :  { %v118_v35 = vadd.f32 %v117_v32, %v106_v33 }
  0x15   :  { %v126_v36 = vadd.f32 %v157_v34, %v118_v35 }
  0x17   :  { %127 = vst [vmem:[%s241_s3] sm:$0xff] %v126_v36 }

// kernel: _lambda_.31
= control target key start
LH: loop header
LB: loop body
LE: loop exit
PB: predicated region body
PF: predicated region fallthrough
CT: control target
= control target key end

     0   :  { %v409_v1 = vmov 0   ;;  %v49_v25 = vlaneseq  ;;  %s645_s1 = inlined_call_operand.vmem [shape: bf16[128,256], index: 1, kind: input, shape index: {}]   ;;  %s646_s0 = inlined_call_operand.vmem [shape: bf16[128,128], index: 0, kind: input, shape index: {}]   ;;  %s647_s2 = inlined_call_operand.vmem [shape: f32[1,256], index: 2, kind: input, shape index: {}]   ;;  %s648_s3 = inlined_call_operand.vmem [shape: f32[128,256], index: 3, kind: output, shape index: {}]  }
   0x1   :  { %v377_v0 = vld [vmem:[%s645_s1 + $0x4] ss:$8 sps:$4 sm:$0xff]   ;;  %219 = vmatprep.mubr.bf16.mxu0 %v409_v1  ;;  %259 = vmatprep.mubr.bf16.mxu1 %v409_v1  ;;  %v379_v2 = vld [vmem:[%s645_s1] ss:$8 sps:$4 sm:$0xff]   ;;  %v380_v3 = vld [vmem:[%s645_s1 + $0x14] ss:$8 sps:$4 sm:$0xff]  }
   0x2   :  { %187 = vmatprep.subr.bf16.mxu0 %v377_v0  ;;  %360 = vmatprep.subr.bf16.mxu1 %v377_v0  ;;  %v382_v4 = vld [vmem:[%s645_s1 + $0x10] ss:$8 sps:$4 sm:$0xff]   ;;  %v383_v5 = vld [vmem:[%s645_s1 + $0x24] ss:$8 sps:$4 sm:$0xff]   ;;  %v385_v6 = vld [vmem:[%s645_s1 + $0x20] ss:$8 sps:$4 sm:$0xff]  }
   0x3   :  { %188 = vmatpush1.bf16.msra.mxu0 %v379_v2  ;;  %368 = vmatpush1.bf16.msra.mxu1 %v379_v2  ;;  %v386_v7 = vld [vmem:[%s645_s1 + $0x34] ss:$8 sps:$4 sm:$0xff]   ;;  %v388_v8 = vld [vmem:[%s645_s1 + $0x30] ss:$8 sps:$4 sm:$0xff]   ;;  %v389_v9 = vld [vmem:[%s645_s1 + $0x44] ss:$8 sps:$4 sm:$0xff]  }
   0x4   :  { %189 = vmatprep.subr.bf16.mxu0 %v380_v3  ;;  %361 = vmatprep.subr.bf16.mxu1 %v380_v3  ;;  %v391_v10 = vld [vmem:[%s645_s1 + $0x40] ss:$8 sps:$4 sm:$0xff]   ;;  %v392_v11 = vld [vmem:[%s645_s1 + $0x54] ss:$8 sps:$4 sm:$0xff]   ;;  %v394_v12 = vld [vmem:[%s645_s1 + $0x50] ss:$8 sps:$4 sm:$0xff]  }
   0x5   :  { %v395_v13 = vld [vmem:[%s645_s1 + $0x64] ss:$8 sps:$4 sm:$0xff]   ;;  %v397_v14 = vld [vmem:[%s645_s1 + $0x60] ss:$8 sps:$4 sm:$0xff]   ;;  %v398_v15 = vld [vmem:[%s645_s1 + $0x74] ss:$8 sps:$4 sm:$0xff]  }
   0x6   :  { %v400_v16 = vld [vmem:[%s645_s1 + $0x70] ss:$8 sps:$4 sm:$0xff]   ;;  %v401_v17 = vld [vmem:[%s646_s0] sm:$0xff]   ;;  %v403_v19 = vld [vmem:[%s646_s0 + $0x8] sm:$0xff]   ;;  %v50_v26 = vshrl.u32 %v49_v25, 7 }
   0x7   :  { %190 = vmatpush1.bf16.msra.mxu0 %v382_v4  ;;  %369 = vmatpush1.bf16.msra.mxu1 %v382_v4  ;;  %v402_v18 = vld [vmem:[%s646_s0 + $0x20] sm:$0xff]   ;;  %v404_v20 = vld [vmem:[%s646_s0 + $0x28] sm:$0xff]   ;;  %v405_v21 = vld [vmem:[%s646_s0 + $0x10] sm:$0xff]  }
   0x8   :  { %191 = vmatprep.subr.bf16.mxu0 %v383_v5  ;;  %362 = vmatprep.subr.bf16.mxu1 %v383_v5  ;;  %v406_v22 = vld [vmem:[%s646_s0 + $0x30] sm:$0xff]   ;;  %v407_v23 = vld [vmem:[%s646_s0 + $0x18] sm:$0xff]   ;;  %v51_v27 = vsub.s32 0, %v50_v26  ;;  %v47_v28 = vld [vmem:[%s647_s2] sm:$0x3]  ;;  %v55_v29 = vsub.s32 1, %v50_v26 }
   0x9   :  { %v408_v24 = vld [vmem:[%s646_s0 + $0x38] sm:$0xff]  }
   0xa   :  { %v513_v30 = vrot.slane %v47_v28, %v51_v27  ;;  %v515_v31 = vrot.slane %v47_v28, %v55_v29 }
   0xb   :  { %192 = vmatpush1.bf16.msra.mxu0 %v385_v6  ;;  %370 = vmatpush1.bf16.msra.mxu1 %v385_v6 }
   0xc   :  { %193 = vmatprep.subr.bf16.mxu0 %v386_v7  ;;  %363 = vmatprep.subr.bf16.mxu1 %v386_v7 }
   0xf   :  { %194 = vmatpush1.bf16.msra.mxu0 %v388_v8  ;;  %371 = vmatpush1.bf16.msra.mxu1 %v388_v8 }
  0x10   :  { %195 = vmatprep.subr.bf16.mxu0 %v389_v9  ;;  %364 = vmatprep.subr.bf16.mxu1 %v389_v9 }
  0x13   :  { %196 = vmatpush1.bf16.msra.mxu0 %v391_v10  ;;  %372 = vmatpush1.bf16.msra.mxu1 %v391_v10 }
  0x14   :  { %197 = vmatprep.subr.bf16.mxu0 %v392_v11  ;;  %365 = vmatprep.subr.bf16.mxu1 %v392_v11 }
  0x17   :  { %198 = vmatpush1.bf16.msra.mxu0 %v394_v12  ;;  %373 = vmatpush1.bf16.msra.mxu1 %v394_v12 }
  0x18   :  { %199 = vmatprep.subr.bf16.mxu0 %v395_v13  ;;  %366 = vmatprep.subr.bf16.mxu1 %v395_v13 }
  0x1b   :  { %200 = vmatpush1.bf16.msra.mxu0 %v397_v14  ;;  %374 = vmatpush1.bf16.msra.mxu1 %v397_v14 }
  0x1c   :  { %201 = vmatprep.subr.bf16.mxu0 %v398_v15  ;;  %367 = vmatprep.subr.bf16.mxu1 %v398_v15 }
  0x1f   :  { %202 = vmatpush1.bf16.msra.mxu0 %v400_v16  ;;  %375 = vmatpush1.bf16.msra.mxu1 %v400_v16 }
  0x22   :  { %220 = vmatmul.mubr.bf16.vlgmr.msra.gmra.mrb[0].mxu0 %v401_v17  ;;  %260 = vmatmul.mubr.bf16.vlgmr.msra.gmra.mrb[0].mxu1 %v402_v18 }
  0x23   :  { %229 = vmatprep.mubr.bf16.mxu0 %v409_v1  ;;  %269 = vmatprep.mubr.bf16.mxu1 %v409_v1 }
  0x2a   :  { %230 = vmatmul.mubr.bf16.gmra.mrb[4].mxu0 %v403_v19  ;;  %270 = vmatmul.mubr.bf16.gmra.mrb[4].mxu1 %v404_v20 }
  0x2b   :  { %239 = vmatprep.mubr.bf16.mxu0 %v409_v1  ;;  %279 = vmatprep.mubr.bf16.mxu1 %v409_v1 }
  0x32   :  { %240 = vmatmul.mubr.bf16.gmra.mrb[8].mxu0 %v405_v21  ;;  %280 = vmatmul.mubr.bf16.gmra.mrb[8].mxu1 %v406_v22 }
  0x33   :  { %249 = vmatprep.mubr.bf16.mxu0 %v409_v1  ;;  %289 = vmatprep.mubr.bf16.mxu1 %v409_v1 }
  0x3a   :  { %250 = vmatmul.mubr.bf16.gmra.mrb[12].mxu0 %v407_v23  ;;  %290 = vmatmul.mubr.bf16.gmra.mrb[12].mxu1 %v408_v24 }
  0xf5   :  { %v221_v32 = vpop.f32.mrb[0].mxu0  ;;  %v261_v33 = vpop.f32.mrb[0].mxu1 }
  0xf6   :  { %v222_v34 = vadd.f32 %v221_v32, %v513_v30  ;;  %v262_v35 = vadd.f32 %v261_v33, %v513_v30  ;;  %v223_v36 = vpop.f32.mrb[1].mxu0  ;;  %v263_v37 = vpop.f32.mrb[1].mxu1 }
  0xf7   :  { %v224_v38 = vadd.f32 %v223_v36, %v515_v31  ;;  %v264_v39 = vadd.f32 %v263_v37, %v515_v31  ;;  %v225_v40 = vpop.f32.mrb[2].mxu0  ;;  %v265_v41 = vpop.f32.mrb[2].mxu1 }
  0xf8   :  { %300 = vst [vmem:[%s648_s3] sm:$0xff] %v222_v34  ;;  %316 = vst [vmem:[%s648_s3 + $0x80] sm:$0xff] %v262_v35  ;;  %v226_v42 = vadd.f32 %v225_v40, %v513_v30  ;;  %v266_v43 = vadd.f32 %v265_v41, %v513_v30  ;;  %v227_v44 = vpop.f32.mrb[3].mxu0  ;;  %v267_v45 = vpop.f32.mrb[3].mxu1 }
  0xf9   :  { %301 = vst [vmem:[%s648_s3 + $0x8] sm:$0xff] %v224_v38  ;;  %317 = vst [vmem:[%s648_s3 + $0x88] sm:$0xff] %v264_v39  ;;  %v228_v46 = vadd.f32 %v227_v44, %v515_v31  ;;  %v268_v47 = vadd.f32 %v267_v45, %v515_v31 }
  0xfa   :  { %302 = vst [vmem:[%s648_s3 + $0x10] sm:$0xff] %v226_v42  ;;  %318 = vst [vmem:[%s648_s3 + $0x90] sm:$0xff] %v266_v43 }
  0xfb   :  { %303 = vst [vmem:[%s648_s3 + $0x18] sm:$0xff] %v228_v46  ;;  %319 = vst [vmem:[%s648_s3 + $0x98] sm:$0xff] %v268_v47 }
  0xfd   :  { %v231_v48 = vpop.f32.mrb[4].mxu0  ;;  %v271_v49 = vpop.f32.mrb[4].mxu1 }
  0xfe   :  { %v232_v50 = vadd.f32 %v231_v48, %v513_v30  ;;  %v272_v51 = vadd.f32 %v271_v49, %v513_v30  ;;  %v233_v52 = vpop.f32.mrb[5].mxu0  ;;  %v273_v53 = vpop.f32.mrb[5].mxu1 }
  0xff   :  { %v234_v54 = vadd.f32 %v233_v52, %v515_v31  ;;  %v274_v55 = vadd.f32 %v273_v53, %v515_v31  ;;  %v235_v56 = vpop.f32.mrb[6].mxu0  ;;  %v275_v57 = vpop.f32.mrb[6].mxu1 }
 0x100   :  { %304 = vst [vmem:[%s648_s3 + $0x20] sm:$0xff] %v232_v50  ;;  %320 = vst [vmem:[%s648_s3 + $0xa0] sm:$0xff] %v272_v51  ;;  %v236_v58 = vadd.f32 %v235_v56, %v513_v30  ;;  %v276_v59 = vadd.f32 %v275_v57, %v513_v30  ;;  %v237_v60 = vpop.f32.mrb[7].mxu0  ;;  %v277_v61 = vpop.f32.mrb[7].mxu1 }
 0x101   :  { %305 = vst [vmem:[%s648_s3 + $0x28] sm:$0xff] %v234_v54  ;;  %321 = vst [vmem:[%s648_s3 + $0xa8] sm:$0xff] %v274_v55  ;;  %v238_v62 = vadd.f32 %v237_v60, %v515_v31  ;;  %v278_v63 = vadd.f32 %v277_v61, %v515_v31 }
 0x102   :  { %306 = vst [vmem:[%s648_s3 + $0x30] sm:$0xff] %v236_v58  ;;  %322 = vst [vmem:[%s648_s3 + $0xb0] sm:$0xff] %v276_v59 }
 0x103   :  { %307 = vst [vmem:[%s648_s3 + $0x38] sm:$0xff] %v238_v62  ;;  %323 = vst [vmem:[%s648_s3 + $0xb8] sm:$0xff] %v278_v63 }
 0x105   :  { %v241_v0 = vpop.f32.mrb[8].mxu0  ;;  %v281_v1 = vpop.f32.mrb[8].mxu1 }
 0x106   :  { %v242_v2 = vadd.f32 %v241_v0, %v513_v30  ;;  %v282_v3 = vadd.f32 %v281_v1, %v513_v30  ;;  %v243_v4 = vpop.f32.mrb[9].mxu0  ;;  %v283_v5 = vpop.f32.mrb[9].mxu1 }
 0x107   :  { %v244_v6 = vadd.f32 %v243_v4, %v515_v31  ;;  %v284_v7 = vadd.f32 %v283_v5, %v515_v31  ;;  %v245_v8 = vpop.f32.mrb[10].mxu0  ;;  %v285_v9 = vpop.f32.mrb[10].mxu1 }
 0x108   :  { %308 = vst [vmem:[%s648_s3 + $0x40] sm:$0xff] %v242_v2  ;;  %324 = vst [vmem:[%s648_s3 + $0xc0] sm:$0xff] %v282_v3  ;;  %v246_v10 = vadd.f32 %v245_v8, %v513_v30  ;;  %v286_v11 = vadd.f32 %v285_v9, %v513_v30  ;;  %v247_v12 = vpop.f32.mrb[11].mxu0  ;;  %v287_v13 = vpop.f32.mrb[11].mxu1 }
 0x109   :  { %309 = vst [vmem:[%s648_s3 + $0x48] sm:$0xff] %v244_v6  ;;  %325 = vst [vmem:[%s648_s3 + $0xc8] sm:$0xff] %v284_v7  ;;  %v248_v14 = vadd.f32 %v247_v12, %v515_v31  ;;  %v288_v15 = vadd.f32 %v287_v13, %v515_v31 }
 0x10a   :  { %310 = vst [vmem:[%s648_s3 + $0x50] sm:$0xff] %v246_v10  ;;  %326 = vst [vmem:[%s648_s3 + $0xd0] sm:$0xff] %v286_v11 }
 0x10b   :  { %311 = vst [vmem:[%s648_s3 + $0x58] sm:$0xff] %v248_v14  ;;  %327 = vst [vmem:[%s648_s3 + $0xd8] sm:$0xff] %v288_v15 }
 0x10d   :  { %v251_v16 = vpop.f32.mrb[12].mxu0  ;;  %v291_v17 = vpop.f32.mrb[12].mxu1 }
 0x10e   :  { %v252_v18 = vadd.f32 %v251_v16, %v513_v30  ;;  %v292_v19 = vadd.f32 %v291_v17, %v513_v30  ;;  %v253_v20 = vpop.f32.mrb[13].mxu0  ;;  %v293_v21 = vpop.f32.mrb[13].mxu1 }
 0x10f   :  { %v254_v22 = vadd.f32 %v253_v20, %v515_v31  ;;  %v294_v23 = vadd.f32 %v293_v21, %v515_v31  ;;  %v255_v24 = vpop.f32.mrb[14].mxu0  ;;  %v295_v25 = vpop.f32.mrb[14].mxu1 }
 0x110   :  { %312 = vst [vmem:[%s648_s3 + $0x60] sm:$0xff] %v252_v18  ;;  %328 = vst [vmem:[%s648_s3 + $0xe0] sm:$0xff] %v292_v19  ;;  %v256_v26 = vadd.f32 %v255_v24, %v513_v30  ;;  %v296_v27 = vadd.f32 %v295_v25, %v513_v30  ;;  %v257_v28 = vpop.f32.mrb[15].mxu0  ;;  %v297_v29 = vpop.f32.mrb[15].mxu1 }
 0x111   :  { %313 = vst [vmem:[%s648_s3 + $0x68] sm:$0xff] %v254_v22  ;;  %329 = vst [vmem:[%s648_s3 + $0xe8] sm:$0xff] %v294_v23  ;;  %v258_v32 = vadd.f32 %v257_v28, %v515_v31  ;;  %v298_v33 = vadd.f32 %v297_v29, %v515_v31 }
 0x112   :  { %314 = vst [vmem:[%s648_s3 + $0x70] sm:$0xff] %v256_v26  ;;  %330 = vst [vmem:[%s648_s3 + $0xf0] sm:$0xff] %v296_v27 }
 0x113   :  { %315 = vst [vmem:[%s648_s3 + $0x78] sm:$0xff] %v258_v32  ;;  %331 = vst [vmem:[%s648_s3 + $0xf8] sm:$0xff] %v298_v33 }

// kernel: _lambda_.32
= control target key start
LH: loop header
LB: loop body
LE: loop exit
PB: predicated region body
PF: predicated region fallthrough
CT: control target
= control target key end

     0   :  { %s1408_s12 = smov 0   ;;  %s1410_s13 = smov 0   ;;  %s1680_s0 = inlined_call_operand.vmem [shape: bf16[128,2304], index: 0, kind: input, shape index: {}]   ;;  %s1681_s1 = inlined_call_operand.vmem [shape: bf16[2304,256], index: 1, kind: input, shape index: {}]   ;;  %s1682_s2 = inlined_call_operand.vmem [shape: f32[1,256], index: 2, kind: input, shape index: {}]   ;;  %s1683_s3 = inlined_call_operand.vmem [shape: f32[128,256], index: 3, kind: output, shape index: {}]  }
   0x1   :  { %s1412_s14 = smov 0   ;;  %s1414_s15 = smov 0  }
   0x2   :  { %s1416_s16 = smov 0  }
   0x3 LB: > { %s25_s17 = sadd.s32 1, %s1381_s15  ;;  %p48_p1 = scmp.ne.s32.totalorder %s1373_s13, %s1369_s12  ;;  %s1385_s16 = sphi %s1416_s16, %s13_s16   ;;  %s1381_s15 = sphi %s1414_s15, %s1687_s15   ;;  %s1377_s14 = sphi %s1412_s14, %s1686_s14   ;;  %s1373_s13 = sphi %s1410_s13, %s1685_s13   ;;  %s1369_s12 = sphi %s1408_s12, %s1684_s12  }
   0x4   : > { %p26_p0 = scmp.ge.s32.totalorder %s25_s17, 9  ;;  %p49_p2 = scmp.eq.s32.totalorder %s1385_s16, 0 }
   0x5   : > { %s41_s19 = sadd.s32 1, %s1373_s13  ;;  %p1137_p5 = scmp.ge.s32.totalorder %s1385_s16, 9 }
   0x6   : > { %s1689_s17 = smov (%p26_p0, %s25_s17), 0  ;;  %p50_p3 = por %p49_p2, %p48_p1 }
   0x7   : > { %s37_s18 = ssub.s32 %s1381_s15, %s1689_s17  ;;  %164 = sbr.rel (%p1137_p5) target bundleno = 26 (0x1a), region = 20 }
   0x8   : > { %p39_p4 = scmp.eq.s32.totalorder %s37_s18, 0 }
   0xa   : > { %s1443_s20 = scalar_select %p39_p4, %s1373_s13, %s41_s19  }
   0xe   : > { %167 = sbr.rel (!%p50_p3) target bundleno = 26 (0x1a), region = 24  ;;  %s169_s21 = sand.u32 (%p50_p3), 1, %s1373_s13  }
   0xf   : > { %s1200_s22 = sshll.u32 (%p50_p3), %s1381_s15, 3  ;;  %s1138_s23 = sshll.u32 (%p50_p3), %s169_s21, 7 }
  0x10   : > { %s1451_s26 = scalar_lea.vmem (%p50_p3), %s1680_s0, %s1200_s22  ;;  %s171_s27 = scalar_lea.vmem (%p50_p3), [#allocation3], %s1138_s23 }
  0x11   : > { %v235_v0 = vld [vmem:[%s1451_s26] sm:$0xff] (%p50_p3)  ;;  %v237_v1 = vld [vmem:[%s1451_s26 + $0x48] sm:$0xff] (%p50_p3)  ;;  %v239_v2 = vld [vmem:[%s1451_s26 + $0x90] sm:$0xff] (%p50_p3) }
  0x12   : > { %236 = vst [vmem:[%s171_s27] sm:$0xff] (%p50_p3), %v235_v0  ;;  %238 = vst [vmem:[%s171_s27 + $0x8] sm:$0xff] (%p50_p3), %v237_v1  ;;  %v241_v3 = vld [vmem:[%s1451_s26 + $0xd8] sm:$0xff] (%p50_p3)  ;;  %v243_v4 = vld [vmem:[%s1451_s26 + $0x120] sm:$0xff] (%p50_p3) }
  0x13   : > { %240 = vst [vmem:[%s171_s27 + $0x10] sm:$0xff] (%p50_p3), %v239_v2  ;;  %v245_v5 = vld [vmem:[%s1451_s26 + $0x168] sm:$0xff] (%p50_p3)  ;;  %242 = vst [vmem:[%s171_s27 + $0x18] sm:$0xff] (%p50_p3), %v241_v3  ;;  %v247_v6 = vld [vmem:[%s1451_s26 + $0x1b0] sm:$0xff] (%p50_p3) }
  0x14   : > { %244 = vst [vmem:[%s171_s27 + $0x20] sm:$0xff] (%p50_p3), %v243_v4  ;;  %246 = vst [vmem:[%s171_s27 + $0x28] sm:$0xff] (%p50_p3), %v245_v5  ;;  %v249_v7 = vld [vmem:[%s1451_s26 + $0x1f8] sm:$0xff] (%p50_p3)  ;;  %v251_v8 = vld [vmem:[%s1451_s26 + $0x240] sm:$0xff] (%p50_p3) }
  0x15   : > { %248 = vst [vmem:[%s171_s27 + $0x30] sm:$0xff] %v247_v6  ;;  %250 = vst [vmem:[%s171_s27 + $0x38] sm:$0xff] %v249_v7  ;;  %v253_v9 = vld [vmem:[%s1451_s26 + $0x288] sm:$0xff]  ;;  %v255_v10 = vld [vmem:[%s1451_s26 + $0x2d0] sm:$0xff] }
  0x16   : > { %252 = vst [vmem:[%s171_s27 + $0x40] sm:$0xff] %v251_v8  ;;  %v257_v11 = vld [vmem:[%s1451_s26 + $0x318] sm:$0xff]  ;;  %254 = vst [vmem:[%s171_s27 + $0x48] sm:$0xff] %v253_v9  ;;  %v259_v12 = vld [vmem:[%s1451_s26 + $0x360] sm:$0xff] }
  0x17   : > { %256 = vst [vmem:[%s171_s27 + $0x50] sm:$0xff] %v255_v10  ;;  %258 = vst [vmem:[%s171_s27 + $0x58] sm:$0xff] %v257_v11  ;;  %v261_v13 = vld [vmem:[%s1451_s26 + $0x3a8] sm:$0xff]  ;;  %v263_v14 = vld [vmem:[%s1451_s26 + $0x3f0] sm:$0xff] }
  0x18   : > { %260 = vst [vmem:[%s171_s27 + $0x60] sm:$0xff] %v259_v12  ;;  %262 = vst [vmem:[%s171_s27 + $0x68] sm:$0xff] %v261_v13  ;;  %v265_v15 = vld [vmem:[%s1451_s26 + $0x438] sm:$0xff] }
  0x19   : > { %264 = vst [vmem:[%s171_s27 + $0x70] sm:$0xff] %v263_v14  ;;  %266 = vst [vmem:[%s171_s27 + $0x78] sm:$0xff] %v265_v15 }
  0x1a PF: > { %p1141_p6 = scmp.ge.s32.totalorder %s1385_s16, 1  ;;  %p286_p7 = scmp.lt.s32.totalorder %s1385_s16, 10 }
  0x1c   : > { %p287_p8 = pnand %p1141_p6, %p286_p7 }
  0x1d   : > { %s293_s28 = sand.u32 (!%p287_p8), 1, %s1369_s12   ;;  %s1143_s29 = sshll.u32 (!%p287_p8), %s1377_s14, 5 }
  0x1e   : > { %290 = sbr.rel (%p287_p8) target bundleno = 374 (0x176), region = 66  ;;  %s1142_s30 = sshll.u32 (!%p287_p8), %s293_s28, 7 }
  0x1f   : > { %p339_p9 = scmp.lt.s32.totalorder (!%p287_p8), %s1143_s29, 287  ;;  %s1478_s8 = scalar_lea.vmem (!%p287_p8), [#allocation3], %s1142_s30 }
  0x20   : > { %p1146_p10 = scmp.ne.s32.totalorder (!%p287_p8), %s1377_s14, 0 }
  0x25   : > { %s1691_s29 = smov (!%p339_p9, %s1143_s29), 287  ;;  %369 = sbr.rel (%p1146_p10) target bundleno = 55 (0x37), region = 74 }
  0x26   : > { %s1201_s4 = sshll.u32 %s1691_s29, 3  ;;  %v1387_v16 = vmov (!%p1146_p10), 0.0  }
  0x27   : > { %s1476_s7 = scalar_lea.vmem %s1681_s1, %s1201_s4  ;;  %370 = vst [vmem:[#allocation2] sm:$0xff] (!%p1146_p10), %v1387_v16  ;;  %371 = vst [vmem:[#allocation2 + $0x8] sm:$0xff] (!%p1146_p10), %v1387_v16 }
  0x28   : > { %372 = vst [vmem:[#allocation2 + $0x10] sm:$0xff] (!%p1146_p10), %v1387_v16  ;;  %373 = vst [vmem:[#allocation2 + $0x18] sm:$0xff] (!%p1146_p10), %v1387_v16 }
  0x29   : > { %374 = vst [vmem:[#allocation2 + $0x20] sm:$0xff] (!%p1146_p10), %v1387_v16  ;;  %375 = vst [vmem:[#allocation2 + $0x28] sm:$0xff] (!%p1146_p10), %v1387_v16 }
  0x2a   : > { %376 = vst [vmem:[#allocation2 + $0x30] sm:$0xff] (!%p1146_p10), %v1387_v16  ;;  %377 = vst [vmem:[#allocation2 + $0x38] sm:$0xff] (!%p1146_p10), %v1387_v16 }
  0x2b   : > { %378 = vst [vmem:[#allocation2 + $0x40] sm:$0xff] (!%p1146_p10), %v1387_v16  ;;  %379 = vst [vmem:[#allocation2 + $0x48] sm:$0xff] (!%p1146_p10), %v1387_v16 }
  0x2c   : > { %380 = vst [vmem:[#allocation2 + $0x50] sm:$0xff] %v1387_v16  ;;  %381 = vst [vmem:[#allocation2 + $0x58] sm:$0xff] %v1387_v16 }
  0x2d   : > { %382 = vst [vmem:[#allocation2 + $0x60] sm:$0xff] %v1387_v16  ;;  %383 = vst [vmem:[#allocation2 + $0x68] sm:$0xff] %v1387_v16 }
  0x2e   : > { %384 = vst [vmem:[#allocation2 + $0x70] sm:$0xff] %v1387_v16  ;;  %385 = vst [vmem:[#allocation2 + $0x78] sm:$0xff] %v1387_v16 }
  0x2f   : > { %386 = vst [vmem:[#allocation2 + $0x80] sm:$0xff] %v1387_v16  ;;  %387 = vst [vmem:[#allocation2 + $0x88] sm:$0xff] %v1387_v16 }
  0x30   : > { %388 = vst [vmem:[#allocation2 + $0x90] sm:$0xff] %v1387_v16  ;;  %389 = vst [vmem:[#allocation2 + $0x98] sm:$0xff] %v1387_v16 }
  0x31   : > { %390 = vst [vmem:[#allocation2 + $0xa0] sm:$0xff] %v1387_v16  ;;  %391 = vst [vmem:[#allocation2 + $0xa8] sm:$0xff] %v1387_v16 }
  0x32   : > { %392 = vst [vmem:[#allocation2 + $0xb0] sm:$0xff] %v1387_v16  ;;  %393 = vst [vmem:[#allocation2 + $0xb8] sm:$0xff] %v1387_v16 }
  0x33   : > { %394 = vst [vmem:[#allocation2 + $0xc0] sm:$0xff] %v1387_v16  ;;  %395 = vst [vmem:[#allocation2 + $0xc8] sm:$0xff] %v1387_v16 }
  0x34   : > { %396 = vst [vmem:[#allocation2 + $0xd0] sm:$0xff] %v1387_v16  ;;  %397 = vst [vmem:[#allocation2 + $0xd8] sm:$0xff] %v1387_v16 }
  0x35   : > { %398 = vst [vmem:[#allocation2 + $0xe0] sm:$0xff] %v1387_v16  ;;  %399 = vst [vmem:[#allocation2 + $0xe8] sm:$0xff] %v1387_v16 }
  0x36   : > { %400 = vst [vmem:[#allocation2 + $0xf0] sm:$0xff] %v1387_v16  ;;  %401 = vst [vmem:[#allocation2 + $0xf8] sm:$0xff] %v1387_v16 }
  0x37 PF: > { %v1275_v17 = vld [vmem:[%s1476_s7 + $0x4] ss:$8 sps:$4 sm:$0xff]   ;;  %v1277_v18 = vld [vmem:[%s1476_s7] ss:$8 sps:$4 sm:$0xff]   ;;  %v1278_v19 = vld [vmem:[%s1476_s7 + $0x14] ss:$8 sps:$4 sm:$0xff]  }
  0x38   : > { %722 = vmatprep.subr.bf16.mxu0 %v1275_v17  ;;  %1202 = vmatprep.subr.bf16.mxu1 %v1275_v17  ;;  %v1280_v20 = vld [vmem:[%s1476_s7 + $0x10] ss:$8 sps:$4 sm:$0xff]   ;;  %v1281_v21 = vld [vmem:[%s1476_s7 + $0x24] ss:$8 sps:$4 sm:$0xff]   ;;  %v1283_v22 = vld [vmem:[%s1476_s7 + $0x20] ss:$8 sps:$4 sm:$0xff]  }
  0x39   : > { %723 = vmatpush1.bf16.msra.mxu0 %v1277_v18  ;;  %1218 = vmatpush1.bf16.msra.mxu1 %v1277_v18  ;;  %v1284_v23 = vld [vmem:[%s1476_s7 + $0x34] ss:$8 sps:$4 sm:$0xff]   ;;  %v1286_v24 = vld [vmem:[%s1476_s7 + $0x30] ss:$8 sps:$4 sm:$0xff]   ;;  %v1287_v25 = vld [vmem:[%s1476_s7 + $0x44] ss:$8 sps:$4 sm:$0xff]  }
  0x3a   : > { %724 = vmatprep.subr.bf16.mxu0 %v1278_v19  ;;  %1203 = vmatprep.subr.bf16.mxu1 %v1278_v19  ;;  %v1289_v26 = vld [vmem:[%s1476_s7 + $0x40] ss:$8 sps:$4 sm:$0xff]   ;;  %v1290_v27 = vld [vmem:[%s1476_s7 + $0x54] ss:$8 sps:$4 sm:$0xff]   ;;  %v1292_v28 = vld [vmem:[%s1476_s7 + $0x50] ss:$8 sps:$4 sm:$0xff]  }
  0x3b   : > { %v1293_v29 = vld [vmem:[%s1476_s7 + $0x64] ss:$8 sps:$4 sm:$0xff]   ;;  %v1295_v31 = vld [vmem:[%s1476_s7 + $0x60] ss:$8 sps:$4 sm:$0xff]   ;;  %v1296_v33 = vld [vmem:[%s1476_s7 + $0x74] ss:$8 sps:$4 sm:$0xff]  }
  0x3c   : > { %v1325_v30 = vld [vmem:[%s1478_s8 + $0x4] ss:$8 sps:$4 sm:$0xff]   ;;  %v1298_v34 = vld [vmem:[%s1476_s7 + $0x70] ss:$8 sps:$4 sm:$0xff]   ;;  %v1301_v36 = vld [vmem:[%s1476_s7 + $0x80] ss:$8 sps:$4 sm:$0xff]  }
  0x3d   : > { %725 = vmatpush1.bf16.msra.mxu0 %v1280_v20  ;;  %1219 = vmatpush1.bf16.msra.mxu1 %v1280_v20  ;;  %v1328_v32 = vld [vmem:[%s1478_s8 + $0x44] ss:$8 sps:$4 sm:$0xff]   ;;  %v1302_v37 = vld [vmem:[%s1476_s7 + $0x94] ss:$8 sps:$4 sm:$0xff]   ;;  %v1304_v38 = vld [vmem:[%s1476_s7 + $0x90] ss:$8 sps:$4 sm:$0xff]  }
  0x3e   : > { %726 = vmatprep.subr.bf16.mxu0 %v1281_v21  ;;  %1204 = vmatprep.subr.bf16.mxu1 %v1281_v21  ;;  %v1299_v35 = vld [vmem:[%s1476_s7 + $0x84] ss:$8 sps:$4 sm:$0xff]   ;;  %v1307_v40 = vld [vmem:[%s1476_s7 + $0xa0] ss:$8 sps:$4 sm:$0xff]   ;;  %v1308_v41 = vld [vmem:[%s1476_s7 + $0xb4] ss:$8 sps:$4 sm:$0xff]  }
  0x3f   : > { %754 = vmatprep.mubr.bf16.mxu0 %v1325_v30  ;;  %794 = vmatprep.mubr.bf16.mxu1 %v1328_v32  ;;  %v1305_v39 = vld [vmem:[%s1476_s7 + $0xa4] ss:$8 sps:$4 sm:$0xff]   ;;  %v1310_v42 = vld [vmem:[%s1476_s7 + $0xb0] ss:$8 sps:$4 sm:$0xff]   ;;  %v1313_v44 = vld [vmem:[%s1476_s7 + $0xc0] ss:$8 sps:$4 sm:$0xff]  }
  0x40   : > { %v1311_v43 = vld [vmem:[%s1476_s7 + $0xc4] ss:$8 sps:$4 sm:$0xff]   ;;  %v1314_v45 = vld [vmem:[%s1476_s7 + $0xd4] ss:$8 sps:$4 sm:$0xff]   ;;  %v1316_v46 = vld [vmem:[%s1476_s7 + $0xd0] ss:$8 sps:$4 sm:$0xff]  }
  0x41   : > { %727 = vmatpush1.bf16.msra.mxu0 %v1283_v22  ;;  %1220 = vmatpush1.bf16.msra.mxu1 %v1283_v22  ;;  %v1317_v47 = vld [vmem:[%s1476_s7 + $0xe4] ss:$8 sps:$4 sm:$0xff]   ;;  %v1319_v48 = vld [vmem:[%s1476_s7 + $0xe0] ss:$8 sps:$4 sm:$0xff]   ;;  %v1320_v49 = vld [vmem:[%s1476_s7 + $0xf4] ss:$8 sps:$4 sm:$0xff]  }
  0x42   : > { %728 = vmatprep.subr.bf16.mxu0 %v1284_v23  ;;  %1205 = vmatprep.subr.bf16.mxu1 %v1284_v23  ;;  %v1322_v50 = vld [vmem:[%s1476_s7 + $0xf0] ss:$8 sps:$4 sm:$0xff]   ;;  %v1323_v51 = vld [vmem:[%s1478_s8] ss:$8 sps:$4 sm:$0xff]   ;;  %v1329_v53 = vld [vmem:[%s1478_s8 + $0x14] ss:$8 sps:$4 sm:$0xff]  }
  0x43   : > { %v1326_v52 = vld [vmem:[%s1478_s8 + $0x40] ss:$8 sps:$4 sm:$0xff]   ;;  %v1331_v54 = vld [vmem:[%s1478_s8 + $0x54] ss:$8 sps:$4 sm:$0xff]   ;;  %v1333_v55 = vld [vmem:[%s1478_s8 + $0x10] ss:$8 sps:$4 sm:$0xff]  }
  0x44   : > { %v1334_v56 = vld [vmem:[%s1478_s8 + $0x50] ss:$8 sps:$4 sm:$0xff]   ;;  %v1335_v57 = vld [vmem:[%s1478_s8 + $0x24] ss:$8 sps:$4 sm:$0xff]   ;;  %v1339_v59 = vld [vmem:[%s1478_s8 + $0x20] ss:$8 sps:$4 sm:$0xff]  }
  0x45   : > { %729 = vmatpush1.bf16.msra.mxu0 %v1286_v24  ;;  %1221 = vmatpush1.bf16.msra.mxu1 %v1286_v24  ;;  %v1337_v58 = vld [vmem:[%s1478_s8 + $0x64] ss:$8 sps:$4 sm:$0xff]   ;;  %v1340_v60 = vld [vmem:[%s1478_s8 + $0x60] ss:$8 sps:$4 sm:$0xff]   ;;  %v1341_v61 = vld [vmem:[%s1478_s8 + $0x34] ss:$8 sps:$4 sm:$0xff]  }
  0x46   : > { %730 = vmatprep.subr.bf16.mxu0 %v1287_v25  ;;  %1206 = vmatprep.subr.bf16.mxu1 %v1287_v25  ;;  %v1343_v62 = vld [vmem:[%s1478_s8 + $0x74] ss:$8 sps:$4 sm:$0xff]   ;;  %v1345_v63 = vld [vmem:[%s1478_s8 + $0x30] ss:$8 sps:$4 sm:$0xff]   ;;  %v402_v1 = vld [vmem:[#allocation2] sm:$0xff]  ;;  %p1195_p11 = scmp.ne.s32.totalorder %s1377_s14, 8 }
  0x47   : > { %v1346_v0 = vld [vmem:[%s1478_s8 + $0x70] ss:$8 sps:$4 sm:$0xff]   ;;  %v418_v2 = vld [vmem:[#allocation2 + $0x80] sm:$0xff]  ;;  %v403_v3 = vld [vmem:[#allocation2 + $0x8] sm:$0xff] }
  0x48   : > { %v419_v4 = vld [vmem:[#allocation2 + $0x88] sm:$0xff]  ;;  %v404_v7 = vld [vmem:[#allocation2 + $0x10] sm:$0xff]  ;;  %v405_v13 = vld [vmem:[#allocation2 + $0x18] sm:$0xff] }
  0x49   : > { %731 = vmatpush1.bf16.msra.mxu0 %v1289_v26  ;;  %1222 = vmatpush1.bf16.msra.mxu1 %v1289_v26  ;;  %v420_v8 = vld [vmem:[#allocation2 + $0x90] sm:$0xff]  ;;  %v421_v14 = vld [vmem:[#allocation2 + $0x98] sm:$0xff]  ;;  %v406_v25 = vld [vmem:[#allocation2 + $0x20] sm:$0xff] }
  0x4a   : > { %732 = vmatprep.subr.bf16.mxu0 %v1290_v27  ;;  %1207 = vmatprep.subr.bf16.mxu1 %v1290_v27  ;;  %v422_v26 = vld [vmem:[#allocation2 + $0xa0] sm:$0xff]  ;;  %v407_v27 = vld [vmem:[#allocation2 + $0x28] sm:$0xff]  ;;  %v424_v32 = vld [vmem:[#allocation2 + $0xb0] sm:$0xff] }
  0x4d   : > { %733 = vmatpush1.bf16.msra.mxu0 %v1292_v28  ;;  %1223 = vmatpush1.bf16.msra.mxu1 %v1292_v28  ;;  %v423_v28 = vld [vmem:[#allocation2 + $0xa8] sm:$0xff] }
  0x4e   : > { %734 = vmatprep.subr.bf16.mxu0 %v1293_v29  ;;  %1208 = vmatprep.subr.bf16.mxu1 %v1293_v29 }
  0x51   : > { %735 = vmatpush1.bf16.msra.mxu0 %v1295_v31  ;;  %1224 = vmatpush1.bf16.msra.mxu1 %v1295_v31  ;;  %v408_v31 = vld [vmem:[#allocation2 + $0x30] sm:$0xff] }
  0x52   : > { %736 = vmatprep.subr.bf16.mxu0 %v1296_v33  ;;  %1209 = vmatprep.subr.bf16.mxu1 %v1296_v33 }
  0x55   : > { %737 = vmatpush1.bf16.msra.mxu0 %v1298_v34  ;;  %1225 = vmatpush1.bf16.msra.mxu1 %v1298_v34 }
  0x56   : > { %738 = vmatprep.subr.bf16.mxu0 %v1299_v35  ;;  %1210 = vmatprep.subr.bf16.mxu1 %v1299_v35 }
  0x59   : > { %739 = vmatpush1.bf16.msra.mxu0 %v1301_v36  ;;  %1226 = vmatpush1.bf16.msra.mxu1 %v1301_v36 }
  0x5a   : > { %740 = vmatprep.subr.bf16.mxu0 %v1302_v37  ;;  %1211 = vmatprep.subr.bf16.mxu1 %v1302_v37  ;;  %v409_v37 = vld [vmem:[#allocation2 + $0x38] sm:$0xff] }
  0x5d   : > { %741 = vmatpush1.bf16.msra.mxu0 %v1304_v38  ;;  %1227 = vmatpush1.bf16.msra.mxu1 %v1304_v38  ;;  %v425_v38 = vld [vmem:[#allocation2 + $0xb8] sm:$0xff] }
  0x5e   : > { %742 = vmatprep.subr.bf16.mxu0 %v1305_v39  ;;  %1212 = vmatprep.subr.bf16.mxu1 %v1305_v39 }
  0x61   : > { %743 = vmatpush1.bf16.msra.mxu0 %v1307_v40  ;;  %1228 = vmatpush1.bf16.msra.mxu1 %v1307_v40 }
  0x62   : > { %744 = vmatprep.subr.bf16.mxu0 %v1308_v41  ;;  %1213 = vmatprep.subr.bf16.mxu1 %v1308_v41 }
  0x65   : > { %745 = vmatpush1.bf16.msra.mxu0 %v1310_v42  ;;  %1229 = vmatpush1.bf16.msra.mxu1 %v1310_v42 }
  0x66   : > { %746 = vmatprep.subr.bf16.mxu0 %v1311_v43  ;;  %1214 = vmatprep.subr.bf16.mxu1 %v1311_v43 }
  0x69   : > { %747 = vmatpush1.bf16.msra.mxu0 %v1313_v44  ;;  %1230 = vmatpush1.bf16.msra.mxu1 %v1313_v44 }
  0x6a   : > { %748 = vmatprep.subr.bf16.mxu0 %v1314_v45  ;;  %1215 = vmatprep.subr.bf16.mxu1 %v1314_v45 }
  0x6d   : > { %749 = vmatpush1.bf16.msra.mxu0 %v1316_v46  ;;  %1231 = vmatpush1.bf16.msra.mxu1 %v1316_v46 }
  0x6e   : > { %750 = vmatprep.subr.bf16.mxu0 %v1317_v47  ;;  %1216 = vmatprep.subr.bf16.mxu1 %v1317_v47 }
  0x71   : > { %751 = vmatpush1.bf16.msra.mxu0 %v1319_v48  ;;  %1232 = vmatpush1.bf16.msra.mxu1 %v1319_v48 }
  0x72   : > { %752 = vmatprep.subr.bf16.mxu0 %v1320_v49  ;;  %1217 = vmatprep.subr.bf16.mxu1 %v1320_v49  ;;  %v410_v49 = vld [vmem:[#allocation2 + $0x40] sm:$0xff] }
  0x75   : > { %753 = vmatpush1.bf16.msra.mxu0 %v1322_v50  ;;  %1233 = vmatpush1.bf16.msra.mxu1 %v1322_v50  ;;  %v426_v50 = vld [vmem:[#allocation2 + $0xc0] sm:$0xff] }
  0x78   : > { %755 = vmatmul.mubr.bf16.vlgmr.msra.gmra.mrb[0].mxu0 %v1323_v51  ;;  %795 = vmatmul.mubr.bf16.vlgmr.msra.gmra.mrb[0].mxu1 %v1326_v52  ;;  %v411_v51 = vld [vmem:[#allocation2 + $0x48] sm:$0xff] }
  0x79   : > { %764 = vmatprep.mubr.bf16.mxu0 %v1329_v53  ;;  %804 = vmatprep.mubr.bf16.mxu1 %v1331_v54  ;;  %v427_v52 = vld [vmem:[#allocation2 + $0xc8] sm:$0xff] }
  0x80   : > { %765 = vmatmul.mubr.bf16.gmra.mrb[4].mxu0 %v1333_v55  ;;  %805 = vmatmul.mubr.bf16.gmra.mrb[4].mxu1 %v1334_v56  ;;  %v412_v55 = vld [vmem:[#allocation2 + $0x50] sm:$0xff] }
  0x81   : > { %774 = vmatprep.mubr.bf16.mxu0 %v1335_v57  ;;  %814 = vmatprep.mubr.bf16.mxu1 %v1337_v58  ;;  %v428_v56 = vld [vmem:[#allocation2 + $0xd0] sm:$0xff] }
  0x88   : > { %775 = vmatmul.mubr.bf16.gmra.mrb[8].mxu0 %v1339_v59  ;;  %815 = vmatmul.mubr.bf16.gmra.mrb[8].mxu1 %v1340_v60 }
  0x89   : > { %784 = vmatprep.mubr.bf16.mxu0 %v1341_v61  ;;  %824 = vmatprep.mubr.bf16.mxu1 %v1343_v62  ;;  %v413_v61 = vld [vmem:[#allocation2 + $0x58] sm:$0xff] }
  0x8a   : > { %v429_v62 = vld [vmem:[#allocation2 + $0xd8] sm:$0xff] }
  0x90   : > { %785 = vmatmul.mubr.bf16.gmra.mrb[12].mxu0 %v1345_v63  ;;  %825 = vmatmul.mubr.bf16.gmra.mrb[12].mxu1 %v1346_v0 }
 0x14b   : > { %v756_v5 = vpop.f32.mrb[0].mxu0  ;;  %v796_v6 = vpop.f32.mrb[0].mxu1 }
 0x14c   : > { %v835_v9 = vadd.f32 %v756_v5, %v402_v1  ;;  %v851_v10 = vadd.f32 %v796_v6, %v418_v2  ;;  %v758_v11 = vpop.f32.mrb[1].mxu0  ;;  %v798_v12 = vpop.f32.mrb[1].mxu1 }
 0x14d   : > { %v836_v15 = vadd.f32 %v758_v11, %v403_v3  ;;  %v852_v16 = vadd.f32 %v798_v12, %v419_v4  ;;  %v760_v17 = vpop.f32.mrb[2].mxu0  ;;  %v800_v18 = vpop.f32.mrb[2].mxu1  ;;  %v415_v11 = vld [vmem:[#allocation2 + $0x68] sm:$0xff] }
 0x14e   : > { %867 = vst [vmem:[#allocation2] sm:$0xff] %v835_v9  ;;  %883 = vst [vmem:[#allocation2 + $0x80] sm:$0xff] %v851_v10  ;;  %v837_v19 = vadd.f32 %v760_v17, %v404_v7  ;;  %v853_v20 = vadd.f32 %v800_v18, %v420_v8  ;;  %v762_v21 = vpop.f32.mrb[3].mxu0  ;;  %v802_v22 = vpop.f32.mrb[3].mxu1  ;;  %v414_v9 = vld [vmem:[#allocation2 + $0x60] sm:$0xff]  ;;  %v431_v12 = vld [vmem:[#allocation2 + $0xe8] sm:$0xff] }
 0x14f   : > { %868 = vst [vmem:[#allocation2 + $0x8] sm:$0xff] %v836_v15  ;;  %884 = vst [vmem:[#allocation2 + $0x88] sm:$0xff] %v852_v16  ;;  %v838_v23 = vadd.f32 %v762_v21, %v405_v13  ;;  %v854_v24 = vadd.f32 %v802_v22, %v421_v14  ;;  %v430_v10 = vld [vmem:[#allocation2 + $0xe0] sm:$0xff]  ;;  %v416_v15 = vld [vmem:[#allocation2 + $0x70] sm:$0xff] }
 0x150   : > { %869 = vst [vmem:[#allocation2 + $0x10] sm:$0xff] %v837_v19  ;;  %885 = vst [vmem:[#allocation2 + $0x90] sm:$0xff] %v853_v20  ;;  %v432_v16 = vld [vmem:[#allocation2 + $0xf0] sm:$0xff]  ;;  %v417_v21 = vld [vmem:[#allocation2 + $0x78] sm:$0xff] }
 0x151   : > { %870 = vst [vmem:[#allocation2 + $0x18] sm:$0xff] %v838_v23  ;;  %886 = vst [vmem:[#allocation2 + $0x98] sm:$0xff] %v854_v24  ;;  %v433_v22 = vld [vmem:[#allocation2 + $0xf8] sm:$0xff] }
 0x153   : > { %v766_v29 = vpop.f32.mrb[4].mxu0  ;;  %v806_v30 = vpop.f32.mrb[4].mxu1 }
 0x154   : > { %v839_v33 = vadd.f32 %v766_v29, %v406_v25  ;;  %v855_v34 = vadd.f32 %v806_v30, %v422_v26  ;;  %v768_v35 = vpop.f32.mrb[5].mxu0  ;;  %v808_v36 = vpop.f32.mrb[5].mxu1 }
 0x155   : > { %v840_v39 = vadd.f32 %v768_v35, %v407_v27  ;;  %v856_v40 = vadd.f32 %v808_v36, %v423_v28  ;;  %v770_v41 = vpop.f32.mrb[6].mxu0  ;;  %v810_v42 = vpop.f32.mrb[6].mxu1  ;;  %v903_v36 = vld [vmem:[#allocation2] sm:$0xff] (!%p1195_p11) }
 0x156   : > { %871 = vst [vmem:[#allocation2 + $0x20] sm:$0xff] %v839_v33  ;;  %887 = vst [vmem:[#allocation2 + $0xa0] sm:$0xff] %v855_v34  ;;  %v841_v43 = vadd.f32 %v770_v41, %v408_v31  ;;  %v857_v44 = vadd.f32 %v810_v42, %v424_v32  ;;  %v772_v45 = vpop.f32.mrb[7].mxu0  ;;  %v812_v46 = vpop.f32.mrb[7].mxu1  ;;  %v937_v33 = vlaneseq (!%p1195_p11)  ;;  %v935_v34 = vld [vmem:[%s1682_s2] sm:$0x3] (!%p1195_p11) }
 0x157   : > { %872 = vst [vmem:[#allocation2 + $0x28] sm:$0xff] %v840_v39  ;;  %888 = vst [vmem:[#allocation2 + $0xa8] sm:$0xff] %v856_v40  ;;  %v842_v47 = vadd.f32 %v772_v45, %v409_v37  ;;  %v858_v48 = vadd.f32 %v812_v46, %v425_v38  ;;  %v904_v37 = vld [vmem:[#allocation2 + $0x8] sm:$0xff] (!%p1195_p11)  ;;  %v905_v38 = vld [vmem:[#allocation2 + $0x10] sm:$0xff] (!%p1195_p11) }
 0x158   : > { %873 = vst [vmem:[#allocation2 + $0x30] sm:$0xff] %v841_v43  ;;  %889 = vst [vmem:[#allocation2 + $0xb0] sm:$0xff] %v857_v44  ;;  %v938_v35 = vshrl.u32 (!%p1195_p11), %v937_v33, 7  ;;  %v906_v39 = vld [vmem:[#allocation2 + $0x18] sm:$0xff] (!%p1195_p11) }
 0x159   : > { %874 = vst [vmem:[#allocation2 + $0x38] sm:$0xff] %v842_v47  ;;  %890 = vst [vmem:[#allocation2 + $0xb8] sm:$0xff] %v858_v48 }
 0x15a   : > { %v939_v40 = vsub.s32 (!%p1195_p11), 0, %v938_v35  ;;  %v943_v41 = vsub.s32 (!%p1195_p11), 1, %v938_v35 }
 0x15b   : > { %v776_v53 = vpop.f32.mrb[8].mxu0  ;;  %v816_v54 = vpop.f32.mrb[8].mxu1 }
 0x15c   : > { %v843_v57 = vadd.f32 %v776_v53, %v410_v49  ;;  %v859_v58 = vadd.f32 %v816_v54, %v426_v50  ;;  %v778_v59 = vpop.f32.mrb[9].mxu0  ;;  %v818_v60 = vpop.f32.mrb[9].mxu1  ;;  %v1533_v49 = vrot.slane (!%p1195_p11), %v935_v34, %v939_v40  ;;  %v1535_v50 = vrot.slane (!%p1195_p11), %v935_v34, %v943_v41 }
 0x15d   : > { %v844_v63 = vadd.f32 %v778_v59, %v411_v51  ;;  %v860_v0 = vadd.f32 %v818_v60, %v427_v52  ;;  %v780_v1 = vpop.f32.mrb[10].mxu0  ;;  %v820_v2 = vpop.f32.mrb[10].mxu1  ;;  %v907_v42 = vld [vmem:[#allocation2 + $0x20] sm:$0xff] (!%p1195_p11) }
 0x15e   : > { %875 = vst [vmem:[#allocation2 + $0x40] sm:$0xff] %v843_v57  ;;  %891 = vst [vmem:[#allocation2 + $0xc0] sm:$0xff] %v859_v58  ;;  %v845_v3 = vadd.f32 %v780_v1, %v412_v55  ;;  %v861_v4 = vadd.f32 %v820_v2, %v428_v56  ;;  %v782_v5 = vpop.f32.mrb[11].mxu0  ;;  %v822_v6 = vpop.f32.mrb[11].mxu1  ;;  %v908_v43 = vld [vmem:[#allocation2 + $0x28] sm:$0xff] (!%p1195_p11)  ;;  %v919_v56 = vld [vmem:[#allocation2 + $0x80] sm:$0xff] (!%p1195_p11)  ;;  %v947_v57 = vadd.f32 (!%p1195_p11), %v1533_v49, %v903_v36 }
 0x15f   : > { %876 = vst [vmem:[#allocation2 + $0x48] sm:$0xff] %v844_v63  ;;  %892 = vst [vmem:[#allocation2 + $0xc8] sm:$0xff] %v860_v0  ;;  %v846_v7 = vadd.f32 %v782_v5, %v413_v61  ;;  %v862_v8 = vadd.f32 %v822_v6, %v429_v62  ;;  %v909_v44 = vld [vmem:[#allocation2 + $0x30] sm:$0xff] (!%p1195_p11)  ;;  %v948_v58 = vadd.f32 (!%p1195_p11), %v1535_v50, %v904_v37  ;;  %v920_v61 = vld [vmem:[#allocation2 + $0x88] sm:$0xff] (!%p1195_p11) }
 0x160   : > { %877 = vst [vmem:[#allocation2 + $0x50] sm:$0xff] %v845_v3  ;;  %893 = vst [vmem:[#allocation2 + $0xd0] sm:$0xff] %v861_v4  ;;  %v910_v45 = vld [vmem:[#allocation2 + $0x38] sm:$0xff] (!%p1195_p11)  ;;  %v949_v59 = vadd.f32 (!%p1195_p11), %v1533_v49, %v905_v38  ;;  %v950_v60 = vadd.f32 (!%p1195_p11), %v1535_v50, %v906_v39  ;;  %v921_v62 = vld [vmem:[#allocation2 + $0x90] sm:$0xff] (!%p1195_p11)  ;;  %v951_v0 = vadd.f32 (!%p1195_p11), %v1533_v49, %v907_v42 }
 0x161   : > { %878 = vst [vmem:[#allocation2 + $0x58] sm:$0xff] %v846_v7  ;;  %894 = vst [vmem:[#allocation2 + $0xd8] sm:$0xff] %v862_v8  ;;  %v922_v63 = vld [vmem:[#allocation2 + $0x98] sm:$0xff] (!%p1195_p11)  ;;  %v952_v1 = vadd.f32 (!%p1195_p11), %v1535_v50, %v908_v43  ;;  %v953_v2 = vadd.f32 (!%p1195_p11), %v1533_v49, %v909_v44  ;;  %v954_v3 = vadd.f32 (!%p1195_p11), %v1535_v50, %v910_v45  ;;  %v923_v4 = vld [vmem:[#allocation2 + $0xa0] sm:$0xff] (!%p1195_p11) }
 0x162   : > { %v924_v5 = vld [vmem:[#allocation2 + $0xa8] sm:$0xff] (!%p1195_p11)  ;;  %v925_v6 = vld [vmem:[#allocation2 + $0xb0] sm:$0xff] (!%p1195_p11)  ;;  %979 = vst [vmem:[%s1683_s3] sm:$0xff] (!%p1195_p11), %v947_v57  ;;  %980 = vst [vmem:[%s1683_s3 + $0x8] sm:$0xff] (!%p1195_p11), %v948_v58 }
 0x163   : > { %v786_v13 = vpop.f32.mrb[12].mxu0  ;;  %v826_v14 = vpop.f32.mrb[12].mxu1  ;;  %902 = sbr.rel (%p1195_p11) target bundleno = 374 (0x176), region = 78  ;;  %981 = vst [vmem:[%s1683_s3 + $0x10] sm:$0xff] (!%p1195_p11), %v949_v59  ;;  %982 = vst [vmem:[%s1683_s3 + $0x18] sm:$0xff] (!%p1195_p11), %v950_v60 }
 0x164   : > { %v847_v17 = vadd.f32 %v786_v13, %v414_v9  ;;  %v863_v18 = vadd.f32 %v826_v14, %v430_v10  ;;  %v788_v19 = vpop.f32.mrb[13].mxu0  ;;  %v828_v20 = vpop.f32.mrb[13].mxu1  ;;  %983 = vst [vmem:[%s1683_s3 + $0x20] sm:$0xff] (!%p1195_p11), %v951_v0  ;;  %984 = vst [vmem:[%s1683_s3 + $0x28] sm:$0xff] (!%p1195_p11), %v952_v1 }
 0x165   : > { %v848_v23 = vadd.f32 %v788_v19, %v415_v11  ;;  %v864_v24 = vadd.f32 %v828_v20, %v431_v12  ;;  %v790_v25 = vpop.f32.mrb[14].mxu0  ;;  %v830_v26 = vpop.f32.mrb[14].mxu1  ;;  %v911_v46 = vld [vmem:[#allocation2 + $0x40] sm:$0xff] (!%p1195_p11)  ;;  %v926_v11 = vld [vmem:[#allocation2 + $0xb8] sm:$0xff] (!%p1195_p11)  ;;  %985 = vst [vmem:[%s1683_s3 + $0x30] sm:$0xff] (!%p1195_p11), %v953_v2  ;;  %986 = vst [vmem:[%s1683_s3 + $0x38] sm:$0xff] (!%p1195_p11), %v954_v3 }
 0x166   : > { %879 = vst [vmem:[#allocation2 + $0x60] sm:$0xff] %v847_v17  ;;  %895 = vst [vmem:[#allocation2 + $0xe0] sm:$0xff] %v863_v18  ;;  %v849_v27 = vadd.f32 %v790_v25, %v416_v15  ;;  %v865_v28 = vadd.f32 %v830_v26, %v432_v16  ;;  %v792_v29 = vpop.f32.mrb[15].mxu0  ;;  %v832_v30 = vpop.f32.mrb[15].mxu1  ;;  %v912_v47 = vld [vmem:[#allocation2 + $0x48] sm:$0xff] (!%p1195_p11)  ;;  %v955_v7 = vadd.f32 (!%p1195_p11), %v1533_v49, %v911_v46  ;;  %v927_v12 = vld [vmem:[#allocation2 + $0xc0] sm:$0xff] (!%p1195_p11) }
 0x167   : > { %880 = vst [vmem:[#allocation2 + $0x68] sm:$0xff] %v848_v23  ;;  %896 = vst [vmem:[#allocation2 + $0xe8] sm:$0xff] %v864_v24  ;;  %v850_v31 = vadd.f32 %v792_v29, %v417_v21  ;;  %v866_v32 = vadd.f32 %v832_v30, %v433_v22  ;;  %v913_v48 = vld [vmem:[#allocation2 + $0x50] sm:$0xff] (!%p1195_p11)  ;;  %v956_v8 = vadd.f32 (!%p1195_p11), %v1535_v50, %v912_v47  ;;  %v928_v13 = vld [vmem:[#allocation2 + $0xc8] sm:$0xff] (!%p1195_p11) }
 0x168   : > { %881 = vst [vmem:[#allocation2 + $0x70] sm:$0xff] %v849_v27  ;;  %897 = vst [vmem:[#allocation2 + $0xf0] sm:$0xff] %v865_v28  ;;  %v914_v51 = vld [vmem:[#allocation2 + $0x58] sm:$0xff] (!%p1195_p11)  ;;  %v957_v9 = vadd.f32 (!%p1195_p11), %v1533_v49, %v913_v48  ;;  %v929_v18 = vld [vmem:[#allocation2 + $0xd0] sm:$0xff] (!%p1195_p11)  ;;  %v963_v21 = vadd.f32 (!%p1195_p11), %v1533_v49, %v919_v56  ;;  %v964_v22 = vadd.f32 (!%p1195_p11), %v1535_v50, %v920_v61 }
 0x169   : > { %882 = vst [vmem:[#allocation2 + $0x78] sm:$0xff] %v850_v31  ;;  %898 = vst [vmem:[#allocation2 + $0xf8] sm:$0xff] %v866_v32  ;;  %v958_v10 = vadd.f32 (!%p1195_p11), %v1535_v50, %v914_v51  ;;  %v930_v19 = vld [vmem:[#allocation2 + $0xd8] sm:$0xff] (!%p1195_p11)  ;;  %v965_v23 = vadd.f32 (!%p1195_p11), %v1533_v49, %v921_v62  ;;  %v966_v24 = vadd.f32 (!%p1195_p11), %v1535_v50, %v922_v63 }
 0x16a   : > { %987 = vst [vmem:[%s1683_s3 + $0x40] sm:$0xff] %v955_v7  ;;  %988 = vst [vmem:[%s1683_s3 + $0x48] sm:$0xff] %v956_v8  ;;  %v967_v28 = vadd.f32 %v1533_v49, %v923_v4  ;;  %v968_v29 = vadd.f32 %v1535_v50, %v924_v5  ;;  %v969_v30 = vadd.f32 %v1533_v49, %v925_v6 }
 0x16b   : > { %989 = vst [vmem:[%s1683_s3 + $0x50] sm:$0xff] %v957_v9  ;;  %990 = vst [vmem:[%s1683_s3 + $0x58] sm:$0xff] %v958_v10  ;;  %v970_v31 = vadd.f32 %v1535_v50, %v926_v11  ;;  %v971_v32 = vadd.f32 %v1533_v49, %v927_v12  ;;  %v972_v33 = vadd.f32 %v1535_v50, %v928_v13 }
 0x16c   : > { %995 = vst [vmem:[%s1683_s3 + $0x80] sm:$0xff] %v963_v21  ;;  %996 = vst [vmem:[%s1683_s3 + $0x88] sm:$0xff] %v964_v22  ;;  %v973_v34 = vadd.f32 %v1533_v49, %v929_v18  ;;  %v974_v35 = vadd.f32 %v1535_v50, %v930_v19 }
 0x16d   : > { %v915_v52 = vld [vmem:[#allocation2 + $0x60] sm:$0xff]  ;;  %997 = vst [vmem:[%s1683_s3 + $0x90] sm:$0xff] %v965_v23  ;;  %998 = vst [vmem:[%s1683_s3 + $0x98] sm:$0xff] %v966_v24 }
 0x16e   : > { %v916_v53 = vld [vmem:[#allocation2 + $0x68] sm:$0xff]  ;;  %v959_v14 = vadd.f32 %v1533_v49, %v915_v52  ;;  %v931_v20 = vld [vmem:[#allocation2 + $0xe0] sm:$0xff]  ;;  %999 = vst [vmem:[%s1683_s3 + $0xa0] sm:$0xff] %v967_v28  ;;  %1000 = vst [vmem:[%s1683_s3 + $0xa8] sm:$0xff] %v968_v29 }
 0x16f   : > { %v917_v54 = vld [vmem:[#allocation2 + $0x70] sm:$0xff]  ;;  %v960_v15 = vadd.f32 %v1535_v50, %v916_v53  ;;  %v932_v25 = vld [vmem:[#allocation2 + $0xe8] sm:$0xff]  ;;  %1001 = vst [vmem:[%s1683_s3 + $0xb0] sm:$0xff] %v969_v30  ;;  %1002 = vst [vmem:[%s1683_s3 + $0xb8] sm:$0xff] %v970_v31  ;;  %v975_v36 = vadd.f32 %v1533_v49, %v931_v20 }
 0x170   : > { %v918_v55 = vld [vmem:[#allocation2 + $0x78] sm:$0xff]  ;;  %v961_v16 = vadd.f32 %v1533_v49, %v917_v54  ;;  %v933_v26 = vld [vmem:[#allocation2 + $0xf0] sm:$0xff]  ;;  %991 = vst [vmem:[%s1683_s3 + $0x60] sm:$0xff] %v959_v14  ;;  %v976_v37 = vadd.f32 %v1535_v50, %v932_v25  ;;  %1003 = vst [vmem:[%s1683_s3 + $0xc0] sm:$0xff] %v971_v32 }
 0x171   : > { %v962_v17 = vadd.f32 %v1535_v50, %v918_v55  ;;  %v934_v27 = vld [vmem:[#allocation2 + $0xf8] sm:$0xff]  ;;  %992 = vst [vmem:[%s1683_s3 + $0x68] sm:$0xff] %v960_v15  ;;  %v977_v38 = vadd.f32 %v1533_v49, %v933_v26  ;;  %1004 = vst [vmem:[%s1683_s3 + $0xc8] sm:$0xff] %v972_v33 }
 0x172   : > { %993 = vst [vmem:[%s1683_s3 + $0x70] sm:$0xff] %v961_v16  ;;  %v978_v39 = vadd.f32 %v1535_v50, %v934_v27  ;;  %1005 = vst [vmem:[%s1683_s3 + $0xd0] sm:$0xff] %v973_v34 }
 0x173   : > { %994 = vst [vmem:[%s1683_s3 + $0x78] sm:$0xff] %v962_v17  ;;  %1006 = vst [vmem:[%s1683_s3 + $0xd8] sm:$0xff] %v974_v35 }
 0x174   : > { %1007 = vst [vmem:[%s1683_s3 + $0xe0] sm:$0xff] %v975_v36  ;;  %1008 = vst [vmem:[%s1683_s3 + $0xe8] sm:$0xff] %v976_v37 }
 0x175   : > { %1009 = vst [vmem:[%s1683_s3 + $0xf0] sm:$0xff] %v977_v38  ;;  %1010 = vst [vmem:[%s1683_s3 + $0xf8] sm:$0xff] %v978_v39 }
 0x176 PF: > { %s13_s16 = sadd.s32 1, %s1385_s16   ;;  %s1684_s12 = smov %s1373_s13 }
 0x177   : > { %p10_p12 = scmp.ge.s32.totalorder %s13_s16, 11   ;;  %s1685_s13 = smov %s1443_s20 }
 0x178   : > { %s1686_s14 = smov %s1381_s15  ;;  %s1687_s15 = smov %s1689_s17 }
 0x179   :  { %12 = sbr.rel (!%p10_p12) target bundleno = 3 (0x3), region = 119 }

// kernel: _lambda_.33
= control target key start
LH: loop header
LB: loop body
LE: loop exit
PB: predicated region body
PF: predicated region fallthrough
CT: control target
= control target key end

     0   :  { %s2162_s0 = inlined_call_operand.vmem [shape: bf16[128,9216], index: 0, kind: input, shape index: {}]   ;;  %s2163_s1 = inlined_call_operand.vmem [shape: bf16[9216,512], index: 1, kind: input, shape index: {}]   ;;  %s2164_s2 = inlined_call_operand.vmem [shape: f32[1,512], index: 2, kind: input, shape index: {}]   ;;  %s2165_s3 = inlined_call_operand.vmem [shape: f32[128,512], index: 3, kind: output, shape index: {}]  }
   0x1   :  { %2167 = sst [smem:[#allocation7_spill]] %s2162_s0 }
   0x2   :  { %2168 = sst [smem:[#allocation8_spill]] %s2163_s1 }
   0x3   :  { %s1716_s12 = smov 0   ;;  %s1718_s13 = smov 0  }
   0x4   :  { %s1720_s14 = smov 0   ;;  %s1722_s15 = smov 0  }
   0x5   :  { %s1724_s16 = smov 0   ;;  %s1726_s17 = smov 0  }
   0x6   :  { %s1728_s18 = smov 0   ;;  %s1730_s19 = smov 0  }
   0x7   :  { %s1732_s20 = smov 0   ;;  %s1734_s21 = smov 0  }
   0x8   :  { %s1736_s22 = smov 0  }
   0x9 LB: > { %s1339_s23 = sadd.s32 4294967295, %s1693_s22   ;;  %s25_s24 = sadd.s32 1, %s1685_s20  ;;  %s1693_s22 = sphi %s1736_s22, %s13_s22   ;;  %s1689_s21 = sphi %s1734_s21, %s2185_s21   ;;  %s1685_s20 = sphi %s1732_s20, %s2184_s20   ;;  %s1681_s19 = sphi %s1730_s19, %s2183_s19   ;;  %s1677_s18 = sphi %s1728_s18, %s2182_s18   ;;  %s1673_s17 = sphi %s1726_s17, %s2181_s17   ;;  %s1669_s16 = sphi %s1724_s16, %s2180_s16   ;;  %s1665_s15 = sphi %s1722_s15, %s2179_s15   ;;  %s1661_s14 = sphi %s1720_s14, %s2178_s14   ;;  %s1657_s13 = sphi %s1718_s13, %s2177_s13   ;;  %s1653_s12 = sphi %s1716_s12, %s2176_s12  }
   0xa   : > { %p26_p0 = scmp.ge.s32.totalorder %s25_s24, 36  ;;  %s28_s25 = sadd.s32 1, %s1689_s21 }
   0xb   : > { %s41_s26 = sadd.s32 1, %s1673_s17  ;;  %p48_p1 = scmp.ne.s32.totalorder %s1673_s17, %s1669_s16 }
   0xc   : > { %s2187_s24 = smov (%p26_p0, %s25_s24), 0  ;;  %s2189_s25 = smov (!%p26_p0, %s28_s25), %s1689_s21 }
   0xd   : > { %s37_s27 = ssub.s32 %s1685_s20, %s2187_s24  ;;  %p49_p2 = scmp.eq.s32.totalorder %s1693_s22, 0 }
   0xe   : > { %p30_p3 = scmp.ge.s32.totalorder %s2189_s25, 2  ;;  %p39_p4 = scmp.eq.s32.totalorder %s37_s27, 0 }
   0xf   : > { %p1783_p5 = por %p49_p2, %p48_p1  ;;  %s69_s29 = sadd.s32 1, %s1665_s15 }
  0x10   : > { %s2191_s25 = smov (%p30_p3, %s2189_s25), 0  ;;  %p76_p6 = scmp.ne.s32.totalorder %s1665_s15, %s1661_s14 }
  0x11   : > { %2170 = sst [smem:[#allocation6_spill]] %s2191_s25  ;;  %s65_s4 = ssub.s32 %s1689_s21, %s2191_s25 }
  0x12   : > { %s1791_s30 = scalar_select %p39_p4, %s1673_s17, %s41_s26  }
  0x13   : > { %s66_s5 = sor.u32 %s65_s4, %s37_s27  ;;  %p121_p7 = scmp.eq.s32.totalorder %s65_s4, 0 }
  0x14   : > { %p67_p8 = scmp.eq.s32.totalorder %s66_s5, 0  ;;  %p1797_p9 = por %p76_p6, %p49_p2 }
  0x15   : > { %s123_s7 = sadd.s32 1, %s1657_s13  ;;  %p133_p10 = scmp.ne.s32.totalorder %s1657_s13, %s1653_s12 }
  0x16   : > { %s1805_s8 = scalar_select %p67_p8, %s1665_s15, %s69_s29  }
  0x17   : > { %s1808_s9 = scalar_select %p121_p7, %s1657_s13, %s123_s7  }
  0x18   : > { %p134_p11 = scmp.eq.s32.totalorder %s1339_s23, 71  ;;  %p1342_p13 = scmp.ge.s32.totalorder %s1693_s22, 72 }
  0x1a   : > { %p1810_p12 = por %p134_p11, %p133_p10  ;;  %156 = sbr.rel (%p1342_p13) target bundleno = 85 (0x55), region = 16 }
  0x21   : > { %159 = sbr.rel (!%p1783_p5) target bundleno = 59 (0x3b), region = 20  ;;  %s161_s11 = sand.u32 (%p1783_p5), 1, %s1673_s17  }
  0x22   : > { %s1411_s26 = sshll.u32 (%p1783_p5), %s1685_s20, 3  ;;  %s1343_s27 = sshll.u32 (%p1783_p5), %s161_s11, 7 }
  0x23   : > { %s2173_s0 = sld [smem:[#allocation7_spill]] (%p1783_p5)  ;;  %s163_s23 = scalar_lea.vmem (%p1783_p5), [#allocation3], %s1343_s27 }
  0x29   : > { %s1822_s5 = scalar_lea.vmem %s2173_s0, %s1411_s26 }
  0x2a   : > { %v227_v0 = vld [vmem:[%s1822_s5] sm:$0xff] }
  0x2b   : > { %v229_v1 = vld [vmem:[%s1822_s5 + $0x120] sm:$0xff]  ;;  %228 = vst [vmem:[%s163_s23] sm:$0xff] %v227_v0 }
  0x2c   : > { %v231_v2 = vld [vmem:[%s1822_s5 + $0x240] sm:$0xff]  ;;  %230 = vst [vmem:[%s163_s23 + $0x8] sm:$0xff] %v229_v1 }
  0x2d   : > { %232 = vst [vmem:[%s163_s23 + $0x10] sm:$0xff] %v231_v2  ;;  %v233_v3 = vld [vmem:[%s1822_s5 + $0x360] sm:$0xff] }
  0x2e   : > { %v235_v4 = vld [vmem:[%s1822_s5 + $0x480] sm:$0xff]  ;;  %234 = vst [vmem:[%s163_s23 + $0x18] sm:$0xff] %v233_v3 }
  0x2f   : > { %v237_v5 = vld [vmem:[%s1822_s5 + $0x5a0] sm:$0xff]  ;;  %236 = vst [vmem:[%s163_s23 + $0x20] sm:$0xff] %v235_v4 }
  0x30   : > { %238 = vst [vmem:[%s163_s23 + $0x28] sm:$0xff] %v237_v5  ;;  %v239_v6 = vld [vmem:[%s1822_s5 + $0x6c0] sm:$0xff] }
  0x31   : > { %v241_v7 = vld [vmem:[%s1822_s5 + $0x7e0] sm:$0xff]  ;;  %240 = vst [vmem:[%s163_s23 + $0x30] sm:$0xff] %v239_v6 }
  0x32   : > { %v243_v8 = vld [vmem:[%s1822_s5 + $0x900] sm:$0xff]  ;;  %242 = vst [vmem:[%s163_s23 + $0x38] sm:$0xff] %v241_v7 }
  0x33   : > { %244 = vst [vmem:[%s163_s23 + $0x40] sm:$0xff] %v243_v8  ;;  %v245_v9 = vld [vmem:[%s1822_s5 + $0xa20] sm:$0xff] }
  0x34   : > { %v247_v10 = vld [vmem:[%s1822_s5 + $0xb40] sm:$0xff]  ;;  %246 = vst [vmem:[%s163_s23 + $0x48] sm:$0xff] %v245_v9 }
  0x35   : > { %v249_v11 = vld [vmem:[%s1822_s5 + $0xc60] sm:$0xff]  ;;  %248 = vst [vmem:[%s163_s23 + $0x50] sm:$0xff] %v247_v10 }
  0x36   : > { %250 = vst [vmem:[%s163_s23 + $0x58] sm:$0xff] %v249_v11  ;;  %v251_v12 = vld [vmem:[%s1822_s5 + $0xd80] sm:$0xff] }
  0x37   : > { %v253_v13 = vld [vmem:[%s1822_s5 + $0xea0] sm:$0xff]  ;;  %252 = vst [vmem:[%s163_s23 + $0x60] sm:$0xff] %v251_v12 }
  0x38   : > { %v255_v14 = vld [vmem:[%s1822_s5 + $0xfc0] sm:$0xff]  ;;  %254 = vst [vmem:[%s163_s23 + $0x68] sm:$0xff] %v253_v13 }
  0x39   : > { %256 = vst [vmem:[%s163_s23 + $0x70] sm:$0xff] %v255_v14  ;;  %v257_v15 = vld [vmem:[%s1822_s5 + $0x10e0] sm:$0xff] }
  0x3a   : > { %258 = vst [vmem:[%s163_s23 + $0x78] sm:$0xff] %v257_v15 }
  0x3b PF: > { %264 = sbr.rel (!%p1797_p9) target bundleno = 85 (0x55), region = 58  ;;  %s266_s28 = sand.u32 (%p1797_p9), 1, %s1665_s15  }
  0x3c   : > { %s1348_s7 = sshll.u32 (%p1797_p9), %s1689_s21, 1  ;;  %s1346_s11 = sshll.u32 (%p1797_p9), %s266_s28, 8 }
  0x3d   : > { %s1412_s26 = sshll.u32 (%p1797_p9), %s1685_s20, 7  ;;  %s2174_s1 = sld [smem:[#allocation8_spill]] (%p1797_p9) }
  0x3e   : > { %s272_s27 = sadd.s32 (%p1797_p9), %s1412_s26, %s1348_s7  ;;  %s1853_s6 = scalar_lea.vmem (%p1797_p9), [#allocation4], %s1346_s11 }
  0x3f   : > { %s1350_s29 = sshll.u32 (%p1797_p9), %s272_s27, 2 }
  0x43   : > { %s1848_s25 = scalar_lea.vmem %s2174_s1, %s1350_s29 }
  0x44   : > { %v364_v16 = vld [vmem:[%s1848_s25] sm:$0xff]  ;;  %v366_v17 = vld [vmem:[%s1848_s25 + $0x10] sm:$0xff] }
  0x45   : > { %v368_v18 = vld [vmem:[%s1848_s25 + $0x20] sm:$0xff]  ;;  %365 = vst [vmem:[%s1853_s6] sm:$0xff] %v364_v16  ;;  %367 = vst [vmem:[%s1853_s6 + $0x8] sm:$0xff] %v366_v17  ;;  %v370_v19 = vld [vmem:[%s1848_s25 + $0x30] sm:$0xff] }
  0x46   : > { %369 = vst [vmem:[%s1853_s6 + $0x10] sm:$0xff] %v368_v18  ;;  %v372_v20 = vld [vmem:[%s1848_s25 + $0x40] sm:$0xff]  ;;  %v374_v21 = vld [vmem:[%s1848_s25 + $0x50] sm:$0xff]  ;;  %371 = vst [vmem:[%s1853_s6 + $0x18] sm:$0xff] %v370_v19 }
  0x47   : > { %373 = vst [vmem:[%s1853_s6 + $0x20] sm:$0xff] %v372_v20  ;;  %375 = vst [vmem:[%s1853_s6 + $0x28] sm:$0xff] %v374_v21  ;;  %v376_v22 = vld [vmem:[%s1848_s25 + $0x60] sm:$0xff]  ;;  %v378_v23 = vld [vmem:[%s1848_s25 + $0x70] sm:$0xff] }
  0x48   : > { %v380_v24 = vld [vmem:[%s1848_s25 + $0x80] sm:$0xff]  ;;  %377 = vst [vmem:[%s1853_s6 + $0x30] sm:$0xff] %v376_v22  ;;  %379 = vst [vmem:[%s1853_s6 + $0x38] sm:$0xff] %v378_v23  ;;  %v382_v25 = vld [vmem:[%s1848_s25 + $0x90] sm:$0xff] }
  0x49   : > { %381 = vst [vmem:[%s1853_s6 + $0x40] sm:$0xff] %v380_v24  ;;  %v384_v26 = vld [vmem:[%s1848_s25 + $0xa0] sm:$0xff]  ;;  %v386_v27 = vld [vmem:[%s1848_s25 + $0xb0] sm:$0xff]  ;;  %383 = vst [vmem:[%s1853_s6 + $0x48] sm:$0xff] %v382_v25 }
  0x4a   : > { %385 = vst [vmem:[%s1853_s6 + $0x50] sm:$0xff] %v384_v26  ;;  %387 = vst [vmem:[%s1853_s6 + $0x58] sm:$0xff] %v386_v27  ;;  %v388_v28 = vld [vmem:[%s1848_s25 + $0xc0] sm:$0xff]  ;;  %v390_v29 = vld [vmem:[%s1848_s25 + $0xd0] sm:$0xff] }
  0x4b   : > { %v392_v30 = vld [vmem:[%s1848_s25 + $0xe0] sm:$0xff]  ;;  %389 = vst [vmem:[%s1853_s6 + $0x60] sm:$0xff] %v388_v28  ;;  %391 = vst [vmem:[%s1853_s6 + $0x68] sm:$0xff] %v390_v29  ;;  %v394_v31 = vld [vmem:[%s1848_s25 + $0xf0] sm:$0xff] }
  0x4c   : > { %393 = vst [vmem:[%s1853_s6 + $0x70] sm:$0xff] %v392_v30  ;;  %v396_v32 = vld [vmem:[%s1848_s25 + $0x100] sm:$0xff]  ;;  %v398_v33 = vld [vmem:[%s1848_s25 + $0x110] sm:$0xff]  ;;  %395 = vst [vmem:[%s1853_s6 + $0x78] sm:$0xff] %v394_v31 }
  0x4d   : > { %397 = vst [vmem:[%s1853_s6 + $0x80] sm:$0xff] %v396_v32  ;;  %399 = vst [vmem:[%s1853_s6 + $0x88] sm:$0xff] %v398_v33  ;;  %v400_v34 = vld [vmem:[%s1848_s25 + $0x120] sm:$0xff]  ;;  %v402_v35 = vld [vmem:[%s1848_s25 + $0x130] sm:$0xff] }
  0x4e   : > { %v404_v36 = vld [vmem:[%s1848_s25 + $0x140] sm:$0xff]  ;;  %401 = vst [vmem:[%s1853_s6 + $0x90] sm:$0xff] %v400_v34  ;;  %403 = vst [vmem:[%s1853_s6 + $0x98] sm:$0xff] %v402_v35  ;;  %v406_v37 = vld [vmem:[%s1848_s25 + $0x150] sm:$0xff] }
  0x4f   : > { %405 = vst [vmem:[%s1853_s6 + $0xa0] sm:$0xff] %v404_v36  ;;  %v408_v38 = vld [vmem:[%s1848_s25 + $0x160] sm:$0xff]  ;;  %v410_v39 = vld [vmem:[%s1848_s25 + $0x170] sm:$0xff]  ;;  %407 = vst [vmem:[%s1853_s6 + $0xa8] sm:$0xff] %v406_v37 }
  0x50   : > { %409 = vst [vmem:[%s1853_s6 + $0xb0] sm:$0xff] %v408_v38  ;;  %411 = vst [vmem:[%s1853_s6 + $0xb8] sm:$0xff] %v410_v39  ;;  %v412_v40 = vld [vmem:[%s1848_s25 + $0x180] sm:$0xff]  ;;  %v414_v41 = vld [vmem:[%s1848_s25 + $0x190] sm:$0xff] }
  0x51   : > { %v416_v42 = vld [vmem:[%s1848_s25 + $0x1a0] sm:$0xff]  ;;  %413 = vst [vmem:[%s1853_s6 + $0xc0] sm:$0xff] %v412_v40  ;;  %415 = vst [vmem:[%s1853_s6 + $0xc8] sm:$0xff] %v414_v41  ;;  %v418_v43 = vld [vmem:[%s1848_s25 + $0x1b0] sm:$0xff] }
  0x52   : > { %417 = vst [vmem:[%s1853_s6 + $0xd0] sm:$0xff] %v416_v42  ;;  %v420_v44 = vld [vmem:[%s1848_s25 + $0x1c0] sm:$0xff]  ;;  %v422_v45 = vld [vmem:[%s1848_s25 + $0x1d0] sm:$0xff]  ;;  %419 = vst [vmem:[%s1853_s6 + $0xd8] sm:$0xff] %v418_v43 }
  0x53   : > { %421 = vst [vmem:[%s1853_s6 + $0xe0] sm:$0xff] %v420_v44  ;;  %423 = vst [vmem:[%s1853_s6 + $0xe8] sm:$0xff] %v422_v45  ;;  %v424_v46 = vld [vmem:[%s1848_s25 + $0x1e0] sm:$0xff]  ;;  %v426_v47 = vld [vmem:[%s1848_s25 + $0x1f0] sm:$0xff] }
  0x54   : > { %425 = vst [vmem:[%s1853_s6 + $0xf0] sm:$0xff] %v424_v46  ;;  %427 = vst [vmem:[%s1853_s6 + $0xf8] sm:$0xff] %v426_v47 }
  0x55 PF: > { %p1351_p0 = scmp.ge.s32.totalorder %s1693_s22, 1  ;;  %p440_p1 = scmp.lt.s32.totalorder %s1693_s22, 73 }
  0x57   : > { %p441_p2 = pnand %p1351_p0, %p440_p1 }
  0x58   : > { %s447_s0 = sand.u32 (!%p441_p2), 1, %s1669_s16   ;;  %s454_s5 = sand.u32 (!%p441_p2), 1, %s1661_s14  }
  0x59   : > { %444 = sbr.rel (%p441_p2) target bundleno = 451 (0x1c3), region = 100  ;;  %s1352_s23 = sshll.u32 (!%p441_p2), %s447_s0, 7 }
  0x5a   : > { %s1353_s28 = sshll.u32 (!%p441_p2), %s454_s5, 8  ;;  %s481_s7 = sand.u32 (!%p441_p2), 1, %s1653_s12  }
  0x5b   : > { %s1355_s25 = sshll.u32 (!%p441_p2), %s1681_s19, 1  ;;  %s1354_s11 = sshll.u32 (!%p441_p2), %s481_s7, 8 }
  0x5c   : > { %p489_p3 = scmp.lt.s32.totalorder (!%p441_p2), %s1355_s25, 3  ;;  %s1928_s4 = scalar_lea.vmem (!%p441_p2), [#allocation3], %s1352_s23 }
  0x5d   : > { %s1930_s6 = scalar_lea.vmem (!%p441_p2), [#allocation4], %s1353_s28  ;;  %s1932_s1 = scalar_lea.vmem (!%p441_p2), [#allocation5], %s1354_s11 }
  0x5e   : > { %p1356_p4 = scmp.ne.s32.totalorder (!%p441_p2), %s1677_s18, 0 }
  0x60   : > { %s2193_s25 = smov (!%p489_p3, %s1355_s25), 3  ;;  %498 = sbr.rel (%p1356_p4) target bundleno = 114 (0x72), region = 112 }
  0x61   : > { %s491_s29 = scalar_lea.vmem %s2164_s2, %s2193_s25  ;;  %v1695_v48 = vmov (!%p1356_p4), 0.0  }
  0x62   : > { %499 = vst [vmem:[#allocation2] sm:$0xff] (!%p1356_p4), %v1695_v48  ;;  %500 = vst [vmem:[#allocation2 + $0x8] sm:$0xff] (!%p1356_p4), %v1695_v48 }
  0x63   : > { %501 = vst [vmem:[#allocation2 + $0x10] sm:$0xff] (!%p1356_p4), %v1695_v48  ;;  %502 = vst [vmem:[#allocation2 + $0x18] sm:$0xff] (!%p1356_p4), %v1695_v48 }
  0x64   : > { %503 = vst [vmem:[#allocation2 + $0x20] sm:$0xff] (!%p1356_p4), %v1695_v48  ;;  %504 = vst [vmem:[#allocation2 + $0x28] sm:$0xff] (!%p1356_p4), %v1695_v48 }
  0x65   : > { %505 = vst [vmem:[#allocation2 + $0x30] sm:$0xff] (!%p1356_p4), %v1695_v48  ;;  %506 = vst [vmem:[#allocation2 + $0x38] sm:$0xff] (!%p1356_p4), %v1695_v48 }
  0x66   : > { %507 = vst [vmem:[#allocation2 + $0x40] sm:$0xff] (!%p1356_p4), %v1695_v48  ;;  %508 = vst [vmem:[#allocation2 + $0x48] sm:$0xff] (!%p1356_p4), %v1695_v48 }
  0x67   : > { %509 = vst [vmem:[#allocation2 + $0x50] sm:$0xff] %v1695_v48  ;;  %510 = vst [vmem:[#allocation2 + $0x58] sm:$0xff] %v1695_v48 }
  0x68   : > { %511 = vst [vmem:[#allocation2 + $0x60] sm:$0xff] %v1695_v48  ;;  %512 = vst [vmem:[#allocation2 + $0x68] sm:$0xff] %v1695_v48 }
  0x69   : > { %513 = vst [vmem:[#allocation2 + $0x70] sm:$0xff] %v1695_v48  ;;  %514 = vst [vmem:[#allocation2 + $0x78] sm:$0xff] %v1695_v48 }
  0x6a   : > { %515 = vst [vmem:[#allocation2 + $0x80] sm:$0xff] %v1695_v48  ;;  %516 = vst [vmem:[#allocation2 + $0x88] sm:$0xff] %v1695_v48 }
  0x6b   : > { %517 = vst [vmem:[#allocation2 + $0x90] sm:$0xff] %v1695_v48  ;;  %518 = vst [vmem:[#allocation2 + $0x98] sm:$0xff] %v1695_v48 }
  0x6c   : > { %519 = vst [vmem:[#allocation2 + $0xa0] sm:$0xff] %v1695_v48  ;;  %520 = vst [vmem:[#allocation2 + $0xa8] sm:$0xff] %v1695_v48 }
  0x6d   : > { %521 = vst [vmem:[#allocation2 + $0xb0] sm:$0xff] %v1695_v48  ;;  %522 = vst [vmem:[#allocation2 + $0xb8] sm:$0xff] %v1695_v48 }
  0x6e   : > { %523 = vst [vmem:[#allocation2 + $0xc0] sm:$0xff] %v1695_v48  ;;  %524 = vst [vmem:[#allocation2 + $0xc8] sm:$0xff] %v1695_v48 }
  0x6f   : > { %525 = vst [vmem:[#allocation2 + $0xd0] sm:$0xff] %v1695_v48  ;;  %526 = vst [vmem:[#allocation2 + $0xd8] sm:$0xff] %v1695_v48 }
  0x70   : > { %527 = vst [vmem:[#allocation2 + $0xe0] sm:$0xff] %v1695_v48  ;;  %528 = vst [vmem:[#allocation2 + $0xe8] sm:$0xff] %v1695_v48 }
  0x71   : > { %529 = vst [vmem:[#allocation2 + $0xf0] sm:$0xff] %v1695_v48  ;;  %530 = vst [vmem:[#allocation2 + $0xf8] sm:$0xff] %v1695_v48 }
  0x72 PF: > { %v1535_v49 = vld [vmem:[%s1930_s6 + $0x4] ss:$8 sps:$4 sm:$0xff]   ;;  %v1537_v50 = vld [vmem:[%s1930_s6] ss:$8 sps:$4 sm:$0xff]   ;;  %v1538_v51 = vld [vmem:[%s1930_s6 + $0x14] ss:$8 sps:$4 sm:$0xff]  }
  0x73   : > { %851 = vmatprep.subr.bf16.mxu0 %v1535_v49  ;;  %1414 = vmatprep.subr.bf16.mxu1 %v1535_v49  ;;  %v1540_v52 = vld [vmem:[%s1930_s6 + $0x10] ss:$8 sps:$4 sm:$0xff]   ;;  %v1541_v53 = vld [vmem:[%s1930_s6 + $0x24] ss:$8 sps:$4 sm:$0xff]   ;;  %v1543_v54 = vld [vmem:[%s1930_s6 + $0x20] ss:$8 sps:$4 sm:$0xff]  }
  0x74   : > { %852 = vmatpush1.bf16.msra.mxu0 %v1537_v50  ;;  %1430 = vmatpush1.bf16.msra.mxu1 %v1537_v50  ;;  %v1544_v55 = vld [vmem:[%s1930_s6 + $0x34] ss:$8 sps:$4 sm:$0xff]   ;;  %v1546_v56 = vld [vmem:[%s1930_s6 + $0x30] ss:$8 sps:$4 sm:$0xff]   ;;  %v1547_v57 = vld [vmem:[%s1930_s6 + $0x44] ss:$8 sps:$4 sm:$0xff]  }
  0x75   : > { %853 = vmatprep.subr.bf16.mxu0 %v1538_v51  ;;  %1415 = vmatprep.subr.bf16.mxu1 %v1538_v51  ;;  %v1549_v58 = vld [vmem:[%s1930_s6 + $0x40] ss:$8 sps:$4 sm:$0xff]   ;;  %v1550_v59 = vld [vmem:[%s1930_s6 + $0x54] ss:$8 sps:$4 sm:$0xff]   ;;  %v1552_v60 = vld [vmem:[%s1930_s6 + $0x50] ss:$8 sps:$4 sm:$0xff]  }
  0x76   : > { %v1553_v61 = vld [vmem:[%s1930_s6 + $0x64] ss:$8 sps:$4 sm:$0xff]   ;;  %v1555_v63 = vld [vmem:[%s1930_s6 + $0x60] ss:$8 sps:$4 sm:$0xff]   ;;  %v1556_v1 = vld [vmem:[%s1930_s6 + $0x74] ss:$8 sps:$4 sm:$0xff]  }
  0x77   : > { %v1585_v62 = vld [vmem:[%s1928_s4 + $0x4] ss:$8 sps:$4 sm:$0xff]   ;;  %v1558_v2 = vld [vmem:[%s1930_s6 + $0x70] ss:$8 sps:$4 sm:$0xff]   ;;  %v1561_v4 = vld [vmem:[%s1930_s6 + $0x80] ss:$8 sps:$4 sm:$0xff]  }
  0x78   : > { %854 = vmatpush1.bf16.msra.mxu0 %v1540_v52  ;;  %1431 = vmatpush1.bf16.msra.mxu1 %v1540_v52  ;;  %v1588_v0 = vld [vmem:[%s1928_s4 + $0x44] ss:$8 sps:$4 sm:$0xff]   ;;  %v1562_v5 = vld [vmem:[%s1930_s6 + $0x94] ss:$8 sps:$4 sm:$0xff]   ;;  %v1564_v6 = vld [vmem:[%s1930_s6 + $0x90] ss:$8 sps:$4 sm:$0xff]  }
  0x79   : > { %855 = vmatprep.subr.bf16.mxu0 %v1541_v53  ;;  %1416 = vmatprep.subr.bf16.mxu1 %v1541_v53  ;;  %v1559_v3 = vld [vmem:[%s1930_s6 + $0x84] ss:$8 sps:$4 sm:$0xff]   ;;  %v1567_v8 = vld [vmem:[%s1930_s6 + $0xa0] ss:$8 sps:$4 sm:$0xff]   ;;  %v1568_v9 = vld [vmem:[%s1930_s6 + $0xb4] ss:$8 sps:$4 sm:$0xff]  }
  0x7a   : > { %883 = vmatprep.mubr.bf16.mxu0 %v1585_v62  ;;  %923 = vmatprep.mubr.bf16.mxu1 %v1588_v0  ;;  %v1565_v7 = vld [vmem:[%s1930_s6 + $0xa4] ss:$8 sps:$4 sm:$0xff]   ;;  %v1570_v10 = vld [vmem:[%s1930_s6 + $0xb0] ss:$8 sps:$4 sm:$0xff]   ;;  %v1573_v12 = vld [vmem:[%s1930_s6 + $0xc0] ss:$8 sps:$4 sm:$0xff]  }
  0x7b   : > { %v1571_v11 = vld [vmem:[%s1930_s6 + $0xc4] ss:$8 sps:$4 sm:$0xff]   ;;  %v1574_v13 = vld [vmem:[%s1930_s6 + $0xd4] ss:$8 sps:$4 sm:$0xff]   ;;  %v1576_v14 = vld [vmem:[%s1930_s6 + $0xd0] ss:$8 sps:$4 sm:$0xff]  }
  0x7c   : > { %856 = vmatpush1.bf16.msra.mxu0 %v1543_v54  ;;  %1432 = vmatpush1.bf16.msra.mxu1 %v1543_v54  ;;  %v1577_v15 = vld [vmem:[%s1930_s6 + $0xe4] ss:$8 sps:$4 sm:$0xff]   ;;  %v1579_v16 = vld [vmem:[%s1930_s6 + $0xe0] ss:$8 sps:$4 sm:$0xff]   ;;  %v1580_v17 = vld [vmem:[%s1930_s6 + $0xf4] ss:$8 sps:$4 sm:$0xff]  }
  0x7d   : > { %857 = vmatprep.subr.bf16.mxu0 %v1544_v55  ;;  %1417 = vmatprep.subr.bf16.mxu1 %v1544_v55  ;;  %v1582_v18 = vld [vmem:[%s1930_s6 + $0xf0] ss:$8 sps:$4 sm:$0xff]   ;;  %v1583_v19 = vld [vmem:[%s1928_s4] ss:$8 sps:$4 sm:$0xff]   ;;  %v1589_v21 = vld [vmem:[%s1928_s4 + $0x14] ss:$8 sps:$4 sm:$0xff]  }
  0x7e   : > { %v1586_v20 = vld [vmem:[%s1928_s4 + $0x40] ss:$8 sps:$4 sm:$0xff]   ;;  %v1591_v22 = vld [vmem:[%s1928_s4 + $0x54] ss:$8 sps:$4 sm:$0xff]   ;;  %v1593_v23 = vld [vmem:[%s1928_s4 + $0x10] ss:$8 sps:$4 sm:$0xff]  }
  0x7f   : > { %v1594_v24 = vld [vmem:[%s1928_s4 + $0x50] ss:$8 sps:$4 sm:$0xff]   ;;  %v1595_v25 = vld [vmem:[%s1928_s4 + $0x24] ss:$8 sps:$4 sm:$0xff]   ;;  %v1599_v27 = vld [vmem:[%s1928_s4 + $0x20] ss:$8 sps:$4 sm:$0xff]  }
  0x80   : > { %858 = vmatpush1.bf16.msra.mxu0 %v1546_v56  ;;  %1433 = vmatpush1.bf16.msra.mxu1 %v1546_v56  ;;  %v1597_v26 = vld [vmem:[%s1928_s4 + $0x64] ss:$8 sps:$4 sm:$0xff]   ;;  %v1600_v28 = vld [vmem:[%s1928_s4 + $0x60] ss:$8 sps:$4 sm:$0xff]   ;;  %v1601_v29 = vld [vmem:[%s1928_s4 + $0x34] ss:$8 sps:$4 sm:$0xff]  }
  0x81   : > { %859 = vmatprep.subr.bf16.mxu0 %v1547_v57  ;;  %1418 = vmatprep.subr.bf16.mxu1 %v1547_v57  ;;  %v1603_v30 = vld [vmem:[%s1928_s4 + $0x74] ss:$8 sps:$4 sm:$0xff]   ;;  %v1605_v31 = vld [vmem:[%s1928_s4 + $0x30] ss:$8 sps:$4 sm:$0xff]   ;;  %v531_v33 = vld [vmem:[#allocation2] sm:$0xff]  ;;  %p1405_p5 = scmp.ne.s32.totalorder %s1677_s18, 35 }
  0x82   : > { %v1606_v32 = vld [vmem:[%s1928_s4 + $0x70] ss:$8 sps:$4 sm:$0xff]   ;;  %v547_v34 = vld [vmem:[#allocation2 + $0x80] sm:$0xff]  ;;  %v532_v35 = vld [vmem:[#allocation2 + $0x8] sm:$0xff] }
  0x83   : > { %v548_v36 = vld [vmem:[#allocation2 + $0x88] sm:$0xff]  ;;  %v533_v39 = vld [vmem:[#allocation2 + $0x10] sm:$0xff]  ;;  %v534_v45 = vld [vmem:[#allocation2 + $0x18] sm:$0xff] }
  0x84   : > { %860 = vmatpush1.bf16.msra.mxu0 %v1549_v58  ;;  %1434 = vmatpush1.bf16.msra.mxu1 %v1549_v58  ;;  %v549_v40 = vld [vmem:[#allocation2 + $0x90] sm:$0xff]  ;;  %v550_v46 = vld [vmem:[#allocation2 + $0x98] sm:$0xff]  ;;  %v535_v57 = vld [vmem:[#allocation2 + $0x20] sm:$0xff] }
  0x85   : > { %861 = vmatprep.subr.bf16.mxu0 %v1550_v59  ;;  %1419 = vmatprep.subr.bf16.mxu1 %v1550_v59  ;;  %v551_v58 = vld [vmem:[#allocation2 + $0xa0] sm:$0xff]  ;;  %v536_v59 = vld [vmem:[#allocation2 + $0x28] sm:$0xff]  ;;  %v553_v0 = vld [vmem:[#allocation2 + $0xb0] sm:$0xff] }
  0x88   : > { %862 = vmatpush1.bf16.msra.mxu0 %v1552_v60  ;;  %1435 = vmatpush1.bf16.msra.mxu1 %v1552_v60  ;;  %v552_v60 = vld [vmem:[#allocation2 + $0xa8] sm:$0xff] }
  0x89   : > { %863 = vmatprep.subr.bf16.mxu0 %v1553_v61  ;;  %1420 = vmatprep.subr.bf16.mxu1 %v1553_v61 }
  0x8c   : > { %864 = vmatpush1.bf16.msra.mxu0 %v1555_v63  ;;  %1436 = vmatpush1.bf16.msra.mxu1 %v1555_v63  ;;  %v537_v63 = vld [vmem:[#allocation2 + $0x30] sm:$0xff] }
  0x8d   : > { %865 = vmatprep.subr.bf16.mxu0 %v1556_v1  ;;  %1421 = vmatprep.subr.bf16.mxu1 %v1556_v1 }
  0x90   : > { %866 = vmatpush1.bf16.msra.mxu0 %v1558_v2  ;;  %1437 = vmatpush1.bf16.msra.mxu1 %v1558_v2 }
  0x91   : > { %867 = vmatprep.subr.bf16.mxu0 %v1559_v3  ;;  %1422 = vmatprep.subr.bf16.mxu1 %v1559_v3 }
  0x94   : > { %868 = vmatpush1.bf16.msra.mxu0 %v1561_v4  ;;  %1438 = vmatpush1.bf16.msra.mxu1 %v1561_v4 }
  0x95   : > { %869 = vmatprep.subr.bf16.mxu0 %v1562_v5  ;;  %1423 = vmatprep.subr.bf16.mxu1 %v1562_v5  ;;  %v538_v5 = vld [vmem:[#allocation2 + $0x38] sm:$0xff] }
  0x98   : > { %870 = vmatpush1.bf16.msra.mxu0 %v1564_v6  ;;  %1439 = vmatpush1.bf16.msra.mxu1 %v1564_v6  ;;  %v554_v6 = vld [vmem:[#allocation2 + $0xb8] sm:$0xff] }
  0x99   : > { %871 = vmatprep.subr.bf16.mxu0 %v1565_v7  ;;  %1424 = vmatprep.subr.bf16.mxu1 %v1565_v7 }
  0x9c   : > { %872 = vmatpush1.bf16.msra.mxu0 %v1567_v8  ;;  %1440 = vmatpush1.bf16.msra.mxu1 %v1567_v8 }
  0x9d   : > { %873 = vmatprep.subr.bf16.mxu0 %v1568_v9  ;;  %1425 = vmatprep.subr.bf16.mxu1 %v1568_v9 }
  0xa0   : > { %874 = vmatpush1.bf16.msra.mxu0 %v1570_v10  ;;  %1441 = vmatpush1.bf16.msra.mxu1 %v1570_v10 }
  0xa1   : > { %875 = vmatprep.subr.bf16.mxu0 %v1571_v11  ;;  %1426 = vmatprep.subr.bf16.mxu1 %v1571_v11 }
  0xa4   : > { %876 = vmatpush1.bf16.msra.mxu0 %v1573_v12  ;;  %1442 = vmatpush1.bf16.msra.mxu1 %v1573_v12 }
  0xa5   : > { %877 = vmatprep.subr.bf16.mxu0 %v1574_v13  ;;  %1427 = vmatprep.subr.bf16.mxu1 %v1574_v13 }
  0xa8   : > { %878 = vmatpush1.bf16.msra.mxu0 %v1576_v14  ;;  %1443 = vmatpush1.bf16.msra.mxu1 %v1576_v14 }
  0xa9   : > { %879 = vmatprep.subr.bf16.mxu0 %v1577_v15  ;;  %1428 = vmatprep.subr.bf16.mxu1 %v1577_v15 }
  0xac   : > { %880 = vmatpush1.bf16.msra.mxu0 %v1579_v16  ;;  %1444 = vmatpush1.bf16.msra.mxu1 %v1579_v16 }
  0xad   : > { %881 = vmatprep.subr.bf16.mxu0 %v1580_v17  ;;  %1429 = vmatprep.subr.bf16.mxu1 %v1580_v17  ;;  %v539_v17 = vld [vmem:[#allocation2 + $0x40] sm:$0xff] }
  0xb0   : > { %882 = vmatpush1.bf16.msra.mxu0 %v1582_v18  ;;  %1445 = vmatpush1.bf16.msra.mxu1 %v1582_v18  ;;  %v555_v18 = vld [vmem:[#allocation2 + $0xc0] sm:$0xff] }
  0xb3   : > { %884 = vmatmul.mubr.bf16.vlgmr.msra.gmra.mrb[0].mxu0 %v1583_v19  ;;  %924 = vmatmul.mubr.bf16.vlgmr.msra.gmra.mrb[0].mxu1 %v1586_v20  ;;  %v540_v19 = vld [vmem:[#allocation2 + $0x48] sm:$0xff] }
  0xb4   : > { %893 = vmatprep.mubr.bf16.mxu0 %v1589_v21  ;;  %933 = vmatprep.mubr.bf16.mxu1 %v1591_v22  ;;  %v556_v20 = vld [vmem:[#allocation2 + $0xc8] sm:$0xff] }
  0xbb   : > { %894 = vmatmul.mubr.bf16.gmra.mrb[4].mxu0 %v1593_v23  ;;  %934 = vmatmul.mubr.bf16.gmra.mrb[4].mxu1 %v1594_v24  ;;  %v541_v23 = vld [vmem:[#allocation2 + $0x50] sm:$0xff] }
  0xbc   : > { %903 = vmatprep.mubr.bf16.mxu0 %v1595_v25  ;;  %943 = vmatprep.mubr.bf16.mxu1 %v1597_v26  ;;  %v557_v24 = vld [vmem:[#allocation2 + $0xd0] sm:$0xff] }
  0xc3   : > { %904 = vmatmul.mubr.bf16.gmra.mrb[8].mxu0 %v1599_v27  ;;  %944 = vmatmul.mubr.bf16.gmra.mrb[8].mxu1 %v1600_v28 }
  0xc4   : > { %913 = vmatprep.mubr.bf16.mxu0 %v1601_v29  ;;  %953 = vmatprep.mubr.bf16.mxu1 %v1603_v30  ;;  %v542_v29 = vld [vmem:[#allocation2 + $0x58] sm:$0xff] }
  0xc5   : > { %v558_v30 = vld [vmem:[#allocation2 + $0xd8] sm:$0xff] }
  0xcb   : > { %914 = vmatmul.mubr.bf16.gmra.mrb[12].mxu0 %v1605_v31  ;;  %954 = vmatmul.mubr.bf16.gmra.mrb[12].mxu1 %v1606_v32 }
 0x186   : > { %v885_v37 = vpop.f32.mrb[0].mxu0  ;;  %v925_v38 = vpop.f32.mrb[0].mxu1 }
 0x187   : > { %v964_v41 = vadd.f32 %v885_v37, %v531_v33  ;;  %v980_v42 = vadd.f32 %v925_v38, %v547_v34  ;;  %v887_v43 = vpop.f32.mrb[1].mxu0  ;;  %v927_v44 = vpop.f32.mrb[1].mxu1 }
 0x188   : > { %v965_v47 = vadd.f32 %v887_v43, %v532_v35  ;;  %v981_v48 = vadd.f32 %v927_v44, %v548_v36  ;;  %v889_v49 = vpop.f32.mrb[2].mxu0  ;;  %v929_v50 = vpop.f32.mrb[2].mxu1  ;;  %v544_v43 = vld [vmem:[#allocation2 + $0x68] sm:$0xff] }
 0x189   : > { %996 = vst [vmem:[#allocation2] sm:$0xff] %v964_v41  ;;  %1012 = vst [vmem:[#allocation2 + $0x80] sm:$0xff] %v980_v42  ;;  %v966_v51 = vadd.f32 %v889_v49, %v533_v39  ;;  %v982_v52 = vadd.f32 %v929_v50, %v549_v40  ;;  %v891_v53 = vpop.f32.mrb[3].mxu0  ;;  %v931_v54 = vpop.f32.mrb[3].mxu1  ;;  %v543_v41 = vld [vmem:[#allocation2 + $0x60] sm:$0xff]  ;;  %v560_v44 = vld [vmem:[#allocation2 + $0xe8] sm:$0xff] }
 0x18a   : > { %997 = vst [vmem:[#allocation2 + $0x8] sm:$0xff] %v965_v47  ;;  %1013 = vst [vmem:[#allocation2 + $0x88] sm:$0xff] %v981_v48  ;;  %v967_v55 = vadd.f32 %v891_v53, %v534_v45  ;;  %v983_v56 = vadd.f32 %v931_v54, %v550_v46  ;;  %v559_v42 = vld [vmem:[#allocation2 + $0xe0] sm:$0xff]  ;;  %v545_v47 = vld [vmem:[#allocation2 + $0x70] sm:$0xff] }
 0x18b   : > { %998 = vst [vmem:[#allocation2 + $0x10] sm:$0xff] %v966_v51  ;;  %1014 = vst [vmem:[#allocation2 + $0x90] sm:$0xff] %v982_v52  ;;  %v561_v48 = vld [vmem:[#allocation2 + $0xf0] sm:$0xff]  ;;  %v546_v53 = vld [vmem:[#allocation2 + $0x78] sm:$0xff] }
 0x18c   : > { %999 = vst [vmem:[#allocation2 + $0x18] sm:$0xff] %v967_v55  ;;  %1015 = vst [vmem:[#allocation2 + $0x98] sm:$0xff] %v983_v56  ;;  %v562_v54 = vld [vmem:[#allocation2 + $0xf8] sm:$0xff] }
 0x18e   : > { %v895_v61 = vpop.f32.mrb[4].mxu0  ;;  %v935_v62 = vpop.f32.mrb[4].mxu1 }
 0x18f   : > { %v968_v1 = vadd.f32 %v895_v61, %v535_v57  ;;  %v984_v2 = vadd.f32 %v935_v62, %v551_v58  ;;  %v897_v3 = vpop.f32.mrb[5].mxu0  ;;  %v937_v4 = vpop.f32.mrb[5].mxu1 }
 0x190   : > { %v969_v7 = vadd.f32 %v897_v3, %v536_v59  ;;  %v985_v8 = vadd.f32 %v937_v4, %v552_v60  ;;  %v899_v9 = vpop.f32.mrb[6].mxu0  ;;  %v939_v10 = vpop.f32.mrb[6].mxu1  ;;  %v1032_v4 = vld [vmem:[#allocation2] sm:$0xff] (!%p1405_p5) }
 0x191   : > { %1000 = vst [vmem:[#allocation2 + $0x20] sm:$0xff] %v968_v1  ;;  %1016 = vst [vmem:[#allocation2 + $0xa0] sm:$0xff] %v984_v2  ;;  %v970_v11 = vadd.f32 %v899_v9, %v537_v63  ;;  %v986_v12 = vadd.f32 %v939_v10, %v553_v0  ;;  %v901_v13 = vpop.f32.mrb[7].mxu0  ;;  %v941_v14 = vpop.f32.mrb[7].mxu1  ;;  %v1066_v1 = vlaneseq (!%p1405_p5)  ;;  %v1064_v2 = vld [vmem:[%s491_s29] sm:$0x3] (!%p1405_p5) }
 0x192   : > { %1001 = vst [vmem:[#allocation2 + $0x28] sm:$0xff] %v969_v7  ;;  %1017 = vst [vmem:[#allocation2 + $0xa8] sm:$0xff] %v985_v8  ;;  %v971_v15 = vadd.f32 %v901_v13, %v538_v5  ;;  %v987_v16 = vadd.f32 %v941_v14, %v554_v6  ;;  %v1033_v5 = vld [vmem:[#allocation2 + $0x8] sm:$0xff] (!%p1405_p5)  ;;  %v1034_v6 = vld [vmem:[#allocation2 + $0x10] sm:$0xff] (!%p1405_p5) }
 0x193   : > { %1002 = vst [vmem:[#allocation2 + $0x30] sm:$0xff] %v970_v11  ;;  %1018 = vst [vmem:[#allocation2 + $0xb0] sm:$0xff] %v986_v12  ;;  %v1067_v3 = vshrl.u32 (!%p1405_p5), %v1066_v1, 7  ;;  %v1035_v7 = vld [vmem:[#allocation2 + $0x18] sm:$0xff] (!%p1405_p5) }
 0x194   : > { %1003 = vst [vmem:[#allocation2 + $0x38] sm:$0xff] %v971_v15  ;;  %1019 = vst [vmem:[#allocation2 + $0xb8] sm:$0xff] %v987_v16 }
 0x195   : > { %v1068_v8 = vsub.s32 (!%p1405_p5), 0, %v1067_v3  ;;  %v1072_v9 = vsub.s32 (!%p1405_p5), 1, %v1067_v3 }
 0x196   : > { %v905_v21 = vpop.f32.mrb[8].mxu0  ;;  %v945_v22 = vpop.f32.mrb[8].mxu1 }
 0x197   : > { %v972_v25 = vadd.f32 %v905_v21, %v539_v17  ;;  %v988_v26 = vadd.f32 %v945_v22, %v555_v18  ;;  %v907_v27 = vpop.f32.mrb[9].mxu0  ;;  %v947_v28 = vpop.f32.mrb[9].mxu1  ;;  %v1989_v17 = vrot.slane (!%p1405_p5), %v1064_v2, %v1068_v8  ;;  %v1991_v18 = vrot.slane (!%p1405_p5), %v1064_v2, %v1072_v9 }
 0x198   : > { %v973_v31 = vadd.f32 %v907_v27, %v540_v19  ;;  %v989_v32 = vadd.f32 %v947_v28, %v556_v20  ;;  %v909_v33 = vpop.f32.mrb[10].mxu0  ;;  %v949_v34 = vpop.f32.mrb[10].mxu1  ;;  %v1036_v10 = vld [vmem:[#allocation2 + $0x20] sm:$0xff] (!%p1405_p5) }
 0x199   : > { %1004 = vst [vmem:[#allocation2 + $0x40] sm:$0xff] %v972_v25  ;;  %1020 = vst [vmem:[#allocation2 + $0xc0] sm:$0xff] %v988_v26  ;;  %v974_v35 = vadd.f32 %v909_v33, %v541_v23  ;;  %v990_v36 = vadd.f32 %v949_v34, %v557_v24  ;;  %v911_v37 = vpop.f32.mrb[11].mxu0  ;;  %v951_v38 = vpop.f32.mrb[11].mxu1  ;;  %v1037_v11 = vld [vmem:[#allocation2 + $0x28] sm:$0xff] (!%p1405_p5)  ;;  %v1048_v24 = vld [vmem:[#allocation2 + $0x80] sm:$0xff] (!%p1405_p5)  ;;  %v1076_v25 = vadd.f32 (!%p1405_p5), %v1989_v17, %v1032_v4 }
 0x19a   : > { %1005 = vst [vmem:[#allocation2 + $0x48] sm:$0xff] %v973_v31  ;;  %1021 = vst [vmem:[#allocation2 + $0xc8] sm:$0xff] %v989_v32  ;;  %v975_v39 = vadd.f32 %v911_v37, %v542_v29  ;;  %v991_v40 = vadd.f32 %v951_v38, %v558_v30  ;;  %v1038_v12 = vld [vmem:[#allocation2 + $0x30] sm:$0xff] (!%p1405_p5)  ;;  %v1077_v26 = vadd.f32 (!%p1405_p5), %v1991_v18, %v1033_v5  ;;  %v1049_v29 = vld [vmem:[#allocation2 + $0x88] sm:$0xff] (!%p1405_p5) }
 0x19b   : > { %1006 = vst [vmem:[#allocation2 + $0x50] sm:$0xff] %v974_v35  ;;  %1022 = vst [vmem:[#allocation2 + $0xd0] sm:$0xff] %v990_v36  ;;  %v1039_v13 = vld [vmem:[#allocation2 + $0x38] sm:$0xff] (!%p1405_p5)  ;;  %v1078_v27 = vadd.f32 (!%p1405_p5), %v1989_v17, %v1034_v6  ;;  %v1079_v28 = vadd.f32 (!%p1405_p5), %v1991_v18, %v1035_v7  ;;  %v1050_v30 = vld [vmem:[#allocation2 + $0x90] sm:$0xff] (!%p1405_p5)  ;;  %v1080_v32 = vadd.f32 (!%p1405_p5), %v1989_v17, %v1036_v10 }
 0x19c   : > { %1007 = vst [vmem:[#allocation2 + $0x58] sm:$0xff] %v975_v39  ;;  %1023 = vst [vmem:[#allocation2 + $0xd8] sm:$0xff] %v991_v40  ;;  %v1051_v31 = vld [vmem:[#allocation2 + $0x98] sm:$0xff] (!%p1405_p5)  ;;  %v1081_v33 = vadd.f32 (!%p1405_p5), %v1991_v18, %v1037_v11  ;;  %v1082_v34 = vadd.f32 (!%p1405_p5), %v1989_v17, %v1038_v12  ;;  %v1083_v35 = vadd.f32 (!%p1405_p5), %v1991_v18, %v1039_v13  ;;  %v1052_v36 = vld [vmem:[#allocation2 + $0xa0] sm:$0xff] (!%p1405_p5) }
 0x19d   : > { %v1053_v37 = vld [vmem:[#allocation2 + $0xa8] sm:$0xff] (!%p1405_p5)  ;;  %v1054_v38 = vld [vmem:[#allocation2 + $0xb0] sm:$0xff] (!%p1405_p5)  ;;  %1108 = vst [vmem:[%s1932_s1] sm:$0xff] (!%p1405_p5), %v1076_v25  ;;  %1109 = vst [vmem:[%s1932_s1 + $0x8] sm:$0xff] (!%p1405_p5), %v1077_v26 }
 0x19e   : > { %v915_v45 = vpop.f32.mrb[12].mxu0  ;;  %v955_v46 = vpop.f32.mrb[12].mxu1  ;;  %1031 = sbr.rel (%p1405_p5) target bundleno = 433 (0x1b1), region = 116  ;;  %1110 = vst [vmem:[%s1932_s1 + $0x10] sm:$0xff] (!%p1405_p5), %v1078_v27  ;;  %1111 = vst [vmem:[%s1932_s1 + $0x18] sm:$0xff] (!%p1405_p5), %v1079_v28 }
 0x19f   : > { %v976_v49 = vadd.f32 %v915_v45, %v543_v41  ;;  %v992_v50 = vadd.f32 %v955_v46, %v559_v42  ;;  %v917_v51 = vpop.f32.mrb[13].mxu0  ;;  %v957_v52 = vpop.f32.mrb[13].mxu1  ;;  %1112 = vst [vmem:[%s1932_s1 + $0x20] sm:$0xff] (!%p1405_p5), %v1080_v32  ;;  %1113 = vst [vmem:[%s1932_s1 + $0x28] sm:$0xff] (!%p1405_p5), %v1081_v33 }
 0x1a0   : > { %v977_v55 = vadd.f32 %v917_v51, %v544_v43  ;;  %v993_v56 = vadd.f32 %v957_v52, %v560_v44  ;;  %v919_v57 = vpop.f32.mrb[14].mxu0  ;;  %v959_v58 = vpop.f32.mrb[14].mxu1  ;;  %v1040_v14 = vld [vmem:[#allocation2 + $0x40] sm:$0xff] (!%p1405_p5)  ;;  %v1055_v43 = vld [vmem:[#allocation2 + $0xb8] sm:$0xff] (!%p1405_p5)  ;;  %1114 = vst [vmem:[%s1932_s1 + $0x30] sm:$0xff] (!%p1405_p5), %v1082_v34  ;;  %1115 = vst [vmem:[%s1932_s1 + $0x38] sm:$0xff] (!%p1405_p5), %v1083_v35 }
 0x1a1   : > { %1008 = vst [vmem:[#allocation2 + $0x60] sm:$0xff] %v976_v49  ;;  %1024 = vst [vmem:[#allocation2 + $0xe0] sm:$0xff] %v992_v50  ;;  %v978_v59 = vadd.f32 %v919_v57, %v545_v47  ;;  %v994_v60 = vadd.f32 %v959_v58, %v561_v48  ;;  %v921_v61 = vpop.f32.mrb[15].mxu0  ;;  %v961_v62 = vpop.f32.mrb[15].mxu1  ;;  %v1041_v15 = vld [vmem:[#allocation2 + $0x48] sm:$0xff] (!%p1405_p5)  ;;  %v1084_v39 = vadd.f32 (!%p1405_p5), %v1989_v17, %v1040_v14  ;;  %v1056_v44 = vld [vmem:[#allocation2 + $0xc0] sm:$0xff] (!%p1405_p5) }
 0x1a2   : > { %1009 = vst [vmem:[#allocation2 + $0x68] sm:$0xff] %v977_v55  ;;  %1025 = vst [vmem:[#allocation2 + $0xe8] sm:$0xff] %v993_v56  ;;  %v979_v63 = vadd.f32 %v921_v61, %v546_v53  ;;  %v995_v0 = vadd.f32 %v961_v62, %v562_v54  ;;  %v1042_v16 = vld [vmem:[#allocation2 + $0x50] sm:$0xff] (!%p1405_p5)  ;;  %v1085_v40 = vadd.f32 (!%p1405_p5), %v1991_v18, %v1041_v15  ;;  %v1057_v45 = vld [vmem:[#allocation2 + $0xc8] sm:$0xff] (!%p1405_p5) }
 0x1a3   : > { %1010 = vst [vmem:[#allocation2 + $0x70] sm:$0xff] %v978_v59  ;;  %1026 = vst [vmem:[#allocation2 + $0xf0] sm:$0xff] %v994_v60  ;;  %v1043_v19 = vld [vmem:[#allocation2 + $0x58] sm:$0xff] (!%p1405_p5)  ;;  %v1086_v41 = vadd.f32 (!%p1405_p5), %v1989_v17, %v1042_v16  ;;  %v1058_v50 = vld [vmem:[#allocation2 + $0xd0] sm:$0xff] (!%p1405_p5)  ;;  %v1092_v53 = vadd.f32 (!%p1405_p5), %v1989_v17, %v1048_v24  ;;  %v1093_v54 = vadd.f32 (!%p1405_p5), %v1991_v18, %v1049_v29 }
 0x1a4   : > { %1011 = vst [vmem:[#allocation2 + $0x78] sm:$0xff] %v979_v63  ;;  %1027 = vst [vmem:[#allocation2 + $0xf8] sm:$0xff] %v995_v0  ;;  %v1087_v42 = vadd.f32 (!%p1405_p5), %v1991_v18, %v1043_v19  ;;  %v1059_v51 = vld [vmem:[#allocation2 + $0xd8] sm:$0xff] (!%p1405_p5)  ;;  %v1094_v55 = vadd.f32 (!%p1405_p5), %v1989_v17, %v1050_v30  ;;  %v1095_v56 = vadd.f32 (!%p1405_p5), %v1991_v18, %v1051_v31 }
 0x1a5   : > { %1116 = vst [vmem:[%s1932_s1 + $0x40] sm:$0xff] %v1084_v39  ;;  %1117 = vst [vmem:[%s1932_s1 + $0x48] sm:$0xff] %v1085_v40  ;;  %v1096_v60 = vadd.f32 %v1989_v17, %v1052_v36  ;;  %v1097_v61 = vadd.f32 %v1991_v18, %v1053_v37  ;;  %v1098_v62 = vadd.f32 %v1989_v17, %v1054_v38 }
 0x1a6   : > { %1118 = vst [vmem:[%s1932_s1 + $0x50] sm:$0xff] %v1086_v41  ;;  %1119 = vst [vmem:[%s1932_s1 + $0x58] sm:$0xff] %v1087_v42  ;;  %v1099_v63 = vadd.f32 %v1991_v18, %v1055_v43  ;;  %v1100_v0 = vadd.f32 %v1989_v17, %v1056_v44  ;;  %v1101_v1 = vadd.f32 %v1991_v18, %v1057_v45 }
 0x1a7   : > { %1124 = vst [vmem:[%s1932_s1 + $0x80] sm:$0xff] %v1092_v53  ;;  %1125 = vst [vmem:[%s1932_s1 + $0x88] sm:$0xff] %v1093_v54  ;;  %v1102_v2 = vadd.f32 %v1989_v17, %v1058_v50  ;;  %v1103_v3 = vadd.f32 %v1991_v18, %v1059_v51 }
 0x1a8   : > { %v1044_v20 = vld [vmem:[#allocation2 + $0x60] sm:$0xff]  ;;  %1126 = vst [vmem:[%s1932_s1 + $0x90] sm:$0xff] %v1094_v55  ;;  %1127 = vst [vmem:[%s1932_s1 + $0x98] sm:$0xff] %v1095_v56 }
 0x1a9   : > { %v1045_v21 = vld [vmem:[#allocation2 + $0x68] sm:$0xff]  ;;  %v1088_v46 = vadd.f32 %v1989_v17, %v1044_v20  ;;  %v1060_v52 = vld [vmem:[#allocation2 + $0xe0] sm:$0xff]  ;;  %1128 = vst [vmem:[%s1932_s1 + $0xa0] sm:$0xff] %v1096_v60  ;;  %1129 = vst [vmem:[%s1932_s1 + $0xa8] sm:$0xff] %v1097_v61 }
 0x1aa   : > { %v1046_v22 = vld [vmem:[#allocation2 + $0x70] sm:$0xff]  ;;  %v1089_v47 = vadd.f32 %v1991_v18, %v1045_v21  ;;  %v1061_v57 = vld [vmem:[#allocation2 + $0xe8] sm:$0xff]  ;;  %1130 = vst [vmem:[%s1932_s1 + $0xb0] sm:$0xff] %v1098_v62  ;;  %1131 = vst [vmem:[%s1932_s1 + $0xb8] sm:$0xff] %v1099_v63  ;;  %v1104_v4 = vadd.f32 %v1989_v17, %v1060_v52 }
 0x1ab   : > { %v1047_v23 = vld [vmem:[#allocation2 + $0x78] sm:$0xff]  ;;  %v1090_v48 = vadd.f32 %v1989_v17, %v1046_v22  ;;  %v1062_v58 = vld [vmem:[#allocation2 + $0xf0] sm:$0xff]  ;;  %1120 = vst [vmem:[%s1932_s1 + $0x60] sm:$0xff] %v1088_v46  ;;  %v1105_v5 = vadd.f32 %v1991_v18, %v1061_v57  ;;  %1132 = vst [vmem:[%s1932_s1 + $0xc0] sm:$0xff] %v1100_v0 }
 0x1ac   : > { %v1091_v49 = vadd.f32 %v1991_v18, %v1047_v23  ;;  %v1063_v59 = vld [vmem:[#allocation2 + $0xf8] sm:$0xff]  ;;  %1121 = vst [vmem:[%s1932_s1 + $0x68] sm:$0xff] %v1089_v47  ;;  %v1106_v6 = vadd.f32 %v1989_v17, %v1062_v58  ;;  %1133 = vst [vmem:[%s1932_s1 + $0xc8] sm:$0xff] %v1101_v1 }
 0x1ad   : > { %1122 = vst [vmem:[%s1932_s1 + $0x70] sm:$0xff] %v1090_v48  ;;  %v1107_v7 = vadd.f32 %v1991_v18, %v1063_v59  ;;  %1134 = vst [vmem:[%s1932_s1 + $0xd0] sm:$0xff] %v1102_v2 }
 0x1ae   : > { %1123 = vst [vmem:[%s1932_s1 + $0x78] sm:$0xff] %v1091_v49  ;;  %1135 = vst [vmem:[%s1932_s1 + $0xd8] sm:$0xff] %v1103_v3 }
 0x1af   : > { %1136 = vst [vmem:[%s1932_s1 + $0xe0] sm:$0xff] %v1104_v4  ;;  %1137 = vst [vmem:[%s1932_s1 + $0xe8] sm:$0xff] %v1105_v5 }
 0x1b0   : > { %1138 = vst [vmem:[%s1932_s1 + $0xf0] sm:$0xff] %v1106_v6  ;;  %1139 = vst [vmem:[%s1932_s1 + $0xf8] sm:$0xff] %v1107_v7 }
 0x1b1 PF: > { %1146 = sbr.rel (!%p1810_p12) target bundleno = 451 (0x1c3), region = 120  ;;  %s1413_s16 = sshll.u32 (%p1810_p12), %s1681_s19, 4  ;;  %v1165_v8 = vld [vmem:[%s1932_s1] sm:$0xff] (%p1810_p12)  ;;  %v1167_v9 = vld [vmem:[%s1932_s1 + $0x8] sm:$0xff] (%p1810_p12)  ;;  %v1169_v10 = vld [vmem:[%s1932_s1 + $0x10] sm:$0xff] (%p1810_p12) }
 0x1b2   : > { %s2066_s5 = scalar_lea.vmem (%p1810_p12), %s2165_s3, %s1413_s16  ;;  %v1171_v11 = vld [vmem:[%s1932_s1 + $0x18] sm:$0xff] (%p1810_p12)  ;;  %v1173_v12 = vld [vmem:[%s1932_s1 + $0x20] sm:$0xff] (%p1810_p12)  ;;  %v1175_v13 = vld [vmem:[%s1932_s1 + $0x28] sm:$0xff] (%p1810_p12) }
 0x1b3   : > { %1166 = vst [vmem:[%s2066_s5] sm:$0xff] (%p1810_p12), %v1165_v8  ;;  %1168 = vst [vmem:[%s2066_s5 + $0x8] sm:$0xff] (%p1810_p12), %v1167_v9  ;;  %v1177_v14 = vld [vmem:[%s1932_s1 + $0x30] sm:$0xff] (%p1810_p12)  ;;  %v1179_v15 = vld [vmem:[%s1932_s1 + $0x38] sm:$0xff] (%p1810_p12) }
 0x1b4   : > { %1170 = vst [vmem:[%s2066_s5 + $0x20] sm:$0xff] (%p1810_p12), %v1169_v10  ;;  %1172 = vst [vmem:[%s2066_s5 + $0x28] sm:$0xff] (%p1810_p12), %v1171_v11  ;;  %v1185_v18 = vld [vmem:[%s1932_s1 + $0x50] sm:$0xff] (%p1810_p12)  ;;  %v1187_v19 = vld [vmem:[%s1932_s1 + $0x58] sm:$0xff] (%p1810_p12) }
 0x1b5   : > { %1174 = vst [vmem:[%s2066_s5 + $0x40] sm:$0xff] (%p1810_p12), %v1173_v12  ;;  %1176 = vst [vmem:[%s2066_s5 + $0x48] sm:$0xff] (%p1810_p12), %v1175_v13  ;;  %v1189_v20 = vld [vmem:[%s1932_s1 + $0x60] sm:$0xff] (%p1810_p12)  ;;  %v1191_v21 = vld [vmem:[%s1932_s1 + $0x68] sm:$0xff] (%p1810_p12) }
 0x1b6   : > { %1178 = vst [vmem:[%s2066_s5 + $0x60] sm:$0xff] (%p1810_p12), %v1177_v14  ;;  %1180 = vst [vmem:[%s2066_s5 + $0x68] sm:$0xff] (%p1810_p12), %v1179_v15  ;;  %v1193_v22 = vld [vmem:[%s1932_s1 + $0x70] sm:$0xff] (%p1810_p12)  ;;  %v1195_v23 = vld [vmem:[%s1932_s1 + $0x78] sm:$0xff] (%p1810_p12) }
 0x1b7   : > { %1186 = vst [vmem:[%s2066_s5 + $0xa0] sm:$0xff] (%p1810_p12), %v1185_v18  ;;  %1188 = vst [vmem:[%s2066_s5 + $0xa8] sm:$0xff] (%p1810_p12), %v1187_v19  ;;  %v1197_v24 = vld [vmem:[%s1932_s1 + $0x80] sm:$0xff] (%p1810_p12)  ;;  %v1199_v25 = vld [vmem:[%s1932_s1 + $0x88] sm:$0xff] (%p1810_p12) }
 0x1b8   : > { %v1181_v16 = vld [vmem:[%s1932_s1 + $0x40] sm:$0xff]  ;;  %v1183_v17 = vld [vmem:[%s1932_s1 + $0x48] sm:$0xff]  ;;  %1190 = vst [vmem:[%s2066_s5 + $0xc0] sm:$0xff] %v1189_v20  ;;  %1192 = vst [vmem:[%s2066_s5 + $0xc8] sm:$0xff] %v1191_v21 }
 0x1b9   : > { %1182 = vst [vmem:[%s2066_s5 + $0x80] sm:$0xff] %v1181_v16  ;;  %1184 = vst [vmem:[%s2066_s5 + $0x88] sm:$0xff] %v1183_v17  ;;  %v1201_v26 = vld [vmem:[%s1932_s1 + $0x90] sm:$0xff]  ;;  %v1203_v27 = vld [vmem:[%s1932_s1 + $0x98] sm:$0xff] }
 0x1ba   : > { %1194 = vst [vmem:[%s2066_s5 + $0xe0] sm:$0xff] %v1193_v22  ;;  %1196 = vst [vmem:[%s2066_s5 + $0xe8] sm:$0xff] %v1195_v23  ;;  %v1205_v28 = vld [vmem:[%s1932_s1 + $0xa0] sm:$0xff]  ;;  %v1207_v29 = vld [vmem:[%s1932_s1 + $0xa8] sm:$0xff] }
 0x1bb   : > { %1198 = vst [vmem:[%s2066_s5 + $0x100] sm:$0xff] %v1197_v24  ;;  %1200 = vst [vmem:[%s2066_s5 + $0x108] sm:$0xff] %v1199_v25  ;;  %v1209_v30 = vld [vmem:[%s1932_s1 + $0xb0] sm:$0xff]  ;;  %v1211_v31 = vld [vmem:[%s1932_s1 + $0xb8] sm:$0xff] }
 0x1bc   : > { %1202 = vst [vmem:[%s2066_s5 + $0x120] sm:$0xff] %v1201_v26  ;;  %1204 = vst [vmem:[%s2066_s5 + $0x128] sm:$0xff] %v1203_v27  ;;  %v1213_v32 = vld [vmem:[%s1932_s1 + $0xc0] sm:$0xff]  ;;  %v1215_v33 = vld [vmem:[%s1932_s1 + $0xc8] sm:$0xff] }
 0x1bd   : > { %1206 = vst [vmem:[%s2066_s5 + $0x140] sm:$0xff] %v1205_v28  ;;  %1208 = vst [vmem:[%s2066_s5 + $0x148] sm:$0xff] %v1207_v29  ;;  %v1217_v34 = vld [vmem:[%s1932_s1 + $0xd0] sm:$0xff]  ;;  %v1219_v35 = vld [vmem:[%s1932_s1 + $0xd8] sm:$0xff] }
 0x1be   : > { %1210 = vst [vmem:[%s2066_s5 + $0x160] sm:$0xff] %v1209_v30  ;;  %1212 = vst [vmem:[%s2066_s5 + $0x168] sm:$0xff] %v1211_v31  ;;  %v1221_v36 = vld [vmem:[%s1932_s1 + $0xe0] sm:$0xff]  ;;  %v1223_v37 = vld [vmem:[%s1932_s1 + $0xe8] sm:$0xff] }
 0x1bf   : > { %1214 = vst [vmem:[%s2066_s5 + $0x180] sm:$0xff] %v1213_v32  ;;  %1216 = vst [vmem:[%s2066_s5 + $0x188] sm:$0xff] %v1215_v33  ;;  %v1225_v38 = vld [vmem:[%s1932_s1 + $0xf0] sm:$0xff]  ;;  %v1227_v39 = vld [vmem:[%s1932_s1 + $0xf8] sm:$0xff] }
 0x1c0   : > { %1218 = vst [vmem:[%s2066_s5 + $0x1a0] sm:$0xff] %v1217_v34  ;;  %1220 = vst [vmem:[%s2066_s5 + $0x1a8] sm:$0xff] %v1219_v35 }
 0x1c1   : > { %1222 = vst [vmem:[%s2066_s5 + $0x1c0] sm:$0xff] %v1221_v36  ;;  %1224 = vst [vmem:[%s2066_s5 + $0x1c8] sm:$0xff] %v1223_v37 }
 0x1c2   : > { %1226 = vst [vmem:[%s2066_s5 + $0x1e0] sm:$0xff] %v1225_v38  ;;  %1228 = vst [vmem:[%s2066_s5 + $0x1e8] sm:$0xff] %v1227_v39 }
 0x1c3 PF: > { %s13_s22 = sadd.s32 1, %s1693_s22   ;;  %s2175_s10 = sld [smem:[#allocation6_spill]] }
 0x1c4   : > { %p10_p6 = scmp.ge.s32.totalorder %s13_s22, 74   ;;  %s2176_s12 = smov %s1657_s13 }
 0x1c5   : > { %s2177_s13 = smov %s1808_s9  ;;  %s2178_s14 = smov %s1665_s15 }
 0x1c6   : > { %s2179_s15 = smov %s1805_s8  ;;  %s2180_s16 = smov %s1673_s17 }
 0x1c7   : > { %s2181_s17 = smov %s1791_s30  ;;  %s2182_s18 = smov %s1685_s20 }
 0x1c8   : > { %s2183_s19 = smov %s1689_s21  ;;  %s2184_s20 = smov %s2187_s24 }
 0x1c9   : > { %s2185_s21 = smov %s2175_s10  ;;  %12 = sbr.rel (!%p10_p6) target bundleno = 9 (0x9), region = 185 }

// kernel: _lambda_.35
= control target key start
LH: loop header
LB: loop body
LE: loop exit
PB: predicated region body
PF: predicated region fallthrough
CT: control target
= control target key end

     0   :  { %s1181_s12 = smov 0   ;;  %s1183_s13 = smov 0   ;;  %s1353_s0 = inlined_call_operand.vmem [shape: bf16[128,512], index: 0, kind: input, shape index: {}]   ;;  %s1354_s1 = inlined_call_operand.vmem [shape: bf16[512,128], index: 1, kind: input, shape index: {}]   ;;  %s1355_s2 = inlined_call_operand.vmem [shape: f32[1,128], index: 2, kind: input, shape index: {}]   ;;  %s1356_s3 = inlined_call_operand.vmem [shape: f32[128,128], index: 3, kind: output, shape index: {}]  }
   0x1   :  { %s1185_s14 = smov 0   ;;  %s1187_s15 = smov 0  }
   0x2   :  { %s1189_s16 = smov 0  }
   0x3 LB: > { %s25_s17 = sadd.s32 1, %s1154_s15  ;;  %p48_p1 = scmp.ne.s32.totalorder %s1146_s13, %s1142_s12  ;;  %s1158_s16 = sphi %s1189_s16, %s13_s16   ;;  %s1154_s15 = sphi %s1187_s15, %s1360_s15   ;;  %s1150_s14 = sphi %s1185_s14, %s1359_s14   ;;  %s1146_s13 = sphi %s1183_s13, %s1358_s13   ;;  %s1142_s12 = sphi %s1181_s12, %s1357_s12  }
   0x4   : > { %p26_p0 = scmp.ge.s32.totalorder %s25_s17, 2  ;;  %p49_p2 = scmp.eq.s32.totalorder %s1158_s16, 0 }
   0x5   : > { %s41_s19 = sadd.s32 1, %s1146_s13  ;;  %p911_p5 = scmp.ge.s32.totalorder %s1158_s16, 2 }
   0x6   : > { %s1362_s17 = smov (%p26_p0, %s25_s17), 0  ;;  %p50_p3 = por %p49_p2, %p48_p1 }
   0x7   : > { %s37_s18 = ssub.s32 %s1154_s15, %s1362_s17  ;;  %162 = sbr.rel (%p911_p5) target bundleno = 26 (0x1a), region = 20 }
   0x8   : > { %p39_p4 = scmp.eq.s32.totalorder %s37_s18, 0 }
   0xa   : > { %s1216_s20 = scalar_select %p39_p4, %s1146_s13, %s41_s19  }
   0xe   : > { %165 = sbr.rel (!%p50_p3) target bundleno = 26 (0x1a), region = 24  ;;  %s167_s21 = sand.u32 (%p50_p3), 1, %s1146_s13  }
   0xf   : > { %s958_s22 = sshll.u32 (%p50_p3), %s1154_s15, 3  ;;  %s912_s23 = sshll.u32 (%p50_p3), %s167_s21, 7 }
  0x10   : > { %s1224_s26 = scalar_lea.vmem (%p50_p3), %s1353_s0, %s958_s22  ;;  %s169_s27 = scalar_lea.vmem (%p50_p3), [#allocation3], %s912_s23 }
  0x11   : > { %v233_v0 = vld [vmem:[%s1224_s26] sm:$0xff] (%p50_p3)  ;;  %v235_v1 = vld [vmem:[%s1224_s26 + $0x10] sm:$0xff] (%p50_p3) }
  0x12   : > { %v237_v2 = vld [vmem:[%s1224_s26 + $0x20] sm:$0xff] (%p50_p3)  ;;  %234 = vst [vmem:[%s169_s27] sm:$0xff] (%p50_p3), %v233_v0  ;;  %236 = vst [vmem:[%s169_s27 + $0x8] sm:$0xff] (%p50_p3), %v235_v1  ;;  %v239_v3 = vld [vmem:[%s1224_s26 + $0x30] sm:$0xff] (%p50_p3) }
  0x13   : > { %238 = vst [vmem:[%s169_s27 + $0x10] sm:$0xff] (%p50_p3), %v237_v2  ;;  %v241_v4 = vld [vmem:[%s1224_s26 + $0x40] sm:$0xff] (%p50_p3)  ;;  %v243_v5 = vld [vmem:[%s1224_s26 + $0x50] sm:$0xff] (%p50_p3)  ;;  %240 = vst [vmem:[%s169_s27 + $0x18] sm:$0xff] (%p50_p3), %v239_v3 }
  0x14   : > { %242 = vst [vmem:[%s169_s27 + $0x20] sm:$0xff] (%p50_p3), %v241_v4  ;;  %244 = vst [vmem:[%s169_s27 + $0x28] sm:$0xff] (%p50_p3), %v243_v5  ;;  %v245_v6 = vld [vmem:[%s1224_s26 + $0x60] sm:$0xff] (%p50_p3)  ;;  %v247_v7 = vld [vmem:[%s1224_s26 + $0x70] sm:$0xff] (%p50_p3) }
  0x15   : > { %v249_v8 = vld [vmem:[%s1224_s26 + $0x80] sm:$0xff]  ;;  %246 = vst [vmem:[%s169_s27 + $0x30] sm:$0xff] %v245_v6  ;;  %248 = vst [vmem:[%s169_s27 + $0x38] sm:$0xff] %v247_v7  ;;  %v251_v9 = vld [vmem:[%s1224_s26 + $0x90] sm:$0xff] }
  0x16   : > { %250 = vst [vmem:[%s169_s27 + $0x40] sm:$0xff] %v249_v8  ;;  %v253_v10 = vld [vmem:[%s1224_s26 + $0xa0] sm:$0xff]  ;;  %v255_v11 = vld [vmem:[%s1224_s26 + $0xb0] sm:$0xff]  ;;  %252 = vst [vmem:[%s169_s27 + $0x48] sm:$0xff] %v251_v9 }
  0x17   : > { %254 = vst [vmem:[%s169_s27 + $0x50] sm:$0xff] %v253_v10  ;;  %256 = vst [vmem:[%s169_s27 + $0x58] sm:$0xff] %v255_v11  ;;  %v257_v12 = vld [vmem:[%s1224_s26 + $0xc0] sm:$0xff]  ;;  %v259_v13 = vld [vmem:[%s1224_s26 + $0xd0] sm:$0xff] }
  0x18   : > { %v261_v14 = vld [vmem:[%s1224_s26 + $0xe0] sm:$0xff]  ;;  %258 = vst [vmem:[%s169_s27 + $0x60] sm:$0xff] %v257_v12  ;;  %260 = vst [vmem:[%s169_s27 + $0x68] sm:$0xff] %v259_v13  ;;  %v263_v15 = vld [vmem:[%s1224_s26 + $0xf0] sm:$0xff] }
  0x19   : > { %262 = vst [vmem:[%s169_s27 + $0x70] sm:$0xff] %v261_v14  ;;  %264 = vst [vmem:[%s169_s27 + $0x78] sm:$0xff] %v263_v15 }
  0x1a PF: > { %p915_p6 = scmp.ge.s32.totalorder %s1158_s16, 1  ;;  %p281_p7 = scmp.lt.s32.totalorder %s1158_s16, 3 }
  0x1c   : > { %p282_p8 = pnand %p915_p6, %p281_p7 }
  0x1d   : > { %s288_s28 = sand.u32 (!%p282_p8), 1, %s1142_s12   ;;  %s917_s29 = sshll.u32 (!%p282_p8), %s1150_s14, 5 }
  0x1e   : > { %285 = sbr.rel (%p282_p8) target bundleno = 335 (0x14f), region = 66  ;;  %s916_s30 = sshll.u32 (!%p282_p8), %s288_s28, 7 }
  0x1f   : > { %p328_p9 = scmp.lt.s32.totalorder (!%p282_p8), %s917_s29, 63  ;;  %s1251_s8 = scalar_lea.vmem (!%p282_p8), [#allocation3], %s916_s30 }
  0x20   : > { %p919_p10 = scmp.ne.s32.totalorder (!%p282_p8), %s1150_s14, 0 }
  0x25   : > { %s1364_s29 = smov (!%p328_p9, %s917_s29), 63  ;;  %352 = sbr.rel (%p919_p10) target bundleno = 47 (0x2f), region = 74 }
  0x26   : > { %s918_s4 = sshll.u32 %s1364_s29, 2  ;;  %v1160_v16 = vmov (!%p919_p10), 0.0  }
  0x27   : > { %s1249_s7 = scalar_lea.vmem %s1354_s1, %s918_s4  ;;  %353 = vst [vmem:[#allocation2] sm:$0xff] (!%p919_p10), %v1160_v16  ;;  %354 = vst [vmem:[#allocation2 + $0x8] sm:$0xff] (!%p919_p10), %v1160_v16 }
  0x28   : > { %355 = vst [vmem:[#allocation2 + $0x10] sm:$0xff] (!%p919_p10), %v1160_v16  ;;  %356 = vst [vmem:[#allocation2 + $0x18] sm:$0xff] (!%p919_p10), %v1160_v16 }
  0x29   : > { %357 = vst [vmem:[#allocation2 + $0x20] sm:$0xff] (!%p919_p10), %v1160_v16  ;;  %358 = vst [vmem:[#allocation2 + $0x28] sm:$0xff] (!%p919_p10), %v1160_v16 }
  0x2a   : > { %359 = vst [vmem:[#allocation2 + $0x30] sm:$0xff] (!%p919_p10), %v1160_v16  ;;  %360 = vst [vmem:[#allocation2 + $0x38] sm:$0xff] (!%p919_p10), %v1160_v16 }
  0x2b   : > { %361 = vst [vmem:[#allocation2 + $0x40] sm:$0xff] (!%p919_p10), %v1160_v16  ;;  %362 = vst [vmem:[#allocation2 + $0x48] sm:$0xff] (!%p919_p10), %v1160_v16 }
  0x2c   : > { %363 = vst [vmem:[#allocation2 + $0x50] sm:$0xff] %v1160_v16  ;;  %364 = vst [vmem:[#allocation2 + $0x58] sm:$0xff] %v1160_v16 }
  0x2d   : > { %365 = vst [vmem:[#allocation2 + $0x60] sm:$0xff] %v1160_v16  ;;  %366 = vst [vmem:[#allocation2 + $0x68] sm:$0xff] %v1160_v16 }
  0x2e   : > { %367 = vst [vmem:[#allocation2 + $0x70] sm:$0xff] %v1160_v16  ;;  %368 = vst [vmem:[#allocation2 + $0x78] sm:$0xff] %v1160_v16 }
  0x2f PF: > { %v1080_v17 = vld [vmem:[%s1249_s7 + $0x40] sm:$0xff]   ;;  %v1082_v19 = vld [vmem:[%s1249_s7 + $0x48] sm:$0xff]   ;;  %v1084_v21 = vld [vmem:[%s1249_s7 + $0x50] sm:$0xff]   ;;  %p952_p11 = scmp.ne.s32.totalorder %s1150_s14, 1 }
  0x30   : > { %v1081_v18 = vld [vmem:[%s1249_s7] sm:$0xff]   ;;  %959 = vmatprep.subr.bf16.mxu0 %v1080_v17  ;;  %1023 = vmatprep.subr.bf16.mxu1 %v1080_v17  ;;  %v1083_v20 = vld [vmem:[%s1249_s7 + $0x8] sm:$0xff]   ;;  %v1085_v22 = vld [vmem:[%s1249_s7 + $0x10] sm:$0xff]  }
  0x31   : > { %960 = vmatpush3.bf16.msra.mxu0 %v1081_v18  ;;  %1031 = vmatpush3.bf16.msra.mxu1 %v1081_v18  ;;  %v1086_v23 = vld [vmem:[%s1249_s7 + $0x58] sm:$0xff]   ;;  %v1088_v25 = vld [vmem:[%s1249_s7 + $0x60] sm:$0xff]   ;;  %v1090_v27 = vld [vmem:[%s1249_s7 + $0x68] sm:$0xff]  }
  0x32   : > { %961 = vmatprep.subr.bf16.mxu0 %v1082_v19  ;;  %1024 = vmatprep.subr.bf16.mxu1 %v1082_v19  ;;  %v1087_v24 = vld [vmem:[%s1249_s7 + $0x18] sm:$0xff]   ;;  %v1089_v26 = vld [vmem:[%s1249_s7 + $0x20] sm:$0xff]   ;;  %v1091_v30 = vld [vmem:[%s1249_s7 + $0x28] sm:$0xff]  }
  0x33   : > { %v1098_v28 = vld [vmem:[%s1251_s8 + $0x4] ss:$8 sps:$4 sm:$0xff]   ;;  %v1092_v31 = vld [vmem:[%s1249_s7 + $0x70] sm:$0xff]   ;;  %v1094_v33 = vld [vmem:[%s1249_s7 + $0x78] sm:$0xff]  }
  0x34   : > { %v1101_v29 = vld [vmem:[%s1251_s8 + $0x44] ss:$8 sps:$4 sm:$0xff]   ;;  %641 = vmatprep.mubr.bf16.mxu0 %v1098_v28  ;;  %v1093_v32 = vld [vmem:[%s1249_s7 + $0x30] sm:$0xff]   ;;  %v1095_v34 = vld [vmem:[%s1249_s7 + $0x38] sm:$0xff]  }
  0x35   : > { %962 = vmatpush3.bf16.msra.mxu0 %v1083_v20  ;;  %1032 = vmatpush3.bf16.msra.mxu1 %v1083_v20  ;;  %v1096_v35 = vld [vmem:[%s1251_s8] ss:$8 sps:$4 sm:$0xff]   ;;  %v1102_v37 = vld [vmem:[%s1251_s8 + $0x14] ss:$8 sps:$4 sm:$0xff]   ;;  %v1106_v39 = vld [vmem:[%s1251_s8 + $0x10] ss:$8 sps:$4 sm:$0xff]  }
  0x36   : > { %963 = vmatprep.subr.bf16.mxu0 %v1084_v21  ;;  %1025 = vmatprep.subr.bf16.mxu1 %v1084_v21  ;;  %v1099_v36 = vld [vmem:[%s1251_s8 + $0x40] ss:$8 sps:$4 sm:$0xff]   ;;  %v1104_v38 = vld [vmem:[%s1251_s8 + $0x54] ss:$8 sps:$4 sm:$0xff]   ;;  %v1107_v40 = vld [vmem:[%s1251_s8 + $0x50] ss:$8 sps:$4 sm:$0xff]  }
  0x37   : > { %673 = vmatprep.mubr.bf16.mxu1 %v1101_v29  ;;  %v1108_v41 = vld [vmem:[%s1251_s8 + $0x24] ss:$8 sps:$4 sm:$0xff]   ;;  %v1112_v43 = vld [vmem:[%s1251_s8 + $0x20] ss:$8 sps:$4 sm:$0xff]   ;;  %v1114_v45 = vld [vmem:[%s1251_s8 + $0x34] ss:$8 sps:$4 sm:$0xff]  }
  0x38   : > { %v1110_v42 = vld [vmem:[%s1251_s8 + $0x64] ss:$8 sps:$4 sm:$0xff]   ;;  %v1113_v44 = vld [vmem:[%s1251_s8 + $0x60] ss:$8 sps:$4 sm:$0xff]   ;;  %v1116_v46 = vld [vmem:[%s1251_s8 + $0x74] ss:$8 sps:$4 sm:$0xff]  }
  0x39   : > { %964 = vmatpush3.bf16.msra.mxu0 %v1085_v22  ;;  %1033 = vmatpush3.bf16.msra.mxu1 %v1085_v22  ;;  %v1118_v47 = vld [vmem:[%s1251_s8 + $0x30] ss:$8 sps:$4 sm:$0xff]   ;;  %v369_v51 = vld [vmem:[#allocation2] sm:$0xff]  ;;  %v370_v59 = vld [vmem:[#allocation2 + $0x8] sm:$0xff] }
  0x3a   : > { %965 = vmatprep.subr.bf16.mxu0 %v1086_v23  ;;  %1026 = vmatprep.subr.bf16.mxu1 %v1086_v23  ;;  %v1119_v48 = vld [vmem:[%s1251_s8 + $0x70] ss:$8 sps:$4 sm:$0xff]   ;;  %v377_v53 = vld [vmem:[#allocation2 + $0x40] sm:$0xff]  ;;  %v378_v61 = vld [vmem:[#allocation2 + $0x48] sm:$0xff] }
  0x3b   : > { %v371_v7 = vld [vmem:[#allocation2 + $0x10] sm:$0xff]  ;;  %v372_v15 = vld [vmem:[#allocation2 + $0x18] sm:$0xff]  ;;  %v381_v29 = vld [vmem:[#allocation2 + $0x60] sm:$0xff] }
  0x3c   : > { %v379_v9 = vld [vmem:[#allocation2 + $0x50] sm:$0xff]  ;;  %v380_v17 = vld [vmem:[#allocation2 + $0x58] sm:$0xff] }
  0x3d   : > { %966 = vmatpush3.bf16.msra.mxu0 %v1087_v24  ;;  %1034 = vmatpush3.bf16.msra.mxu1 %v1087_v24 }
  0x3e   : > { %967 = vmatprep.subr.bf16.mxu0 %v1088_v25  ;;  %1027 = vmatprep.subr.bf16.mxu1 %v1088_v25 }
  0x41   : > { %968 = vmatpush3.bf16.msra.mxu0 %v1089_v26  ;;  %1035 = vmatpush3.bf16.msra.mxu1 %v1089_v26 }
  0x42   : > { %969 = vmatprep.subr.bf16.mxu0 %v1090_v27  ;;  %1028 = vmatprep.subr.bf16.mxu1 %v1090_v27  ;;  %v373_v27 = vld [vmem:[#allocation2 + $0x20] sm:$0xff] }
  0x45   : > { %970 = vmatpush3.bf16.msra.mxu0 %v1091_v30  ;;  %1036 = vmatpush3.bf16.msra.mxu1 %v1091_v30 }
  0x46   : > { %971 = vmatprep.subr.bf16.mxu0 %v1092_v31  ;;  %1029 = vmatprep.subr.bf16.mxu1 %v1092_v31 }
  0x49   : > { %972 = vmatpush3.bf16.msra.mxu0 %v1093_v32  ;;  %1037 = vmatpush3.bf16.msra.mxu1 %v1093_v32 }
  0x4a   : > { %973 = vmatprep.subr.bf16.mxu0 %v1094_v33  ;;  %1030 = vmatprep.subr.bf16.mxu1 %v1094_v33 }
  0x4d   : > { %974 = vmatpush3.bf16.msra.mxu0 %v1095_v34  ;;  %1038 = vmatpush3.bf16.msra.mxu1 %v1095_v34 }
  0x50   : > { %642 = vmatmul.mubr.bf16.vlgmr.msra.gmra.mrb[0].mxu0 %v1096_v35  ;;  %674 = vmatmul.mubr.bf16.vlgmr.msra.gmra.mrb[0].mxu1 %v1099_v36  ;;  %v374_v35 = vld [vmem:[#allocation2 + $0x28] sm:$0xff] }
  0x51   : > { %649 = vmatprep.mubr.bf16.mxu0 %v1102_v37  ;;  %681 = vmatprep.mubr.bf16.mxu1 %v1104_v38  ;;  %v382_v37 = vld [vmem:[#allocation2 + $0x68] sm:$0xff] }
  0x58   : > { %650 = vmatmul.mubr.bf16.gmra.mrb[4].mxu0 %v1106_v39  ;;  %682 = vmatmul.mubr.bf16.gmra.mrb[4].mxu1 %v1107_v40 }
  0x59   : > { %657 = vmatprep.mubr.bf16.mxu0 %v1108_v41  ;;  %689 = vmatprep.mubr.bf16.mxu1 %v1110_v42 }
  0x60   : > { %658 = vmatmul.mubr.bf16.gmra.mrb[8].mxu0 %v1112_v43  ;;  %690 = vmatmul.mubr.bf16.gmra.mrb[8].mxu1 %v1113_v44 }
  0x61   : > { %665 = vmatprep.mubr.bf16.mxu0 %v1114_v45  ;;  %697 = vmatprep.mubr.bf16.mxu1 %v1116_v46 }
  0x68   : > { %666 = vmatmul.mubr.bf16.gmra.mrb[12].mxu0 %v1118_v47  ;;  %698 = vmatmul.mubr.bf16.gmra.mrb[12].mxu1 %v1119_v48  ;;  %v375_v47 = vld [vmem:[#allocation2 + $0x30] sm:$0xff] }
 0x123   : > { %v975_v49 = vpop.f32.mrb[0].mxu0  ;;  %v999_v50 = vpop.f32.mrb[0].mxu1 }
 0x124   : > { %v976_v52 = vpop.f32.mrb[1].mxu0  ;;  %v1000_v54 = vpop.f32.mrb[1].mxu1 }
 0x125   : > { %v977_v55 = vadd.f32 %v976_v52, %v975_v49  ;;  %v1001_v56 = vadd.f32 %v1000_v54, %v999_v50  ;;  %v978_v57 = vpop.f32.mrb[2].mxu0  ;;  %v1002_v58 = vpop.f32.mrb[2].mxu1  ;;  %v383_v49 = vld [vmem:[#allocation2 + $0x70] sm:$0xff] }
 0x126   : > { %v979_v60 = vpop.f32.mrb[3].mxu0  ;;  %v1003_v62 = vpop.f32.mrb[3].mxu1 }
 0x127   : > { %v706_v63 = vadd.f32 %v977_v55, %v369_v51  ;;  %v714_v0 = vadd.f32 %v1001_v56, %v377_v53  ;;  %v980_v1 = vadd.f32 %v979_v60, %v978_v57  ;;  %v1004_v2 = vadd.f32 %v1003_v62, %v1002_v58  ;;  %v376_v55 = vld [vmem:[#allocation2 + $0x38] sm:$0xff] }
 0x128   : > { %v384_v57 = vld [vmem:[#allocation2 + $0x78] sm:$0xff] }
 0x129   : > { %722 = vst [vmem:[#allocation2] sm:$0xff] %v706_v63  ;;  %730 = vst [vmem:[#allocation2 + $0x40] sm:$0xff] %v714_v0  ;;  %v707_v3 = vadd.f32 %v980_v1, %v370_v59  ;;  %v715_v4 = vadd.f32 %v1004_v2, %v378_v61  ;;  %v953_v2 = vld [vmem:[%s1355_s2] ss:$0 sm:$0xff] (!%p952_p11) }
 0x12b   : > { %723 = vst [vmem:[#allocation2 + $0x8] sm:$0xff] %v707_v3  ;;  %731 = vst [vmem:[#allocation2 + $0x48] sm:$0xff] %v715_v4  ;;  %v981_v5 = vpop.f32.mrb[4].mxu0  ;;  %v1005_v6 = vpop.f32.mrb[4].mxu1 }
 0x12c   : > { %v982_v8 = vpop.f32.mrb[5].mxu0  ;;  %v1006_v10 = vpop.f32.mrb[5].mxu1 }
 0x12d   : > { %v983_v11 = vadd.f32 %v982_v8, %v981_v5  ;;  %v1007_v12 = vadd.f32 %v1006_v10, %v1005_v6  ;;  %v984_v13 = vpop.f32.mrb[6].mxu0  ;;  %v1008_v14 = vpop.f32.mrb[6].mxu1 }
 0x12e   : > { %v985_v16 = vpop.f32.mrb[7].mxu0  ;;  %v1009_v18 = vpop.f32.mrb[7].mxu1 }
 0x12f   : > { %v708_v19 = vadd.f32 %v983_v11, %v371_v7  ;;  %v716_v20 = vadd.f32 %v1007_v12, %v379_v9  ;;  %v986_v21 = vadd.f32 %v985_v16, %v984_v13  ;;  %v1010_v22 = vadd.f32 %v1009_v18, %v1008_v14 }
 0x130   : > { %v742_v1 = vld [vmem:[#allocation2] sm:$0xff] (!%p952_p11) }
 0x131   : > { %724 = vst [vmem:[#allocation2 + $0x10] sm:$0xff] %v708_v19  ;;  %732 = vst [vmem:[#allocation2 + $0x50] sm:$0xff] %v716_v20  ;;  %v709_v23 = vadd.f32 %v986_v21, %v372_v15  ;;  %v717_v24 = vadd.f32 %v1010_v22, %v380_v17  ;;  %v765_v4 = vadd.f32 (!%p952_p11), %v953_v2, %v742_v1  ;;  %v750_v18 = vld [vmem:[#allocation2 + $0x40] sm:$0xff] (!%p952_p11) }
 0x132   : > { %v743_v3 = vld [vmem:[#allocation2 + $0x8] sm:$0xff] (!%p952_p11)  ;;  %v773_v21 = vadd.f32 (!%p952_p11), %v953_v2, %v750_v18 }
 0x133   : > { %725 = vst [vmem:[#allocation2 + $0x18] sm:$0xff] %v709_v23  ;;  %733 = vst [vmem:[#allocation2 + $0x58] sm:$0xff] %v717_v24  ;;  %v987_v25 = vpop.f32.mrb[8].mxu0  ;;  %v1011_v26 = vpop.f32.mrb[8].mxu1  ;;  %v766_v5 = vadd.f32 (!%p952_p11), %v953_v2, %v743_v3  ;;  %v751_v19 = vld [vmem:[#allocation2 + $0x48] sm:$0xff] (!%p952_p11) }
 0x134   : > { %v988_v28 = vpop.f32.mrb[9].mxu0  ;;  %v1012_v30 = vpop.f32.mrb[9].mxu1  ;;  %781 = vst [vmem:[%s1356_s3] sm:$0xff] (!%p952_p11), %v765_v4  ;;  %v774_v22 = vadd.f32 (!%p952_p11), %v953_v2, %v751_v19  ;;  %789 = vst [vmem:[%s1356_s3 + $0x40] sm:$0xff] (!%p952_p11), %v773_v21 }
 0x135   : > { %v989_v31 = vadd.f32 %v988_v28, %v987_v25  ;;  %v1013_v32 = vadd.f32 %v1012_v30, %v1011_v26  ;;  %v990_v33 = vpop.f32.mrb[10].mxu0  ;;  %v1014_v34 = vpop.f32.mrb[10].mxu1  ;;  %782 = vst [vmem:[%s1356_s3 + $0x8] sm:$0xff] (!%p952_p11), %v766_v5 }
 0x136   : > { %v991_v36 = vpop.f32.mrb[11].mxu0  ;;  %v1015_v38 = vpop.f32.mrb[11].mxu1  ;;  %790 = vst [vmem:[%s1356_s3 + $0x48] sm:$0xff] (!%p952_p11), %v774_v22 }
 0x137   : > { %v710_v39 = vadd.f32 %v989_v31, %v373_v27  ;;  %v718_v40 = vadd.f32 %v1013_v32, %v381_v29  ;;  %v992_v41 = vadd.f32 %v991_v36, %v990_v33  ;;  %v1016_v42 = vadd.f32 %v1015_v38, %v1014_v34 }
 0x138   : > { %v744_v6 = vld [vmem:[#allocation2 + $0x10] sm:$0xff] (!%p952_p11) }
 0x139   : > { %726 = vst [vmem:[#allocation2 + $0x20] sm:$0xff] %v710_v39  ;;  %734 = vst [vmem:[#allocation2 + $0x60] sm:$0xff] %v718_v40  ;;  %v711_v43 = vadd.f32 %v992_v41, %v374_v35  ;;  %v719_v44 = vadd.f32 %v1016_v42, %v382_v37  ;;  %v767_v9 = vadd.f32 (!%p952_p11), %v953_v2, %v744_v6  ;;  %v752_v20 = vld [vmem:[#allocation2 + $0x50] sm:$0xff] (!%p952_p11) }
 0x13a   : > { %v745_v7 = vld [vmem:[#allocation2 + $0x18] sm:$0xff] (!%p952_p11)  ;;  %v775_v23 = vadd.f32 (!%p952_p11), %v953_v2, %v752_v20 }
 0x13b   : > { %727 = vst [vmem:[#allocation2 + $0x28] sm:$0xff] %v711_v43  ;;  %735 = vst [vmem:[#allocation2 + $0x68] sm:$0xff] %v719_v44  ;;  %v993_v45 = vpop.f32.mrb[12].mxu0  ;;  %v1017_v46 = vpop.f32.mrb[12].mxu1  ;;  %v768_v10 = vadd.f32 (!%p952_p11), %v953_v2, %v745_v7  ;;  %v753_v24 = vld [vmem:[#allocation2 + $0x58] sm:$0xff] (!%p952_p11) }
 0x13c   : > { %v994_v48 = vpop.f32.mrb[13].mxu0  ;;  %v1018_v50 = vpop.f32.mrb[13].mxu1  ;;  %783 = vst [vmem:[%s1356_s3 + $0x10] sm:$0xff] (!%p952_p11), %v767_v9  ;;  %v776_v27 = vadd.f32 (!%p952_p11), %v953_v2, %v753_v24  ;;  %791 = vst [vmem:[%s1356_s3 + $0x50] sm:$0xff] (!%p952_p11), %v775_v23 }
 0x13d   : > { %v995_v51 = vadd.f32 %v994_v48, %v993_v45  ;;  %v1019_v52 = vadd.f32 %v1018_v50, %v1017_v46  ;;  %v996_v53 = vpop.f32.mrb[14].mxu0  ;;  %v1020_v54 = vpop.f32.mrb[14].mxu1  ;;  %741 = sbr.rel (%p952_p11) target bundleno = 335 (0x14f), region = 78  ;;  %784 = vst [vmem:[%s1356_s3 + $0x18] sm:$0xff] (!%p952_p11), %v768_v10 }
 0x13e   : > { %v997_v56 = vpop.f32.mrb[15].mxu0  ;;  %v1021_v58 = vpop.f32.mrb[15].mxu1  ;;  %792 = vst [vmem:[%s1356_s3 + $0x58] sm:$0xff] (!%p952_p11), %v776_v27 }
 0x13f   : > { %v712_v59 = vadd.f32 %v995_v51, %v375_v47  ;;  %v720_v60 = vadd.f32 %v1019_v52, %v383_v49  ;;  %v998_v61 = vadd.f32 %v997_v56, %v996_v53  ;;  %v1022_v62 = vadd.f32 %v1021_v58, %v1020_v54 }
 0x140   : > { %v746_v8 = vld [vmem:[#allocation2 + $0x20] sm:$0xff] (!%p952_p11) }
 0x141   : > { %728 = vst [vmem:[#allocation2 + $0x30] sm:$0xff] %v712_v59  ;;  %736 = vst [vmem:[#allocation2 + $0x70] sm:$0xff] %v720_v60  ;;  %v713_v63 = vadd.f32 %v998_v61, %v376_v55  ;;  %v721_v0 = vadd.f32 %v1022_v62, %v384_v57  ;;  %v769_v11 = vadd.f32 (!%p952_p11), %v953_v2, %v746_v8  ;;  %v754_v25 = vld [vmem:[#allocation2 + $0x60] sm:$0xff] (!%p952_p11) }
 0x142   : > { %v747_v12 = vld [vmem:[#allocation2 + $0x28] sm:$0xff] (!%p952_p11)  ;;  %v777_v28 = vadd.f32 (!%p952_p11), %v953_v2, %v754_v25 }
 0x143   : > { %729 = vst [vmem:[#allocation2 + $0x38] sm:$0xff] %v713_v63  ;;  %737 = vst [vmem:[#allocation2 + $0x78] sm:$0xff] %v721_v0  ;;  %v770_v15 = vadd.f32 (!%p952_p11), %v953_v2, %v747_v12  ;;  %v755_v26 = vld [vmem:[#allocation2 + $0x68] sm:$0xff] (!%p952_p11) }
 0x144   : > { %785 = vst [vmem:[%s1356_s3 + $0x20] sm:$0xff] %v769_v11  ;;  %v778_v29 = vadd.f32 %v953_v2, %v755_v26  ;;  %793 = vst [vmem:[%s1356_s3 + $0x60] sm:$0xff] %v777_v28 }
 0x145   : > { %786 = vst [vmem:[%s1356_s3 + $0x28] sm:$0xff] %v770_v15 }
 0x146   : > { %794 = vst [vmem:[%s1356_s3 + $0x68] sm:$0xff] %v778_v29 }
 0x148   : > { %v748_v13 = vld [vmem:[#allocation2 + $0x30] sm:$0xff] }
 0x149   : > { %v771_v16 = vadd.f32 %v953_v2, %v748_v13  ;;  %v756_v30 = vld [vmem:[#allocation2 + $0x70] sm:$0xff] }
 0x14a   : > { %v749_v14 = vld [vmem:[#allocation2 + $0x38] sm:$0xff]  ;;  %v779_v32 = vadd.f32 %v953_v2, %v756_v30 }
 0x14b   : > { %v772_v17 = vadd.f32 %v953_v2, %v749_v14  ;;  %787 = vst [vmem:[%s1356_s3 + $0x30] sm:$0xff] %v771_v16  ;;  %v757_v31 = vld [vmem:[#allocation2 + $0x78] sm:$0xff] }
 0x14c   : > { %v780_v33 = vadd.f32 %v953_v2, %v757_v31  ;;  %795 = vst [vmem:[%s1356_s3 + $0x70] sm:$0xff] %v779_v32 }
 0x14d   : > { %788 = vst [vmem:[%s1356_s3 + $0x38] sm:$0xff] %v772_v17 }
 0x14e   : > { %796 = vst [vmem:[%s1356_s3 + $0x78] sm:$0xff] %v780_v33 }
 0x14f PF: > { %s13_s16 = sadd.s32 1, %s1158_s16   ;;  %s1357_s12 = smov %s1146_s13 }
 0x150   : > { %p10_p12 = scmp.ge.s32.totalorder %s13_s16, 4   ;;  %s1358_s13 = smov %s1216_s20 }
 0x151   : > { %s1359_s14 = smov %s1154_s15  ;;  %s1360_s15 = smov %s1362_s17 }
 0x152   :  { %12 = sbr.rel (!%p10_p12) target bundleno = 3 (0x3), region = 119 }

// kernel: _lambda_.34
= control target key start
LH: loop header
LB: loop body
LE: loop exit
PB: predicated region body
PF: predicated region fallthrough
CT: control target
= control target key end

     0   :  { %s2162_s0 = inlined_call_operand.vmem [shape: bf16[128,4608], index: 0, kind: input, shape index: {}]   ;;  %s2163_s1 = inlined_call_operand.vmem [shape: bf16[4608,512], index: 1, kind: input, shape index: {}]   ;;  %s2164_s2 = inlined_call_operand.vmem [shape: f32[1,512], index: 2, kind: input, shape index: {}]   ;;  %s2165_s3 = inlined_call_operand.vmem [shape: f32[128,512], index: 3, kind: output, shape index: {}]  }
   0x1   :  { %2167 = sst [smem:[#allocation7_spill]] %s2162_s0 }
   0x2   :  { %2168 = sst [smem:[#allocation8_spill]] %s2163_s1 }
   0x3   :  { %s1716_s12 = smov 0   ;;  %s1718_s13 = smov 0  }
   0x4   :  { %s1720_s14 = smov 0   ;;  %s1722_s15 = smov 0  }
   0x5   :  { %s1724_s16 = smov 0   ;;  %s1726_s17 = smov 0  }
   0x6   :  { %s1728_s18 = smov 0   ;;  %s1730_s19 = smov 0  }
   0x7   :  { %s1732_s20 = smov 0   ;;  %s1734_s21 = smov 0  }
   0x8   :  { %s1736_s22 = smov 0  }
   0x9 LB: > { %s1339_s23 = sadd.s32 4294967295, %s1693_s22   ;;  %s25_s24 = sadd.s32 1, %s1685_s20  ;;  %s1693_s22 = sphi %s1736_s22, %s13_s22   ;;  %s1689_s21 = sphi %s1734_s21, %s2185_s21   ;;  %s1685_s20 = sphi %s1732_s20, %s2184_s20   ;;  %s1681_s19 = sphi %s1730_s19, %s2183_s19   ;;  %s1677_s18 = sphi %s1728_s18, %s2182_s18   ;;  %s1673_s17 = sphi %s1726_s17, %s2181_s17   ;;  %s1669_s16 = sphi %s1724_s16, %s2180_s16   ;;  %s1665_s15 = sphi %s1722_s15, %s2179_s15   ;;  %s1661_s14 = sphi %s1720_s14, %s2178_s14   ;;  %s1657_s13 = sphi %s1718_s13, %s2177_s13   ;;  %s1653_s12 = sphi %s1716_s12, %s2176_s12  }
   0xa   : > { %p26_p0 = scmp.ge.s32.totalorder %s25_s24, 18  ;;  %s28_s25 = sadd.s32 1, %s1689_s21 }
   0xb   : > { %s41_s26 = sadd.s32 1, %s1673_s17  ;;  %p48_p1 = scmp.ne.s32.totalorder %s1673_s17, %s1669_s16 }
   0xc   : > { %s2187_s24 = smov (%p26_p0, %s25_s24), 0  ;;  %s2189_s25 = smov (!%p26_p0, %s28_s25), %s1689_s21 }
   0xd   : > { %s37_s27 = ssub.s32 %s1685_s20, %s2187_s24  ;;  %p49_p2 = scmp.eq.s32.totalorder %s1693_s22, 0 }
   0xe   : > { %p30_p3 = scmp.ge.s32.totalorder %s2189_s25, 2  ;;  %p39_p4 = scmp.eq.s32.totalorder %s37_s27, 0 }
   0xf   : > { %p1783_p5 = por %p49_p2, %p48_p1  ;;  %s69_s29 = sadd.s32 1, %s1665_s15 }
  0x10   : > { %s2191_s25 = smov (%p30_p3, %s2189_s25), 0  ;;  %p76_p6 = scmp.ne.s32.totalorder %s1665_s15, %s1661_s14 }
  0x11   : > { %2170 = sst [smem:[#allocation6_spill]] %s2191_s25  ;;  %s65_s4 = ssub.s32 %s1689_s21, %s2191_s25 }
  0x12   : > { %s1791_s30 = scalar_select %p39_p4, %s1673_s17, %s41_s26  }
  0x13   : > { %s66_s5 = sor.u32 %s65_s4, %s37_s27  ;;  %p121_p7 = scmp.eq.s32.totalorder %s65_s4, 0 }
  0x14   : > { %p67_p8 = scmp.eq.s32.totalorder %s66_s5, 0  ;;  %p1797_p9 = por %p76_p6, %p49_p2 }
  0x15   : > { %s123_s7 = sadd.s32 1, %s1657_s13  ;;  %p133_p10 = scmp.ne.s32.totalorder %s1657_s13, %s1653_s12 }
  0x16   : > { %s1805_s8 = scalar_select %p67_p8, %s1665_s15, %s69_s29  }
  0x17   : > { %s1808_s9 = scalar_select %p121_p7, %s1657_s13, %s123_s7  }
  0x18   : > { %p134_p11 = scmp.eq.s32.totalorder %s1339_s23, 35  ;;  %p1342_p13 = scmp.ge.s32.totalorder %s1693_s22, 36 }
  0x1a   : > { %p1810_p12 = por %p134_p11, %p133_p10  ;;  %156 = sbr.rel (%p1342_p13) target bundleno = 77 (0x4d), region = 16 }
  0x21   : > { %159 = sbr.rel (!%p1783_p5) target bundleno = 51 (0x33), region = 20  ;;  %s161_s11 = sand.u32 (%p1783_p5), 1, %s1673_s17  }
  0x22   : > { %s1411_s26 = sshll.u32 (%p1783_p5), %s1685_s20, 3  ;;  %s1343_s27 = sshll.u32 (%p1783_p5), %s161_s11, 7 }
  0x23   : > { %s2173_s0 = sld [smem:[#allocation7_spill]] (%p1783_p5)  ;;  %s163_s23 = scalar_lea.vmem (%p1783_p5), [#allocation3], %s1343_s27 }
  0x29   : > { %s1822_s5 = scalar_lea.vmem %s2173_s0, %s1411_s26 }
  0x2a   : > { %v227_v0 = vld [vmem:[%s1822_s5] sm:$0xff]  ;;  %v229_v1 = vld [vmem:[%s1822_s5 + $0x90] sm:$0xff] }
  0x2b   : > { %v231_v2 = vld [vmem:[%s1822_s5 + $0x120] sm:$0xff]  ;;  %228 = vst [vmem:[%s163_s23] sm:$0xff] %v227_v0  ;;  %230 = vst [vmem:[%s163_s23 + $0x8] sm:$0xff] %v229_v1  ;;  %v233_v3 = vld [vmem:[%s1822_s5 + $0x1b0] sm:$0xff] }
  0x2c   : > { %232 = vst [vmem:[%s163_s23 + $0x10] sm:$0xff] %v231_v2  ;;  %v235_v4 = vld [vmem:[%s1822_s5 + $0x240] sm:$0xff]  ;;  %v237_v5 = vld [vmem:[%s1822_s5 + $0x2d0] sm:$0xff]  ;;  %234 = vst [vmem:[%s163_s23 + $0x18] sm:$0xff] %v233_v3 }
  0x2d   : > { %236 = vst [vmem:[%s163_s23 + $0x20] sm:$0xff] %v235_v4  ;;  %238 = vst [vmem:[%s163_s23 + $0x28] sm:$0xff] %v237_v5  ;;  %v239_v6 = vld [vmem:[%s1822_s5 + $0x360] sm:$0xff]  ;;  %v241_v7 = vld [vmem:[%s1822_s5 + $0x3f0] sm:$0xff] }
  0x2e   : > { %v243_v8 = vld [vmem:[%s1822_s5 + $0x480] sm:$0xff]  ;;  %240 = vst [vmem:[%s163_s23 + $0x30] sm:$0xff] %v239_v6  ;;  %242 = vst [vmem:[%s163_s23 + $0x38] sm:$0xff] %v241_v7  ;;  %v245_v9 = vld [vmem:[%s1822_s5 + $0x510] sm:$0xff] }
  0x2f   : > { %244 = vst [vmem:[%s163_s23 + $0x40] sm:$0xff] %v243_v8  ;;  %v247_v10 = vld [vmem:[%s1822_s5 + $0x5a0] sm:$0xff]  ;;  %v249_v11 = vld [vmem:[%s1822_s5 + $0x630] sm:$0xff]  ;;  %246 = vst [vmem:[%s163_s23 + $0x48] sm:$0xff] %v245_v9 }
  0x30   : > { %248 = vst [vmem:[%s163_s23 + $0x50] sm:$0xff] %v247_v10  ;;  %250 = vst [vmem:[%s163_s23 + $0x58] sm:$0xff] %v249_v11  ;;  %v251_v12 = vld [vmem:[%s1822_s5 + $0x6c0] sm:$0xff]  ;;  %v253_v13 = vld [vmem:[%s1822_s5 + $0x750] sm:$0xff] }
  0x31   : > { %v255_v14 = vld [vmem:[%s1822_s5 + $0x7e0] sm:$0xff]  ;;  %252 = vst [vmem:[%s163_s23 + $0x60] sm:$0xff] %v251_v12  ;;  %254 = vst [vmem:[%s163_s23 + $0x68] sm:$0xff] %v253_v13  ;;  %v257_v15 = vld [vmem:[%s1822_s5 + $0x870] sm:$0xff] }
  0x32   : > { %256 = vst [vmem:[%s163_s23 + $0x70] sm:$0xff] %v255_v14  ;;  %258 = vst [vmem:[%s163_s23 + $0x78] sm:$0xff] %v257_v15 }
  0x33 PF: > { %264 = sbr.rel (!%p1797_p9) target bundleno = 77 (0x4d), region = 58  ;;  %s266_s28 = sand.u32 (%p1797_p9), 1, %s1665_s15  }
  0x34   : > { %s1348_s7 = sshll.u32 (%p1797_p9), %s1689_s21, 1  ;;  %s1346_s11 = sshll.u32 (%p1797_p9), %s266_s28, 8 }
  0x35   : > { %s1412_s26 = sshll.u32 (%p1797_p9), %s1685_s20, 7  ;;  %s2174_s1 = sld [smem:[#allocation8_spill]] (%p1797_p9) }
  0x36   : > { %s272_s27 = sadd.s32 (%p1797_p9), %s1412_s26, %s1348_s7  ;;  %s1853_s6 = scalar_lea.vmem (%p1797_p9), [#allocation4], %s1346_s11 }
  0x37   : > { %s1350_s29 = sshll.u32 (%p1797_p9), %s272_s27, 2 }
  0x3b   : > { %s1848_s25 = scalar_lea.vmem %s2174_s1, %s1350_s29 }
  0x3c   : > { %v364_v16 = vld [vmem:[%s1848_s25] sm:$0xff]  ;;  %v366_v17 = vld [vmem:[%s1848_s25 + $0x10] sm:$0xff] }
  0x3d   : > { %v368_v18 = vld [vmem:[%s1848_s25 + $0x20] sm:$0xff]  ;;  %365 = vst [vmem:[%s1853_s6] sm:$0xff] %v364_v16  ;;  %367 = vst [vmem:[%s1853_s6 + $0x8] sm:$0xff] %v366_v17  ;;  %v370_v19 = vld [vmem:[%s1848_s25 + $0x30] sm:$0xff] }
  0x3e   : > { %369 = vst [vmem:[%s1853_s6 + $0x10] sm:$0xff] %v368_v18  ;;  %v372_v20 = vld [vmem:[%s1848_s25 + $0x40] sm:$0xff]  ;;  %v374_v21 = vld [vmem:[%s1848_s25 + $0x50] sm:$0xff]  ;;  %371 = vst [vmem:[%s1853_s6 + $0x18] sm:$0xff] %v370_v19 }
  0x3f   : > { %373 = vst [vmem:[%s1853_s6 + $0x20] sm:$0xff] %v372_v20  ;;  %375 = vst [vmem:[%s1853_s6 + $0x28] sm:$0xff] %v374_v21  ;;  %v376_v22 = vld [vmem:[%s1848_s25 + $0x60] sm:$0xff]  ;;  %v378_v23 = vld [vmem:[%s1848_s25 + $0x70] sm:$0xff] }
  0x40   : > { %v380_v24 = vld [vmem:[%s1848_s25 + $0x80] sm:$0xff]  ;;  %377 = vst [vmem:[%s1853_s6 + $0x30] sm:$0xff] %v376_v22  ;;  %379 = vst [vmem:[%s1853_s6 + $0x38] sm:$0xff] %v378_v23  ;;  %v382_v25 = vld [vmem:[%s1848_s25 + $0x90] sm:$0xff] }
  0x41   : > { %381 = vst [vmem:[%s1853_s6 + $0x40] sm:$0xff] %v380_v24  ;;  %v384_v26 = vld [vmem:[%s1848_s25 + $0xa0] sm:$0xff]  ;;  %v386_v27 = vld [vmem:[%s1848_s25 + $0xb0] sm:$0xff]  ;;  %383 = vst [vmem:[%s1853_s6 + $0x48] sm:$0xff] %v382_v25 }
  0x42   : > { %385 = vst [vmem:[%s1853_s6 + $0x50] sm:$0xff] %v384_v26  ;;  %387 = vst [vmem:[%s1853_s6 + $0x58] sm:$0xff] %v386_v27  ;;  %v388_v28 = vld [vmem:[%s1848_s25 + $0xc0] sm:$0xff]  ;;  %v390_v29 = vld [vmem:[%s1848_s25 + $0xd0] sm:$0xff] }
  0x43   : > { %v392_v30 = vld [vmem:[%s1848_s25 + $0xe0] sm:$0xff]  ;;  %389 = vst [vmem:[%s1853_s6 + $0x60] sm:$0xff] %v388_v28  ;;  %391 = vst [vmem:[%s1853_s6 + $0x68] sm:$0xff] %v390_v29  ;;  %v394_v31 = vld [vmem:[%s1848_s25 + $0xf0] sm:$0xff] }
  0x44   : > { %393 = vst [vmem:[%s1853_s6 + $0x70] sm:$0xff] %v392_v30  ;;  %v396_v32 = vld [vmem:[%s1848_s25 + $0x100] sm:$0xff]  ;;  %v398_v33 = vld [vmem:[%s1848_s25 + $0x110] sm:$0xff]  ;;  %395 = vst [vmem:[%s1853_s6 + $0x78] sm:$0xff] %v394_v31 }
  0x45   : > { %397 = vst [vmem:[%s1853_s6 + $0x80] sm:$0xff] %v396_v32  ;;  %399 = vst [vmem:[%s1853_s6 + $0x88] sm:$0xff] %v398_v33  ;;  %v400_v34 = vld [vmem:[%s1848_s25 + $0x120] sm:$0xff]  ;;  %v402_v35 = vld [vmem:[%s1848_s25 + $0x130] sm:$0xff] }
  0x46   : > { %v404_v36 = vld [vmem:[%s1848_s25 + $0x140] sm:$0xff]  ;;  %401 = vst [vmem:[%s1853_s6 + $0x90] sm:$0xff] %v400_v34  ;;  %403 = vst [vmem:[%s1853_s6 + $0x98] sm:$0xff] %v402_v35  ;;  %v406_v37 = vld [vmem:[%s1848_s25 + $0x150] sm:$0xff] }
  0x47   : > { %405 = vst [vmem:[%s1853_s6 + $0xa0] sm:$0xff] %v404_v36  ;;  %v408_v38 = vld [vmem:[%s1848_s25 + $0x160] sm:$0xff]  ;;  %v410_v39 = vld [vmem:[%s1848_s25 + $0x170] sm:$0xff]  ;;  %407 = vst [vmem:[%s1853_s6 + $0xa8] sm:$0xff] %v406_v37 }
  0x48   : > { %409 = vst [vmem:[%s1853_s6 + $0xb0] sm:$0xff] %v408_v38  ;;  %411 = vst [vmem:[%s1853_s6 + $0xb8] sm:$0xff] %v410_v39  ;;  %v412_v40 = vld [vmem:[%s1848_s25 + $0x180] sm:$0xff]  ;;  %v414_v41 = vld [vmem:[%s1848_s25 + $0x190] sm:$0xff] }
  0x49   : > { %v416_v42 = vld [vmem:[%s1848_s25 + $0x1a0] sm:$0xff]  ;;  %413 = vst [vmem:[%s1853_s6 + $0xc0] sm:$0xff] %v412_v40  ;;  %415 = vst [vmem:[%s1853_s6 + $0xc8] sm:$0xff] %v414_v41  ;;  %v418_v43 = vld [vmem:[%s1848_s25 + $0x1b0] sm:$0xff] }
  0x4a   : > { %417 = vst [vmem:[%s1853_s6 + $0xd0] sm:$0xff] %v416_v42  ;;  %v420_v44 = vld [vmem:[%s1848_s25 + $0x1c0] sm:$0xff]  ;;  %v422_v45 = vld [vmem:[%s1848_s25 + $0x1d0] sm:$0xff]  ;;  %419 = vst [vmem:[%s1853_s6 + $0xd8] sm:$0xff] %v418_v43 }
  0x4b   : > { %421 = vst [vmem:[%s1853_s6 + $0xe0] sm:$0xff] %v420_v44  ;;  %423 = vst [vmem:[%s1853_s6 + $0xe8] sm:$0xff] %v422_v45  ;;  %v424_v46 = vld [vmem:[%s1848_s25 + $0x1e0] sm:$0xff]  ;;  %v426_v47 = vld [vmem:[%s1848_s25 + $0x1f0] sm:$0xff] }
  0x4c   : > { %425 = vst [vmem:[%s1853_s6 + $0xf0] sm:$0xff] %v424_v46  ;;  %427 = vst [vmem:[%s1853_s6 + $0xf8] sm:$0xff] %v426_v47 }
  0x4d PF: > { %p1351_p0 = scmp.ge.s32.totalorder %s1693_s22, 1  ;;  %p440_p1 = scmp.lt.s32.totalorder %s1693_s22, 37 }
  0x4f   : > { %p441_p2 = pnand %p1351_p0, %p440_p1 }
  0x50   : > { %s447_s0 = sand.u32 (!%p441_p2), 1, %s1669_s16   ;;  %s454_s5 = sand.u32 (!%p441_p2), 1, %s1661_s14  }
  0x51   : > { %444 = sbr.rel (%p441_p2) target bundleno = 443 (0x1bb), region = 100  ;;  %s1352_s23 = sshll.u32 (!%p441_p2), %s447_s0, 7 }
  0x52   : > { %s1353_s28 = sshll.u32 (!%p441_p2), %s454_s5, 8  ;;  %s481_s7 = sand.u32 (!%p441_p2), 1, %s1653_s12  }
  0x53   : > { %s1355_s25 = sshll.u32 (!%p441_p2), %s1681_s19, 1  ;;  %s1354_s11 = sshll.u32 (!%p441_p2), %s481_s7, 8 }
  0x54   : > { %p489_p3 = scmp.lt.s32.totalorder (!%p441_p2), %s1355_s25, 3  ;;  %s1928_s4 = scalar_lea.vmem (!%p441_p2), [#allocation3], %s1352_s23 }
  0x55   : > { %s1930_s6 = scalar_lea.vmem (!%p441_p2), [#allocation4], %s1353_s28  ;;  %s1932_s1 = scalar_lea.vmem (!%p441_p2), [#allocation5], %s1354_s11 }
  0x56   : > { %p1356_p4 = scmp.ne.s32.totalorder (!%p441_p2), %s1677_s18, 0 }
  0x58   : > { %s2193_s25 = smov (!%p489_p3, %s1355_s25), 3  ;;  %498 = sbr.rel (%p1356_p4) target bundleno = 106 (0x6a), region = 112 }
  0x59   : > { %s491_s29 = scalar_lea.vmem %s2164_s2, %s2193_s25  ;;  %v1695_v48 = vmov (!%p1356_p4), 0.0  }
  0x5a   : > { %499 = vst [vmem:[#allocation2] sm:$0xff] (!%p1356_p4), %v1695_v48  ;;  %500 = vst [vmem:[#allocation2 + $0x8] sm:$0xff] (!%p1356_p4), %v1695_v48 }
  0x5b   : > { %501 = vst [vmem:[#allocation2 + $0x10] sm:$0xff] (!%p1356_p4), %v1695_v48  ;;  %502 = vst [vmem:[#allocation2 + $0x18] sm:$0xff] (!%p1356_p4), %v1695_v48 }
  0x5c   : > { %503 = vst [vmem:[#allocation2 + $0x20] sm:$0xff] (!%p1356_p4), %v1695_v48  ;;  %504 = vst [vmem:[#allocation2 + $0x28] sm:$0xff] (!%p1356_p4), %v1695_v48 }
  0x5d   : > { %505 = vst [vmem:[#allocation2 + $0x30] sm:$0xff] (!%p1356_p4), %v1695_v48  ;;  %506 = vst [vmem:[#allocation2 + $0x38] sm:$0xff] (!%p1356_p4), %v1695_v48 }
  0x5e   : > { %507 = vst [vmem:[#allocation2 + $0x40] sm:$0xff] (!%p1356_p4), %v1695_v48  ;;  %508 = vst [vmem:[#allocation2 + $0x48] sm:$0xff] (!%p1356_p4), %v1695_v48 }
  0x5f   : > { %509 = vst [vmem:[#allocation2 + $0x50] sm:$0xff] %v1695_v48  ;;  %510 = vst [vmem:[#allocation2 + $0x58] sm:$0xff] %v1695_v48 }
  0x60   : > { %511 = vst [vmem:[#allocation2 + $0x60] sm:$0xff] %v1695_v48  ;;  %512 = vst [vmem:[#allocation2 + $0x68] sm:$0xff] %v1695_v48 }
  0x61   : > { %513 = vst [vmem:[#allocation2 + $0x70] sm:$0xff] %v1695_v48  ;;  %514 = vst [vmem:[#allocation2 + $0x78] sm:$0xff] %v1695_v48 }
  0x62   : > { %515 = vst [vmem:[#allocation2 + $0x80] sm:$0xff] %v1695_v48  ;;  %516 = vst [vmem:[#allocation2 + $0x88] sm:$0xff] %v1695_v48 }
  0x63   : > { %517 = vst [vmem:[#allocation2 + $0x90] sm:$0xff] %v1695_v48  ;;  %518 = vst [vmem:[#allocation2 + $0x98] sm:$0xff] %v1695_v48 }
  0x64   : > { %519 = vst [vmem:[#allocation2 + $0xa0] sm:$0xff] %v1695_v48  ;;  %520 = vst [vmem:[#allocation2 + $0xa8] sm:$0xff] %v1695_v48 }
  0x65   : > { %521 = vst [vmem:[#allocation2 + $0xb0] sm:$0xff] %v1695_v48  ;;  %522 = vst [vmem:[#allocation2 + $0xb8] sm:$0xff] %v1695_v48 }
  0x66   : > { %523 = vst [vmem:[#allocation2 + $0xc0] sm:$0xff] %v1695_v48  ;;  %524 = vst [vmem:[#allocation2 + $0xc8] sm:$0xff] %v1695_v48 }
  0x67   : > { %525 = vst [vmem:[#allocation2 + $0xd0] sm:$0xff] %v1695_v48  ;;  %526 = vst [vmem:[#allocation2 + $0xd8] sm:$0xff] %v1695_v48 }
  0x68   : > { %527 = vst [vmem:[#allocation2 + $0xe0] sm:$0xff] %v1695_v48  ;;  %528 = vst [vmem:[#allocation2 + $0xe8] sm:$0xff] %v1695_v48 }
  0x69   : > { %529 = vst [vmem:[#allocation2 + $0xf0] sm:$0xff] %v1695_v48  ;;  %530 = vst [vmem:[#allocation2 + $0xf8] sm:$0xff] %v1695_v48 }
  0x6a PF: > { %v1535_v49 = vld [vmem:[%s1930_s6 + $0x4] ss:$8 sps:$4 sm:$0xff]   ;;  %v1537_v50 = vld [vmem:[%s1930_s6] ss:$8 sps:$4 sm:$0xff]   ;;  %v1538_v51 = vld [vmem:[%s1930_s6 + $0x14] ss:$8 sps:$4 sm:$0xff]  }
  0x6b   : > { %851 = vmatprep.subr.bf16.mxu0 %v1535_v49  ;;  %1414 = vmatprep.subr.bf16.mxu1 %v1535_v49  ;;  %v1540_v52 = vld [vmem:[%s1930_s6 + $0x10] ss:$8 sps:$4 sm:$0xff]   ;;  %v1541_v53 = vld [vmem:[%s1930_s6 + $0x24] ss:$8 sps:$4 sm:$0xff]   ;;  %v1543_v54 = vld [vmem:[%s1930_s6 + $0x20] ss:$8 sps:$4 sm:$0xff]  }
  0x6c   : > { %852 = vmatpush1.bf16.msra.mxu0 %v1537_v50  ;;  %1430 = vmatpush1.bf16.msra.mxu1 %v1537_v50  ;;  %v1544_v55 = vld [vmem:[%s1930_s6 + $0x34] ss:$8 sps:$4 sm:$0xff]   ;;  %v1546_v56 = vld [vmem:[%s1930_s6 + $0x30] ss:$8 sps:$4 sm:$0xff]   ;;  %v1547_v57 = vld [vmem:[%s1930_s6 + $0x44] ss:$8 sps:$4 sm:$0xff]  }
  0x6d   : > { %853 = vmatprep.subr.bf16.mxu0 %v1538_v51  ;;  %1415 = vmatprep.subr.bf16.mxu1 %v1538_v51  ;;  %v1549_v58 = vld [vmem:[%s1930_s6 + $0x40] ss:$8 sps:$4 sm:$0xff]   ;;  %v1550_v59 = vld [vmem:[%s1930_s6 + $0x54] ss:$8 sps:$4 sm:$0xff]   ;;  %v1552_v60 = vld [vmem:[%s1930_s6 + $0x50] ss:$8 sps:$4 sm:$0xff]  }
  0x6e   : > { %v1553_v61 = vld [vmem:[%s1930_s6 + $0x64] ss:$8 sps:$4 sm:$0xff]   ;;  %v1555_v63 = vld [vmem:[%s1930_s6 + $0x60] ss:$8 sps:$4 sm:$0xff]   ;;  %v1556_v1 = vld [vmem:[%s1930_s6 + $0x74] ss:$8 sps:$4 sm:$0xff]  }
  0x6f   : > { %v1585_v62 = vld [vmem:[%s1928_s4 + $0x4] ss:$8 sps:$4 sm:$0xff]   ;;  %v1558_v2 = vld [vmem:[%s1930_s6 + $0x70] ss:$8 sps:$4 sm:$0xff]   ;;  %v1561_v4 = vld [vmem:[%s1930_s6 + $0x80] ss:$8 sps:$4 sm:$0xff]  }
  0x70   : > { %854 = vmatpush1.bf16.msra.mxu0 %v1540_v52  ;;  %1431 = vmatpush1.bf16.msra.mxu1 %v1540_v52  ;;  %v1588_v0 = vld [vmem:[%s1928_s4 + $0x44] ss:$8 sps:$4 sm:$0xff]   ;;  %v1562_v5 = vld [vmem:[%s1930_s6 + $0x94] ss:$8 sps:$4 sm:$0xff]   ;;  %v1564_v6 = vld [vmem:[%s1930_s6 + $0x90] ss:$8 sps:$4 sm:$0xff]  }
  0x71   : > { %855 = vmatprep.subr.bf16.mxu0 %v1541_v53  ;;  %1416 = vmatprep.subr.bf16.mxu1 %v1541_v53  ;;  %v1559_v3 = vld [vmem:[%s1930_s6 + $0x84] ss:$8 sps:$4 sm:$0xff]   ;;  %v1567_v8 = vld [vmem:[%s1930_s6 + $0xa0] ss:$8 sps:$4 sm:$0xff]   ;;  %v1568_v9 = vld [vmem:[%s1930_s6 + $0xb4] ss:$8 sps:$4 sm:$0xff]  }
  0x72   : > { %883 = vmatprep.mubr.bf16.mxu0 %v1585_v62  ;;  %923 = vmatprep.mubr.bf16.mxu1 %v1588_v0  ;;  %v1565_v7 = vld [vmem:[%s1930_s6 + $0xa4] ss:$8 sps:$4 sm:$0xff]   ;;  %v1570_v10 = vld [vmem:[%s1930_s6 + $0xb0] ss:$8 sps:$4 sm:$0xff]   ;;  %v1573_v12 = vld [vmem:[%s1930_s6 + $0xc0] ss:$8 sps:$4 sm:$0xff]  }
  0x73   : > { %v1571_v11 = vld [vmem:[%s1930_s6 + $0xc4] ss:$8 sps:$4 sm:$0xff]   ;;  %v1574_v13 = vld [vmem:[%s1930_s6 + $0xd4] ss:$8 sps:$4 sm:$0xff]   ;;  %v1576_v14 = vld [vmem:[%s1930_s6 + $0xd0] ss:$8 sps:$4 sm:$0xff]  }
  0x74   : > { %856 = vmatpush1.bf16.msra.mxu0 %v1543_v54  ;;  %1432 = vmatpush1.bf16.msra.mxu1 %v1543_v54  ;;  %v1577_v15 = vld [vmem:[%s1930_s6 + $0xe4] ss:$8 sps:$4 sm:$0xff]   ;;  %v1579_v16 = vld [vmem:[%s1930_s6 + $0xe0] ss:$8 sps:$4 sm:$0xff]   ;;  %v1580_v17 = vld [vmem:[%s1930_s6 + $0xf4] ss:$8 sps:$4 sm:$0xff]  }
  0x75   : > { %857 = vmatprep.subr.bf16.mxu0 %v1544_v55  ;;  %1417 = vmatprep.subr.bf16.mxu1 %v1544_v55  ;;  %v1582_v18 = vld [vmem:[%s1930_s6 + $0xf0] ss:$8 sps:$4 sm:$0xff]   ;;  %v1583_v19 = vld [vmem:[%s1928_s4] ss:$8 sps:$4 sm:$0xff]   ;;  %v1589_v21 = vld [vmem:[%s1928_s4 + $0x14] ss:$8 sps:$4 sm:$0xff]  }
  0x76   : > { %v1586_v20 = vld [vmem:[%s1928_s4 + $0x40] ss:$8 sps:$4 sm:$0xff]   ;;  %v1591_v22 = vld [vmem:[%s1928_s4 + $0x54] ss:$8 sps:$4 sm:$0xff]   ;;  %v1593_v23 = vld [vmem:[%s1928_s4 + $0x10] ss:$8 sps:$4 sm:$0xff]  }
  0x77   : > { %v1594_v24 = vld [vmem:[%s1928_s4 + $0x50] ss:$8 sps:$4 sm:$0xff]   ;;  %v1595_v25 = vld [vmem:[%s1928_s4 + $0x24] ss:$8 sps:$4 sm:$0xff]   ;;  %v1599_v27 = vld [vmem:[%s1928_s4 + $0x20] ss:$8 sps:$4 sm:$0xff]  }
  0x78   : > { %858 = vmatpush1.bf16.msra.mxu0 %v1546_v56  ;;  %1433 = vmatpush1.bf16.msra.mxu1 %v1546_v56  ;;  %v1597_v26 = vld [vmem:[%s1928_s4 + $0x64] ss:$8 sps:$4 sm:$0xff]   ;;  %v1600_v28 = vld [vmem:[%s1928_s4 + $0x60] ss:$8 sps:$4 sm:$0xff]   ;;  %v1601_v29 = vld [vmem:[%s1928_s4 + $0x34] ss:$8 sps:$4 sm:$0xff]  }
  0x79   : > { %859 = vmatprep.subr.bf16.mxu0 %v1547_v57  ;;  %1418 = vmatprep.subr.bf16.mxu1 %v1547_v57  ;;  %v1603_v30 = vld [vmem:[%s1928_s4 + $0x74] ss:$8 sps:$4 sm:$0xff]   ;;  %v1605_v31 = vld [vmem:[%s1928_s4 + $0x30] ss:$8 sps:$4 sm:$0xff]   ;;  %v531_v33 = vld [vmem:[#allocation2] sm:$0xff]  ;;  %p1405_p5 = scmp.ne.s32.totalorder %s1677_s18, 17 }
  0x7a   : > { %v1606_v32 = vld [vmem:[%s1928_s4 + $0x70] ss:$8 sps:$4 sm:$0xff]   ;;  %v547_v34 = vld [vmem:[#allocation2 + $0x80] sm:$0xff]  ;;  %v532_v35 = vld [vmem:[#allocation2 + $0x8] sm:$0xff] }
  0x7b   : > { %v548_v36 = vld [vmem:[#allocation2 + $0x88] sm:$0xff]  ;;  %v533_v39 = vld [vmem:[#allocation2 + $0x10] sm:$0xff]  ;;  %v534_v45 = vld [vmem:[#allocation2 + $0x18] sm:$0xff] }
  0x7c   : > { %860 = vmatpush1.bf16.msra.mxu0 %v1549_v58  ;;  %1434 = vmatpush1.bf16.msra.mxu1 %v1549_v58  ;;  %v549_v40 = vld [vmem:[#allocation2 + $0x90] sm:$0xff]  ;;  %v550_v46 = vld [vmem:[#allocation2 + $0x98] sm:$0xff]  ;;  %v535_v57 = vld [vmem:[#allocation2 + $0x20] sm:$0xff] }
  0x7d   : > { %861 = vmatprep.subr.bf16.mxu0 %v1550_v59  ;;  %1419 = vmatprep.subr.bf16.mxu1 %v1550_v59  ;;  %v551_v58 = vld [vmem:[#allocation2 + $0xa0] sm:$0xff]  ;;  %v536_v59 = vld [vmem:[#allocation2 + $0x28] sm:$0xff]  ;;  %v553_v0 = vld [vmem:[#allocation2 + $0xb0] sm:$0xff] }
  0x80   : > { %862 = vmatpush1.bf16.msra.mxu0 %v1552_v60  ;;  %1435 = vmatpush1.bf16.msra.mxu1 %v1552_v60  ;;  %v552_v60 = vld [vmem:[#allocation2 + $0xa8] sm:$0xff] }
  0x81   : > { %863 = vmatprep.subr.bf16.mxu0 %v1553_v61  ;;  %1420 = vmatprep.subr.bf16.mxu1 %v1553_v61 }
  0x84   : > { %864 = vmatpush1.bf16.msra.mxu0 %v1555_v63  ;;  %1436 = vmatpush1.bf16.msra.mxu1 %v1555_v63  ;;  %v537_v63 = vld [vmem:[#allocation2 + $0x30] sm:$0xff] }
  0x85   : > { %865 = vmatprep.subr.bf16.mxu0 %v1556_v1  ;;  %1421 = vmatprep.subr.bf16.mxu1 %v1556_v1 }
  0x88   : > { %866 = vmatpush1.bf16.msra.mxu0 %v1558_v2  ;;  %1437 = vmatpush1.bf16.msra.mxu1 %v1558_v2 }
  0x89   : > { %867 = vmatprep.subr.bf16.mxu0 %v1559_v3  ;;  %1422 = vmatprep.subr.bf16.mxu1 %v1559_v3 }
  0x8c   : > { %868 = vmatpush1.bf16.msra.mxu0 %v1561_v4  ;;  %1438 = vmatpush1.bf16.msra.mxu1 %v1561_v4 }
  0x8d   : > { %869 = vmatprep.subr.bf16.mxu0 %v1562_v5  ;;  %1423 = vmatprep.subr.bf16.mxu1 %v1562_v5  ;;  %v538_v5 = vld [vmem:[#allocation2 + $0x38] sm:$0xff] }
  0x90   : > { %870 = vmatpush1.bf16.msra.mxu0 %v1564_v6  ;;  %1439 = vmatpush1.bf16.msra.mxu1 %v1564_v6  ;;  %v554_v6 = vld [vmem:[#allocation2 + $0xb8] sm:$0xff] }
  0x91   : > { %871 = vmatprep.subr.bf16.mxu0 %v1565_v7  ;;  %1424 = vmatprep.subr.bf16.mxu1 %v1565_v7 }
  0x94   : > { %872 = vmatpush1.bf16.msra.mxu0 %v1567_v8  ;;  %1440 = vmatpush1.bf16.msra.mxu1 %v1567_v8 }
  0x95   : > { %873 = vmatprep.subr.bf16.mxu0 %v1568_v9  ;;  %1425 = vmatprep.subr.bf16.mxu1 %v1568_v9 }
  0x98   : > { %874 = vmatpush1.bf16.msra.mxu0 %v1570_v10  ;;  %1441 = vmatpush1.bf16.msra.mxu1 %v1570_v10 }
  0x99   : > { %875 = vmatprep.subr.bf16.mxu0 %v1571_v11  ;;  %1426 = vmatprep.subr.bf16.mxu1 %v1571_v11 }
  0x9c   : > { %876 = vmatpush1.bf16.msra.mxu0 %v1573_v12  ;;  %1442 = vmatpush1.bf16.msra.mxu1 %v1573_v12 }
  0x9d   : > { %877 = vmatprep.subr.bf16.mxu0 %v1574_v13  ;;  %1427 = vmatprep.subr.bf16.mxu1 %v1574_v13 }
  0xa0   : > { %878 = vmatpush1.bf16.msra.mxu0 %v1576_v14  ;;  %1443 = vmatpush1.bf16.msra.mxu1 %v1576_v14 }
  0xa1   : > { %879 = vmatprep.subr.bf16.mxu0 %v1577_v15  ;;  %1428 = vmatprep.subr.bf16.mxu1 %v1577_v15 }
  0xa4   : > { %880 = vmatpush1.bf16.msra.mxu0 %v1579_v16  ;;  %1444 = vmatpush1.bf16.msra.mxu1 %v1579_v16 }
  0xa5   : > { %881 = vmatprep.subr.bf16.mxu0 %v1580_v17  ;;  %1429 = vmatprep.subr.bf16.mxu1 %v1580_v17  ;;  %v539_v17 = vld [vmem:[#allocation2 + $0x40] sm:$0xff] }
  0xa8   : > { %882 = vmatpush1.bf16.msra.mxu0 %v1582_v18  ;;  %1445 = vmatpush1.bf16.msra.mxu1 %v1582_v18  ;;  %v555_v18 = vld [vmem:[#allocation2 + $0xc0] sm:$0xff] }
  0xab   : > { %884 = vmatmul.mubr.bf16.vlgmr.msra.gmra.mrb[0].mxu0 %v1583_v19  ;;  %924 = vmatmul.mubr.bf16.vlgmr.msra.gmra.mrb[0].mxu1 %v1586_v20  ;;  %v540_v19 = vld [vmem:[#allocation2 + $0x48] sm:$0xff] }
  0xac   : > { %893 = vmatprep.mubr.bf16.mxu0 %v1589_v21  ;;  %933 = vmatprep.mubr.bf16.mxu1 %v1591_v22  ;;  %v556_v20 = vld [vmem:[#allocation2 + $0xc8] sm:$0xff] }
  0xb3   : > { %894 = vmatmul.mubr.bf16.gmra.mrb[4].mxu0 %v1593_v23  ;;  %934 = vmatmul.mubr.bf16.gmra.mrb[4].mxu1 %v1594_v24  ;;  %v541_v23 = vld [vmem:[#allocation2 + $0x50] sm:$0xff] }
  0xb4   : > { %903 = vmatprep.mubr.bf16.mxu0 %v1595_v25  ;;  %943 = vmatprep.mubr.bf16.mxu1 %v1597_v26  ;;  %v557_v24 = vld [vmem:[#allocation2 + $0xd0] sm:$0xff] }
  0xbb   : > { %904 = vmatmul.mubr.bf16.gmra.mrb[8].mxu0 %v1599_v27  ;;  %944 = vmatmul.mubr.bf16.gmra.mrb[8].mxu1 %v1600_v28 }
  0xbc   : > { %913 = vmatprep.mubr.bf16.mxu0 %v1601_v29  ;;  %953 = vmatprep.mubr.bf16.mxu1 %v1603_v30  ;;  %v542_v29 = vld [vmem:[#allocation2 + $0x58] sm:$0xff] }
  0xbd   : > { %v558_v30 = vld [vmem:[#allocation2 + $0xd8] sm:$0xff] }
  0xc3   : > { %914 = vmatmul.mubr.bf16.gmra.mrb[12].mxu0 %v1605_v31  ;;  %954 = vmatmul.mubr.bf16.gmra.mrb[12].mxu1 %v1606_v32 }
 0x17e   : > { %v885_v37 = vpop.f32.mrb[0].mxu0  ;;  %v925_v38 = vpop.f32.mrb[0].mxu1 }
 0x17f   : > { %v964_v41 = vadd.f32 %v885_v37, %v531_v33  ;;  %v980_v42 = vadd.f32 %v925_v38, %v547_v34  ;;  %v887_v43 = vpop.f32.mrb[1].mxu0  ;;  %v927_v44 = vpop.f32.mrb[1].mxu1 }
 0x180   : > { %v965_v47 = vadd.f32 %v887_v43, %v532_v35  ;;  %v981_v48 = vadd.f32 %v927_v44, %v548_v36  ;;  %v889_v49 = vpop.f32.mrb[2].mxu0  ;;  %v929_v50 = vpop.f32.mrb[2].mxu1  ;;  %v544_v43 = vld [vmem:[#allocation2 + $0x68] sm:$0xff] }
 0x181   : > { %996 = vst [vmem:[#allocation2] sm:$0xff] %v964_v41  ;;  %1012 = vst [vmem:[#allocation2 + $0x80] sm:$0xff] %v980_v42  ;;  %v966_v51 = vadd.f32 %v889_v49, %v533_v39  ;;  %v982_v52 = vadd.f32 %v929_v50, %v549_v40  ;;  %v891_v53 = vpop.f32.mrb[3].mxu0  ;;  %v931_v54 = vpop.f32.mrb[3].mxu1  ;;  %v543_v41 = vld [vmem:[#allocation2 + $0x60] sm:$0xff]  ;;  %v560_v44 = vld [vmem:[#allocation2 + $0xe8] sm:$0xff] }
 0x182   : > { %997 = vst [vmem:[#allocation2 + $0x8] sm:$0xff] %v965_v47  ;;  %1013 = vst [vmem:[#allocation2 + $0x88] sm:$0xff] %v981_v48  ;;  %v967_v55 = vadd.f32 %v891_v53, %v534_v45  ;;  %v983_v56 = vadd.f32 %v931_v54, %v550_v46  ;;  %v559_v42 = vld [vmem:[#allocation2 + $0xe0] sm:$0xff]  ;;  %v545_v47 = vld [vmem:[#allocation2 + $0x70] sm:$0xff] }
 0x183   : > { %998 = vst [vmem:[#allocation2 + $0x10] sm:$0xff] %v966_v51  ;;  %1014 = vst [vmem:[#allocation2 + $0x90] sm:$0xff] %v982_v52  ;;  %v561_v48 = vld [vmem:[#allocation2 + $0xf0] sm:$0xff]  ;;  %v546_v53 = vld [vmem:[#allocation2 + $0x78] sm:$0xff] }
 0x184   : > { %999 = vst [vmem:[#allocation2 + $0x18] sm:$0xff] %v967_v55  ;;  %1015 = vst [vmem:[#allocation2 + $0x98] sm:$0xff] %v983_v56  ;;  %v562_v54 = vld [vmem:[#allocation2 + $0xf8] sm:$0xff] }
 0x186   : > { %v895_v61 = vpop.f32.mrb[4].mxu0  ;;  %v935_v62 = vpop.f32.mrb[4].mxu1 }
 0x187   : > { %v968_v1 = vadd.f32 %v895_v61, %v535_v57  ;;  %v984_v2 = vadd.f32 %v935_v62, %v551_v58  ;;  %v897_v3 = vpop.f32.mrb[5].mxu0  ;;  %v937_v4 = vpop.f32.mrb[5].mxu1 }
 0x188   : > { %v969_v7 = vadd.f32 %v897_v3, %v536_v59  ;;  %v985_v8 = vadd.f32 %v937_v4, %v552_v60  ;;  %v899_v9 = vpop.f32.mrb[6].mxu0  ;;  %v939_v10 = vpop.f32.mrb[6].mxu1  ;;  %v1032_v4 = vld [vmem:[#allocation2] sm:$0xff] (!%p1405_p5) }
 0x189   : > { %1000 = vst [vmem:[#allocation2 + $0x20] sm:$0xff] %v968_v1  ;;  %1016 = vst [vmem:[#allocation2 + $0xa0] sm:$0xff] %v984_v2  ;;  %v970_v11 = vadd.f32 %v899_v9, %v537_v63  ;;  %v986_v12 = vadd.f32 %v939_v10, %v553_v0  ;;  %v901_v13 = vpop.f32.mrb[7].mxu0  ;;  %v941_v14 = vpop.f32.mrb[7].mxu1  ;;  %v1066_v1 = vlaneseq (!%p1405_p5)  ;;  %v1064_v2 = vld [vmem:[%s491_s29] sm:$0x3] (!%p1405_p5) }
 0x18a   : > { %1001 = vst [vmem:[#allocation2 + $0x28] sm:$0xff] %v969_v7  ;;  %1017 = vst [vmem:[#allocation2 + $0xa8] sm:$0xff] %v985_v8  ;;  %v971_v15 = vadd.f32 %v901_v13, %v538_v5  ;;  %v987_v16 = vadd.f32 %v941_v14, %v554_v6  ;;  %v1033_v5 = vld [vmem:[#allocation2 + $0x8] sm:$0xff] (!%p1405_p5)  ;;  %v1034_v6 = vld [vmem:[#allocation2 + $0x10] sm:$0xff] (!%p1405_p5) }
 0x18b   : > { %1002 = vst [vmem:[#allocation2 + $0x30] sm:$0xff] %v970_v11  ;;  %1018 = vst [vmem:[#allocation2 + $0xb0] sm:$0xff] %v986_v12  ;;  %v1067_v3 = vshrl.u32 (!%p1405_p5), %v1066_v1, 7  ;;  %v1035_v7 = vld [vmem:[#allocation2 + $0x18] sm:$0xff] (!%p1405_p5) }
 0x18c   : > { %1003 = vst [vmem:[#allocation2 + $0x38] sm:$0xff] %v971_v15  ;;  %1019 = vst [vmem:[#allocation2 + $0xb8] sm:$0xff] %v987_v16 }
 0x18d   : > { %v1068_v8 = vsub.s32 (!%p1405_p5), 0, %v1067_v3  ;;  %v1072_v9 = vsub.s32 (!%p1405_p5), 1, %v1067_v3 }
 0x18e   : > { %v905_v21 = vpop.f32.mrb[8].mxu0  ;;  %v945_v22 = vpop.f32.mrb[8].mxu1 }
 0x18f   : > { %v972_v25 = vadd.f32 %v905_v21, %v539_v17  ;;  %v988_v26 = vadd.f32 %v945_v22, %v555_v18  ;;  %v907_v27 = vpop.f32.mrb[9].mxu0  ;;  %v947_v28 = vpop.f32.mrb[9].mxu1  ;;  %v1989_v17 = vrot.slane (!%p1405_p5), %v1064_v2, %v1068_v8  ;;  %v1991_v18 = vrot.slane (!%p1405_p5), %v1064_v2, %v1072_v9 }
 0x190   : > { %v973_v31 = vadd.f32 %v907_v27, %v540_v19  ;;  %v989_v32 = vadd.f32 %v947_v28, %v556_v20  ;;  %v909_v33 = vpop.f32.mrb[10].mxu0  ;;  %v949_v34 = vpop.f32.mrb[10].mxu1  ;;  %v1036_v10 = vld [vmem:[#allocation2 + $0x20] sm:$0xff] (!%p1405_p5) }
 0x191   : > { %1004 = vst [vmem:[#allocation2 + $0x40] sm:$0xff] %v972_v25  ;;  %1020 = vst [vmem:[#allocation2 + $0xc0] sm:$0xff] %v988_v26  ;;  %v974_v35 = vadd.f32 %v909_v33, %v541_v23  ;;  %v990_v36 = vadd.f32 %v949_v34, %v557_v24  ;;  %v911_v37 = vpop.f32.mrb[11].mxu0  ;;  %v951_v38 = vpop.f32.mrb[11].mxu1  ;;  %v1037_v11 = vld [vmem:[#allocation2 + $0x28] sm:$0xff] (!%p1405_p5)  ;;  %v1048_v24 = vld [vmem:[#allocation2 + $0x80] sm:$0xff] (!%p1405_p5)  ;;  %v1076_v25 = vadd.f32 (!%p1405_p5), %v1989_v17, %v1032_v4 }
 0x192   : > { %1005 = vst [vmem:[#allocation2 + $0x48] sm:$0xff] %v973_v31  ;;  %1021 = vst [vmem:[#allocation2 + $0xc8] sm:$0xff] %v989_v32  ;;  %v975_v39 = vadd.f32 %v911_v37, %v542_v29  ;;  %v991_v40 = vadd.f32 %v951_v38, %v558_v30  ;;  %v1038_v12 = vld [vmem:[#allocation2 + $0x30] sm:$0xff] (!%p1405_p5)  ;;  %v1077_v26 = vadd.f32 (!%p1405_p5), %v1991_v18, %v1033_v5  ;;  %v1049_v29 = vld [vmem:[#allocation2 + $0x88] sm:$0xff] (!%p1405_p5) }
 0x193   : > { %1006 = vst [vmem:[#allocation2 + $0x50] sm:$0xff] %v974_v35  ;;  %1022 = vst [vmem:[#allocation2 + $0xd0] sm:$0xff] %v990_v36  ;;  %v1039_v13 = vld [vmem:[#allocation2 + $0x38] sm:$0xff] (!%p1405_p5)  ;;  %v1078_v27 = vadd.f32 (!%p1405_p5), %v1989_v17, %v1034_v6  ;;  %v1079_v28 = vadd.f32 (!%p1405_p5), %v1991_v18, %v1035_v7  ;;  %v1050_v30 = vld [vmem:[#allocation2 + $0x90] sm:$0xff] (!%p1405_p5)  ;;  %v1080_v32 = vadd.f32 (!%p1405_p5), %v1989_v17, %v1036_v10 }
 0x194   : > { %1007 = vst [vmem:[#allocation2 + $0x58] sm:$0xff] %v975_v39  ;;  %1023 = vst [vmem:[#allocation2 + $0xd8] sm:$0xff] %v991_v40  ;;  %v1051_v31 = vld [vmem:[#allocation2 + $0x98] sm:$0xff] (!%p1405_p5)  ;;  %v1081_v33 = vadd.f32 (!%p1405_p5), %v1991_v18, %v1037_v11  ;;  %v1082_v34 = vadd.f32 (!%p1405_p5), %v1989_v17, %v1038_v12  ;;  %v1083_v35 = vadd.f32 (!%p1405_p5), %v1991_v18, %v1039_v13  ;;  %v1052_v36 = vld [vmem:[#allocation2 + $0xa0] sm:$0xff] (!%p1405_p5) }
 0x195   : > { %v1053_v37 = vld [vmem:[#allocation2 + $0xa8] sm:$0xff] (!%p1405_p5)  ;;  %v1054_v38 = vld [vmem:[#allocation2 + $0xb0] sm:$0xff] (!%p1405_p5)  ;;  %1108 = vst [vmem:[%s1932_s1] sm:$0xff] (!%p1405_p5), %v1076_v25  ;;  %1109 = vst [vmem:[%s1932_s1 + $0x8] sm:$0xff] (!%p1405_p5), %v1077_v26 }
 0x196   : > { %v915_v45 = vpop.f32.mrb[12].mxu0  ;;  %v955_v46 = vpop.f32.mrb[12].mxu1  ;;  %1031 = sbr.rel (%p1405_p5) target bundleno = 425 (0x1a9), region = 116  ;;  %1110 = vst [vmem:[%s1932_s1 + $0x10] sm:$0xff] (!%p1405_p5), %v1078_v27  ;;  %1111 = vst [vmem:[%s1932_s1 + $0x18] sm:$0xff] (!%p1405_p5), %v1079_v28 }
 0x197   : > { %v976_v49 = vadd.f32 %v915_v45, %v543_v41  ;;  %v992_v50 = vadd.f32 %v955_v46, %v559_v42  ;;  %v917_v51 = vpop.f32.mrb[13].mxu0  ;;  %v957_v52 = vpop.f32.mrb[13].mxu1  ;;  %1112 = vst [vmem:[%s1932_s1 + $0x20] sm:$0xff] (!%p1405_p5), %v1080_v32  ;;  %1113 = vst [vmem:[%s1932_s1 + $0x28] sm:$0xff] (!%p1405_p5), %v1081_v33 }
 0x198   : > { %v977_v55 = vadd.f32 %v917_v51, %v544_v43  ;;  %v993_v56 = vadd.f32 %v957_v52, %v560_v44  ;;  %v919_v57 = vpop.f32.mrb[14].mxu0  ;;  %v959_v58 = vpop.f32.mrb[14].mxu1  ;;  %v1040_v14 = vld [vmem:[#allocation2 + $0x40] sm:$0xff] (!%p1405_p5)  ;;  %v1055_v43 = vld [vmem:[#allocation2 + $0xb8] sm:$0xff] (!%p1405_p5)  ;;  %1114 = vst [vmem:[%s1932_s1 + $0x30] sm:$0xff] (!%p1405_p5), %v1082_v34  ;;  %1115 = vst [vmem:[%s1932_s1 + $0x38] sm:$0xff] (!%p1405_p5), %v1083_v35 }
 0x199   : > { %1008 = vst [vmem:[#allocation2 + $0x60] sm:$0xff] %v976_v49  ;;  %1024 = vst [vmem:[#allocation2 + $0xe0] sm:$0xff] %v992_v50  ;;  %v978_v59 = vadd.f32 %v919_v57, %v545_v47  ;;  %v994_v60 = vadd.f32 %v959_v58, %v561_v48  ;;  %v921_v61 = vpop.f32.mrb[15].mxu0  ;;  %v961_v62 = vpop.f32.mrb[15].mxu1  ;;  %v1041_v15 = vld [vmem:[#allocation2 + $0x48] sm:$0xff] (!%p1405_p5)  ;;  %v1084_v39 = vadd.f32 (!%p1405_p5), %v1989_v17, %v1040_v14  ;;  %v1056_v44 = vld [vmem:[#allocation2 + $0xc0] sm:$0xff] (!%p1405_p5) }
 0x19a   : > { %1009 = vst [vmem:[#allocation2 + $0x68] sm:$0xff] %v977_v55  ;;  %1025 = vst [vmem:[#allocation2 + $0xe8] sm:$0xff] %v993_v56  ;;  %v979_v63 = vadd.f32 %v921_v61, %v546_v53  ;;  %v995_v0 = vadd.f32 %v961_v62, %v562_v54  ;;  %v1042_v16 = vld [vmem:[#allocation2 + $0x50] sm:$0xff] (!%p1405_p5)  ;;  %v1085_v40 = vadd.f32 (!%p1405_p5), %v1991_v18, %v1041_v15  ;;  %v1057_v45 = vld [vmem:[#allocation2 + $0xc8] sm:$0xff] (!%p1405_p5) }
 0x19b   : > { %1010 = vst [vmem:[#allocation2 + $0x70] sm:$0xff] %v978_v59  ;;  %1026 = vst [vmem:[#allocation2 + $0xf0] sm:$0xff] %v994_v60  ;;  %v1043_v19 = vld [vmem:[#allocation2 + $0x58] sm:$0xff] (!%p1405_p5)  ;;  %v1086_v41 = vadd.f32 (!%p1405_p5), %v1989_v17, %v1042_v16  ;;  %v1058_v50 = vld [vmem:[#allocation2 + $0xd0] sm:$0xff] (!%p1405_p5)  ;;  %v1092_v53 = vadd.f32 (!%p1405_p5), %v1989_v17, %v1048_v24  ;;  %v1093_v54 = vadd.f32 (!%p1405_p5), %v1991_v18, %v1049_v29 }
 0x19c   : > { %1011 = vst [vmem:[#allocation2 + $0x78] sm:$0xff] %v979_v63  ;;  %1027 = vst [vmem:[#allocation2 + $0xf8] sm:$0xff] %v995_v0  ;;  %v1087_v42 = vadd.f32 (!%p1405_p5), %v1991_v18, %v1043_v19  ;;  %v1059_v51 = vld [vmem:[#allocation2 + $0xd8] sm:$0xff] (!%p1405_p5)  ;;  %v1094_v55 = vadd.f32 (!%p1405_p5), %v1989_v17, %v1050_v30  ;;  %v1095_v56 = vadd.f32 (!%p1405_p5), %v1991_v18, %v1051_v31 }
 0x19d   : > { %1116 = vst [vmem:[%s1932_s1 + $0x40] sm:$0xff] %v1084_v39  ;;  %1117 = vst [vmem:[%s1932_s1 + $0x48] sm:$0xff] %v1085_v40  ;;  %v1096_v60 = vadd.f32 %v1989_v17, %v1052_v36  ;;  %v1097_v61 = vadd.f32 %v1991_v18, %v1053_v37  ;;  %v1098_v62 = vadd.f32 %v1989_v17, %v1054_v38 }
 0x19e   : > { %1118 = vst [vmem:[%s1932_s1 + $0x50] sm:$0xff] %v1086_v41  ;;  %1119 = vst [vmem:[%s1932_s1 + $0x58] sm:$0xff] %v1087_v42  ;;  %v1099_v63 = vadd.f32 %v1991_v18, %v1055_v43  ;;  %v1100_v0 = vadd.f32 %v1989_v17, %v1056_v44  ;;  %v1101_v1 = vadd.f32 %v1991_v18, %v1057_v45 }
 0x19f   : > { %1124 = vst [vmem:[%s1932_s1 + $0x80] sm:$0xff] %v1092_v53  ;;  %1125 = vst [vmem:[%s1932_s1 + $0x88] sm:$0xff] %v1093_v54  ;;  %v1102_v2 = vadd.f32 %v1989_v17, %v1058_v50  ;;  %v1103_v3 = vadd.f32 %v1991_v18, %v1059_v51 }
 0x1a0   : > { %v1044_v20 = vld [vmem:[#allocation2 + $0x60] sm:$0xff]  ;;  %1126 = vst [vmem:[%s1932_s1 + $0x90] sm:$0xff] %v1094_v55  ;;  %1127 = vst [vmem:[%s1932_s1 + $0x98] sm:$0xff] %v1095_v56 }
 0x1a1   : > { %v1045_v21 = vld [vmem:[#allocation2 + $0x68] sm:$0xff]  ;;  %v1088_v46 = vadd.f32 %v1989_v17, %v1044_v20  ;;  %v1060_v52 = vld [vmem:[#allocation2 + $0xe0] sm:$0xff]  ;;  %1128 = vst [vmem:[%s1932_s1 + $0xa0] sm:$0xff] %v1096_v60  ;;  %1129 = vst [vmem:[%s1932_s1 + $0xa8] sm:$0xff] %v1097_v61 }
 0x1a2   : > { %v1046_v22 = vld [vmem:[#allocation2 + $0x70] sm:$0xff]  ;;  %v1089_v47 = vadd.f32 %v1991_v18, %v1045_v21  ;;  %v1061_v57 = vld [vmem:[#allocation2 + $0xe8] sm:$0xff]  ;;  %1130 = vst [vmem:[%s1932_s1 + $0xb0] sm:$0xff] %v1098_v62  ;;  %1131 = vst [vmem:[%s1932_s1 + $0xb8] sm:$0xff] %v1099_v63  ;;  %v1104_v4 = vadd.f32 %v1989_v17, %v1060_v52 }
 0x1a3   : > { %v1047_v23 = vld [vmem:[#allocation2 + $0x78] sm:$0xff]  ;;  %v1090_v48 = vadd.f32 %v1989_v17, %v1046_v22  ;;  %v1062_v58 = vld [vmem:[#allocation2 + $0xf0] sm:$0xff]  ;;  %1120 = vst [vmem:[%s1932_s1 + $0x60] sm:$0xff] %v1088_v46  ;;  %v1105_v5 = vadd.f32 %v1991_v18, %v1061_v57  ;;  %1132 = vst [vmem:[%s1932_s1 + $0xc0] sm:$0xff] %v1100_v0 }
 0x1a4   : > { %v1091_v49 = vadd.f32 %v1991_v18, %v1047_v23  ;;  %v1063_v59 = vld [vmem:[#allocation2 + $0xf8] sm:$0xff]  ;;  %1121 = vst [vmem:[%s1932_s1 + $0x68] sm:$0xff] %v1089_v47  ;;  %v1106_v6 = vadd.f32 %v1989_v17, %v1062_v58  ;;  %1133 = vst [vmem:[%s1932_s1 + $0xc8] sm:$0xff] %v1101_v1 }
 0x1a5   : > { %1122 = vst [vmem:[%s1932_s1 + $0x70] sm:$0xff] %v1090_v48  ;;  %v1107_v7 = vadd.f32 %v1991_v18, %v1063_v59  ;;  %1134 = vst [vmem:[%s1932_s1 + $0xd0] sm:$0xff] %v1102_v2 }
 0x1a6   : > { %1123 = vst [vmem:[%s1932_s1 + $0x78] sm:$0xff] %v1091_v49  ;;  %1135 = vst [vmem:[%s1932_s1 + $0xd8] sm:$0xff] %v1103_v3 }
 0x1a7   : > { %1136 = vst [vmem:[%s1932_s1 + $0xe0] sm:$0xff] %v1104_v4  ;;  %1137 = vst [vmem:[%s1932_s1 + $0xe8] sm:$0xff] %v1105_v5 }
 0x1a8   : > { %1138 = vst [vmem:[%s1932_s1 + $0xf0] sm:$0xff] %v1106_v6  ;;  %1139 = vst [vmem:[%s1932_s1 + $0xf8] sm:$0xff] %v1107_v7 }
 0x1a9 PF: > { %1146 = sbr.rel (!%p1810_p12) target bundleno = 443 (0x1bb), region = 120  ;;  %s1413_s16 = sshll.u32 (%p1810_p12), %s1681_s19, 4  ;;  %v1165_v8 = vld [vmem:[%s1932_s1] sm:$0xff] (%p1810_p12)  ;;  %v1167_v9 = vld [vmem:[%s1932_s1 + $0x8] sm:$0xff] (%p1810_p12)  ;;  %v1169_v10 = vld [vmem:[%s1932_s1 + $0x10] sm:$0xff] (%p1810_p12) }
 0x1aa   : > { %s2066_s5 = scalar_lea.vmem (%p1810_p12), %s2165_s3, %s1413_s16  ;;  %v1171_v11 = vld [vmem:[%s1932_s1 + $0x18] sm:$0xff] (%p1810_p12)  ;;  %v1173_v12 = vld [vmem:[%s1932_s1 + $0x20] sm:$0xff] (%p1810_p12)  ;;  %v1175_v13 = vld [vmem:[%s1932_s1 + $0x28] sm:$0xff] (%p1810_p12) }
 0x1ab   : > { %1166 = vst [vmem:[%s2066_s5] sm:$0xff] (%p1810_p12), %v1165_v8  ;;  %1168 = vst [vmem:[%s2066_s5 + $0x8] sm:$0xff] (%p1810_p12), %v1167_v9  ;;  %v1177_v14 = vld [vmem:[%s1932_s1 + $0x30] sm:$0xff] (%p1810_p12)  ;;  %v1179_v15 = vld [vmem:[%s1932_s1 + $0x38] sm:$0xff] (%p1810_p12) }
 0x1ac   : > { %1170 = vst [vmem:[%s2066_s5 + $0x20] sm:$0xff] (%p1810_p12), %v1169_v10  ;;  %1172 = vst [vmem:[%s2066_s5 + $0x28] sm:$0xff] (%p1810_p12), %v1171_v11  ;;  %v1185_v18 = vld [vmem:[%s1932_s1 + $0x50] sm:$0xff] (%p1810_p12)  ;;  %v1187_v19 = vld [vmem:[%s1932_s1 + $0x58] sm:$0xff] (%p1810_p12) }
 0x1ad   : > { %1174 = vst [vmem:[%s2066_s5 + $0x40] sm:$0xff] (%p1810_p12), %v1173_v12  ;;  %1176 = vst [vmem:[%s2066_s5 + $0x48] sm:$0xff] (%p1810_p12), %v1175_v13  ;;  %v1189_v20 = vld [vmem:[%s1932_s1 + $0x60] sm:$0xff] (%p1810_p12)  ;;  %v1191_v21 = vld [vmem:[%s1932_s1 + $0x68] sm:$0xff] (%p1810_p12) }
 0x1ae   : > { %1178 = vst [vmem:[%s2066_s5 + $0x60] sm:$0xff] (%p1810_p12), %v1177_v14  ;;  %1180 = vst [vmem:[%s2066_s5 + $0x68] sm:$0xff] (%p1810_p12), %v1179_v15  ;;  %v1193_v22 = vld [vmem:[%s1932_s1 + $0x70] sm:$0xff] (%p1810_p12)  ;;  %v1195_v23 = vld [vmem:[%s1932_s1 + $0x78] sm:$0xff] (%p1810_p12) }
 0x1af   : > { %1186 = vst [vmem:[%s2066_s5 + $0xa0] sm:$0xff] (%p1810_p12), %v1185_v18  ;;  %1188 = vst [vmem:[%s2066_s5 + $0xa8] sm:$0xff] (%p1810_p12), %v1187_v19  ;;  %v1197_v24 = vld [vmem:[%s1932_s1 + $0x80] sm:$0xff] (%p1810_p12)  ;;  %v1199_v25 = vld [vmem:[%s1932_s1 + $0x88] sm:$0xff] (%p1810_p12) }
 0x1b0   : > { %v1181_v16 = vld [vmem:[%s1932_s1 + $0x40] sm:$0xff]  ;;  %v1183_v17 = vld [vmem:[%s1932_s1 + $0x48] sm:$0xff]  ;;  %1190 = vst [vmem:[%s2066_s5 + $0xc0] sm:$0xff] %v1189_v20  ;;  %1192 = vst [vmem:[%s2066_s5 + $0xc8] sm:$0xff] %v1191_v21 }
 0x1b1   : > { %1182 = vst [vmem:[%s2066_s5 + $0x80] sm:$0xff] %v1181_v16  ;;  %1184 = vst [vmem:[%s2066_s5 + $0x88] sm:$0xff] %v1183_v17  ;;  %v1201_v26 = vld [vmem:[%s1932_s1 + $0x90] sm:$0xff]  ;;  %v1203_v27 = vld [vmem:[%s1932_s1 + $0x98] sm:$0xff] }
 0x1b2   : > { %1194 = vst [vmem:[%s2066_s5 + $0xe0] sm:$0xff] %v1193_v22  ;;  %1196 = vst [vmem:[%s2066_s5 + $0xe8] sm:$0xff] %v1195_v23  ;;  %v1205_v28 = vld [vmem:[%s1932_s1 + $0xa0] sm:$0xff]  ;;  %v1207_v29 = vld [vmem:[%s1932_s1 + $0xa8] sm:$0xff] }
 0x1b3   : > { %1198 = vst [vmem:[%s2066_s5 + $0x100] sm:$0xff] %v1197_v24  ;;  %1200 = vst [vmem:[%s2066_s5 + $0x108] sm:$0xff] %v1199_v25  ;;  %v1209_v30 = vld [vmem:[%s1932_s1 + $0xb0] sm:$0xff]  ;;  %v1211_v31 = vld [vmem:[%s1932_s1 + $0xb8] sm:$0xff] }
 0x1b4   : > { %1202 = vst [vmem:[%s2066_s5 + $0x120] sm:$0xff] %v1201_v26  ;;  %1204 = vst [vmem:[%s2066_s5 + $0x128] sm:$0xff] %v1203_v27  ;;  %v1213_v32 = vld [vmem:[%s1932_s1 + $0xc0] sm:$0xff]  ;;  %v1215_v33 = vld [vmem:[%s1932_s1 + $0xc8] sm:$0xff] }
 0x1b5   : > { %1206 = vst [vmem:[%s2066_s5 + $0x140] sm:$0xff] %v1205_v28  ;;  %1208 = vst [vmem:[%s2066_s5 + $0x148] sm:$0xff] %v1207_v29  ;;  %v1217_v34 = vld [vmem:[%s1932_s1 + $0xd0] sm:$0xff]  ;;  %v1219_v35 = vld [vmem:[%s1932_s1 + $0xd8] sm:$0xff] }
 0x1b6   : > { %1210 = vst [vmem:[%s2066_s5 + $0x160] sm:$0xff] %v1209_v30  ;;  %1212 = vst [vmem:[%s2066_s5 + $0x168] sm:$0xff] %v1211_v31  ;;  %v1221_v36 = vld [vmem:[%s1932_s1 + $0xe0] sm:$0xff]  ;;  %v1223_v37 = vld [vmem:[%s1932_s1 + $0xe8] sm:$0xff] }
 0x1b7   : > { %1214 = vst [vmem:[%s2066_s5 + $0x180] sm:$0xff] %v1213_v32  ;;  %1216 = vst [vmem:[%s2066_s5 + $0x188] sm:$0xff] %v1215_v33  ;;  %v1225_v38 = vld [vmem:[%s1932_s1 + $0xf0] sm:$0xff]  ;;  %v1227_v39 = vld [vmem:[%s1932_s1 + $0xf8] sm:$0xff] }
 0x1b8   : > { %1218 = vst [vmem:[%s2066_s5 + $0x1a0] sm:$0xff] %v1217_v34  ;;  %1220 = vst [vmem:[%s2066_s5 + $0x1a8] sm:$0xff] %v1219_v35 }
 0x1b9   : > { %1222 = vst [vmem:[%s2066_s5 + $0x1c0] sm:$0xff] %v1221_v36  ;;  %1224 = vst [vmem:[%s2066_s5 + $0x1c8] sm:$0xff] %v1223_v37 }
 0x1ba   : > { %1226 = vst [vmem:[%s2066_s5 + $0x1e0] sm:$0xff] %v1225_v38  ;;  %1228 = vst [vmem:[%s2066_s5 + $0x1e8] sm:$0xff] %v1227_v39 }
 0x1bb PF: > { %s13_s22 = sadd.s32 1, %s1693_s22   ;;  %s2175_s10 = sld [smem:[#allocation6_spill]] }
 0x1bc   : > { %p10_p6 = scmp.ge.s32.totalorder %s13_s22, 38   ;;  %s2176_s12 = smov %s1657_s13 }
 0x1bd   : > { %s2177_s13 = smov %s1808_s9  ;;  %s2178_s14 = smov %s1665_s15 }
 0x1be   : > { %s2179_s15 = smov %s1805_s8  ;;  %s2180_s16 = smov %s1673_s17 }
 0x1bf   : > { %s2181_s17 = smov %s1791_s30  ;;  %s2182_s18 = smov %s1685_s20 }
 0x1c0   : > { %s2183_s19 = smov %s1689_s21  ;;  %s2184_s20 = smov %s2187_s24 }
 0x1c1   : > { %s2185_s21 = smov %s2175_s10  ;;  %12 = sbr.rel (!%p10_p6) target bundleno = 9 (0x9), region = 185 }

</bundles_post_ra>
